<compile_context>
chip_gen: v7x
topology: tpu7x:2x2x1
jax: 0.10.0
libtpu: 0.0.40
codegen_flags: <defaults>
</compile_context>

<pallas_src>
import functools

import jax
import jax.numpy as jnp
import numpy as np
from jax import lax
from jax.experimental import pallas as pl
from jax.experimental.pallas import tpu as pltpu

jax.config.update("jax_default_matmul_precision", "highest")

NEG_INF = -1e9
LN_EPS = 1e-10


# ------------------------- fused in-kernel helpers -------------------------

def _layernorm(z, g, b):
    # LayerNorm with biased std and (sigma + eps) denominator, matching the
    # PyTorch LayerNormalization class exactly.
    mu = jnp.mean(z, axis=-1, keepdims=True)
    var = jnp.mean((z - mu) ** 2, axis=-1, keepdims=True)
    return (z - mu) / (jnp.sqrt(var) + LN_EPS) * g + b


def _attention(q, k, v, mask_bool, num_heads, head_dim):
    # q/k/v: (K, H*D) with all heads packed along lanes; 1/sqrt(D) already folded
    # into q.  Small static per-head loop; the expensive projections were already
    # done as single lane-dense matmuls by the caller.
    outs = []
    for h in range(num_heads):
        lo = h * head_dim
        s = lax.dot_general(q[:, lo:lo + head_dim], k[:, lo:lo + head_dim],
                            (((1,), (1,)), ((), ())),
                            preferred_element_type=jnp.float32)        # (K, K)
        if mask_bool is not None:
            s = jnp.where(mask_bool, jnp.float32(NEG_INF), s)          # masked_fill
        s = s - jnp.max(s, axis=-1, keepdims=True)
        e = jnp.exp(s)
        w = e / jnp.sum(e, axis=-1, keepdims=True)
        outs.append(jnp.dot(w, v[:, lo:lo + head_dim],
                            preferred_element_type=jnp.float32))
    return jnp.concatenate(outs, axis=-1)                               # (K, H*D)


def _decoder_kernel(dec_ref, enc_ref, mask_ref,
                    s_wqkv_ref, s_bqkv_ref, s_wo_ref, s_bo_ref,
                    c_wq_ref, c_bq_ref, c_wkv_ref, c_bkv_ref, c_wo_ref, c_bo_ref,
                    ff_w1_ref, ff_b1_ref, ff_w2_ref, ff_b2_ref,
                    ln_g_ref, ln_b_ref, proj_w_ref, proj_b_ref,
                    out_ref, *, num_heads):
    # One grid step == one batch element; everything stays resident in VMEM/vregs.
    x = dec_ref[0]                       # (K, M)
    enc = enc_ref[0]                     # (K, M)
    mask_bool = mask_ref[0] > 0.5        # (K, K), 1.0 == masked
    M = x.shape[-1]
    head_dim = M // num_heads
    HD = num_heads * head_dim            # == M
    num_layers = s_wqkv_ref.shape[0]

    # Hoisted, loop-invariant cross-attention K/V for ALL layers: one lane-dense matmul.
    # ckv_all[:, l*2*HD : l*2*HD+HD]   = K of layer l
    # ckv_all[:, l*2*HD+HD : (l+1)*2*HD] = V of layer l
    ckv_all = (jnp.dot(enc, c_wkv_ref[...], preferred_element_type=jnp.float32)
               + c_bkv_ref[...])

    for l in range(num_layers):          # static unroll over layers
        g3 = ln_g_ref[l]                 # (3, M)
        b3 = ln_b_ref[l]

        # masked self-attention (dropout layers are identity at inference)
        qkv = (jnp.dot(x, s_wqkv_ref[l], preferred_element_type=jnp.float32)
               + s_bqkv_ref[l])                                   # (K, 3*HD)
        sa = _attention(qkv[:, :HD], qkv[:, HD:2 * HD], qkv[:, 2 * HD:],
                        mask_bool, num_heads, head_dim)
        sa = jnp.dot(sa, s_wo_ref[l], preferred_element_type=jnp.float32) + s_bo_ref[l]
        x1 = _layernorm(x + sa, g3[0:1], b3[0:1])

        # cross-attention: no mask at all (static branch); K/V sliced from the hoisted block
        cq = (jnp.dot(x1, c_wq_ref[l], preferred_element_type=jnp.float32)
              + c_bq_ref[l])
        ck = ckv_all[:, l * 2 * HD:l * 2 * HD + HD]
        cv = ckv_all[:, l * 2 * HD + HD:(l + 1) * 2 * HD]
        ca = _attention(cq, ck, cv, None, num_heads, head_dim)
        ca = jnp.dot(ca, c_wo_ref[l], preferred_element_type=jnp.float32) + c_bo_ref[l]
        x2 = _layernorm(x1 + ca, g3[1:2], b3[1:2])

        # feed-forward
        h = jnp.maximum(
            jnp.dot(x2, ff_w1_ref[l], preferred_element_type=jnp.float32) + ff_b1_ref[l],
            0.0)
        ff = jnp.dot(h, ff_w2_ref[l], preferred_element_type=jnp.float32) + ff_b2_ref[l]
        # NOTE: the reference module's third residual uses x1 (norm1 output), not x2.
        x = _layernorm(x1 + ff, g3[2:3], b3[2:3])

    # final projection to the (zero-padded, lane-dense) vocab dimension
    out_ref[0] = (jnp.dot(x, proj_w_ref[...], preferred_element_type=jnp.float32)
                  + proj_b_ref[...])


# ------------------------- pallas_call wrapper -------------------------

WEIGHT_NAMES = ["s_wqkv", "s_bqkv", "s_wo", "s_bo",
                "c_wq", "c_bq", "c_wkv", "c_bkv", "c_wo", "c_bo",
                "ff_w1", "ff_b1", "ff_w2", "ff_b2",
                "ln_g", "ln_b", "proj_w", "proj_b"]


@functools.partial(jax.jit, static_argnames=("num_heads", "vocab_len"))
def decoder_forward(packed, target_seq, enc_out, mask_f, *, num_heads, vocab_len):
    N, K, M = target_seq.shape
    Vpad = packed["proj_w"].shape[1]

    def full_spec(arr):
        nd = arr.ndim
        return pl.BlockSpec(arr.shape, lambda n, _nd=nd: (0,) * _nd)

    weights = [packed[n] for n in WEIGHT_NAMES]

    kernel = functools.partial(_decoder_kernel, num_heads=num_heads)
    out = pl.pallas_call(
        kernel,
        out_shape=jax.ShapeDtypeStruct((N, K, Vpad), jnp.float32),
        grid=(N,),
        in_specs=[pl.BlockSpec((1, K, M), lambda n: (n, 0, 0)),   # decoder input
                  pl.BlockSpec((1, K, M), lambda n: (n, 0, 0)),   # encoder output
                  pl.BlockSpec((1, K, K), lambda n: (n, 0, 0))]   # self-attn mask (1.0 == masked)
                 + [full_spec(w) for w in weights],               # weights resident, same block each step
        out_specs=pl.BlockSpec((1, K, Vpad), lambda n: (n, 0, 0)),
        compiler_params=pltpu.CompilerParams(dimension_semantics=("parallel",)),
    )(target_seq, enc_out, mask_f, *weights)
    return out[:, :, :vocab_len]


# ------------------------- parameter init (module semantics) -------------------------

def init_params(key, num_heads, emb_dim, ff_dim, num_layers, vocab_len):
    D = emb_dim // num_heads

    def uni(k, shape, c):
        return jax.random.uniform(k, shape, jnp.float32, -c, c)

    c_head = float(np.sqrt(6.0 / (emb_dim + D)))
    c_out = float(np.sqrt(6.0 / (emb_dim + D * num_heads)))
    c_ff = float(np.sqrt(6.0 / (emb_dim + ff_dim)))
    c_proj = float(np.sqrt(6.0 / (emb_dim + vocab_len)))

    def mha_params(k):
        ks = jax.random.split(k, 8)
        return {
            "wq": uni(ks[0], (num_heads, emb_dim, D), c_head),
            "bq": uni(ks[1], (num_heads, 1, D), 0.05),
            "wk": uni(ks[2], (num_heads, emb_dim, D), c_head),
            "bk": uni(ks[3], (num_heads, 1, D), 0.05),
            "wv": uni(ks[4], (num_heads, emb_dim, D), c_head),
            "bv": uni(ks[5], (num_heads, 1, D), 0.05),
            "wo": uni(ks[6], (num_heads * D, emb_dim), c_out),
            "bo": uni(ks[7], (1, emb_dim), 0.05),
        }

    layers = []
    keys = jax.random.split(key, num_layers + 1)
    for l in range(num_layers):
        ks = jax.random.split(keys[l], 6)
        layers.append({
            "self": mha_params(ks[0]),
            "cross": mha_params(ks[1]),
            "ff_w1": uni(ks[2], (emb_dim, ff_dim), c_ff),
            "ff_b1": uni(ks[3], (1, ff_dim), 0.05),
            "ff_w2": uni(ks[4], (ff_dim, emb_dim), c_ff),
            "ff_b2": uni(ks[5], (1, emb_dim), 0.05),
            "norm1_g": jnp.ones((1, emb_dim), jnp.float32),
            "norm1_b": jnp.zeros((1, emb_dim), jnp.float32),
            "norm2_g": jnp.ones((1, emb_dim), jnp.float32),
            "norm2_b": jnp.zeros((1, emb_dim), jnp.float32),
            "norm3_g": jnp.ones((1, emb_dim), jnp.float32),
            "norm3_b": jnp.zeros((1, emb_dim), jnp.float32),
        })
    pk = jax.random.split(keys[-1], 2)
    return {
        "layers": layers,
        "proj_w": uni(pk[0], (emb_dim, vocab_len), c_proj),
        "proj_b": uni(pk[1], (1, vocab_len), 0.05),
    }


# ------------------------- pack params into kernel layout -------------------------

def pack_params(params, num_heads, emb_dim):
    D = emb_dim // num_heads
    HD = num_heads * D
    inv = 1.0 / float(np.sqrt(D))      # fold softmax 1/sqrt(D) into Wq / bq

    def pack_heads(w, b):
        # (H, M, D) -> (M, H*D) so the head concat is free along lanes.
        wm = jnp.transpose(w, (1, 0, 2)).reshape(emb_dim, HD)
        bm = jnp.transpose(b, (1, 0, 2)).reshape(1, HD)
        return wm, bm

    names = ["s_wqkv", "s_bqkv", "s_wo", "s_bo",
             "c_wq", "c_bq", "c_wo", "c_bo",
             "ff_w1", "ff_b1", "ff_w2", "ff_b2", "ln_g", "ln_b"]
    acc = {k: [] for k in names}
    ckv_w_cols, ckv_b_cols = [], []
    for lp in params["layers"]:
        sp, cp = lp["self"], lp["cross"]
        swq, sbq = pack_heads(sp["wq"], sp["bq"])
        swk, sbk = pack_heads(sp["wk"], sp["bk"])
        swv, sbv = pack_heads(sp["wv"], sp["bv"])
        acc["s_wqkv"].append(jnp.concatenate([swq * inv, swk, swv], axis=1))
        acc["s_bqkv"].append(jnp.concatenate([sbq * inv, sbk, sbv], axis=1))
        acc["s_wo"].append(sp["wo"]); acc["s_bo"].append(sp["bo"])

        cwq, cbq = pack_heads(cp["wq"], cp["bq"])
        cwk, cbk = pack_heads(cp["wk"], cp["bk"])
        cwv, cbv = pack_heads(cp["wv"], cp["bv"])
        acc["c_wq"].append(cwq * inv); acc["c_bq"].append(cbq * inv)
        acc["c_wo"].append(cp["wo"]); acc["c_bo"].append(cp["bo"])
        ckv_w_cols += [cwk, cwv]
        ckv_b_cols += [cbk, cbv]

        acc["ff_w1"].append(lp["ff_w1"]); acc["ff_b1"].append(lp["ff_b1"])
        acc["ff_w2"].append(lp["ff_w2"]); acc["ff_b2"].append(lp["ff_b2"])
        acc["ln_g"].append(jnp.stack([lp["norm1_g"][0], lp["norm2_g"][0], lp["norm3_g"][0]]))
        acc["ln_b"].append(jnp.stack([lp["norm1_b"][0], lp["norm2_b"][0], lp["norm3_b"][0]]))
    packed = {k: jnp.stack(v) for k, v in acc.items()}

    # All layers' cross-attention K/V projections in one lane-dense matrix (M, L*2*HD):
    # they are loop-invariant in the kernel (encoder output never changes across layers).
    packed["c_wkv"] = jnp.concatenate(ckv_w_cols, axis=1)
    packed["c_bkv"] = jnp.concatenate(ckv_b_cols, axis=1)

    # pad vocab projection to a lane-dense multiple of 128 (sliced back outside kernel)
    V = params["proj_w"].shape[1]
    Vpad = ((V + 127) // 128) * 128
    packed["proj_w"] = jnp.zeros((emb_dim, Vpad), jnp.float32).at[:, :V].set(params["proj_w"])
    packed["proj_b"] = jnp.zeros((1, Vpad), jnp.float32).at[:, :V].set(params["proj_b"])
    return packed


# ------------------------- pure-JAX reference (module semantics) -------------------------

def _ref_mha(q_src, kv_src, mask_f, p):
    H, M, D = p["wq"].shape
    outs = []
    for h in range(H):
        q = q_src @ p["wq"][h] + p["bq"][h, 0]
        k = kv_src @ p["wk"][h] + p["bk"][h, 0]
        v = kv_src @ p["wv"][h] + p["bv"][h, 0]
        qk = jnp.einsum("nkd,njd->nkj", q, k)
        if mask_f is not None:
            qk = jnp.where(mask_f > 0.5, NEG_INF, qk)
        w = jax.nn.softmax(qk / jnp.sqrt(jnp.float32(D)), axis=-1)
        outs.append(jnp.einsum("nkj,njd->nkd", w, v))
    cat = jnp.concatenate(outs, axis=-1)
    return cat @ p["wo"] + p["bo"][0]


def _ref_ln(z, g, b):
    mu = jnp.mean(z, axis=-1, keepdims=True)
    sigma = jnp.sqrt(jnp.mean((z - mu) ** 2, axis=-1, keepdims=True))
    return (z - mu) / (sigma + LN_EPS) * g[0] + b[0]


def ref_decoder(params, target_seq, enc_out, mask_f):
    out = target_seq
    for lp in params["layers"]:
        sa = _ref_mha(out, out, mask_f, lp["self"])
        x = _ref_ln(out + sa, lp["norm1_g"], lp["norm1_b"])
        ca = _ref_mha(x, enc_out, None, lp["cross"])
        y = _ref_ln(x + ca, lp["norm2_g"], lp["norm2_b"])
        h = jnp.maximum(y @ lp["ff_w1"] + lp["ff_b1"][0], 0.0)
        ff = h @ lp["ff_w2"] + lp["ff_b2"][0]
        out = _ref_ln(x + ff, lp["norm3_g"], lp["norm3_b"])
    return out @ params["proj_w"] + params["proj_b"][0]


# ------------------------- main -------------------------

if __name__ == "__main__":
    N, K, M = 2, 8, 32                      # batch, seq_len, emb_dim
    num_heads, ff_dim, num_layers, vocab_len = 4, 64, 2, 50

    key = jax.random.PRNGKey(0)
    kp, kt, ke = jax.random.split(key, 3)
    params = init_params(kp, num_heads, M, ff_dim, num_layers, vocab_len)
    target_seq = jax.random.normal(kt, (N, K, M), jnp.float32)
    enc_out = jax.random.normal(ke, (N, K, M), jnp.float32)

    # causal "subsequent" mask: 1.0 == masked (upper triangle, future positions)
    causal = jnp.triu(jnp.ones((K, K), jnp.float32), k=1)
    mask_f = jnp.broadcast_to(causal, (N, K, K))

    packed = pack_params(params, num_heads, M)
    out = decoder_forward(packed, target_seq, enc_out, mask_f,
                          num_heads=num_heads, vocab_len=vocab_len)
    out = jax.block_until_ready(out)

    ref = ref_decoder(params, target_seq, enc_out, mask_f)
    assert out.shape == (N, K, vocab_len)
    np.testing.assert_allclose(np.asarray(out), np.asarray(ref), atol=2e-3, rtol=2e-3)
    print("KERNEL_OK")
</pallas_src>

<mosaic_0001>
module attributes {stable_mosaic.version = 11 : i64} {
  func.func @_decoder_kernel(%arg0: i32, %arg1: memref<1x8x32xf32, #tpu.memory_space<vmem>>, %arg2: memref<1x8x32xf32, #tpu.memory_space<vmem>>, %arg3: memref<1x8x8xf32, #tpu.memory_space<vmem>>, %arg4: memref<2x32x96xf32, #tpu.memory_space<vmem>>, %arg5: memref<2x1x96xf32, #tpu.memory_space<vmem>>, %arg6: memref<2x32x32xf32, #tpu.memory_space<vmem>>, %arg7: memref<2x1x32xf32, #tpu.memory_space<vmem>>, %arg8: memref<2x32x32xf32, #tpu.memory_space<vmem>>, %arg9: memref<2x1x32xf32, #tpu.memory_space<vmem>>, %arg10: memref<32x128xf32, #tpu.memory_space<vmem>>, %arg11: memref<1x128xf32, #tpu.memory_space<vmem>>, %arg12: memref<2x32x32xf32, #tpu.memory_space<vmem>>, %arg13: memref<2x1x32xf32, #tpu.memory_space<vmem>>, %arg14: memref<2x32x64xf32, #tpu.memory_space<vmem>>, %arg15: memref<2x1x64xf32, #tpu.memory_space<vmem>>, %arg16: memref<2x64x32xf32, #tpu.memory_space<vmem>>, %arg17: memref<2x1x32xf32, #tpu.memory_space<vmem>>, %arg18: memref<2x3x32xf32, #tpu.memory_space<vmem>>, %arg19: memref<2x3x32xf32, #tpu.memory_space<vmem>>, %arg20: memref<32x128xf32, #tpu.memory_space<vmem>>, %arg21: memref<1x128xf32, #tpu.memory_space<vmem>>, %arg22: memref<1x8x128xf32, #tpu.memory_space<vmem>>) attributes {dimension_semantics = [#tpu.dimension_semantics<parallel>], iteration_bounds = array<i64: 2>, scalar_prefetch = 0 : i64, scratch_operands = 0 : i64, tpu.core_type = #tpu.core_type<tc>, window_params = [{transform_indices = @transform_0, window_bounds = array<i64: 1, 8, 32>}, {transform_indices = @transform_1, window_bounds = array<i64: 1, 8, 32>}, {transform_indices = @transform_2, window_bounds = array<i64: 1, 8, 8>}, {pipeline_mode = #tpu.pipeline_mode<synchronous>, transform_indices = @transform_3, window_bounds = array<i64: 2, 32, 96>}, {pipeline_mode = #tpu.pipeline_mode<synchronous>, transform_indices = @transform_4, window_bounds = array<i64: 2, 1, 96>}, {pipeline_mode = #tpu.pipeline_mode<synchronous>, transform_indices = @transform_5, window_bounds = array<i64: 2, 32, 32>}, {pipeline_mode = #tpu.pipeline_mode<synchronous>, transform_indices = @transform_6, window_bounds = array<i64: 2, 1, 32>}, {pipeline_mode = #tpu.pipeline_mode<synchronous>, transform_indices = @transform_7, window_bounds = array<i64: 2, 32, 32>}, {pipeline_mode = #tpu.pipeline_mode<synchronous>, transform_indices = @transform_8, window_bounds = array<i64: 2, 1, 32>}, {pipeline_mode = #tpu.pipeline_mode<synchronous>, transform_indices = @transform_9, window_bounds = array<i64: 32, 128>}, {pipeline_mode = #tpu.pipeline_mode<synchronous>, transform_indices = @transform_10, window_bounds = array<i64: 1, 128>}, {pipeline_mode = #tpu.pipeline_mode<synchronous>, transform_indices = @transform_11, window_bounds = array<i64: 2, 32, 32>}, {pipeline_mode = #tpu.pipeline_mode<synchronous>, transform_indices = @transform_12, window_bounds = array<i64: 2, 1, 32>}, {pipeline_mode = #tpu.pipeline_mode<synchronous>, transform_indices = @transform_13, window_bounds = array<i64: 2, 32, 64>}, {pipeline_mode = #tpu.pipeline_mode<synchronous>, transform_indices = @transform_14, window_bounds = array<i64: 2, 1, 64>}, {pipeline_mode = #tpu.pipeline_mode<synchronous>, transform_indices = @transform_15, window_bounds = array<i64: 2, 64, 32>}, {pipeline_mode = #tpu.pipeline_mode<synchronous>, transform_indices = @transform_16, window_bounds = array<i64: 2, 1, 32>}, {pipeline_mode = #tpu.pipeline_mode<synchronous>, transform_indices = @transform_17, window_bounds = array<i64: 2, 3, 32>}, {pipeline_mode = #tpu.pipeline_mode<synchronous>, transform_indices = @transform_18, window_bounds = array<i64: 2, 3, 32>}, {pipeline_mode = #tpu.pipeline_mode<synchronous>, transform_indices = @transform_19, window_bounds = array<i64: 32, 128>}, {pipeline_mode = #tpu.pipeline_mode<synchronous>, transform_indices = @transform_20, window_bounds = array<i64: 1, 128>}, {transform_indices = @transform_21, window_bounds = array<i64: 1, 8, 128>}]} {
    %c0 = arith.constant 0 : index
    %c0_0 = arith.constant 0 : index
    %c0_1 = arith.constant 0 : index
    %0 = vector.load %arg1[%c0, %c0_0, %c0_1] : memref<1x8x32xf32, #tpu.memory_space<vmem>>, vector<1x8x32xf32>
    %1 = vector.shape_cast %0 : vector<1x8x32xf32> to vector<8x32xf32>
    %c0_2 = arith.constant 0 : index
    %c0_3 = arith.constant 0 : index
    %c0_4 = arith.constant 0 : index
    %2 = vector.load %arg2[%c0_2, %c0_3, %c0_4] : memref<1x8x32xf32, #tpu.memory_space<vmem>>, vector<1x8x32xf32>
    %3 = vector.shape_cast %2 : vector<1x8x32xf32> to vector<8x32xf32>
    %c0_5 = arith.constant 0 : index
    %c0_6 = arith.constant 0 : index
    %c0_7 = arith.constant 0 : index
    %4 = vector.load %arg3[%c0_5, %c0_6, %c0_7] : memref<1x8x8xf32, #tpu.memory_space<vmem>>, vector<1x8x8xf32>
    %5 = vector.shape_cast %4 : vector<1x8x8xf32> to vector<8x8xf32>
    %cst = arith.constant 5.000000e-01 : f32
    %6 = vector.broadcast %cst : f32 to vector<8x8xf32>
    %7 = arith.cmpf ogt, %5, %6 : vector<8x8xf32>
    %c0_8 = arith.constant 0 : index
    %c0_9 = arith.constant 0 : index
    %8 = vector.load %arg10[%c0_8, %c0_9] : memref<32x128xf32, #tpu.memory_space<vmem>>, vector<32x128xf32>
    %cst_10 = arith.constant dense<0.000000e+00> : vector<8x128xf32>
    %9 = tpu.matmul %3, %8, %cst_10 {dimension_numbers = #tpu.dot_dimension_numbers<[1], [0], [0], [1], [0, 0, 1, 1], [], []>, precision = #tpu.contract_precision<fp32>} : vector<8x32xf32>, vector<32x128xf32>, vector<8x128xf32> -> vector<8x128xf32>
    %c0_11 = arith.constant 0 : index
    %c0_12 = arith.constant 0 : index
    %10 = vector.load %arg11[%c0_11, %c0_12] : memref<1x128xf32, #tpu.memory_space<vmem>>, vector<1x128xf32>
    %11 = vector.broadcast %10 : vector<1x128xf32> to vector<8x128xf32>
    %12 = arith.addf %9, %11 : vector<8x128xf32>
    %c0_13 = arith.constant 0 : index
    %c0_14 = arith.constant 0 : index
    %c0_15 = arith.constant 0 : index
    %13 = vector.load %arg18[%c0_13, %c0_14, %c0_15] : memref<2x3x32xf32, #tpu.memory_space<vmem>>, vector<1x3x32xf32>
    %14 = vector.shape_cast %13 : vector<1x3x32xf32> to vector<3x32xf32>
    %c0_16 = arith.constant 0 : index
    %c0_17 = arith.constant 0 : index
    %c0_18 = arith.constant 0 : index
    %15 = vector.load %arg19[%c0_16, %c0_17, %c0_18] : memref<2x3x32xf32, #tpu.memory_space<vmem>>, vector<1x3x32xf32>
    %16 = vector.shape_cast %15 : vector<1x3x32xf32> to vector<3x32xf32>
    %c0_19 = arith.constant 0 : index
    %c0_20 = arith.constant 0 : index
    %c0_21 = arith.constant 0 : index
    %17 = vector.load %arg4[%c0_19, %c0_20, %c0_21] : memref<2x32x96xf32, #tpu.memory_space<vmem>>, vector<1x32x96xf32>
    %18 = vector.shape_cast %17 : vector<1x32x96xf32> to vector<32x96xf32>
    %cst_22 = arith.constant dense<0.000000e+00> : vector<8x96xf32>
    %19 = tpu.matmul %1, %18, %cst_22 {dimension_numbers = #tpu.dot_dimension_numbers<[1], [0], [0], [1], [0, 0, 1, 1], [], []>, precision = #tpu.contract_precision<fp32>} : vector<8x32xf32>, vector<32x96xf32>, vector<8x96xf32> -> vector<8x96xf32>
    %c0_23 = arith.constant 0 : index
    %c0_24 = arith.constant 0 : index
    %c0_25 = arith.constant 0 : index
    %20 = vector.load %arg5[%c0_23, %c0_24, %c0_25] : memref<2x1x96xf32, #tpu.memory_space<vmem>>, vector<1x1x96xf32>
    %21 = vector.shape_cast %20 : vector<1x1x96xf32> to vector<1x96xf32>
    %22 = vector.broadcast %21 : vector<1x96xf32> to vector<8x96xf32>
    %23 = arith.addf %19, %22 : vector<8x96xf32>
    %24 = vector.extract_strided_slice %23 {offsets = [0, 0], sizes = [8, 32], strides = [1, 1]} : vector<8x96xf32> to vector<8x32xf32>
    %25 = vector.extract_strided_slice %23 {offsets = [0, 32], sizes = [8, 32], strides = [1, 1]} : vector<8x96xf32> to vector<8x32xf32>
    %26 = vector.extract_strided_slice %23 {offsets = [0, 64], sizes = [8, 32], strides = [1, 1]} : vector<8x96xf32> to vector<8x32xf32>
    %27 = vector.extract_strided_slice %24 {offsets = [0, 0], sizes = [8, 8], strides = [1, 1]} : vector<8x32xf32> to vector<8x8xf32>
    %28 = vector.extract_strided_slice %25 {offsets = [0, 0], sizes = [8, 8], strides = [1, 1]} : vector<8x32xf32> to vector<8x8xf32>
    %cst_26 = arith.constant dense<0.000000e+00> : vector<8x8xf32>
    %29 = tpu.matmul %27, %28, %cst_26 {dimension_numbers = #tpu.dot_dimension_numbers<[1], [1], [0], [0], [0, 0, 1, 0], [], []>, precision = #tpu.contract_precision<fp32>} : vector<8x8xf32>, vector<8x8xf32>, vector<8x8xf32> -> vector<8x8xf32>
    %cst_27 = arith.constant -1.000000e+09 : f32
    %30 = vector.broadcast %cst_27 : f32 to vector<8x8xf32>
    %31 = arith.select %7, %30, %29 : vector<8x8xi1>, vector<8x8xf32>
    %cst_28 = arith.constant dense<0xFF800000> : vector<8xf32>
    %32 = vector.multi_reduction <maximumf>, %31, %cst_28 [1] : vector<8x8xf32> to vector<8xf32>
    %33 = vector.shape_cast %32 : vector<8xf32> to vector<8x1xf32>
    %34 = vector.broadcast %33 : vector<8x1xf32> to vector<8x8xf32>
    %35 = arith.subf %31, %34 : vector<8x8xf32>
    %36 = math.exp %35 : vector<8x8xf32>
    %cst_29 = arith.constant dense<0.000000e+00> : vector<8xf32>
    %37 = vector.multi_reduction <add>, %36, %cst_29 [1] : vector<8x8xf32> to vector<8xf32>
    %38 = vector.shape_cast %37 : vector<8xf32> to vector<8x1xf32>
    %39 = vector.broadcast %38 : vector<8x1xf32> to vector<8x8xf32>
    %40 = arith.divf %36, %39 : vector<8x8xf32>
    %41 = vector.extract_strided_slice %26 {offsets = [0, 0], sizes = [8, 8], strides = [1, 1]} : vector<8x32xf32> to vector<8x8xf32>
    %cst_30 = arith.constant dense<0.000000e+00> : vector<8x8xf32>
    %42 = tpu.matmul %40, %41, %cst_30 {dimension_numbers = #tpu.dot_dimension_numbers<[1], [0], [0], [1], [0, 0, 1, 1], [], []>, precision = #tpu.contract_precision<fp32>} : vector<8x8xf32>, vector<8x8xf32>, vector<8x8xf32> -> vector<8x8xf32>
    %43 = vector.extract_strided_slice %24 {offsets = [0, 8], sizes = [8, 8], strides = [1, 1]} : vector<8x32xf32> to vector<8x8xf32>
    %44 = vector.extract_strided_slice %25 {offsets = [0, 8], sizes = [8, 8], strides = [1, 1]} : vector<8x32xf32> to vector<8x8xf32>
    %cst_31 = arith.constant dense<0.000000e+00> : vector<8x8xf32>
    %45 = tpu.matmul %43, %44, %cst_31 {dimension_numbers = #tpu.dot_dimension_numbers<[1], [1], [0], [0], [0, 0, 1, 0], [], []>, precision = #tpu.contract_precision<fp32>} : vector<8x8xf32>, vector<8x8xf32>, vector<8x8xf32> -> vector<8x8xf32>
    %cst_32 = arith.constant -1.000000e+09 : f32
    %46 = vector.broadcast %cst_32 : f32 to vector<8x8xf32>
    %47 = arith.select %7, %46, %45 : vector<8x8xi1>, vector<8x8xf32>
    %cst_33 = arith.constant dense<0xFF800000> : vector<8xf32>
    %48 = vector.multi_reduction <maximumf>, %47, %cst_33 [1] : vector<8x8xf32> to vector<8xf32>
    %49 = vector.shape_cast %48 : vector<8xf32> to vector<8x1xf32>
    %50 = vector.broadcast %49 : vector<8x1xf32> to vector<8x8xf32>
    %51 = arith.subf %47, %50 : vector<8x8xf32>
    %52 = math.exp %51 : vector<8x8xf32>
    %cst_34 = arith.constant dense<0.000000e+00> : vector<8xf32>
    %53 = vector.multi_reduction <add>, %52, %cst_34 [1] : vector<8x8xf32> to vector<8xf32>
    %54 = vector.shape_cast %53 : vector<8xf32> to vector<8x1xf32>
    %55 = vector.broadcast %54 : vector<8x1xf32> to vector<8x8xf32>
    %56 = arith.divf %52, %55 : vector<8x8xf32>
    %57 = vector.extract_strided_slice %26 {offsets = [0, 8], sizes = [8, 8], strides = [1, 1]} : vector<8x32xf32> to vector<8x8xf32>
    %cst_35 = arith.constant dense<0.000000e+00> : vector<8x8xf32>
    %58 = tpu.matmul %56, %57, %cst_35 {dimension_numbers = #tpu.dot_dimension_numbers<[1], [0], [0], [1], [0, 0, 1, 1], [], []>, precision = #tpu.contract_precision<fp32>} : vector<8x8xf32>, vector<8x8xf32>, vector<8x8xf32> -> vector<8x8xf32>
    %59 = vector.extract_strided_slice %24 {offsets = [0, 16], sizes = [8, 8], strides = [1, 1]} : vector<8x32xf32> to vector<8x8xf32>
    %60 = vector.extract_strided_slice %25 {offsets = [0, 16], sizes = [8, 8], strides = [1, 1]} : vector<8x32xf32> to vector<8x8xf32>
    %cst_36 = arith.constant dense<0.000000e+00> : vector<8x8xf32>
    %61 = tpu.matmul %59, %60, %cst_36 {dimension_numbers = #tpu.dot_dimension_numbers<[1], [1], [0], [0], [0, 0, 1, 0], [], []>, precision = #tpu.contract_precision<fp32>} : vector<8x8xf32>, vector<8x8xf32>, vector<8x8xf32> -> vector<8x8xf32>
    %cst_37 = arith.constant -1.000000e+09 : f32
    %62 = vector.broadcast %cst_37 : f32 to vector<8x8xf32>
    %63 = arith.select %7, %62, %61 : vector<8x8xi1>, vector<8x8xf32>
    %cst_38 = arith.constant dense<0xFF800000> : vector<8xf32>
    %64 = vector.multi_reduction <maximumf>, %63, %cst_38 [1] : vector<8x8xf32> to vector<8xf32>
    %65 = vector.shape_cast %64 : vector<8xf32> to vector<8x1xf32>
    %66 = vector.broadcast %65 : vector<8x1xf32> to vector<8x8xf32>
    %67 = arith.subf %63, %66 : vector<8x8xf32>
    %68 = math.exp %67 : vector<8x8xf32>
    %cst_39 = arith.constant dense<0.000000e+00> : vector<8xf32>
    %69 = vector.multi_reduction <add>, %68, %cst_39 [1] : vector<8x8xf32> to vector<8xf32>
    %70 = vector.shape_cast %69 : vector<8xf32> to vector<8x1xf32>
    %71 = vector.broadcast %70 : vector<8x1xf32> to vector<8x8xf32>
    %72 = arith.divf %68, %71 : vector<8x8xf32>
    %73 = vector.extract_strided_slice %26 {offsets = [0, 16], sizes = [8, 8], strides = [1, 1]} : vector<8x32xf32> to vector<8x8xf32>
    %cst_40 = arith.constant dense<0.000000e+00> : vector<8x8xf32>
    %74 = tpu.matmul %72, %73, %cst_40 {dimension_numbers = #tpu.dot_dimension_numbers<[1], [0], [0], [1], [0, 0, 1, 1], [], []>, precision = #tpu.contract_precision<fp32>} : vector<8x8xf32>, vector<8x8xf32>, vector<8x8xf32> -> vector<8x8xf32>
    %75 = vector.extract_strided_slice %24 {offsets = [0, 24], sizes = [8, 8], strides = [1, 1]} : vector<8x32xf32> to vector<8x8xf32>
    %76 = vector.extract_strided_slice %25 {offsets = [0, 24], sizes = [8, 8], strides = [1, 1]} : vector<8x32xf32> to vector<8x8xf32>
    %cst_41 = arith.constant dense<0.000000e+00> : vector<8x8xf32>
    %77 = tpu.matmul %75, %76, %cst_41 {dimension_numbers = #tpu.dot_dimension_numbers<[1], [1], [0], [0], [0, 0, 1, 0], [], []>, precision = #tpu.contract_precision<fp32>} : vector<8x8xf32>, vector<8x8xf32>, vector<8x8xf32> -> vector<8x8xf32>
    %cst_42 = arith.constant -1.000000e+09 : f32
    %78 = vector.broadcast %cst_42 : f32 to vector<8x8xf32>
    %79 = arith.select %7, %78, %77 : vector<8x8xi1>, vector<8x8xf32>
    %cst_43 = arith.constant dense<0xFF800000> : vector<8xf32>
    %80 = vector.multi_reduction <maximumf>, %79, %cst_43 [1] : vector<8x8xf32> to vector<8xf32>
    %81 = vector.shape_cast %80 : vector<8xf32> to vector<8x1xf32>
    %82 = vector.broadcast %81 : vector<8x1xf32> to vector<8x8xf32>
    %83 = arith.subf %79, %82 : vector<8x8xf32>
    %84 = math.exp %83 : vector<8x8xf32>
    %cst_44 = arith.constant dense<0.000000e+00> : vector<8xf32>
    %85 = vector.multi_reduction <add>, %84, %cst_44 [1] : vector<8x8xf32> to vector<8xf32>
    %86 = vector.shape_cast %85 : vector<8xf32> to vector<8x1xf32>
    %87 = vector.broadcast %86 : vector<8x1xf32> to vector<8x8xf32>
    %88 = arith.divf %84, %87 : vector<8x8xf32>
    %89 = vector.extract_strided_slice %26 {offsets = [0, 24], sizes = [8, 8], strides = [1, 1]} : vector<8x32xf32> to vector<8x8xf32>
    %cst_45 = arith.constant dense<0.000000e+00> : vector<8x8xf32>
    %90 = tpu.matmul %88, %89, %cst_45 {dimension_numbers = #tpu.dot_dimension_numbers<[1], [0], [0], [1], [0, 0, 1, 1], [], []>, precision = #tpu.contract_precision<fp32>} : vector<8x8xf32>, vector<8x8xf32>, vector<8x8xf32> -> vector<8x8xf32>
    %91 = tpu.concatenate %42, %58, %74, %90 in 1 : vector<8x8xf32>, vector<8x8xf32>, vector<8x8xf32>, vector<8x8xf32> -> vector<8x32xf32>
    %c0_46 = arith.constant 0 : index
    %c0_47 = arith.constant 0 : index
    %c0_48 = arith.constant 0 : index
    %92 = vector.load %arg6[%c0_46, %c0_47, %c0_48] : memref<2x32x32xf32, #tpu.memory_space<vmem>>, vector<1x32x32xf32>
    %93 = vector.shape_cast %92 : vector<1x32x32xf32> to vector<32x32xf32>
    %cst_49 = arith.constant dense<0.000000e+00> : vector<8x32xf32>
    %94 = tpu.matmul %91, %93, %cst_49 {dimension_numbers = #tpu.dot_dimension_numbers<[1], [0], [0], [1], [0, 0, 1, 1], [], []>, precision = #tpu.contract_precision<fp32>} : vector<8x32xf32>, vector<32x32xf32>, vector<8x32xf32> -> vector<8x32xf32>
    %c0_50 = arith.constant 0 : index
    %c0_51 = arith.constant 0 : index
    %c0_52 = arith.constant 0 : index
    %95 = vector.load %arg7[%c0_50, %c0_51, %c0_52] : memref<2x1x32xf32, #tpu.memory_space<vmem>>, vector<1x1x32xf32>
    %96 = vector.shape_cast %95 : vector<1x1x32xf32> to vector<1x32xf32>
    %97 = vector.broadcast %96 : vector<1x32xf32> to vector<8x32xf32>
    %98 = arith.addf %94, %97 : vector<8x32xf32>
    %99 = arith.addf %1, %98 : vector<8x32xf32>
    %100 = vector.extract_strided_slice %14 {offsets = [0, 0], sizes = [1, 32], strides = [1, 1]} : vector<3x32xf32> to vector<1x32xf32>
    %101 = vector.extract_strided_slice %16 {offsets = [0, 0], sizes = [1, 32], strides = [1, 1]} : vector<3x32xf32> to vector<1x32xf32>
    %cst_53 = arith.constant dense<0.000000e+00> : vector<8xf32>
    %102 = vector.multi_reduction <add>, %99, %cst_53 [1] : vector<8x32xf32> to vector<8xf32>
    %103 = vector.shape_cast %102 : vector<8xf32> to vector<8x1xf32>
    %cst_54 = arith.constant 3.200000e+01 : f32
    %104 = vector.broadcast %cst_54 : f32 to vector<8x1xf32>
    %105 = arith.divf %103, %104 : vector<8x1xf32>
    %106 = vector.broadcast %105 : vector<8x1xf32> to vector<8x32xf32>
    %107 = arith.subf %99, %106 : vector<8x32xf32>
    %108 = arith.mulf %107, %107 : vector<8x32xf32>
    %cst_55 = arith.constant dense<0.000000e+00> : vector<8xf32>
    %109 = vector.multi_reduction <add>, %108, %cst_55 [1] : vector<8x32xf32> to vector<8xf32>
    %110 = vector.shape_cast %109 : vector<8xf32> to vector<8x1xf32>
    %cst_56 = arith.constant 3.200000e+01 : f32
    %111 = vector.broadcast %cst_56 : f32 to vector<8x1xf32>
    %112 = arith.divf %110, %111 : vector<8x1xf32>
    %113 = vector.broadcast %105 : vector<8x1xf32> to vector<8x32xf32>
    %114 = arith.subf %99, %113 : vector<8x32xf32>
    %115 = math.sqrt %112 : vector<8x1xf32>
    %cst_57 = arith.constant 1.000000e-10 : f32
    %116 = vector.broadcast %cst_57 : f32 to vector<8x1xf32>
    %117 = arith.addf %115, %116 : vector<8x1xf32>
    %118 = vector.broadcast %117 : vector<8x1xf32> to vector<8x32xf32>
    %119 = arith.divf %114, %118 : vector<8x32xf32>
    %120 = vector.broadcast %100 : vector<1x32xf32> to vector<8x32xf32>
    %121 = arith.mulf %119, %120 : vector<8x32xf32>
    %122 = vector.broadcast %101 : vector<1x32xf32> to vector<8x32xf32>
    %123 = arith.addf %121, %122 : vector<8x32xf32>
    %c0_58 = arith.constant 0 : index
    %c0_59 = arith.constant 0 : index
    %c0_60 = arith.constant 0 : index
    %124 = vector.load %arg8[%c0_58, %c0_59, %c0_60] : memref<2x32x32xf32, #tpu.memory_space<vmem>>, vector<1x32x32xf32>
    %125 = vector.shape_cast %124 : vector<1x32x32xf32> to vector<32x32xf32>
    %cst_61 = arith.constant dense<0.000000e+00> : vector<8x32xf32>
    %126 = tpu.matmul %123, %125, %cst_61 {dimension_numbers = #tpu.dot_dimension_numbers<[1], [0], [0], [1], [0, 0, 1, 1], [], []>, precision = #tpu.contract_precision<fp32>} : vector<8x32xf32>, vector<32x32xf32>, vector<8x32xf32> -> vector<8x32xf32>
    %c0_62 = arith.constant 0 : index
    %c0_63 = arith.constant 0 : index
    %c0_64 = arith.constant 0 : index
    %127 = vector.load %arg9[%c0_62, %c0_63, %c0_64] : memref<2x1x32xf32, #tpu.memory_space<vmem>>, vector<1x1x32xf32>
    %128 = vector.shape_cast %127 : vector<1x1x32xf32> to vector<1x32xf32>
    %129 = vector.broadcast %128 : vector<1x32xf32> to vector<8x32xf32>
    %130 = arith.addf %126, %129 : vector<8x32xf32>
    %131 = vector.extract_strided_slice %12 {offsets = [0, 0], sizes = [8, 32], strides = [1, 1]} : vector<8x128xf32> to vector<8x32xf32>
    %132 = vector.extract_strided_slice %12 {offsets = [0, 32], sizes = [8, 32], strides = [1, 1]} : vector<8x128xf32> to vector<8x32xf32>
    %133 = vector.extract_strided_slice %130 {offsets = [0, 0], sizes = [8, 8], strides = [1, 1]} : vector<8x32xf32> to vector<8x8xf32>
    %134 = vector.extract_strided_slice %131 {offsets = [0, 0], sizes = [8, 8], strides = [1, 1]} : vector<8x32xf32> to vector<8x8xf32>
    %cst_65 = arith.constant dense<0.000000e+00> : vector<8x8xf32>
    %135 = tpu.matmul %133, %134, %cst_65 {dimension_numbers = #tpu.dot_dimension_numbers<[1], [1], [0], [0], [0, 0, 1, 0], [], []>, precision = #tpu.contract_precision<fp32>} : vector<8x8xf32>, vector<8x8xf32>, vector<8x8xf32> -> vector<8x8xf32>
    %cst_66 = arith.constant dense<0xFF800000> : vector<8xf32>
    %136 = vector.multi_reduction <maximumf>, %135, %cst_66 [1] : vector<8x8xf32> to vector<8xf32>
    %137 = vector.shape_cast %136 : vector<8xf32> to vector<8x1xf32>
    %138 = vector.broadcast %137 : vector<8x1xf32> to vector<8x8xf32>
    %139 = arith.subf %135, %138 : vector<8x8xf32>
    %140 = math.exp %139 : vector<8x8xf32>
    %cst_67 = arith.constant dense<0.000000e+00> : vector<8xf32>
    %141 = vector.multi_reduction <add>, %140, %cst_67 [1] : vector<8x8xf32> to vector<8xf32>
    %142 = vector.shape_cast %141 : vector<8xf32> to vector<8x1xf32>
    %143 = vector.broadcast %142 : vector<8x1xf32> to vector<8x8xf32>
    %144 = arith.divf %140, %143 : vector<8x8xf32>
    %145 = vector.extract_strided_slice %132 {offsets = [0, 0], sizes = [8, 8], strides = [1, 1]} : vector<8x32xf32> to vector<8x8xf32>
    %cst_68 = arith.constant dense<0.000000e+00> : vector<8x8xf32>
    %146 = tpu.matmul %144, %145, %cst_68 {dimension_numbers = #tpu.dot_dimension_numbers<[1], [0], [0], [1], [0, 0, 1, 1], [], []>, precision = #tpu.contract_precision<fp32>} : vector<8x8xf32>, vector<8x8xf32>, vector<8x8xf32> -> vector<8x8xf32>
    %147 = vector.extract_strided_slice %130 {offsets = [0, 8], sizes = [8, 8], strides = [1, 1]} : vector<8x32xf32> to vector<8x8xf32>
    %148 = vector.extract_strided_slice %131 {offsets = [0, 8], sizes = [8, 8], strides = [1, 1]} : vector<8x32xf32> to vector<8x8xf32>
    %cst_69 = arith.constant dense<0.000000e+00> : vector<8x8xf32>
    %149 = tpu.matmul %147, %148, %cst_69 {dimension_numbers = #tpu.dot_dimension_numbers<[1], [1], [0], [0], [0, 0, 1, 0], [], []>, precision = #tpu.contract_precision<fp32>} : vector<8x8xf32>, vector<8x8xf32>, vector<8x8xf32> -> vector<8x8xf32>
    %cst_70 = arith.constant dense<0xFF800000> : vector<8xf32>
    %150 = vector.multi_reduction <maximumf>, %149, %cst_70 [1] : vector<8x8xf32> to vector<8xf32>
    %151 = vector.shape_cast %150 : vector<8xf32> to vector<8x1xf32>
    %152 = vector.broadcast %151 : vector<8x1xf32> to vector<8x8xf32>
    %153 = arith.subf %149, %152 : vector<8x8xf32>
    %154 = math.exp %153 : vector<8x8xf32>
    %cst_71 = arith.constant dense<0.000000e+00> : vector<8xf32>
    %155 = vector.multi_reduction <add>, %154, %cst_71 [1] : vector<8x8xf32> to vector<8xf32>
    %156 = vector.shape_cast %155 : vector<8xf32> to vector<8x1xf32>
    %157 = vector.broadcast %156 : vector<8x1xf32> to vector<8x8xf32>
    %158 = arith.divf %154, %157 : vector<8x8xf32>
    %159 = vector.extract_strided_slice %132 {offsets = [0, 8], sizes = [8, 8], strides = [1, 1]} : vector<8x32xf32> to vector<8x8xf32>
    %cst_72 = arith.constant dense<0.000000e+00> : vector<8x8xf32>
    %160 = tpu.matmul %158, %159, %cst_72 {dimension_numbers = #tpu.dot_dimension_numbers<[1], [0], [0], [1], [0, 0, 1, 1], [], []>, precision = #tpu.contract_precision<fp32>} : vector<8x8xf32>, vector<8x8xf32>, vector<8x8xf32> -> vector<8x8xf32>
    %161 = vector.extract_strided_slice %130 {offsets = [0, 16], sizes = [8, 8], strides = [1, 1]} : vector<8x32xf32> to vector<8x8xf32>
    %162 = vector.extract_strided_slice %131 {offsets = [0, 16], sizes = [8, 8], strides = [1, 1]} : vector<8x32xf32> to vector<8x8xf32>
    %cst_73 = arith.constant dense<0.000000e+00> : vector<8x8xf32>
    %163 = tpu.matmul %161, %162, %cst_73 {dimension_numbers = #tpu.dot_dimension_numbers<[1], [1], [0], [0], [0, 0, 1, 0], [], []>, precision = #tpu.contract_precision<fp32>} : vector<8x8xf32>, vector<8x8xf32>, vector<8x8xf32> -> vector<8x8xf32>
    %cst_74 = arith.constant dense<0xFF800000> : vector<8xf32>
    %164 = vector.multi_reduction <maximumf>, %163, %cst_74 [1] : vector<8x8xf32> to vector<8xf32>
    %165 = vector.shape_cast %164 : vector<8xf32> to vector<8x1xf32>
    %166 = vector.broadcast %165 : vector<8x1xf32> to vector<8x8xf32>
    %167 = arith.subf %163, %166 : vector<8x8xf32>
    %168 = math.exp %167 : vector<8x8xf32>
    %cst_75 = arith.constant dense<0.000000e+00> : vector<8xf32>
    %169 = vector.multi_reduction <add>, %168, %cst_75 [1] : vector<8x8xf32> to vector<8xf32>
    %170 = vector.shape_cast %169 : vector<8xf32> to vector<8x1xf32>
    %171 = vector.broadcast %170 : vector<8x1xf32> to vector<8x8xf32>
    %172 = arith.divf %168, %171 : vector<8x8xf32>
    %173 = vector.extract_strided_slice %132 {offsets = [0, 16], sizes = [8, 8], strides = [1, 1]} : vector<8x32xf32> to vector<8x8xf32>
    %cst_76 = arith.constant dense<0.000000e+00> : vector<8x8xf32>
    %174 = tpu.matmul %172, %173, %cst_76 {dimension_numbers = #tpu.dot_dimension_numbers<[1], [0], [0], [1], [0, 0, 1, 1], [], []>, precision = #tpu.contract_precision<fp32>} : vector<8x8xf32>, vector<8x8xf32>, vector<8x8xf32> -> vector<8x8xf32>
    %175 = vector.extract_strided_slice %130 {offsets = [0, 24], sizes = [8, 8], strides = [1, 1]} : vector<8x32xf32> to vector<8x8xf32>
    %176 = vector.extract_strided_slice %131 {offsets = [0, 24], sizes = [8, 8], strides = [1, 1]} : vector<8x32xf32> to vector<8x8xf32>
    %cst_77 = arith.constant dense<0.000000e+00> : vector<8x8xf32>
    %177 = tpu.matmul %175, %176, %cst_77 {dimension_numbers = #tpu.dot_dimension_numbers<[1], [1], [0], [0], [0, 0, 1, 0], [], []>, precision = #tpu.contract_precision<fp32>} : vector<8x8xf32>, vector<8x8xf32>, vector<8x8xf32> -> vector<8x8xf32>
    %cst_78 = arith.constant dense<0xFF800000> : vector<8xf32>
    %178 = vector.multi_reduction <maximumf>, %177, %cst_78 [1] : vector<8x8xf32> to vector<8xf32>
    %179 = vector.shape_cast %178 : vector<8xf32> to vector<8x1xf32>
    %180 = vector.broadcast %179 : vector<8x1xf32> to vector<8x8xf32>
    %181 = arith.subf %177, %180 : vector<8x8xf32>
    %182 = math.exp %181 : vector<8x8xf32>
    %cst_79 = arith.constant dense<0.000000e+00> : vector<8xf32>
    %183 = vector.multi_reduction <add>, %182, %cst_79 [1] : vector<8x8xf32> to vector<8xf32>
    %184 = vector.shape_cast %183 : vector<8xf32> to vector<8x1xf32>
    %185 = vector.broadcast %184 : vector<8x1xf32> to vector<8x8xf32>
    %186 = arith.divf %182, %185 : vector<8x8xf32>
    %187 = vector.extract_strided_slice %132 {offsets = [0, 24], sizes = [8, 8], strides = [1, 1]} : vector<8x32xf32> to vector<8x8xf32>
    %cst_80 = arith.constant dense<0.000000e+00> : vector<8x8xf32>
    %188 = tpu.matmul %186, %187, %cst_80 {dimension_numbers = #tpu.dot_dimension_numbers<[1], [0], [0], [1], [0, 0, 1, 1], [], []>, precision = #tpu.contract_precision<fp32>} : vector<8x8xf32>, vector<8x8xf32>, vector<8x8xf32> -> vector<8x8xf32>
    %189 = tpu.concatenate %146, %160, %174, %188 in 1 : vector<8x8xf32>, vector<8x8xf32>, vector<8x8xf32>, vector<8x8xf32> -> vector<8x32xf32>
    %c0_81 = arith.constant 0 : index
    %c0_82 = arith.constant 0 : index
    %c0_83 = arith.constant 0 : index
    %190 = vector.load %arg12[%c0_81, %c0_82, %c0_83] : memref<2x32x32xf32, #tpu.memory_space<vmem>>, vector<1x32x32xf32>
    %191 = vector.shape_cast %190 : vector<1x32x32xf32> to vector<32x32xf32>
    %cst_84 = arith.constant dense<0.000000e+00> : vector<8x32xf32>
    %192 = tpu.matmul %189, %191, %cst_84 {dimension_numbers = #tpu.dot_dimension_numbers<[1], [0], [0], [1], [0, 0, 1, 1], [], []>, precision = #tpu.contract_precision<fp32>} : vector<8x32xf32>, vector<32x32xf32>, vector<8x32xf32> -> vector<8x32xf32>
    %c0_85 = arith.constant 0 : index
    %c0_86 = arith.constant 0 : index
    %c0_87 = arith.constant 0 : index
    %193 = vector.load %arg13[%c0_85, %c0_86, %c0_87] : memref<2x1x32xf32, #tpu.memory_space<vmem>>, vector<1x1x32xf32>
    %194 = vector.shape_cast %193 : vector<1x1x32xf32> to vector<1x32xf32>
    %195 = vector.broadcast %194 : vector<1x32xf32> to vector<8x32xf32>
    %196 = arith.addf %192, %195 : vector<8x32xf32>
    %197 = arith.addf %123, %196 : vector<8x32xf32>
    %198 = vector.extract_strided_slice %14 {offsets = [1, 0], sizes = [1, 32], strides = [1, 1]} : vector<3x32xf32> to vector<1x32xf32>
    %199 = vector.extract_strided_slice %16 {offsets = [1, 0], sizes = [1, 32], strides = [1, 1]} : vector<3x32xf32> to vector<1x32xf32>
    %cst_88 = arith.constant dense<0.000000e+00> : vector<8xf32>
    %200 = vector.multi_reduction <add>, %197, %cst_88 [1] : vector<8x32xf32> to vector<8xf32>
    %201 = vector.shape_cast %200 : vector<8xf32> to vector<8x1xf32>
    %cst_89 = arith.constant 3.200000e+01 : f32
    %202 = vector.broadcast %cst_89 : f32 to vector<8x1xf32>
    %203 = arith.divf %201, %202 : vector<8x1xf32>
    %204 = vector.broadcast %203 : vector<8x1xf32> to vector<8x32xf32>
    %205 = arith.subf %197, %204 : vector<8x32xf32>
    %206 = arith.mulf %205, %205 : vector<8x32xf32>
    %cst_90 = arith.constant dense<0.000000e+00> : vector<8xf32>
    %207 = vector.multi_reduction <add>, %206, %cst_90 [1] : vector<8x32xf32> to vector<8xf32>
    %208 = vector.shape_cast %207 : vector<8xf32> to vector<8x1xf32>
    %cst_91 = arith.constant 3.200000e+01 : f32
    %209 = vector.broadcast %cst_91 : f32 to vector<8x1xf32>
    %210 = arith.divf %208, %209 : vector<8x1xf32>
    %211 = vector.broadcast %203 : vector<8x1xf32> to vector<8x32xf32>
    %212 = arith.subf %197, %211 : vector<8x32xf32>
    %213 = math.sqrt %210 : vector<8x1xf32>
    %cst_92 = arith.constant 1.000000e-10 : f32
    %214 = vector.broadcast %cst_92 : f32 to vector<8x1xf32>
    %215 = arith.addf %213, %214 : vector<8x1xf32>
    %216 = vector.broadcast %215 : vector<8x1xf32> to vector<8x32xf32>
    %217 = arith.divf %212, %216 : vector<8x32xf32>
    %218 = vector.broadcast %198 : vector<1x32xf32> to vector<8x32xf32>
    %219 = arith.mulf %217, %218 : vector<8x32xf32>
    %220 = vector.broadcast %199 : vector<1x32xf32> to vector<8x32xf32>
    %221 = arith.addf %219, %220 : vector<8x32xf32>
    %c0_93 = arith.constant 0 : index
    %c0_94 = arith.constant 0 : index
    %c0_95 = arith.constant 0 : index
    %222 = vector.load %arg14[%c0_93, %c0_94, %c0_95] : memref<2x32x64xf32, #tpu.memory_space<vmem>>, vector<1x32x64xf32>
    %223 = vector.shape_cast %222 : vector<1x32x64xf32> to vector<32x64xf32>
    %cst_96 = arith.constant dense<0.000000e+00> : vector<8x64xf32>
    %224 = tpu.matmul %221, %223, %cst_96 {dimension_numbers = #tpu.dot_dimension_numbers<[1], [0], [0], [1], [0, 0, 1, 1], [], []>, precision = #tpu.contract_precision<fp32>} : vector<8x32xf32>, vector<32x64xf32>, vector<8x64xf32> -> vector<8x64xf32>
    %c0_97 = arith.constant 0 : index
    %c0_98 = arith.constant 0 : index
    %c0_99 = arith.constant 0 : index
    %225 = vector.load %arg15[%c0_97, %c0_98, %c0_99] : memref<2x1x64xf32, #tpu.memory_space<vmem>>, vector<1x1x64xf32>
    %226 = vector.shape_cast %225 : vector<1x1x64xf32> to vector<1x64xf32>
    %227 = vector.broadcast %226 : vector<1x64xf32> to vector<8x64xf32>
    %228 = arith.addf %224, %227 : vector<8x64xf32>
    %cst_100 = arith.constant 0.000000e+00 : f32
    %229 = vector.broadcast %cst_100 : f32 to vector<8x64xf32>
    %230 = arith.maximumf %228, %229 : vector<8x64xf32>
    %c0_101 = arith.constant 0 : index
    %c0_102 = arith.constant 0 : index
    %c0_103 = arith.constant 0 : index
    %231 = vector.load %arg16[%c0_101, %c0_102, %c0_103] : memref<2x64x32xf32, #tpu.memory_space<vmem>>, vector<1x64x32xf32>
    %232 = vector.shape_cast %231 : vector<1x64x32xf32> to vector<64x32xf32>
    %cst_104 = arith.constant dense<0.000000e+00> : vector<8x32xf32>
    %233 = tpu.matmul %230, %232, %cst_104 {dimension_numbers = #tpu.dot_dimension_numbers<[1], [0], [0], [1], [0, 0, 1, 1], [], []>, precision = #tpu.contract_precision<fp32>} : vector<8x64xf32>, vector<64x32xf32>, vector<8x32xf32> -> vector<8x32xf32>
    %c0_105 = arith.constant 0 : index
    %c0_106 = arith.constant 0 : index
    %c0_107 = arith.constant 0 : index
    %234 = vector.load %arg17[%c0_105, %c0_106, %c0_107] : memref<2x1x32xf32, #tpu.memory_space<vmem>>, vector<1x1x32xf32>
    %235 = vector.shape_cast %234 : vector<1x1x32xf32> to vector<1x32xf32>
    %236 = vector.broadcast %235 : vector<1x32xf32> to vector<8x32xf32>
    %237 = arith.addf %233, %236 : vector<8x32xf32>
    %238 = arith.addf %123, %237 : vector<8x32xf32>
    %239 = vector.extract_strided_slice %14 {offsets = [2, 0], sizes = [1, 32], strides = [1, 1]} : vector<3x32xf32> to vector<1x32xf32>
    %240 = vector.extract_strided_slice %16 {offsets = [2, 0], sizes = [1, 32], strides = [1, 1]} : vector<3x32xf32> to vector<1x32xf32>
    %cst_108 = arith.constant dense<0.000000e+00> : vector<8xf32>
    %241 = vector.multi_reduction <add>, %238, %cst_108 [1] : vector<8x32xf32> to vector<8xf32>
    %242 = vector.shape_cast %241 : vector<8xf32> to vector<8x1xf32>
    %cst_109 = arith.constant 3.200000e+01 : f32
    %243 = vector.broadcast %cst_109 : f32 to vector<8x1xf32>
    %244 = arith.divf %242, %243 : vector<8x1xf32>
    %245 = vector.broadcast %244 : vector<8x1xf32> to vector<8x32xf32>
    %246 = arith.subf %238, %245 : vector<8x32xf32>
    %247 = arith.mulf %246, %246 : vector<8x32xf32>
    %cst_110 = arith.constant dense<0.000000e+00> : vector<8xf32>
    %248 = vector.multi_reduction <add>, %247, %cst_110 [1] : vector<8x32xf32> to vector<8xf32>
    %249 = vector.shape_cast %248 : vector<8xf32> to vector<8x1xf32>
    %cst_111 = arith.constant 3.200000e+01 : f32
    %250 = vector.broadcast %cst_111 : f32 to vector<8x1xf32>
    %251 = arith.divf %249, %250 : vector<8x1xf32>
    %252 = vector.broadcast %244 : vector<8x1xf32> to vector<8x32xf32>
    %253 = arith.subf %238, %252 : vector<8x32xf32>
    %254 = math.sqrt %251 : vector<8x1xf32>
    %cst_112 = arith.constant 1.000000e-10 : f32
    %255 = vector.broadcast %cst_112 : f32 to vector<8x1xf32>
    %256 = arith.addf %254, %255 : vector<8x1xf32>
    %257 = vector.broadcast %256 : vector<8x1xf32> to vector<8x32xf32>
    %258 = arith.divf %253, %257 : vector<8x32xf32>
    %259 = vector.broadcast %239 : vector<1x32xf32> to vector<8x32xf32>
    %260 = arith.mulf %258, %259 : vector<8x32xf32>
    %261 = vector.broadcast %240 : vector<1x32xf32> to vector<8x32xf32>
    %262 = arith.addf %260, %261 : vector<8x32xf32>
    %c1 = arith.constant 1 : index
    %c0_113 = arith.constant 0 : index
    %c0_114 = arith.constant 0 : index
    %263 = vector.load %arg18[%c1, %c0_113, %c0_114] : memref<2x3x32xf32, #tpu.memory_space<vmem>>, vector<1x3x32xf32>
    %264 = vector.shape_cast %263 : vector<1x3x32xf32> to vector<3x32xf32>
    %c1_115 = arith.constant 1 : index
    %c0_116 = arith.constant 0 : index
    %c0_117 = arith.constant 0 : index
    %265 = vector.load %arg19[%c1_115, %c0_116, %c0_117] : memref<2x3x32xf32, #tpu.memory_space<vmem>>, vector<1x3x32xf32>
    %266 = vector.shape_cast %265 : vector<1x3x32xf32> to vector<3x32xf32>
    %c1_118 = arith.constant 1 : index
    %c0_119 = arith.constant 0 : index
    %c0_120 = arith.constant 0 : index
    %267 = vector.load %arg4[%c1_118, %c0_119, %c0_120] : memref<2x32x96xf32, #tpu.memory_space<vmem>>, vector<1x32x96xf32>
    %268 = vector.shape_cast %267 : vector<1x32x96xf32> to vector<32x96xf32>
    %cst_121 = arith.constant dense<0.000000e+00> : vector<8x96xf32>
    %269 = tpu.matmul %262, %268, %cst_121 {dimension_numbers = #tpu.dot_dimension_numbers<[1], [0], [0], [1], [0, 0, 1, 1], [], []>, precision = #tpu.contract_precision<fp32>} : vector<8x32xf32>, vector<32x96xf32>, vector<8x96xf32> -> vector<8x96xf32>
    %c1_122 = arith.constant 1 : index
    %c0_123 = arith.constant 0 : index
    %c0_124 = arith.constant 0 : index
    %270 = vector.load %arg5[%c1_122, %c0_123, %c0_124] : memref<2x1x96xf32, #tpu.memory_space<vmem>>, vector<1x1x96xf32>
    %271 = vector.shape_cast %270 : vector<1x1x96xf32> to vector<1x96xf32>
    %272 = vector.broadcast %271 : vector<1x96xf32> to vector<8x96xf32>
    %273 = arith.addf %269, %272 : vector<8x96xf32>
    %274 = vector.extract_strided_slice %273 {offsets = [0, 0], sizes = [8, 32], strides = [1, 1]} : vector<8x96xf32> to vector<8x32xf32>
    %275 = vector.extract_strided_slice %273 {offsets = [0, 32], sizes = [8, 32], strides = [1, 1]} : vector<8x96xf32> to vector<8x32xf32>
    %276 = vector.extract_strided_slice %273 {offsets = [0, 64], sizes = [8, 32], strides = [1, 1]} : vector<8x96xf32> to vector<8x32xf32>
    %277 = vector.extract_strided_slice %274 {offsets = [0, 0], sizes = [8, 8], strides = [1, 1]} : vector<8x32xf32> to vector<8x8xf32>
    %278 = vector.extract_strided_slice %275 {offsets = [0, 0], sizes = [8, 8], strides = [1, 1]} : vector<8x32xf32> to vector<8x8xf32>
    %cst_125 = arith.constant dense<0.000000e+00> : vector<8x8xf32>
    %279 = tpu.matmul %277, %278, %cst_125 {dimension_numbers = #tpu.dot_dimension_numbers<[1], [1], [0], [0], [0, 0, 1, 0], [], []>, precision = #tpu.contract_precision<fp32>} : vector<8x8xf32>, vector<8x8xf32>, vector<8x8xf32> -> vector<8x8xf32>
    %cst_126 = arith.constant -1.000000e+09 : f32
    %280 = vector.broadcast %cst_126 : f32 to vector<8x8xf32>
    %281 = arith.select %7, %280, %279 : vector<8x8xi1>, vector<8x8xf32>
    %cst_127 = arith.constant dense<0xFF800000> : vector<8xf32>
    %282 = vector.multi_reduction <maximumf>, %281, %cst_127 [1] : vector<8x8xf32> to vector<8xf32>
    %283 = vector.shape_cast %282 : vector<8xf32> to vector<8x1xf32>
    %284 = vector.broadcast %283 : vector<8x1xf32> to vector<8x8xf32>
    %285 = arith.subf %281, %284 : vector<8x8xf32>
    %286 = math.exp %285 : vector<8x8xf32>
    %cst_128 = arith.constant dense<0.000000e+00> : vector<8xf32>
    %287 = vector.multi_reduction <add>, %286, %cst_128 [1] : vector<8x8xf32> to vector<8xf32>
    %288 = vector.shape_cast %287 : vector<8xf32> to vector<8x1xf32>
    %289 = vector.broadcast %288 : vector<8x1xf32> to vector<8x8xf32>
    %290 = arith.divf %286, %289 : vector<8x8xf32>
    %291 = vector.extract_strided_slice %276 {offsets = [0, 0], sizes = [8, 8], strides = [1, 1]} : vector<8x32xf32> to vector<8x8xf32>
    %cst_129 = arith.constant dense<0.000000e+00> : vector<8x8xf32>
    %292 = tpu.matmul %290, %291, %cst_129 {dimension_numbers = #tpu.dot_dimension_numbers<[1], [0], [0], [1], [0, 0, 1, 1], [], []>, precision = #tpu.contract_precision<fp32>} : vector<8x8xf32>, vector<8x8xf32>, vector<8x8xf32> -> vector<8x8xf32>
    %293 = vector.extract_strided_slice %274 {offsets = [0, 8], sizes = [8, 8], strides = [1, 1]} : vector<8x32xf32> to vector<8x8xf32>
    %294 = vector.extract_strided_slice %275 {offsets = [0, 8], sizes = [8, 8], strides = [1, 1]} : vector<8x32xf32> to vector<8x8xf32>
    %cst_130 = arith.constant dense<0.000000e+00> : vector<8x8xf32>
    %295 = tpu.matmul %293, %294, %cst_130 {dimension_numbers = #tpu.dot_dimension_numbers<[1], [1], [0], [0], [0, 0, 1, 0], [], []>, precision = #tpu.contract_precision<fp32>} : vector<8x8xf32>, vector<8x8xf32>, vector<8x8xf32> -> vector<8x8xf32>
    %cst_131 = arith.constant -1.000000e+09 : f32
    %296 = vector.broadcast %cst_131 : f32 to vector<8x8xf32>
    %297 = arith.select %7, %296, %295 : vector<8x8xi1>, vector<8x8xf32>
    %cst_132 = arith.constant dense<0xFF800000> : vector<8xf32>
    %298 = vector.multi_reduction <maximumf>, %297, %cst_132 [1] : vector<8x8xf32> to vector<8xf32>
    %299 = vector.shape_cast %298 : vector<8xf32> to vector<8x1xf32>
    %300 = vector.broadcast %299 : vector<8x1xf32> to vector<8x8xf32>
    %301 = arith.subf %297, %300 : vector<8x8xf32>
    %302 = math.exp %301 : vector<8x8xf32>
    %cst_133 = arith.constant dense<0.000000e+00> : vector<8xf32>
    %303 = vector.multi_reduction <add>, %302, %cst_133 [1] : vector<8x8xf32> to vector<8xf32>
    %304 = vector.shape_cast %303 : vector<8xf32> to vector<8x1xf32>
    %305 = vector.broadcast %304 : vector<8x1xf32> to vector<8x8xf32>
    %306 = arith.divf %302, %305 : vector<8x8xf32>
    %307 = vector.extract_strided_slice %276 {offsets = [0, 8], sizes = [8, 8], strides = [1, 1]} : vector<8x32xf32> to vector<8x8xf32>
    %cst_134 = arith.constant dense<0.000000e+00> : vector<8x8xf32>
    %308 = tpu.matmul %306, %307, %cst_134 {dimension_numbers = #tpu.dot_dimension_numbers<[1], [0], [0], [1], [0, 0, 1, 1], [], []>, precision = #tpu.contract_precision<fp32>} : vector<8x8xf32>, vector<8x8xf32>, vector<8x8xf32> -> vector<8x8xf32>
    %309 = vector.extract_strided_slice %274 {offsets = [0, 16], sizes = [8, 8], strides = [1, 1]} : vector<8x32xf32> to vector<8x8xf32>
    %310 = vector.extract_strided_slice %275 {offsets = [0, 16], sizes = [8, 8], strides = [1, 1]} : vector<8x32xf32> to vector<8x8xf32>
    %cst_135 = arith.constant dense<0.000000e+00> : vector<8x8xf32>
    %311 = tpu.matmul %309, %310, %cst_135 {dimension_numbers = #tpu.dot_dimension_numbers<[1], [1], [0], [0], [0, 0, 1, 0], [], []>, precision = #tpu.contract_precision<fp32>} : vector<8x8xf32>, vector<8x8xf32>, vector<8x8xf32> -> vector<8x8xf32>
    %cst_136 = arith.constant -1.000000e+09 : f32
    %312 = vector.broadcast %cst_136 : f32 to vector<8x8xf32>
    %313 = arith.select %7, %312, %311 : vector<8x8xi1>, vector<8x8xf32>
    %cst_137 = arith.constant dense<0xFF800000> : vector<8xf32>
    %314 = vector.multi_reduction <maximumf>, %313, %cst_137 [1] : vector<8x8xf32> to vector<8xf32>
    %315 = vector.shape_cast %314 : vector<8xf32> to vector<8x1xf32>
    %316 = vector.broadcast %315 : vector<8x1xf32> to vector<8x8xf32>
    %317 = arith.subf %313, %316 : vector<8x8xf32>
    %318 = math.exp %317 : vector<8x8xf32>
    %cst_138 = arith.constant dense<0.000000e+00> : vector<8xf32>
    %319 = vector.multi_reduction <add>, %318, %cst_138 [1] : vector<8x8xf32> to vector<8xf32>
    %320 = vector.shape_cast %319 : vector<8xf32> to vector<8x1xf32>
    %321 = vector.broadcast %320 : vector<8x1xf32> to vector<8x8xf32>
    %322 = arith.divf %318, %321 : vector<8x8xf32>
    %323 = vector.extract_strided_slice %276 {offsets = [0, 16], sizes = [8, 8], strides = [1, 1]} : vector<8x32xf32> to vector<8x8xf32>
    %cst_139 = arith.constant dense<0.000000e+00> : vector<8x8xf32>
    %324 = tpu.matmul %322, %323, %cst_139 {dimension_numbers = #tpu.dot_dimension_numbers<[1], [0], [0], [1], [0, 0, 1, 1], [], []>, precision = #tpu.contract_precision<fp32>} : vector<8x8xf32>, vector<8x8xf32>, vector<8x8xf32> -> vector<8x8xf32>
    %325 = vector.extract_strided_slice %274 {offsets = [0, 24], sizes = [8, 8], strides = [1, 1]} : vector<8x32xf32> to vector<8x8xf32>
    %326 = vector.extract_strided_slice %275 {offsets = [0, 24], sizes = [8, 8], strides = [1, 1]} : vector<8x32xf32> to vector<8x8xf32>
    %cst_140 = arith.constant dense<0.000000e+00> : vector<8x8xf32>
    %327 = tpu.matmul %325, %326, %cst_140 {dimension_numbers = #tpu.dot_dimension_numbers<[1], [1], [0], [0], [0, 0, 1, 0], [], []>, precision = #tpu.contract_precision<fp32>} : vector<8x8xf32>, vector<8x8xf32>, vector<8x8xf32> -> vector<8x8xf32>
    %cst_141 = arith.constant -1.000000e+09 : f32
    %328 = vector.broadcast %cst_141 : f32 to vector<8x8xf32>
    %329 = arith.select %7, %328, %327 : vector<8x8xi1>, vector<8x8xf32>
    %cst_142 = arith.constant dense<0xFF800000> : vector<8xf32>
    %330 = vector.multi_reduction <maximumf>, %329, %cst_142 [1] : vector<8x8xf32> to vector<8xf32>
    %331 = vector.shape_cast %330 : vector<8xf32> to vector<8x1xf32>
    %332 = vector.broadcast %331 : vector<8x1xf32> to vector<8x8xf32>
    %333 = arith.subf %329, %332 : vector<8x8xf32>
    %334 = math.exp %333 : vector<8x8xf32>
    %cst_143 = arith.constant dense<0.000000e+00> : vector<8xf32>
    %335 = vector.multi_reduction <add>, %334, %cst_143 [1] : vector<8x8xf32> to vector<8xf32>
    %336 = vector.shape_cast %335 : vector<8xf32> to vector<8x1xf32>
    %337 = vector.broadcast %336 : vector<8x1xf32> to vector<8x8xf32>
    %338 = arith.divf %334, %337 : vector<8x8xf32>
    %339 = vector.extract_strided_slice %276 {offsets = [0, 24], sizes = [8, 8], strides = [1, 1]} : vector<8x32xf32> to vector<8x8xf32>
    %cst_144 = arith.constant dense<0.000000e+00> : vector<8x8xf32>
    %340 = tpu.matmul %338, %339, %cst_144 {dimension_numbers = #tpu.dot_dimension_numbers<[1], [0], [0], [1], [0, 0, 1, 1], [], []>, precision = #tpu.contract_precision<fp32>} : vector<8x8xf32>, vector<8x8xf32>, vector<8x8xf32> -> vector<8x8xf32>
    %341 = tpu.concatenate %292, %308, %324, %340 in 1 : vector<8x8xf32>, vector<8x8xf32>, vector<8x8xf32>, vector<8x8xf32> -> vector<8x32xf32>
    %c1_145 = arith.constant 1 : index
    %c0_146 = arith.constant 0 : index
    %c0_147 = arith.constant 0 : index
    %342 = vector.load %arg6[%c1_145, %c0_146, %c0_147] : memref<2x32x32xf32, #tpu.memory_space<vmem>>, vector<1x32x32xf32>
    %343 = vector.shape_cast %342 : vector<1x32x32xf32> to vector<32x32xf32>
    %cst_148 = arith.constant dense<0.000000e+00> : vector<8x32xf32>
    %344 = tpu.matmul %341, %343, %cst_148 {dimension_numbers = #tpu.dot_dimension_numbers<[1], [0], [0], [1], [0, 0, 1, 1], [], []>, precision = #tpu.contract_precision<fp32>} : vector<8x32xf32>, vector<32x32xf32>, vector<8x32xf32> -> vector<8x32xf32>
    %c1_149 = arith.constant 1 : index
    %c0_150 = arith.constant 0 : index
    %c0_151 = arith.constant 0 : index
    %345 = vector.load %arg7[%c1_149, %c0_150, %c0_151] : memref<2x1x32xf32, #tpu.memory_space<vmem>>, vector<1x1x32xf32>
    %346 = vector.shape_cast %345 : vector<1x1x32xf32> to vector<1x32xf32>
    %347 = vector.broadcast %346 : vector<1x32xf32> to vector<8x32xf32>
    %348 = arith.addf %344, %347 : vector<8x32xf32>
    %349 = arith.addf %262, %348 : vector<8x32xf32>
    %350 = vector.extract_strided_slice %264 {offsets = [0, 0], sizes = [1, 32], strides = [1, 1]} : vector<3x32xf32> to vector<1x32xf32>
    %351 = vector.extract_strided_slice %266 {offsets = [0, 0], sizes = [1, 32], strides = [1, 1]} : vector<3x32xf32> to vector<1x32xf32>
    %cst_152 = arith.constant dense<0.000000e+00> : vector<8xf32>
    %352 = vector.multi_reduction <add>, %349, %cst_152 [1] : vector<8x32xf32> to vector<8xf32>
    %353 = vector.shape_cast %352 : vector<8xf32> to vector<8x1xf32>
    %cst_153 = arith.constant 3.200000e+01 : f32
    %354 = vector.broadcast %cst_153 : f32 to vector<8x1xf32>
    %355 = arith.divf %353, %354 : vector<8x1xf32>
    %356 = vector.broadcast %355 : vector<8x1xf32> to vector<8x32xf32>
    %357 = arith.subf %349, %356 : vector<8x32xf32>
    %358 = arith.mulf %357, %357 : vector<8x32xf32>
    %cst_154 = arith.constant dense<0.000000e+00> : vector<8xf32>
    %359 = vector.multi_reduction <add>, %358, %cst_154 [1] : vector<8x32xf32> to vector<8xf32>
    %360 = vector.shape_cast %359 : vector<8xf32> to vector<8x1xf32>
    %cst_155 = arith.constant 3.200000e+01 : f32
    %361 = vector.broadcast %cst_155 : f32 to vector<8x1xf32>
    %362 = arith.divf %360, %361 : vector<8x1xf32>
    %363 = vector.broadcast %355 : vector<8x1xf32> to vector<8x32xf32>
    %364 = arith.subf %349, %363 : vector<8x32xf32>
    %365 = math.sqrt %362 : vector<8x1xf32>
    %cst_156 = arith.constant 1.000000e-10 : f32
    %366 = vector.broadcast %cst_156 : f32 to vector<8x1xf32>
    %367 = arith.addf %365, %366 : vector<8x1xf32>
    %368 = vector.broadcast %367 : vector<8x1xf32> to vector<8x32xf32>
    %369 = arith.divf %364, %368 : vector<8x32xf32>
    %370 = vector.broadcast %350 : vector<1x32xf32> to vector<8x32xf32>
    %371 = arith.mulf %369, %370 : vector<8x32xf32>
    %372 = vector.broadcast %351 : vector<1x32xf32> to vector<8x32xf32>
    %373 = arith.addf %371, %372 : vector<8x32xf32>
    %c1_157 = arith.constant 1 : index
    %c0_158 = arith.constant 0 : index
    %c0_159 = arith.constant 0 : index
    %374 = vector.load %arg8[%c1_157, %c0_158, %c0_159] : memref<2x32x32xf32, #tpu.memory_space<vmem>>, vector<1x32x32xf32>
    %375 = vector.shape_cast %374 : vector<1x32x32xf32> to vector<32x32xf32>
    %cst_160 = arith.constant dense<0.000000e+00> : vector<8x32xf32>
    %376 = tpu.matmul %373, %375, %cst_160 {dimension_numbers = #tpu.dot_dimension_numbers<[1], [0], [0], [1], [0, 0, 1, 1], [], []>, precision = #tpu.contract_precision<fp32>} : vector<8x32xf32>, vector<32x32xf32>, vector<8x32xf32> -> vector<8x32xf32>
    %c1_161 = arith.constant 1 : index
    %c0_162 = arith.constant 0 : index
    %c0_163 = arith.constant 0 : index
    %377 = vector.load %arg9[%c1_161, %c0_162, %c0_163] : memref<2x1x32xf32, #tpu.memory_space<vmem>>, vector<1x1x32xf32>
    %378 = vector.shape_cast %377 : vector<1x1x32xf32> to vector<1x32xf32>
    %379 = vector.broadcast %378 : vector<1x32xf32> to vector<8x32xf32>
    %380 = arith.addf %376, %379 : vector<8x32xf32>
    %381 = vector.extract_strided_slice %12 {offsets = [0, 64], sizes = [8, 32], strides = [1, 1]} : vector<8x128xf32> to vector<8x32xf32>
    %382 = vector.extract_strided_slice %12 {offsets = [0, 96], sizes = [8, 32], strides = [1, 1]} : vector<8x128xf32> to vector<8x32xf32>
    %383 = vector.extract_strided_slice %380 {offsets = [0, 0], sizes = [8, 8], strides = [1, 1]} : vector<8x32xf32> to vector<8x8xf32>
    %384 = vector.extract_strided_slice %381 {offsets = [0, 0], sizes = [8, 8], strides = [1, 1]} : vector<8x32xf32> to vector<8x8xf32>
    %cst_164 = arith.constant dense<0.000000e+00> : vector<8x8xf32>
    %385 = tpu.matmul %383, %384, %cst_164 {dimension_numbers = #tpu.dot_dimension_numbers<[1], [1], [0], [0], [0, 0, 1, 0], [], []>, precision = #tpu.contract_precision<fp32>} : vector<8x8xf32>, vector<8x8xf32>, vector<8x8xf32> -> vector<8x8xf32>
    %cst_165 = arith.constant dense<0xFF800000> : vector<8xf32>
    %386 = vector.multi_reduction <maximumf>, %385, %cst_165 [1] : vector<8x8xf32> to vector<8xf32>
    %387 = vector.shape_cast %386 : vector<8xf32> to vector<8x1xf32>
    %388 = vector.broadcast %387 : vector<8x1xf32> to vector<8x8xf32>
    %389 = arith.subf %385, %388 : vector<8x8xf32>
    %390 = math.exp %389 : vector<8x8xf32>
    %cst_166 = arith.constant dense<0.000000e+00> : vector<8xf32>
    %391 = vector.multi_reduction <add>, %390, %cst_166 [1] : vector<8x8xf32> to vector<8xf32>
    %392 = vector.shape_cast %391 : vector<8xf32> to vector<8x1xf32>
    %393 = vector.broadcast %392 : vector<8x1xf32> to vector<8x8xf32>
    %394 = arith.divf %390, %393 : vector<8x8xf32>
    %395 = vector.extract_strided_slice %382 {offsets = [0, 0], sizes = [8, 8], strides = [1, 1]} : vector<8x32xf32> to vector<8x8xf32>
    %cst_167 = arith.constant dense<0.000000e+00> : vector<8x8xf32>
    %396 = tpu.matmul %394, %395, %cst_167 {dimension_numbers = #tpu.dot_dimension_numbers<[1], [0], [0], [1], [0, 0, 1, 1], [], []>, precision = #tpu.contract_precision<fp32>} : vector<8x8xf32>, vector<8x8xf32>, vector<8x8xf32> -> vector<8x8xf32>
    %397 = vector.extract_strided_slice %380 {offsets = [0, 8], sizes = [8, 8], strides = [1, 1]} : vector<8x32xf32> to vector<8x8xf32>
    %398 = vector.extract_strided_slice %381 {offsets = [0, 8], sizes = [8, 8], strides = [1, 1]} : vector<8x32xf32> to vector<8x8xf32>
    %cst_168 = arith.constant dense<0.000000e+00> : vector<8x8xf32>
    %399 = tpu.matmul %397, %398, %cst_168 {dimension_numbers = #tpu.dot_dimension_numbers<[1], [1], [0], [0], [0, 0, 1, 0], [], []>, precision = #tpu.contract_precision<fp32>} : vector<8x8xf32>, vector<8x8xf32>, vector<8x8xf32> -> vector<8x8xf32>
    %cst_169 = arith.constant dense<0xFF800000> : vector<8xf32>
    %400 = vector.multi_reduction <maximumf>, %399, %cst_169 [1] : vector<8x8xf32> to vector<8xf32>
    %401 = vector.shape_cast %400 : vector<8xf32> to vector<8x1xf32>
    %402 = vector.broadcast %401 : vector<8x1xf32> to vector<8x8xf32>
    %403 = arith.subf %399, %402 : vector<8x8xf32>
    %404 = math.exp %403 : vector<8x8xf32>
    %cst_170 = arith.constant dense<0.000000e+00> : vector<8xf32>
    %405 = vector.multi_reduction <add>, %404, %cst_170 [1] : vector<8x8xf32> to vector<8xf32>
    %406 = vector.shape_cast %405 : vector<8xf32> to vector<8x1xf32>
    %407 = vector.broadcast %406 : vector<8x1xf32> to vector<8x8xf32>
    %408 = arith.divf %404, %407 : vector<8x8xf32>
    %409 = vector.extract_strided_slice %382 {offsets = [0, 8], sizes = [8, 8], strides = [1, 1]} : vector<8x32xf32> to vector<8x8xf32>
    %cst_171 = arith.constant dense<0.000000e+00> : vector<8x8xf32>
    %410 = tpu.matmul %408, %409, %cst_171 {dimension_numbers = #tpu.dot_dimension_numbers<[1], [0], [0], [1], [0, 0, 1, 1], [], []>, precision = #tpu.contract_precision<fp32>} : vector<8x8xf32>, vector<8x8xf32>, vector<8x8xf32> -> vector<8x8xf32>
    %411 = vector.extract_strided_slice %380 {offsets = [0, 16], sizes = [8, 8], strides = [1, 1]} : vector<8x32xf32> to vector<8x8xf32>
    %412 = vector.extract_strided_slice %381 {offsets = [0, 16], sizes = [8, 8], strides = [1, 1]} : vector<8x32xf32> to vector<8x8xf32>
    %cst_172 = arith.constant dense<0.000000e+00> : vector<8x8xf32>
    %413 = tpu.matmul %411, %412, %cst_172 {dimension_numbers = #tpu.dot_dimension_numbers<[1], [1], [0], [0], [0, 0, 1, 0], [], []>, precision = #tpu.contract_precision<fp32>} : vector<8x8xf32>, vector<8x8xf32>, vector<8x8xf32> -> vector<8x8xf32>
    %cst_173 = arith.constant dense<0xFF800000> : vector<8xf32>
    %414 = vector.multi_reduction <maximumf>, %413, %cst_173 [1] : vector<8x8xf32> to vector<8xf32>
    %415 = vector.shape_cast %414 : vector<8xf32> to vector<8x1xf32>
    %416 = vector.broadcast %415 : vector<8x1xf32> to vector<8x8xf32>
    %417 = arith.subf %413, %416 : vector<8x8xf32>
    %418 = math.exp %417 : vector<8x8xf32>
    %cst_174 = arith.constant dense<0.000000e+00> : vector<8xf32>
    %419 = vector.multi_reduction <add>, %418, %cst_174 [1] : vector<8x8xf32> to vector<8xf32>
    %420 = vector.shape_cast %419 : vector<8xf32> to vector<8x1xf32>
    %421 = vector.broadcast %420 : vector<8x1xf32> to vector<8x8xf32>
    %422 = arith.divf %418, %421 : vector<8x8xf32>
    %423 = vector.extract_strided_slice %382 {offsets = [0, 16], sizes = [8, 8], strides = [1, 1]} : vector<8x32xf32> to vector<8x8xf32>
    %cst_175 = arith.constant dense<0.000000e+00> : vector<8x8xf32>
    %424 = tpu.matmul %422, %423, %cst_175 {dimension_numbers = #tpu.dot_dimension_numbers<[1], [0], [0], [1], [0, 0, 1, 1], [], []>, precision = #tpu.contract_precision<fp32>} : vector<8x8xf32>, vector<8x8xf32>, vector<8x8xf32> -> vector<8x8xf32>
    %425 = vector.extract_strided_slice %380 {offsets = [0, 24], sizes = [8, 8], strides = [1, 1]} : vector<8x32xf32> to vector<8x8xf32>
    %426 = vector.extract_strided_slice %381 {offsets = [0, 24], sizes = [8, 8], strides = [1, 1]} : vector<8x32xf32> to vector<8x8xf32>
    %cst_176 = arith.constant dense<0.000000e+00> : vector<8x8xf32>
    %427 = tpu.matmul %425, %426, %cst_176 {dimension_numbers = #tpu.dot_dimension_numbers<[1], [1], [0], [0], [0, 0, 1, 0], [], []>, precision = #tpu.contract_precision<fp32>} : vector<8x8xf32>, vector<8x8xf32>, vector<8x8xf32> -> vector<8x8xf32>
    %cst_177 = arith.constant dense<0xFF800000> : vector<8xf32>
    %428 = vector.multi_reduction <maximumf>, %427, %cst_177 [1] : vector<8x8xf32> to vector<8xf32>
    %429 = vector.shape_cast %428 : vector<8xf32> to vector<8x1xf32>
    %430 = vector.broadcast %429 : vector<8x1xf32> to vector<8x8xf32>
    %431 = arith.subf %427, %430 : vector<8x8xf32>
    %432 = math.exp %431 : vector<8x8xf32>
    %cst_178 = arith.constant dense<0.000000e+00> : vector<8xf32>
    %433 = vector.multi_reduction <add>, %432, %cst_178 [1] : vector<8x8xf32> to vector<8xf32>
    %434 = vector.shape_cast %433 : vector<8xf32> to vector<8x1xf32>
    %435 = vector.broadcast %434 : vector<8x1xf32> to vector<8x8xf32>
    %436 = arith.divf %432, %435 : vector<8x8xf32>
    %437 = vector.extract_strided_slice %382 {offsets = [0, 24], sizes = [8, 8], strides = [1, 1]} : vector<8x32xf32> to vector<8x8xf32>
    %cst_179 = arith.constant dense<0.000000e+00> : vector<8x8xf32>
    %438 = tpu.matmul %436, %437, %cst_179 {dimension_numbers = #tpu.dot_dimension_numbers<[1], [0], [0], [1], [0, 0, 1, 1], [], []>, precision = #tpu.contract_precision<fp32>} : vector<8x8xf32>, vector<8x8xf32>, vector<8x8xf32> -> vector<8x8xf32>
    %439 = tpu.concatenate %396, %410, %424, %438 in 1 : vector<8x8xf32>, vector<8x8xf32>, vector<8x8xf32>, vector<8x8xf32> -> vector<8x32xf32>
    %c1_180 = arith.constant 1 : index
    %c0_181 = arith.constant 0 : index
    %c0_182 = arith.constant 0 : index
    %440 = vector.load %arg12[%c1_180, %c0_181, %c0_182] : memref<2x32x32xf32, #tpu.memory_space<vmem>>, vector<1x32x32xf32>
    %441 = vector.shape_cast %440 : vector<1x32x32xf32> to vector<32x32xf32>
    %cst_183 = arith.constant dense<0.000000e+00> : vector<8x32xf32>
    %442 = tpu.matmul %439, %441, %cst_183 {dimension_numbers = #tpu.dot_dimension_numbers<[1], [0], [0], [1], [0, 0, 1, 1], [], []>, precision = #tpu.contract_precision<fp32>} : vector<8x32xf32>, vector<32x32xf32>, vector<8x32xf32> -> vector<8x32xf32>
    %c1_184 = arith.constant 1 : index
    %c0_185 = arith.constant 0 : index
    %c0_186 = arith.constant 0 : index
    %443 = vector.load %arg13[%c1_184, %c0_185, %c0_186] : memref<2x1x32xf32, #tpu.memory_space<vmem>>, vector<1x1x32xf32>
    %444 = vector.shape_cast %443 : vector<1x1x32xf32> to vector<1x32xf32>
    %445 = vector.broadcast %444 : vector<1x32xf32> to vector<8x32xf32>
    %446 = arith.addf %442, %445 : vector<8x32xf32>
    %447 = arith.addf %373, %446 : vector<8x32xf32>
    %448 = vector.extract_strided_slice %264 {offsets = [1, 0], sizes = [1, 32], strides = [1, 1]} : vector<3x32xf32> to vector<1x32xf32>
    %449 = vector.extract_strided_slice %266 {offsets = [1, 0], sizes = [1, 32], strides = [1, 1]} : vector<3x32xf32> to vector<1x32xf32>
    %cst_187 = arith.constant dense<0.000000e+00> : vector<8xf32>
    %450 = vector.multi_reduction <add>, %447, %cst_187 [1] : vector<8x32xf32> to vector<8xf32>
    %451 = vector.shape_cast %450 : vector<8xf32> to vector<8x1xf32>
    %cst_188 = arith.constant 3.200000e+01 : f32
    %452 = vector.broadcast %cst_188 : f32 to vector<8x1xf32>
    %453 = arith.divf %451, %452 : vector<8x1xf32>
    %454 = vector.broadcast %453 : vector<8x1xf32> to vector<8x32xf32>
    %455 = arith.subf %447, %454 : vector<8x32xf32>
    %456 = arith.mulf %455, %455 : vector<8x32xf32>
    %cst_189 = arith.constant dense<0.000000e+00> : vector<8xf32>
    %457 = vector.multi_reduction <add>, %456, %cst_189 [1] : vector<8x32xf32> to vector<8xf32>
    %458 = vector.shape_cast %457 : vector<8xf32> to vector<8x1xf32>
    %cst_190 = arith.constant 3.200000e+01 : f32
    %459 = vector.broadcast %cst_190 : f32 to vector<8x1xf32>
    %460 = arith.divf %458, %459 : vector<8x1xf32>
    %461 = vector.broadcast %453 : vector<8x1xf32> to vector<8x32xf32>
    %462 = arith.subf %447, %461 : vector<8x32xf32>
    %463 = math.sqrt %460 : vector<8x1xf32>
    %cst_191 = arith.constant 1.000000e-10 : f32
    %464 = vector.broadcast %cst_191 : f32 to vector<8x1xf32>
    %465 = arith.addf %463, %464 : vector<8x1xf32>
    %466 = vector.broadcast %465 : vector<8x1xf32> to vector<8x32xf32>
    %467 = arith.divf %462, %466 : vector<8x32xf32>
    %468 = vector.broadcast %448 : vector<1x32xf32> to vector<8x32xf32>
    %469 = arith.mulf %467, %468 : vector<8x32xf32>
    %470 = vector.broadcast %449 : vector<1x32xf32> to vector<8x32xf32>
    %471 = arith.addf %469, %470 : vector<8x32xf32>
    %c1_192 = arith.constant 1 : index
    %c0_193 = arith.constant 0 : index
    %c0_194 = arith.constant 0 : index
    %472 = vector.load %arg14[%c1_192, %c0_193, %c0_194] : memref<2x32x64xf32, #tpu.memory_space<vmem>>, vector<1x32x64xf32>
    %473 = vector.shape_cast %472 : vector<1x32x64xf32> to vector<32x64xf32>
    %cst_195 = arith.constant dense<0.000000e+00> : vector<8x64xf32>
    %474 = tpu.matmul %471, %473, %cst_195 {dimension_numbers = #tpu.dot_dimension_numbers<[1], [0], [0], [1], [0, 0, 1, 1], [], []>, precision = #tpu.contract_precision<fp32>} : vector<8x32xf32>, vector<32x64xf32>, vector<8x64xf32> -> vector<8x64xf32>
    %c1_196 = arith.constant 1 : index
    %c0_197 = arith.constant 0 : index
    %c0_198 = arith.constant 0 : index
    %475 = vector.load %arg15[%c1_196, %c0_197, %c0_198] : memref<2x1x64xf32, #tpu.memory_space<vmem>>, vector<1x1x64xf32>
    %476 = vector.shape_cast %475 : vector<1x1x64xf32> to vector<1x64xf32>
    %477 = vector.broadcast %476 : vector<1x64xf32> to vector<8x64xf32>
    %478 = arith.addf %474, %477 : vector<8x64xf32>
    %cst_199 = arith.constant 0.000000e+00 : f32
    %479 = vector.broadcast %cst_199 : f32 to vector<8x64xf32>
    %480 = arith.maximumf %478, %479 : vector<8x64xf32>
    %c1_200 = arith.constant 1 : index
    %c0_201 = arith.constant 0 : index
    %c0_202 = arith.constant 0 : index
    %481 = vector.load %arg16[%c1_200, %c0_201, %c0_202] : memref<2x64x32xf32, #tpu.memory_space<vmem>>, vector<1x64x32xf32>
    %482 = vector.shape_cast %481 : vector<1x64x32xf32> to vector<64x32xf32>
    %cst_203 = arith.constant dense<0.000000e+00> : vector<8x32xf32>
    %483 = tpu.matmul %480, %482, %cst_203 {dimension_numbers = #tpu.dot_dimension_numbers<[1], [0], [0], [1], [0, 0, 1, 1], [], []>, precision = #tpu.contract_precision<fp32>} : vector<8x64xf32>, vector<64x32xf32>, vector<8x32xf32> -> vector<8x32xf32>
    %c1_204 = arith.constant 1 : index
    %c0_205 = arith.constant 0 : index
    %c0_206 = arith.constant 0 : index
    %484 = vector.load %arg17[%c1_204, %c0_205, %c0_206] : memref<2x1x32xf32, #tpu.memory_space<vmem>>, vector<1x1x32xf32>
    %485 = vector.shape_cast %484 : vector<1x1x32xf32> to vector<1x32xf32>
    %486 = vector.broadcast %485 : vector<1x32xf32> to vector<8x32xf32>
    %487 = arith.addf %483, %486 : vector<8x32xf32>
    %488 = arith.addf %373, %487 : vector<8x32xf32>
    %489 = vector.extract_strided_slice %264 {offsets = [2, 0], sizes = [1, 32], strides = [1, 1]} : vector<3x32xf32> to vector<1x32xf32>
    %490 = vector.extract_strided_slice %266 {offsets = [2, 0], sizes = [1, 32], strides = [1, 1]} : vector<3x32xf32> to vector<1x32xf32>
    %cst_207 = arith.constant dense<0.000000e+00> : vector<8xf32>
    %491 = vector.multi_reduction <add>, %488, %cst_207 [1] : vector<8x32xf32> to vector<8xf32>
    %492 = vector.shape_cast %491 : vector<8xf32> to vector<8x1xf32>
    %cst_208 = arith.constant 3.200000e+01 : f32
    %493 = vector.broadcast %cst_208 : f32 to vector<8x1xf32>
    %494 = arith.divf %492, %493 : vector<8x1xf32>
    %495 = vector.broadcast %494 : vector<8x1xf32> to vector<8x32xf32>
    %496 = arith.subf %488, %495 : vector<8x32xf32>
    %497 = arith.mulf %496, %496 : vector<8x32xf32>
    %cst_209 = arith.constant dense<0.000000e+00> : vector<8xf32>
    %498 = vector.multi_reduction <add>, %497, %cst_209 [1] : vector<8x32xf32> to vector<8xf32>
    %499 = vector.shape_cast %498 : vector<8xf32> to vector<8x1xf32>
    %cst_210 = arith.constant 3.200000e+01 : f32
    %500 = vector.broadcast %cst_210 : f32 to vector<8x1xf32>
    %501 = arith.divf %499, %500 : vector<8x1xf32>
    %502 = vector.broadcast %494 : vector<8x1xf32> to vector<8x32xf32>
    %503 = arith.subf %488, %502 : vector<8x32xf32>
    %504 = math.sqrt %501 : vector<8x1xf32>
    %cst_211 = arith.constant 1.000000e-10 : f32
    %505 = vector.broadcast %cst_211 : f32 to vector<8x1xf32>
    %506 = arith.addf %504, %505 : vector<8x1xf32>
    %507 = vector.broadcast %506 : vector<8x1xf32> to vector<8x32xf32>
    %508 = arith.divf %503, %507 : vector<8x32xf32>
    %509 = vector.broadcast %489 : vector<1x32xf32> to vector<8x32xf32>
    %510 = arith.mulf %508, %509 : vector<8x32xf32>
    %511 = vector.broadcast %490 : vector<1x32xf32> to vector<8x32xf32>
    %512 = arith.addf %510, %511 : vector<8x32xf32>
    %c0_212 = arith.constant 0 : index
    %c0_213 = arith.constant 0 : index
    %513 = vector.load %arg20[%c0_212, %c0_213] : memref<32x128xf32, #tpu.memory_space<vmem>>, vector<32x128xf32>
    %cst_214 = arith.constant dense<0.000000e+00> : vector<8x128xf32>
    %514 = tpu.matmul %512, %513, %cst_214 {dimension_numbers = #tpu.dot_dimension_numbers<[1], [0], [0], [1], [0, 0, 1, 1], [], []>, precision = #tpu.contract_precision<fp32>} : vector<8x32xf32>, vector<32x128xf32>, vector<8x128xf32> -> vector<8x128xf32>
    %c0_215 = arith.constant 0 : index
    %c0_216 = arith.constant 0 : index
    %515 = vector.load %arg21[%c0_215, %c0_216] : memref<1x128xf32, #tpu.memory_space<vmem>>, vector<1x128xf32>
    %516 = vector.broadcast %515 : vector<1x128xf32> to vector<8x128xf32>
    %517 = arith.addf %514, %516 : vector<8x128xf32>
    %c0_217 = arith.constant 0 : index
    %c0_218 = arith.constant 0 : index
    %c0_219 = arith.constant 0 : index
    %518 = vector.load %arg22[%c0_217, %c0_218, %c0_219] : memref<1x8x128xf32, #tpu.memory_space<vmem>>, vector<1x8x128xf32>
    %519 = vector.shape_cast %518 : vector<1x8x128xf32> to vector<8x128xf32>
    %520 = vector.shape_cast %517 : vector<8x128xf32> to vector<1x8x128xf32>
    tpu.vector_store %arg22[%c0_217, %c0_218, %c0_219], %520 {strides = array<i32>} : memref<1x8x128xf32, #tpu.memory_space<vmem>>, vector<1x8x128xf32>,
    return
  }
  func.func @transform_0(%arg0: i32) -> (i32, i32, i32) {
    %c0_i32 = arith.constant 0 : i32
    %c0_i32_0 = arith.constant 0 : i32
    %c0_i32_1 = arith.constant 0 : i32
    return %arg0, %c0_i32, %c0_i32_0 : i32, i32, i32
  }
  func.func @transform_1(%arg0: i32) -> (i32, i32, i32) {
    %c0_i32 = arith.constant 0 : i32
    %c0_i32_0 = arith.constant 0 : i32
    %c0_i32_1 = arith.constant 0 : i32
    return %arg0, %c0_i32, %c0_i32_0 : i32, i32, i32
  }
  func.func @transform_2(%arg0: i32) -> (i32, i32, i32) {
    %c0_i32 = arith.constant 0 : i32
    %c0_i32_0 = arith.constant 0 : i32
    %c0_i32_1 = arith.constant 0 : i32
    return %arg0, %c0_i32, %c0_i32_0 : i32, i32, i32
  }
  func.func @transform_3(%arg0: i32) -> (i32, i32, i32) {
    %c0_i32 = arith.constant 0 : i32
    %c0_i32_0 = arith.constant 0 : i32
    %c0_i32_1 = arith.constant 0 : i32
    %c0_i32_2 = arith.constant 0 : i32
    return %c0_i32, %c0_i32_0, %c0_i32_1 : i32, i32, i32
  }
  func.func @transform_4(%arg0: i32) -> (i32, i32, i32) {
    %c0_i32 = arith.constant 0 : i32
    %c0_i32_0 = arith.constant 0 : i32
    %c0_i32_1 = arith.constant 0 : i32
    %c0_i32_2 = arith.constant 0 : i32
    return %c0_i32, %c0_i32_0, %c0_i32_1 : i32, i32, i32
  }
  func.func @transform_5(%arg0: i32) -> (i32, i32, i32) {
    %c0_i32 = arith.constant 0 : i32
    %c0_i32_0 = arith.constant 0 : i32
    %c0_i32_1 = arith.constant 0 : i32
    %c0_i32_2 = arith.constant 0 : i32
    return %c0_i32, %c0_i32_0, %c0_i32_1 : i32, i32, i32
  }
  func.func @transform_6(%arg0: i32) -> (i32, i32, i32) {
    %c0_i32 = arith.constant 0 : i32
    %c0_i32_0 = arith.constant 0 : i32
    %c0_i32_1 = arith.constant 0 : i32
    %c0_i32_2 = arith.constant 0 : i32
    return %c0_i32, %c0_i32_0, %c0_i32_1 : i32, i32, i32
  }
  func.func @transform_7(%arg0: i32) -> (i32, i32, i32) {
    %c0_i32 = arith.constant 0 : i32
    %c0_i32_0 = arith.constant 0 : i32
    %c0_i32_1 = arith.constant 0 : i32
    %c0_i32_2 = arith.constant 0 : i32
    return %c0_i32, %c0_i32_0, %c0_i32_1 : i32, i32, i32
  }
  func.func @transform_8(%arg0: i32) -> (i32, i32, i32) {
    %c0_i32 = arith.constant 0 : i32
    %c0_i32_0 = arith.constant 0 : i32
    %c0_i32_1 = arith.constant 0 : i32
    %c0_i32_2 = arith.constant 0 : i32
    return %c0_i32, %c0_i32_0, %c0_i32_1 : i32, i32, i32
  }
  func.func @transform_9(%arg0: i32) -> (i32, i32) {
    %c0_i32 = arith.constant 0 : i32
    %c0_i32_0 = arith.constant 0 : i32
    %c0_i32_1 = arith.constant 0 : i32
    return %c0_i32, %c0_i32_0 : i32, i32
  }
  func.func @transform_10(%arg0: i32) -> (i32, i32) {
    %c0_i32 = arith.constant 0 : i32
    %c0_i32_0 = arith.constant 0 : i32
    %c0_i32_1 = arith.constant 0 : i32
    return %c0_i32, %c0_i32_0 : i32, i32
  }
  func.func @transform_11(%arg0: i32) -> (i32, i32, i32) {
    %c0_i32 = arith.constant 0 : i32
    %c0_i32_0 = arith.constant 0 : i32
    %c0_i32_1 = arith.constant 0 : i32
    %c0_i32_2 = arith.constant 0 : i32
    return %c0_i32, %c0_i32_0, %c0_i32_1 : i32, i32, i32
  }
  func.func @transform_12(%arg0: i32) -> (i32, i32, i32) {
    %c0_i32 = arith.constant 0 : i32
    %c0_i32_0 = arith.constant 0 : i32
    %c0_i32_1 = arith.constant 0 : i32
    %c0_i32_2 = arith.constant 0 : i32
    return %c0_i32, %c0_i32_0, %c0_i32_1 : i32, i32, i32
  }
  func.func @transform_13(%arg0: i32) -> (i32, i32, i32) {
    %c0_i32 = arith.constant 0 : i32
    %c0_i32_0 = arith.constant 0 : i32
    %c0_i32_1 = arith.constant 0 : i32
    %c0_i32_2 = arith.constant 0 : i32
    return %c0_i32, %c0_i32_0, %c0_i32_1 : i32, i32, i32
  }
  func.func @transform_14(%arg0: i32) -> (i32, i32, i32) {
    %c0_i32 = arith.constant 0 : i32
    %c0_i32_0 = arith.constant 0 : i32
    %c0_i32_1 = arith.constant 0 : i32
    %c0_i32_2 = arith.constant 0 : i32
    return %c0_i32, %c0_i32_0, %c0_i32_1 : i32, i32, i32
  }
  func.func @transform_15(%arg0: i32) -> (i32, i32, i32) {
    %c0_i32 = arith.constant 0 : i32
    %c0_i32_0 = arith.constant 0 : i32
    %c0_i32_1 = arith.constant 0 : i32
    %c0_i32_2 = arith.constant 0 : i32
    return %c0_i32, %c0_i32_0, %c0_i32_1 : i32, i32, i32
  }
  func.func @transform_16(%arg0: i32) -> (i32, i32, i32) {
    %c0_i32 = arith.constant 0 : i32
    %c0_i32_0 = arith.constant 0 : i32
    %c0_i32_1 = arith.constant 0 : i32
    %c0_i32_2 = arith.constant 0 : i32
    return %c0_i32, %c0_i32_0, %c0_i32_1 : i32, i32, i32
  }
  func.func @transform_17(%arg0: i32) -> (i32, i32, i32) {
    %c0_i32 = arith.constant 0 : i32
    %c0_i32_0 = arith.constant 0 : i32
    %c0_i32_1 = arith.constant 0 : i32
    %c0_i32_2 = arith.constant 0 : i32
    return %c0_i32, %c0_i32_0, %c0_i32_1 : i32, i32, i32
  }
  func.func @transform_18(%arg0: i32) -> (i32, i32, i32) {
    %c0_i32 = arith.constant 0 : i32
    %c0_i32_0 = arith.constant 0 : i32
    %c0_i32_1 = arith.constant 0 : i32
    %c0_i32_2 = arith.constant 0 : i32
    return %c0_i32, %c0_i32_0, %c0_i32_1 : i32, i32, i32
  }
  func.func @transform_19(%arg0: i32) -> (i32, i32) {
    %c0_i32 = arith.constant 0 : i32
    %c0_i32_0 = arith.constant 0 : i32
    %c0_i32_1 = arith.constant 0 : i32
    return %c0_i32, %c0_i32_0 : i32, i32
  }
  func.func @transform_20(%arg0: i32) -> (i32, i32) {
    %c0_i32 = arith.constant 0 : i32
    %c0_i32_0 = arith.constant 0 : i32
    %c0_i32_1 = arith.constant 0 : i32
    return %c0_i32, %c0_i32_0 : i32, i32
  }
  func.func @transform_21(%arg0: i32) -> (i32, i32, i32) {
    %c0_i32 = arith.constant 0 : i32
    %c0_i32_0 = arith.constant 0 : i32
    %c0_i32_1 = arith.constant 0 : i32
    return %arg0, %c0_i32, %c0_i32_0 : i32, i32, i32
  }
}

</mosaic_0001>

<bundles_post_ra>
// kernel: decoder_forward.1
= control target key start
LH: loop header
LB: loop body
LE: loop exit
PB: predicated region body
PF: predicated region fallthrough
CT: control target
= control target key end

     0   :  { %s30059_s0 = inlined_call_operand.vmem [shape: f32[2,8,32], index: 0, kind: input, shape index: {}]   ;;  %s30060_s1 = inlined_call_operand.vmem [shape: f32[2,8,32], index: 1, kind: input, shape index: {}]   ;;  %s30061_s2 = inlined_call_operand.hbm [shape: f32[2,8,8], index: 2, kind: input, shape index: {}]   ;;  %s30062_s3 = inlined_call_operand.vmem [shape: f32[2,32,96], index: 3, kind: input, shape index: {}]   ;;  %s30063_s4 = inlined_call_operand.hbm [shape: f32[2,1,96], index: 4, kind: input, shape index: {}]   ;;  %s30064_s5 = inlined_call_operand.vmem [shape: f32[2,32,32], index: 5, kind: input, shape index: {}]   ;;  %s30065_s6 = inlined_call_operand.hbm [shape: f32[2,1,32], index: 6, kind: input, shape index: {}]   ;;  %s30066_s7 = inlined_call_operand.vmem [shape: f32[2,32,32], index: 7, kind: input, shape index: {}]   ;;  %s30067_s8 = inlined_call_operand.hbm [shape: f32[2,1,32], index: 8, kind: input, shape index: {}]   ;;  %s30068_s9 = inlined_call_operand.vmem [shape: f32[32,128], index: 9, kind: input, shape index: {}]   ;;  %s30069_s10 = inlined_call_operand.hbm [shape: f32[1,128], index: 10, kind: input, shape index: {}]   ;;  %s30070_s11 = inlined_call_operand.hbm [shape: f32[2,32,32], index: 11, kind: input, shape index: {}]   ;;  %s30071_s12 = inlined_call_operand.hbm [shape: f32[2,1,32], index: 12, kind: input, shape index: {}]   ;;  %s30072_s13 = inlined_call_operand.hbm [shape: f32[2,32,64], index: 13, kind: input, shape index: {}]   ;;  %s30073_s14 = inlined_call_operand.hbm [shape: f32[2,1,64], index: 14, kind: input, shape index: {}]   ;;  %s30074_s15 = inlined_call_operand.vmem [shape: f32[2,64,32], index: 15, kind: input, shape index: {}]   ;;  %s30075_s16 = inlined_call_operand.hbm [shape: f32[2,1,32], index: 16, kind: input, shape index: {}]   ;;  %s30076_s17 = inlined_call_operand.vmem [shape: f32[2,3,32], index: 17, kind: input, shape index: {}]   ;;  %s30077_s18 = inlined_call_operand.vmem [shape: f32[2,3,32], index: 18, kind: input, shape index: {}]   ;;  %s30078_s19 = inlined_call_operand.vmem [shape: f32[32,128], index: 19, kind: input, shape index: {}]   ;;  %s30079_s20 = inlined_call_operand.hbm [shape: f32[1,128], index: 20, kind: input, shape index: {}]   ;;  %s30080_s21 = inlined_call_operand.hbm [shape: f32[2,8,128], index: 21, kind: output, shape index: {}]  }
   0x1   :  { %30130 = sst [smem:[#allocation29_spill]] %s30059_s0 }
   0x2   :  { %30131 = sst [smem:[#allocation30_spill]] %s30060_s1 }
   0x3   :  { %30132 = sst [smem:[#allocation31_spill]] %s30061_s2 }
   0x4   :  { %30133 = sst [smem:[#allocation32_spill]] %s30062_s3 }
   0x5   :  { %30134 = sst [smem:[#allocation33_spill]] %s30063_s4 }
   0x6   :  { %30135 = sst [smem:[#allocation34_spill]] %s30064_s5 }
   0x7   :  { %30136 = sst [smem:[#allocation35_spill]] %s30065_s6 }
   0x8   :  { %30137 = sst [smem:[#allocation36_spill]] %s30066_s7 }
   0x9   :  { %30138 = sst [smem:[#allocation37_spill]] %s30067_s8 }
   0xa   :  { %30139 = sst [smem:[#allocation38_spill]] %s30068_s9 }
   0xb   :  { %30140 = sst [smem:[#allocation39_spill]] %s30069_s10 }
   0xc   :  { %30141 = sst [smem:[#allocation40_spill]] %s30070_s11 }
   0xd   :  { %30142 = sst [smem:[#allocation41_spill]] %s30071_s12 }
   0xe   :  { %30143 = sst [smem:[#allocation42_spill]] %s30072_s13 }
   0xf   :  { %30144 = sst [smem:[#allocation43_spill]] %s30073_s14 }
  0x10   :  { %30145 = sst [smem:[#allocation44_spill]] %s30074_s15 }
  0x11   :  { %30146 = sst [smem:[#allocation45_spill]] %s30075_s16 }
  0x12   :  { %30147 = sst [smem:[#allocation46_spill]] %s30076_s17 }
  0x13   :  { %30148 = sst [smem:[#allocation47_spill]] %s30077_s18 }
  0x14   :  { %30149 = sst [smem:[#allocation48_spill]] %s30078_s19 }
  0x15   :  { %30150 = sst [smem:[#allocation49_spill]] %s30079_s20 }
  0x16   :  { %30151 = sst [smem:[#allocation50_spill]] %s30080_s21 }
  0x17   :  { %26 = vsyncpa [#allocation3], 0 }
  0x18   :  { %28 = vsyncpa [#allocation3 + $0x1], 0 }
  0x19   :  { %29 = vsyncpa [#allocation6], 0 }
  0x1a   :  { %30 = vsyncpa [#allocation9], 0 }
  0x1b   :  { %31 = vsyncpa [#allocation12], 0 }
  0x1c   :  { %32 = vsyncpa [#allocation15], 0 }
  0x1d   :  { %33 = vsyncpa [#allocation18], 0 }
  0x1e   :  { %34 = vsyncpa [#allocation4], 0 }
  0x1f   :  { %36 = vsyncpa [#allocation4 + $0x1], 0  ;;  %s27790_s2 = smov 0   ;;  %s27792_s25 = smov 0  }
  0x20   :  { %s27794_s26 = smov 0   ;;  %s27796_s27 = smov 0  }
  0x21 LB: > { %s27646_s3 = smov [#allocation5]   ;;  %s27811_s29 = sadd.s32 4294967295, %s27644_s27   ;;  %s27644_s27 = sphi %s27796_s27, %s30219_s27   ;;  %s27640_s26 = sphi %s27794_s26, %s30218_s26   ;;  %s27636_s25 = sphi %s27792_s25, %s30217_s25   ;;  %s27632_s2 = sphi %s27790_s2, %s30216_s2  }
  0x22   : > { %s544_s28 = sshll.u32 %s27646_s3, 4  ;;  %p23101_p0 = scmp.ge.s32.totalorder %s27644_s27, 1  ;;  %s27816_s28 = int_to_ptr.vmem [resolvable:$true] %s544_s28 }
  0x23   : > { %p30098_p1 = scmp.eq.s32.totalorder %s27811_s29, 0  ;;  %p529_p2 = scmp.lt.s32.totalorder %s27644_s27, 3 }
  0x24   : > { %s27647_s4 = smov [#allocation8]   ;;  %s27648_s22 = smov [#allocation11]  }
  0x25   : > { %p27818_p3 = pnand %p23101_p0, %p529_p2  ;;  %s576_s30 = sshll.u32 %s27647_s4, 4  ;;  %s27831_s30 = int_to_ptr.vmem [resolvable:$true] %s576_s30 }
  0x26   : > { %s603_s23 = sshll.u32 %s27648_s22, 4  ;;  %s30155_s3 = sld [smem:[#allocation33_spill]]  ;;  %s27833_s23 = int_to_ptr.vmem [resolvable:$true] %s603_s23 }
  0x27   : > { %s30152_s0 = scalar_select %p27818_p3, 1, 0 }
  0x28   : > { %p27030_p5 = pneg %p27818_p3 }
  0x29   : > { %30153 = sst [smem:[#allocation28_spill]] %s30152_s0 }
  0x2a   : > { %p27827_p6 = pnand %p27030_p5, %p30098_p1 }
  0x2c   : > { %s27248_s21 = scalar_lea.hbm %s30155_s3, 32  ;;  %p27843_p8 = pneg %p27827_p6 }
  0x2d   : > { %p27249_p7 = scmp.ne.s32.totalorder %s30155_s3, %s27248_s21  ;;  %p27255_p11 = scmp.lt.u32.totalorder %s27248_s21, %s30155_s3 }
  0x2f   : > { %p27251_p9 = pnand %p27843_p8, %p27249_p7 }
  0x31   : > { %p27252_p10 = pneg %p27251_p9 }
  0x33   : > { %p27257_p12 = pnand %p27255_p11, %p27252_p10 }
  0x35   : > { %27260 = shalt.err (!%p27257_p12)
}
  0x36   : > { %s27261_s15 = scalar_lea.vmem %s27816_s28, 32  ;;  %p27269_p5 = scmp.lt.s32.totalorder %s27816_s28, %s27816_s28 }
  0x37   : > { %p27262_p13 = scmp.ne.s32.totalorder %s27816_s28, %s27261_s15  ;;  %p27270_p4 = scmp.lt.s32.totalorder %s27261_s15, %s27261_s15 }
  0x39   : > { %p27264_p0 = pnand %p27262_p13, %p27843_p8  ;;  %p27271_p7 = por %p27270_p4, %p27269_p5 }
  0x3b   : > { %p27265_p2 = pneg %p27264_p0 }
  0x3d   : > { %p27272_p9 = pnand %p27271_p7, %p27265_p2 }
  0x3f   : > { %27275 = shalt.err (!%p27272_p9)
}
  0x40   : > { %s30093_s19 = smov 16   ;;  %s30095_s18 = smov 1  }
  0x41   : > { %27033 = dma.hbm_to_vmem [thread:$0]  (!%p27827_p6), %s30155_s3, 32, %s27816_s28, [#allocation6], %s30093_s19, %s30093_s19, %s30095_s18  }
  0x42   : > { %s30157_s8 = sld [smem:[#allocation37_spill]] }
  0x48   : > { %s27276_s15 = scalar_lea.hbm %s30157_s8, 32 }
  0x49   : > { %p27277_p4 = scmp.ne.s32.totalorder %s30157_s8, %s27276_s15  ;;  %p27283_p12 = scmp.lt.u32.totalorder %s27276_s15, %s30157_s8 }
  0x4b   : > { %p27279_p10 = pnand %p27277_p4, %p27843_p8 }
  0x4d   : > { %p27280_p11 = pneg %p27279_p10 }
  0x4f   : > { %p27285_p13 = pnand %p27283_p12, %p27280_p11 }
  0x51   : > { %27288 = shalt.err (!%p27285_p13)
}
  0x52   : > { %s27289_s28 = scalar_lea.vmem %s27831_s30, 32  ;;  %p27297_p7 = scmp.lt.s32.totalorder %s27831_s30, %s27831_s30 }
  0x53   : > { %p27290_p0 = scmp.ne.s32.totalorder %s27831_s30, %s27289_s28  ;;  %p27298_p9 = scmp.lt.s32.totalorder %s27289_s28, %s27289_s28 }
  0x55   : > { %p27292_p2 = pnand %p27290_p0, %p27843_p8  ;;  %p27299_p4 = por %p27298_p9, %p27297_p7 }
  0x57   : > { %p27293_p5 = pneg %p27292_p2 }
  0x59   : > { %p27300_p10 = pnand %p27299_p4, %p27293_p5 }
  0x5b   : > { %27303 = shalt.err (!%p27300_p10)
}
  0x5c   : > { %27039 = dma.hbm_to_vmem [thread:$0]  (!%p27827_p6), %s30157_s8, 32, %s27831_s30, [#allocation9], %s30093_s19, %s30093_s19, %s30095_s18  }
  0x5d   : > { %s30158_s11 = sld [smem:[#allocation40_spill]] }
  0x63   : > { %s27304_s21 = scalar_lea.hbm %s30158_s11, 1024 }
  0x64   : > { %p27305_p11 = scmp.ne.s32.totalorder %s30158_s11, %s27304_s21  ;;  %p27311_p0 = scmp.lt.u32.totalorder %s27304_s21, %s30158_s11 }
  0x66   : > { %p27307_p12 = pnand %p27305_p11, %p27843_p8 }
  0x68   : > { %p27308_p13 = pneg %p27307_p12 }
  0x6a   : > { %p27313_p2 = pnand %p27311_p0, %p27308_p13 }
  0x6c   : > { %27316 = shalt.err (!%p27313_p2)
}
  0x6d   : > { %s27317_s30 = scalar_lea.vmem %s27833_s23, 1024  ;;  %p27325_p4 = scmp.lt.s32.totalorder %s27833_s23, %s27833_s23 }
  0x6e   : > { %p27318_p5 = scmp.ne.s32.totalorder %s27833_s23, %s27317_s30  ;;  %p27326_p10 = scmp.lt.s32.totalorder %s27317_s30, %s27317_s30 }
  0x70   : > { %p27320_p7 = pnand %p27318_p5, %p27843_p8  ;;  %p27327_p11 = por %p27326_p10, %p27325_p4 }
  0x72   : > { %p27321_p9 = pneg %p27320_p7 }
  0x74   : > { %p27328_p12 = pnand %p27327_p11, %p27321_p9 }
  0x76   : > { %27331 = shalt.err (!%p27328_p12)
}
  0x77   : > { %s27651_s28 = smov 128   ;;  %s27652_s7 = smov 8  }
  0x78   : > { %27045 = dma.hbm_to_vmem [thread:$0]  (!%p27827_p6), %s30158_s11, 1024, %s27833_s23, [#allocation12], %s27651_s28, %s27651_s28, %s27652_s7  }
  0x79   : > { %s27653_s0 = smov [#allocation14]   ;;  %s27654_s1 = smov [#allocation17]  }
  0x7a   : > { %s629_s21 = sshll.u32 %s27653_s0, 4  ;;  %s658_s24 = sshll.u32 %s27654_s1, 4  ;;  %s630_s21 = int_to_ptr.vmem [resolvable:$true] %s629_s21  ;;  %s659_s24 = int_to_ptr.vmem [resolvable:$true] %s658_s24 }
  0x7b   : > { %s30159_s13 = sld [smem:[#allocation42_spill]] }
  0x81   : > { %s27332_s30 = scalar_lea.hbm %s30159_s13, 1024 }
  0x82   : > { %p27333_p13 = scmp.ne.s32.totalorder %s30159_s13, %s27332_s30  ;;  %p27339_p5 = scmp.lt.u32.totalorder %s27332_s30, %s30159_s13 }
  0x84   : > { %p27335_p0 = pnand %p27333_p13, %p27843_p8 }
  0x86   : > { %p27336_p2 = pneg %p27335_p0 }
  0x88   : > { %p27341_p7 = pnand %p27339_p5, %p27336_p2 }
  0x8a   : > { %27344 = shalt.err (!%p27341_p7)
}
  0x8b   : > { %s27345_s23 = scalar_lea.vmem %s630_s21, 1024  ;;  %p27353_p11 = scmp.lt.s32.totalorder %s630_s21, %s630_s21 }
  0x8c   : > { %p27346_p9 = scmp.ne.s32.totalorder %s630_s21, %s27345_s23  ;;  %p27354_p12 = scmp.lt.s32.totalorder %s27345_s23, %s27345_s23 }
  0x8e   : > { %p27348_p4 = pnand %p27346_p9, %p27843_p8  ;;  %p27355_p1 = por %p27354_p12, %p27353_p11 }
  0x90   : > { %p27349_p10 = pneg %p27348_p4 }
  0x92   : > { %p27356_p3 = pnand %p27355_p1, %p27349_p10 }
  0x94   : > { %27359 = shalt.err (!%p27356_p3)
}
  0x95   : > { %27051 = dma.hbm_to_vmem [thread:$0]  (!%p27827_p6), %s30159_s13, 1024, %s630_s21, [#allocation15], %s27651_s28, %s27651_s28, %s27652_s7  }
  0x96   : > { %s30160_s16 = sld [smem:[#allocation45_spill]] }
  0x9c   : > { %s27360_s9 = scalar_lea.hbm %s30160_s16, 32 }
  0x9d   : > { %p27361_p13 = scmp.ne.s32.totalorder %s30160_s16, %s27360_s9  ;;  %p27367_p3 = scmp.lt.u32.totalorder %s27360_s9, %s30160_s16 }
  0x9f   : > { %p27363_p0 = pnand %p27361_p13, %p27843_p8 }
  0xa1   : > { %p27364_p1 = pneg %p27363_p0 }
  0xa3   : > { %p27369_p2 = pnand %p27367_p3, %p27364_p1 }
  0xa5   : > { %27372 = shalt.err (!%p27369_p2)
}
  0xa6   : > { %s27373_s15 = scalar_lea.vmem %s659_s24, 32  ;;  %p27381_p4 = scmp.lt.s32.totalorder %s659_s24, %s659_s24 }
  0xa7   : > { %p27374_p5 = scmp.ne.s32.totalorder %s659_s24, %s27373_s15  ;;  %p27382_p10 = scmp.lt.s32.totalorder %s27373_s15, %s27373_s15 }
  0xa9   : > { %p27376_p7 = pnand %p27374_p5, %p27843_p8  ;;  %p27383_p11 = por %p27382_p10, %p27381_p4 }
  0xab   : > { %p27377_p9 = pneg %p27376_p7 }
  0xad   : > { %p27384_p12 = pnand %p27383_p11, %p27377_p9 }
  0xaf   : > { %27387 = shalt.err (!%p27384_p12)
}
  0xb0   : > { %s30161_s28 = smov 1   ;;  %s30162_s7 = smov 16  }
  0xb1   : > { %27057 = dma.hbm_to_vmem [thread:$0]  (!%p27827_p6), %s30160_s16, 32, %s659_s24, [#allocation18], %s30162_s7, %s30162_s7, %s30161_s28  }
  0xb2   : > { %s27655_s23 = smov [#allocation7]   ;;  %s27656_s18 = smov [#allocation10]  }
  0xb3   : > { %s560_s19 = sshll.u32 %s27655_s23, 4  ;;  %s593_s8 = sshll.u32 %s27656_s18, 4  ;;  %s561_s19 = int_to_ptr.vmem [resolvable:$true] %s560_s19  ;;  %s594_s8 = int_to_ptr.vmem [resolvable:$true] %s593_s8 }
  0xb4   : > { %s30163_s6 = sld [smem:[#allocation35_spill]] }
  0xba   : > { %s27388_s17 = scalar_lea.hbm %s30163_s6, 32 }
  0xbb   : > { %p27389_p13 = scmp.ne.s32.totalorder %s30163_s6, %s27388_s17  ;;  %p27395_p3 = scmp.lt.u32.totalorder %s27388_s17, %s30163_s6 }
  0xbd   : > { %p27391_p0 = pnand %p27389_p13, %p27843_p8 }
  0xbf   : > { %p27392_p1 = pneg %p27391_p0 }
  0xc1   : > { %p27397_p2 = pnand %p27395_p3, %p27392_p1 }
  0xc3   : > { %27400 = shalt.err (!%p27397_p2)
}
  0xc4   : > { %s27401_s24 = scalar_lea.vmem %s561_s19, 32  ;;  %p27409_p4 = scmp.lt.s32.totalorder %s561_s19, %s561_s19 }
  0xc5   : > { %p27402_p5 = scmp.ne.s32.totalorder %s561_s19, %s27401_s24  ;;  %p27410_p10 = scmp.lt.s32.totalorder %s27401_s24, %s27401_s24 }
  0xc7   : > { %p27404_p7 = pnand %p27402_p5, %p27843_p8  ;;  %p27411_p11 = por %p27410_p10, %p27409_p4 }
  0xc9   : > { %p27405_p9 = pneg %p27404_p7 }
  0xcb   : > { %p27412_p12 = pnand %p27411_p11, %p27405_p9 }
  0xcd   : > { %27415 = shalt.err (!%p27412_p12)
}
  0xce   : > { %27036 = dma.hbm_to_vmem [thread:$0]  (!%p27827_p6), %s30163_s6, 32, %s561_s19, [#allocation6], %s30162_s7, %s30162_s7, %s30161_s28  }
  0xcf   : > { %s30164_s10 = sld [smem:[#allocation39_spill]] }
  0xd5   : > { %s27416_s3 = scalar_lea.hbm %s30164_s10, 16 }
  0xd6   : > { %p27417_p13 = scmp.ne.s32.totalorder %s30164_s10, %s27416_s3  ;;  %p27423_p3 = scmp.lt.u32.totalorder %s27416_s3, %s30164_s10 }
  0xd8   : > { %p27419_p0 = pnand %p27417_p13, %p27843_p8 }
  0xda   : > { %p27420_p1 = pneg %p27419_p0 }
  0xdc   : > { %p27425_p2 = pnand %p27423_p3, %p27420_p1 }
  0xde   : > { %27428 = shalt.err (!%p27425_p2)
}
  0xdf   : > { %s27429_s22 = scalar_lea.vmem %s594_s8, 16  ;;  %s27436_s19 = scalar_lea.vmem %s594_s8, 32 }
  0xe0   : > { %p27430_p5 = scmp.ne.s32.totalorder %s594_s8, %s27429_s22  ;;  %p27437_p4 = scmp.lt.s32.totalorder %s594_s8, %s594_s8 }
  0xe1   : > { %p27438_p10 = scmp.lt.s32.totalorder %s27436_s19, %s27429_s22 }
  0xe2   : > { %p27432_p7 = pnand %p27430_p5, %p27843_p8 }
  0xe3   : > { %p27439_p11 = por %p27438_p10, %p27437_p4 }
  0xe4   : > { %p27433_p9 = pneg %p27432_p7 }
  0xe6   : > { %p27440_p12 = pnand %p27439_p11, %p27433_p9 }
  0xe8   : > { %27443 = shalt.err (!%p27440_p12)
}
  0xe9   : > { %27042 = dma.hbm_to_vmem [thread:$0]  (!%p27827_p6), %s30164_s10, 16, %s594_s8, [#allocation9]  }
  0xea   : > { %s27657_s21 = smov [#allocation13]   ;;  %s27658_s23 = smov [#allocation16]  }
  0xeb   : > { %s616_s30 = sshll.u32 %s27657_s21, 4  ;;  %s642_s18 = sshll.u32 %s27658_s23, 4  ;;  %s617_s30 = int_to_ptr.vmem [resolvable:$true] %s616_s30  ;;  %s643_s18 = int_to_ptr.vmem [resolvable:$true] %s642_s18 }
  0xec   : > { %s30165_s12 = sld [smem:[#allocation41_spill]] }
  0xf2   : > { %s27444_s17 = scalar_lea.hbm %s30165_s12, 32 }
  0xf3   : > { %p27445_p13 = scmp.ne.s32.totalorder %s30165_s12, %s27444_s17  ;;  %p27451_p3 = scmp.lt.u32.totalorder %s27444_s17, %s30165_s12 }
  0xf5   : > { %p27447_p0 = pnand %p27445_p13, %p27843_p8 }
  0xf7   : > { %p27448_p1 = pneg %p27447_p0 }
  0xf9   : > { %p27453_p2 = pnand %p27451_p3, %p27448_p1 }
  0xfb   : > { %27456 = shalt.err (!%p27453_p2)
}
  0xfc   : > { %s27457_s8 = scalar_lea.vmem %s617_s30, 32  ;;  %p27465_p4 = scmp.lt.s32.totalorder %s617_s30, %s617_s30 }
  0xfd   : > { %p27458_p5 = scmp.ne.s32.totalorder %s617_s30, %s27457_s8  ;;  %p27466_p10 = scmp.lt.s32.totalorder %s27457_s8, %s27457_s8 }
  0xff   : > { %p27460_p7 = pnand %p27458_p5, %p27843_p8  ;;  %p27467_p11 = por %p27466_p10, %p27465_p4 }
 0x101   : > { %p27461_p9 = pneg %p27460_p7 }
 0x103   : > { %p27468_p12 = pnand %p27467_p11, %p27461_p9 }
 0x105   : > { %27471 = shalt.err (!%p27468_p12)
}
 0x106   : > { %27048 = dma.hbm_to_vmem [thread:$0]  (!%p27827_p6), %s30165_s12, 32, %s617_s30, [#allocation12], %s30162_s7, %s30162_s7, %s30161_s28  }
 0x107   : > { %s30166_s14 = sld [smem:[#allocation43_spill]] }
 0x10d   : > { %s27472_s3 = scalar_lea.hbm %s30166_s14, 32 }
 0x10e   : > { %p27473_p13 = scmp.ne.s32.totalorder %s30166_s14, %s27472_s3  ;;  %p27479_p3 = scmp.lt.u32.totalorder %s27472_s3, %s30166_s14 }
 0x110   : > { %p27475_p0 = pnand %p27473_p13, %p27843_p8 }
 0x112   : > { %p27476_p1 = pneg %p27475_p0 }
 0x114   : > { %p27481_p2 = pnand %p27479_p3, %p27476_p1 }
 0x116   : > { %27484 = shalt.err (!%p27481_p2)
}
 0x117   : > { %s27485_s22 = scalar_lea.vmem %s643_s18, 32  ;;  %p27493_p4 = scmp.lt.s32.totalorder %s643_s18, %s643_s18 }
 0x118   : > { %p27486_p5 = scmp.ne.s32.totalorder %s643_s18, %s27485_s22  ;;  %p27494_p10 = scmp.lt.s32.totalorder %s27485_s22, %s27485_s22 }
 0x11a   : > { %p27488_p7 = pnand %p27486_p5, %p27843_p8  ;;  %p27495_p11 = por %p27494_p10, %p27493_p4 }
 0x11c   : > { %p27489_p9 = pneg %p27488_p7 }
 0x11e   : > { %p27496_p12 = pnand %p27495_p11, %p27489_p9 }
 0x120   : > { %27499 = shalt.err (!%p27496_p12)
}
 0x121   : > { %27054 = dma.hbm_to_vmem [thread:$0]  (!%p27827_p6), %s30166_s14, 32, %s643_s18, [#allocation15], %s30162_s7, %s30162_s7, %s30161_s28  }
 0x122   : > { %s27659_s8 = smov [#allocation19]   ;;  %s30167_s20 = sld [smem:[#allocation49_spill]] }
 0x123   : > { %s681_s15 = sshll.u32 %s27659_s8, 4  ;;  %s682_s15 = int_to_ptr.vmem [resolvable:$true] %s681_s15 }
 0x128   : > { %s27500_s23 = scalar_lea.hbm %s30167_s20, 16 }
 0x129   : > { %p27501_p13 = scmp.ne.s32.totalorder %s30167_s20, %s27500_s23  ;;  %p27507_p3 = scmp.lt.u32.totalorder %s27500_s23, %s30167_s20 }
 0x12b   : > { %p27503_p0 = pnand %p27501_p13, %p27843_p8 }
 0x12d   : > { %p27504_p1 = pneg %p27503_p0 }
 0x12f   : > { %p27509_p2 = pnand %p27507_p3, %p27504_p1 }
 0x131   : > { %27512 = shalt.err (!%p27509_p2)
}
 0x132   : > { %s27513_s28 = scalar_lea.vmem %s682_s15, 16  ;;  %s27520_s7 = scalar_lea.vmem %s682_s15, 32 }
 0x133   : > { %p27514_p5 = scmp.ne.s32.totalorder %s682_s15, %s27513_s28  ;;  %p27521_p4 = scmp.lt.s32.totalorder %s682_s15, %s682_s15 }
 0x134   : > { %p27522_p10 = scmp.lt.s32.totalorder %s27520_s7, %s27513_s28 }
 0x135   : > { %p27516_p7 = pnand %p27514_p5, %p27843_p8 }
 0x136   : > { %p27523_p11 = por %p27522_p10, %p27521_p4 }
 0x137   : > { %p27517_p9 = pneg %p27516_p7 }
 0x139   : > { %p27524_p12 = pnand %p27523_p11, %p27517_p9 }
 0x13b   : > { %27527 = shalt.err (!%p27524_p12)
}
 0x13c   : > { %27060 = dma.hbm_to_vmem [thread:$0]  (!%p27827_p6), %s30167_s20, 16, %s682_s15, [#allocation18]  }
 0x13d   : > { %s23100_s4 = sadd.s32 4294967294, %s27644_s27   ;;  %s28056_s5 = sadd.s32 1, %s27644_s27  }
 0x13e   : > { %s98_s22 = ssub.s32 %s27644_s27, %s28056_s5  ;;  %s101_s30 = sadd.s32 1, %s27640_s26 }
 0x13f   : > { %p99_p8 = scmp.eq.s32.totalorder %s98_s22, 0  ;;  %p108_p13 = scmp.ne.s32.totalorder %s27640_s26, %s27636_s25 }
 0x140   : > { %p109_p0 = scmp.eq.s32.totalorder %s27644_s27, 0  ;;  %p114_p1 = scmp.ne.s32.totalorder %s27636_s25, %s27632_s2 }
 0x141   : > { %s28067_s19 = scalar_select %p99_p8, %s27640_s26, %s101_s30  }
 0x142   : > { %p28069_p3 = por %p109_p0, %p108_p13  ;;  %p30169_p2 = scmp.eq.s32.totalorder %s27811_s29, 0 }
 0x143   : > { %p516_p5 = scmp.eq.s32.totalorder %s27811_s29, 1  ;;  %p522_p7 = scmp.eq.s32.totalorder %s23100_s4, 1 }
 0x144   : > { %p28075_p6 = por %p30169_p2, %p114_p1  ;;  %p27079_p9 = scmp.lt.s32.totalorder %s27644_s27, 2 }
 0x145   : > { %s706_s24 = sand.u32 1, %s27640_s26   ;;  %p28082_p4 = por %p516_p5, %p108_p13 }
 0x146   : > { %p28086_p10 = por %p522_p7, %p114_p1  ;;  %s23113_s3 = sshll.u32 %s706_s24, 3 }
 0x147   : > { %s30171_s21 = scalar_select %p28082_p4, 1, 0 }
 0x148   : > { %s30172_s23 = scalar_select %p28086_p10, 1, 0 }
 0x149   : > { %s23114_s9 = sshll.u32 %s27644_s27, 7  ;;  %s30173_s28 = sld [smem:[#allocation31_spill]] }
 0x14a   : > { %s710_s18 = scalar_lea.vmem [#allocation2], %s23113_s3  ;;  %p28100_p11 = pnand %p27079_p9, %p28069_p3 }
 0x14b   : > { %s717_s1 = sshll.u32 %s710_s18, 4  ;;  %s707_s22 = scalar_lea.sflag [#allocation3], %s706_s24  ;;  %s28096_s1 = int_to_ptr.vmem [resolvable:$true] %s717_s1 }
 0x14c   : > { %p27530_p8 = pneg %p28100_p11 }
 0x14f   : > { %s28094_s7 = scalar_lea.hbm %s30173_s28, %s23114_s9  ;;  %s27533_s17 = scalar_lea.hbm %s30173_s28, 256 }
 0x150   : > { %s27528_s30 = scalar_lea.hbm %s28094_s7, 128  ;;  %p27534_p1 = scmp.lt.u32.totalorder %s28094_s7, %s30173_s28 }
 0x151   : > { %p27529_p12 = scmp.ne.s32.totalorder %s28094_s7, %s27528_s30  ;;  %p27535_p3 = scmp.lt.u32.totalorder %s27533_s17, %s27528_s30 }
 0x152   : > { %p27537_p5 = scmp.lt.u32.totalorder %s27528_s30, %s28094_s7 }
 0x153   : > { %p27531_p13 = pnand %p27530_p8, %p27529_p12  ;;  %p27536_p2 = por %p27535_p3, %p27534_p1 }
 0x155   : > { %p27532_p0 = pneg %p27531_p13  ;;  %p27538_p7 = por %p27537_p5, %p27536_p2 }
 0x157   : > { %p27539_p9 = pnand %p27538_p7, %p27532_p0 }
 0x159   : > { %27542 = shalt.err (!%p27539_p9)
}
 0x15a   : > { %s27543_s24 = scalar_lea.vmem %s28096_s1, 128  ;;  %s27660_s18 = smov [#allocation2]  }
 0x15b   : > { %p27544_p12 = scmp.ne.s32.totalorder %s28096_s1, %s27543_s24  ;;  %s27548_s3 = sshll.u32 %s27660_s18, 4  ;;  %s27549_s3 = int_to_ptr.vmem [resolvable:$false] %s27548_s3 }
 0x15c   : > { %s27550_s9 = scalar_lea.vmem %s27549_s3, 256  ;;  %p27551_p4 = scmp.lt.s32.totalorder %s28096_s1, %s27549_s3 }
 0x15d   : > { %p27546_p13 = pnand %p27544_p12, %p27530_p8  ;;  %p27552_p1 = scmp.lt.s32.totalorder %s27550_s9, %s27543_s24 }
 0x15f   : > { %p27547_p10 = pneg %p27546_p13  ;;  %p27553_p3 = por %p27552_p1, %p27551_p4 }
 0x161   : > { %p27554_p2 = pnand %p27553_p3, %p27547_p10 }
 0x163   : > { %27557 = shalt.err (!%p27554_p2)
}
 0x164   : > { %27064 = dma.hbm_to_vmem [thread:$0]  (!%p28100_p11), %s28094_s7, 128, %s28096_s1, %s707_s22  }
 0x165   : > { %s30175_s30 = sld [smem:[#allocation28_spill]] }
 0x16b   : > { %p30176_p0 = scmp.ne.s32.totalorder %s30175_s30, 0 }
 0x16c   : > { %s28132_s17 = sand.u32 (!%p30176_p0), 1, %s27636_s25  }
 0x16d   : > { %726 = sbr.rel (%p30176_p0) target bundleno = 10699 (0x29cb), region = 104  ;;  %s30101_s8 = sshll.u32 (!%p30176_p0), %s28132_s17, 3 }
 0x16e   : > { %s729_s0 = scalar_lea.sflag (!%p30176_p0), [#allocation3], %s28132_s17  ;;  %s28138_s24 = scalar_lea.vmem (!%p30176_p0), [#allocation2], %s30101_s8 }
 0x174   : > { %27603 = dma.done.wait (%p28075_p6), %s729_s0, 128  }
 0x175   : > { %27605 = vsyncadd (%p28075_p6), %s729_s0, 4294967168  ;;  %p30177_p4 = scmp.eq.s32.totalorder %s27811_s29, 0 }
 0x177   : > { %27607 = dma.done.wait (%p30177_p4), [#allocation6], 64   ;;  %p30178_p10 = pmov %p30177_p4 }
 0x178   : > { %p30179_p11 = pmov %p30177_p4 }
 0x179   : > { %27609 = vsyncadd (%p30178_p10), [#allocation6], 4294967232 }
 0x17a   : > { %27611 = dma.done.wait (%p30179_p11), [#allocation9], 48   ;;  %p30180_p8 = pmov %p30177_p4 }
 0x17b   : > { %p30181_p5 = pmov %p30177_p4 }
 0x17c   : > { %27613 = vsyncadd (%p30180_p8), [#allocation9], 4294967248 }
 0x17d   : > { %27615 = dma.done.wait (%p30181_p5), [#allocation12], 1056   ;;  %p30182_p7 = pmov %p30177_p4 }
 0x17e   : > { %p30183_p6 = pmov %p30177_p4 }
 0x17f   : > { %27617 = vsyncadd (%p30182_p7), [#allocation12], 4294966240 }
 0x180   : > { %27619 = dma.done.wait (%p30183_p6), [#allocation15], 1056   ;;  %p30184_p9 = pmov %p30177_p4 }
 0x181   : > { %p30185_p12 = pmov %p30177_p4 }
 0x182   : > { %27621 = vsyncadd (%p30184_p9), [#allocation15], 4294966240 }
 0x183   : > { %27623 = dma.done.wait (%p30185_p12), [#allocation18], 48   ;;  %p30186_p13 = pmov %p30177_p4 }
 0x184   : > { %p839_p1 = scmp.lt.s32.totalorder %s27811_s29, 1  ;;  %v27661_v0 = vmov 0.0|0.0   ;;  %vm27662_vm0 = vmmov 0   ;;  %v27663_v1 = vmov 0.0   ;;  %s30187_s22 = sld [smem:[#allocation29_spill]]  ;;  %vm862_vm1 = vcmask 261120  }
 0x185   : > { %27625 = vsyncadd (%p30186_p13), [#allocation18], 4294967248  ;;  %26038 = vmatprep.subr.bf16.mxu1 %v27661_v0  ;;  %24096 = vmatprep.mubr.msk.f32.mxu1 %vm27662_vm0, %v27663_v1  ;;  %s30188_s30 = sld [smem:[#allocation32_spill]]  ;;  %s30189_s11 = sld [smem:[#allocation38_spill]]  ;;  %vm1855_vm2 = vcmask 64512   ;;  %vm5537_vm4 = vcmask 130048  }
 0x186   : > { %s28169_s15 = scalar_select %p839_p1, %s27811_s29, 1  ;;  %26002 = vmatprep.subr.bf16.mxu0 %v27661_v0  ;;  %24030 = vmatprep.mubr.msk.f32.mxu0 %vm27662_vm0, %v27663_v1  ;;  %vm5539_vm5 = vcmask 195584   ;;  %vm11297_vm10 = vcmask 523264  }
 0x187   : > { %s30190_s1 = sld [smem:[#allocation30_spill]]  ;;  %s30124_s13 = smov 96  }
 0x188   : > { %s23128_s7 = sshll.u32 %s28169_s15, 3  ;;  %s30121_s14 = smov 112  }
 0x189   : > { %s30125_s15 = smov 120   ;;  %s30120_s6 = smov 80  }
 0x18a   : > { %s28180_s18 = scalar_lea.vmem %s30187_s22, %s23128_s7  ;;  %s30116_s10 = smov 72  }
 0x18b   : > { %v1353_v2 = vld [vmem:[%s30188_s30] sm:$0xff]  ;;  %v1354_v3 = vld [vmem:[%s30188_s30 + $0x8] sm:$0xff]  ;;  %v1355_v4 = vld [vmem:[%s30188_s30 + $0x10] sm:$0xff]  ;;  %s30106_s8 = smov 56   ;;  %s30104_s4 = smov 48  }
 0x18c   : > { %v1368_v5 = vand.u32 4294901760, %v1353_v2  ;;  %v1371_v6 = vand.u32 4294901760, %v1354_v3  ;;  %v1356_v7 = vld [vmem:[%s30188_s30 + $0x18] sm:$0xff]  ;;  %v1374_v8 = vand.u32 4294901760, %v1355_v4  ;;  %v847_v9 = vld [vmem:[%s28180_s18] sm:$0xff]  ;;  %v852_v42 = vld [vmem:[%s30189_s11 + $0x8] sm:$0xff] }
 0x18d   : > { %v1377_v10 = vand.u32 4294901760, %v1356_v7  ;;  %v1365_v11 = vsel %vm862_vm1, %v847_v9, 0  ;;  %v851_v41 = vld [vmem:[%s30189_s11] sm:$0xff]  ;;  %v853_v43 = vld [vmem:[%s30189_s11 + $0x10] sm:$0xff]  ;;  %s846_s12 = scalar_lea.vmem %s30190_s1, %s23128_s7  ;;  %v870_v45 = vand.u32 4294901760, %v852_v42  ;;  %v854_v46 = vld [vmem:[%s30189_s11 + $0x18] sm:$0xff] }
 0x18e   : > { %v26039_v12 = vpack.c.bf16 %v1371_v6, %v1368_v5  ;;  %v1448_v13 = vsub.f32 %v1353_v2, %v1368_v5  ;;  %v1455_v14 = vsub.f32 %v1354_v3, %v1371_v6  ;;  %v1462_v15 = vsub.f32 %v1355_v4, %v1374_v8  ;;  %v848_v48 = vld [vmem:[%s846_s12] sm:$0xff]  ;;  %s30123_s12 = smov 88   ;;  %s30118_s7 = smov 104  }
 0x18f   : > { %v1469_v16 = vsub.f32 %v1356_v7, %v1377_v10  ;;  %v1436_v17 = vand.u32 4294901760, %v1365_v11  ;;  %v26042_v18 = vpack.c.bf16 %v1377_v10, %v1374_v8  ;;  %v867_v44 = vand.u32 4294901760, %v851_v41  ;;  %s30102_s22 = smov 40   ;;  %s30114_s3 = smov 8  }
 0x190   : > { %26040 = vmatpush3.bf16.msra.mxu1 %v26039_v12  ;;  %v1449_v19 = vand.u32 4294901760, %v1448_v13  ;;  %v1456_v20 = vand.u32 4294901760, %v1455_v14  ;;  %v1463_v21 = vand.u32 4294901760, %v1462_v15  ;;  %v26051_v37 = vpack.c.bf16 %v1455_v14, %v1448_v13  ;;  %s30191_s1 = sld [smem:[#allocation34_spill]]  ;;  %s30192_s9 = sld [smem:[#allocation36_spill]] }
 0x191   : > { %26041 = vmatprep.subr.bf16.mxu1 %v27661_v0  ;;  %v1437_v22 = vsub.f32 %v1365_v11, %v1436_v17  ;;  %v1470_v23 = vand.u32 4294901760, %v1469_v16  ;;  %v26054_v38 = vpack.c.bf16 %v1469_v16, %v1462_v15  ;;  %v873_v47 = vand.u32 4294901760, %v853_v43  ;;  %s30196_s0 = smov 8   ;;  %s30204_s11 = smov 80  }
 0x192   : > { %v1450_v24 = vsub.f32 %v1448_v13, %v1449_v19  ;;  %v1457_v25 = vsub.f32 %v1455_v14, %v1456_v20  ;;  %v1464_v26 = vsub.f32 %v1462_v15, %v1463_v21  ;;  %v26063_v39 = vpack.c.bf16 %v1456_v20, %v1449_v19  ;;  %s23167_s28 = sshll.u32 %s27811_s29, 7  ;;  %p30213_p2 = scmp.ne.s32.totalorder %s30171_s21, 0 }
 0x193   : > { %v1438_v27 = vand.u32 4294901760, %v1437_v22  ;;  %v1471_v28 = vsub.f32 %v1469_v16, %v1470_v23  ;;  %v26066_v40 = vpack.c.bf16 %v1470_v23, %v1463_v21  ;;  %v876_v49 = vand.u32 4294901760, %v854_v46  ;;  %s27679_s29 = smov [#allocation20]  }
 0x194   : > { %26043 = vmatpush3.bf16.msra.mxu1 %v26042_v18  ;;  %v1451_v29 = vand.u32 4294901760, %v1450_v24  ;;  %v1458_v30 = vand.u32 4294901760, %v1457_v25  ;;  %v1465_v33 = vand.u32 4294901760, %v1464_v26  ;;  %v864_v50 = vsel %vm862_vm1, %v848_v48, 0 }
 0x195   : > { %v1439_v31 = vsub.f32 %v1437_v22, %v1438_v27  ;;  %26044 = vmatprep.subr.bf16.mxu1 %v27661_v0  ;;  %v1472_v34 = vand.u32 4294901760, %v1471_v28  ;;  %v26003_v51 = vpack.c.bf16 %v870_v45, %v867_v44  ;;  %v947_v52 = vsub.f32 %v851_v41, %v867_v44 }
 0x196   : > { %v26045_v32 = vpack.c.bf16 %v1458_v30, %v1451_v29  ;;  %v954_v53 = vsub.f32 %v852_v42, %v870_v45  ;;  %v961_v54 = vsub.f32 %v853_v43, %v873_v47  ;;  %v968_v55 = vsub.f32 %v854_v46, %v876_v49 }
 0x197   : > { %v1440_v35 = vand.u32 4294901760, %v1439_v31  ;;  %v26048_v36 = vpack.c.bf16 %v1472_v34, %v1465_v33  ;;  %v935_v56 = vand.u32 4294901760, %v864_v50  ;;  %26004 = vmatpush3.bf16.msra.mxu0 %v26003_v51  ;;  %v26006_v57 = vpack.c.bf16 %v876_v49, %v873_v47 }
 0x198   : > { %v948_v58 = vand.u32 4294901760, %v947_v52  ;;  %v955_v59 = vand.u32 4294901760, %v954_v53  ;;  %v962_v60 = vand.u32 4294901760, %v961_v54  ;;  %26005 = vmatprep.subr.bf16.mxu0 %v27661_v0  ;;  %v969_v62 = vand.u32 4294901760, %v968_v55 }
 0x199   : > { %24097 = vmatmul.mubr.f32.vlgmr.msra.gmra.mrb[0].mxu1 %v1440_v35  ;;  %v936_v61 = vsub.f32 %v864_v50, %v935_v56  ;;  %v26015_v14 = vpack.c.bf16 %v954_v53, %v947_v52  ;;  %v26018_v15 = vpack.c.bf16 %v968_v55, %v961_v54 }
 0x19a   : > { %26046 = vmatpush3.bf16.msra.mxu1 %v26045_v32  ;;  %24107 = vmatprep.mubr.msk.f32.mxu1 %vm27662_vm0, %v27663_v1  ;;  %v949_v63 = vsub.f32 %v947_v52, %v948_v58  ;;  %v956_v2 = vsub.f32 %v954_v53, %v955_v59  ;;  %v963_v3 = vsub.f32 %v961_v54, %v962_v60 }
 0x19b   : > { %26047 = vmatprep.subr.bf16.mxu1 %v27661_v0  ;;  %v937_v4 = vand.u32 4294901760, %v936_v61  ;;  %v970_v5 = vsub.f32 %v968_v55, %v969_v62  ;;  %26007 = vmatpush3.bf16.msra.mxu0 %v26006_v57  ;;  %v26027_v16 = vpack.c.bf16 %v955_v59, %v948_v58 }
 0x19c   : > { %v950_v6 = vand.u32 4294901760, %v949_v63  ;;  %v957_v7 = vand.u32 4294901760, %v956_v2  ;;  %26008 = vmatprep.subr.bf16.mxu0 %v27661_v0  ;;  %v964_v10 = vand.u32 4294901760, %v963_v3 }
 0x19d   : > { %v938_v8 = vsub.f32 %v936_v61, %v937_v4  ;;  %v971_v11 = vand.u32 4294901760, %v970_v5 }
 0x19e   : > { %26049 = vmatpush3.bf16.msra.mxu1 %v26048_v36  ;;  %v26009_v9 = vpack.c.bf16 %v957_v7, %v950_v6 }
 0x19f   : > { %26050 = vmatprep.subr.bf16.mxu1 %v27661_v0  ;;  %v26012_v13 = vpack.c.bf16 %v971_v11, %v964_v10 }
 0x1a1   : > { %24108 = vmatmul.mubr.f32.vlgmr.msra.gmra.mrb[0].mxu1 %v1436_v17 }
 0x1a2   : > { %26052 = vmatpush3.bf16.msra.mxu1 %v26051_v37  ;;  %24118 = vmatprep.mubr.msk.f32.mxu1 %vm27662_vm0, %v27663_v1 }
 0x1a3   : > { %26053 = vmatprep.subr.bf16.mxu1 %v27661_v0 }
 0x1a6   : > { %26055 = vmatpush3.bf16.msra.mxu1 %v26054_v38 }
 0x1a7   : > { %26056 = vmatprep.subr.bf16.mxu1 %v27661_v0 }
 0x1a9   : > { %24119 = vmatmul.mubr.f32.vlgmr.msra.gmra.mrb[0].mxu1 %v1437_v22 }
 0x1aa   : > { %26058 = vmatpush3.bf16.msra.mxu1 %v26039_v12  ;;  %24129 = vmatprep.mubr.msk.f32.mxu1 %vm27662_vm0, %v27663_v1 }
 0x1ab   : > { %26059 = vmatprep.subr.bf16.mxu1 %v27661_v0 }
 0x1ae   : > { %26061 = vmatpush3.bf16.msra.mxu1 %v26042_v18 }
 0x1af   : > { %26062 = vmatprep.subr.bf16.mxu1 %v27661_v0 }
 0x1b1   : > { %24130 = vmatmul.mubr.f32.vlgmr.msra.gmra.mrb[0].mxu1 %v1438_v27 }
 0x1b2   : > { %26064 = vmatpush3.bf16.msra.mxu1 %v26063_v39  ;;  %24140 = vmatprep.mubr.msk.f32.mxu1 %vm27662_vm0, %v27663_v1 }
 0x1b3   : > { %26065 = vmatprep.subr.bf16.mxu1 %v27661_v0 }
 0x1b6   : > { %26067 = vmatpush3.bf16.msra.mxu1 %v26066_v40 }
 0x1b7   : > { %26068 = vmatprep.subr.bf16.mxu1 %v27661_v0 }
 0x1b9   : > { %24141 = vmatmul.mubr.f32.vlgmr.msra.gmra.mrb[0].mxu1 %v1436_v17 }
 0x1ba   : > { %26070 = vmatpush3.bf16.msra.mxu1 %v26039_v12  ;;  %24151 = vmatprep.mubr.msk.f32.mxu1 %vm27662_vm0, %v27663_v1  ;;  %v939_v12 = vand.u32 4294901760, %v938_v8 }
 0x1bb   : > { %26071 = vmatprep.subr.bf16.mxu1 %v27661_v0 }
 0x1bc   : > { %24031 = vmatmul.mubr.f32.vlgmr.msra.gmra.mrb[0].mxu0 %v939_v12 }
 0x1bd   : > { %26010 = vmatpush3.bf16.msra.mxu0 %v26009_v9  ;;  %24041 = vmatprep.mubr.msk.f32.mxu0 %vm27662_vm0, %v27663_v1 }
 0x1be   : > { %26073 = vmatpush3.bf16.msra.mxu1 %v26042_v18  ;;  %26011 = vmatprep.subr.bf16.mxu0 %v27661_v0  ;;  %v23131_v18 = vld [vmem:[#allocation5] ss:$0 sm:$0xff] }
 0x1bf   : > { %24184 = vmatprep.subr.mxu1 %v27663_v1 }
 0x1c1   : > { %24152 = vmatmul.mubr.f32.vlgmr.msra.gmra.mrb[0].mxu1 %v1436_v17  ;;  %26013 = vmatpush3.bf16.msra.mxu0 %v26012_v13  ;;  %v26030_v17 = vpack.c.bf16 %v969_v62, %v962_v60 }
 0x1c2   : > { %24186 = vmatprep.mubr.msk.f32.mxu1 %vm27662_vm0, %v27663_v1  ;;  %26014 = vmatprep.subr.bf16.mxu0 %v27661_v0 }
 0x1c4   : > { %24042 = vmatmul.mubr.f32.vlgmr.msra.gmra.mrb[0].mxu0 %v935_v56 }
 0x1c5   : > { %26016 = vmatpush3.bf16.msra.mxu0 %v26015_v14  ;;  %24052 = vmatprep.mubr.msk.f32.mxu0 %vm27662_vm0, %v27663_v1 }
 0x1c6   : > { %26017 = vmatprep.subr.bf16.mxu0 %v27661_v0 }
 0x1c9   : > { %26019 = vmatpush3.bf16.msra.mxu0 %v26018_v15 }
 0x1ca   : > { %26020 = vmatprep.subr.bf16.mxu0 %v27661_v0 }
 0x1cc   : > { %24053 = vmatmul.mubr.f32.vlgmr.msra.gmra.mrb[0].mxu0 %v936_v61 }
 0x1cd   : > { %26022 = vmatpush3.bf16.msra.mxu0 %v26003_v51  ;;  %24063 = vmatprep.mubr.msk.f32.mxu0 %vm27662_vm0, %v27663_v1 }
 0x1ce   : > { %26023 = vmatprep.subr.bf16.mxu0 %v27661_v0 }
 0x1d1   : > { %26025 = vmatpush3.bf16.msra.mxu0 %v26006_v57 }
 0x1d2   : > { %26026 = vmatprep.subr.bf16.mxu0 %v27661_v0 }
 0x1d4   : > { %24064 = vmatmul.mubr.f32.vlgmr.msra.gmra.mrb[0].mxu0 %v937_v4 }
 0x1d5   : > { %26028 = vmatpush3.bf16.msra.mxu0 %v26027_v16  ;;  %24074 = vmatprep.mubr.msk.f32.mxu0 %vm27662_vm0, %v27663_v1 }
 0x1d6   : > { %26029 = vmatprep.subr.bf16.mxu0 %v27661_v0 }
 0x1d9   : > { %26031 = vmatpush3.bf16.msra.mxu0 %v26030_v17  ;;  %v28362_v17 = vld [vmem:[%s28138_s24] sm:$0xff]  ;;  %s30108_s24 = smov 64  }
 0x1da   : > { %26032 = vmatprep.subr.bf16.mxu0 %v27661_v0  ;;  %vm850_vm3 = vcmp.gt.f32.partialorder %v28362_v17, 0.5 }
 0x1dc   : > { %24075 = vmatmul.mubr.f32.vlgmr.msra.gmra.mrb[0].mxu0 %v935_v56 }
 0x1dd   : > { %26034 = vmatpush3.bf16.msra.mxu0 %v26003_v51  ;;  %24085 = vmatprep.mubr.msk.f32.mxu0 %vm27662_vm0, %v27663_v1 }
 0x1de   : > { %26035 = vmatprep.subr.bf16.mxu0 %v27661_v0 }
 0x1e1   : > { %26037 = vmatpush3.bf16.msra.mxu0 %v26006_v57 }
 0x1e2   : > { %24154 = vmatprep.subr.mxu0 %v27663_v1 }
 0x1e4   : > { %24086 = vmatmul.mubr.f32.vlgmr.msra.gmra.mrb[0].mxu0 %v935_v56 }
 0x1e5   : > { %24156 = vmatprep.mubr.msk.f32.mxu0 %vm27662_vm0, %v27663_v1 }
 0x294   : > { %v1848_v19 = vpop.f32.mrb[0].mxu1 }
 0x295   : > { %v28262_v20 = vadd.f32 %v23131_v18, %v1848_v19  ;;  %v24153_v21 = vpop.f32.mrb[1].mxu1 }
 0x297   : > { %2772 = vrot.lane.b32.xlu1 %v28262_v20, %s30123_s12  ;;  %1853 = vrot.lane.b32.xlu0 %v28262_v20, %s30124_s13  ;;  %v1856_v22 = vsel %vm1855_vm2, %v28262_v20, 0 }
 0x298   : > { %v1926_v23 = vand.u32 4294901760, %v1856_v22 }
 0x29a   : > { %v1927_v24 = vsub.f32 %v1856_v22, %v1926_v23 }
 0x29b   : > { %3688 = vrot.lane.b32.xlu1 %v28262_v20, %s30121_s14  ;;  %2770 = vrot.lane.b32.xlu0 %v28262_v20, %s30125_s15 }
 0x29c   : > { %v1928_v25 = vand.u32 4294901760, %v1927_v24 }
 0x29e   : > { %v1929_v28 = vsub.f32 %v1927_v24, %v1928_v25 }
 0x29f   : > { %4606 = vrot.lane.b32.xlu1 %v28262_v20, %s30118_s7  ;;  %3690 = vrot.lane.b32.xlu0 %v28262_v20, %s30120_s6 }
 0x2a0   : > { %v1930_v31 = vand.u32 4294901760, %v1929_v28 }
 0x2a3   : > { %4608 = vrot.lane.b32.xlu0 %v28262_v20, %s30116_s10  ;;  %s30197_s10 = smov 16  }
 0x2b7   : > { %v28296_v41 = vpop.f32.mrb[0].mxu0 }
 0x2b8   : > { %v24087_v43 = vpop.f32.mrb[1].mxu0 }
 0x309   : > { %v1854_v26 = vpop.permute.xlu0 %1853  ;;  %v2773_v36 = vpop.permute.xlu1 %2772 }
 0x30a   : > { %v1858_v27 = vsel %vm1855_vm2, %v1854_v26, 0  ;;  %v2776_v38 = vsel %vm1855_vm2, %v2773_v36, 0 }
 0x30b   : > { %v1861_v29 = vand.u32 4294901760, %v1858_v27  ;;  %v2779_v40 = vand.u32 4294901760, %v2776_v38 }
 0x30d   : > { %v1938_v30 = vsub.f32 %v1858_v27, %v1861_v29  ;;  %24155 = vmatpush3.xpose.msra.mxu0 %v1861_v29  ;;  %v2771_v35 = vpop.permute.xlu0 %2770  ;;  %v2856_v44 = vsub.f32 %v2776_v38, %v2779_v40  ;;  %v3689_v51 = vpop.permute.xlu1 %3688 }
 0x30e   : > { %24159 = vmatprep.subr.mxu0 %v27663_v1  ;;  %v2774_v37 = vsel %vm1855_vm2, %v2771_v35, 0  ;;  %v3692_v53 = vsel %vm1855_vm2, %v3689_v51, 0 }
 0x30f   : > { %v1939_v32 = vand.u32 4294901760, %v1938_v30  ;;  %v2844_v39 = vand.u32 4294901760, %v2774_v37  ;;  %v2857_v46 = vand.u32 4294901760, %v2856_v44  ;;  %v3762_v55 = vand.u32 4294901760, %v3692_v53 }
 0x310   : > { %24157 = vmatmul.mubr.f32.vlgmr.msra.gmra.mrb[2].mxu0 %v1930_v31 }
 0x311   : > { %v1940_v33 = vsub.f32 %v1938_v30, %v1939_v32  ;;  %24161 = vmatprep.mubr.msk.f32.mxu0 %vm27662_vm0, %v27663_v1  ;;  %v2845_v42 = vsub.f32 %v2774_v37, %v2844_v39  ;;  %v2858_v48 = vsub.f32 %v2856_v44, %v2857_v46  ;;  %v3691_v52 = vpop.permute.xlu0 %3690  ;;  %v3763_v57 = vsub.f32 %v3692_v53, %v3762_v55  ;;  %v4607_v3 = vpop.permute.xlu1 %4606 }
 0x312   : > { %v3694_v54 = vsel %vm1855_vm2, %v3691_v52, 0  ;;  %v4610_v5 = vsel %vm1855_vm2, %v4607_v3, 0 }
 0x313   : > { %v1941_v34 = vand.u32 4294901760, %v1940_v33  ;;  %v2846_v45 = vand.u32 4294901760, %v2845_v42  ;;  %v2859_v50 = vand.u32 4294901760, %v2858_v48  ;;  %v3697_v56 = vand.u32 4294901760, %v3694_v54 }
 0x314   : > { %v3764_v59 = vand.u32 4294901760, %v3763_v57  ;;  %v4680_v7 = vand.u32 4294901760, %v4610_v5 }
 0x315   : > { %24160 = vmatpush3.xpose.msra.mxu0 %v1941_v34  ;;  %v2847_v47 = vsub.f32 %v2845_v42, %v2846_v45  ;;  %v3774_v58 = vsub.f32 %v3694_v54, %v3697_v56  ;;  %v4609_v4 = vpop.permute.xlu0 %4608 }
 0x316   : > { %24164 = vmatprep.subr.mxu0 %v27663_v1  ;;  %v3765_v61 = vsub.f32 %v3763_v57, %v3764_v59  ;;  %v4612_v6 = vsel %vm1855_vm2, %v4609_v4, 0  ;;  %v4681_v9 = vsub.f32 %v4610_v5, %v4680_v7 }
 0x317   : > { %v2848_v49 = vand.u32 4294901760, %v2847_v47  ;;  %v3775_v60 = vand.u32 4294901760, %v3774_v58  ;;  %v4615_v8 = vand.u32 4294901760, %v4612_v6 }
 0x318   : > { %24162 = vmatmul.mubr.f32.vlgmr.msra.gmra.mrb[2].mxu0 %v1926_v23  ;;  %v3766_v63 = vand.u32 4294901760, %v3765_v61  ;;  %v4682_v11 = vand.u32 4294901760, %v4681_v9 }
 0x319   : > { %24165 = vmatpush3.xpose.msra.mxu0 %v1938_v30  ;;  %24166 = vmatprep.mubr.msk.f32.mxu0 %vm27662_vm0, %v27663_v1  ;;  %v3776_v62 = vsub.f32 %v3774_v58, %v3775_v60  ;;  %v4692_v10 = vsub.f32 %v4612_v6, %v4615_v8 }
 0x31a   : > { %24169 = vmatprep.subr.mxu0 %v27663_v1  ;;  %v4683_v13 = vsub.f32 %v4681_v9, %v4682_v11 }
 0x31b   : > { %v3777_v2 = vand.u32 4294901760, %v3776_v62  ;;  %v4693_v12 = vand.u32 4294901760, %v4692_v10 }
 0x31c   : > { %v4684_v15 = vand.u32 4294901760, %v4683_v13 }
 0x31d   : > { %v4694_v14 = vsub.f32 %v4692_v10, %v4693_v12 }
 0x31f   : > { %v4695_v16 = vand.u32 4294901760, %v4694_v14 }
 0x320   : > { %24167 = vmatmul.mubr.f32.vlgmr.msra.gmra.mrb[2].mxu0 %v1927_v24 }
 0x321   : > { %24170 = vmatpush3.xpose.msra.mxu0 %v1861_v29  ;;  %24171 = vmatprep.mubr.msk.f32.mxu0 %vm27662_vm0, %v27663_v1 }
 0x322   : > { %24174 = vmatprep.subr.mxu0 %v27663_v1 }
 0x328   : > { %24172 = vmatmul.mubr.f32.vlgmr.msra.gmra.mrb[2].mxu0 %v1928_v25 }
 0x329   : > { %24175 = vmatpush3.xpose.msra.mxu0 %v1939_v32  ;;  %24176 = vmatprep.mubr.msk.f32.mxu0 %vm27662_vm0, %v27663_v1 }
 0x32a   : > { %24179 = vmatprep.subr.mxu0 %v27663_v1 }
 0x330   : > { %24177 = vmatmul.mubr.f32.vlgmr.msra.gmra.mrb[2].mxu0 %v1926_v23 }
 0x331   : > { %24180 = vmatpush3.xpose.msra.mxu0 %v1861_v29  ;;  %24181 = vmatprep.mubr.msk.f32.mxu0 %vm27662_vm0, %v27663_v1 }
 0x332   : > { %24214 = vmatprep.subr.mxu0 %v27663_v1 }
 0x338   : > { %24182 = vmatmul.mubr.f32.vlgmr.msra.gmra.mrb[2].mxu0 %v1926_v23 }
 0x339   : > { %24215 = vmatpush3.xpose.msra.mxu0 %v2779_v40  ;;  %24216 = vmatprep.mubr.msk.f32.mxu0 %vm27662_vm0, %v27663_v1 }
 0x33a   : > { %24219 = vmatprep.subr.mxu0 %v27663_v1 }
 0x33c   : > { %24217 = vmatmul.mubr.f32.vlgmr.msra.gmra.mrb[4].mxu0 %v2848_v49 }
 0x33d   : > { %24220 = vmatpush3.xpose.msra.mxu0 %v2859_v50  ;;  %24221 = vmatprep.mubr.msk.f32.mxu0 %vm27662_vm0, %v27663_v1 }
 0x33e   : > { %24224 = vmatprep.subr.mxu0 %v27663_v1 }
 0x344   : > { %24222 = vmatmul.mubr.f32.vlgmr.msra.gmra.mrb[4].mxu0 %v2844_v39 }
 0x345   : > { %24225 = vmatpush3.xpose.msra.mxu0 %v2856_v44  ;;  %24226 = vmatprep.mubr.msk.f32.mxu0 %vm27662_vm0, %v27663_v1 }
 0x346   : > { %24229 = vmatprep.subr.mxu0 %v27663_v1 }
 0x34c   : > { %24227 = vmatmul.mubr.f32.vlgmr.msra.gmra.mrb[4].mxu0 %v2845_v42 }
 0x34d   : > { %24230 = vmatpush3.xpose.msra.mxu0 %v2779_v40  ;;  %24231 = vmatprep.mubr.msk.f32.mxu0 %vm27662_vm0, %v27663_v1 }
 0x34e   : > { %24234 = vmatprep.subr.mxu0 %v27663_v1 }
 0x354   : > { %24232 = vmatmul.mubr.f32.vlgmr.msra.gmra.mrb[4].mxu0 %v2846_v45 }
 0x355   : > { %24235 = vmatpush3.xpose.msra.mxu0 %v2857_v46  ;;  %24236 = vmatprep.mubr.msk.f32.mxu0 %vm27662_vm0, %v27663_v1 }
 0x356   : > { %24239 = vmatprep.subr.mxu0 %v27663_v1 }
 0x35c   : > { %24237 = vmatmul.mubr.f32.vlgmr.msra.gmra.mrb[4].mxu0 %v2844_v39 }
 0x35d   : > { %24240 = vmatpush3.xpose.msra.mxu0 %v2779_v40  ;;  %24241 = vmatprep.mubr.msk.f32.mxu0 %vm27662_vm0, %v27663_v1 }
 0x35e   : > { %24274 = vmatprep.subr.mxu0 %v27663_v1 }
 0x364   : > { %24242 = vmatmul.mubr.f32.vlgmr.msra.gmra.mrb[4].mxu0 %v2844_v39 }
 0x365   : > { %24275 = vmatpush3.xpose.msra.mxu0 %v3697_v56  ;;  %24276 = vmatprep.mubr.msk.f32.mxu0 %vm27662_vm0, %v27663_v1 }
 0x366   : > { %24279 = vmatprep.subr.mxu0 %v27663_v1 }
 0x368   : > { %24277 = vmatmul.mubr.f32.vlgmr.msra.gmra.mrb[6].mxu0 %v3766_v63 }
 0x369   : > { %24280 = vmatpush3.xpose.msra.mxu0 %v3777_v2  ;;  %24281 = vmatprep.mubr.msk.f32.mxu0 %vm27662_vm0, %v27663_v1 }
 0x36a   : > { %24284 = vmatprep.subr.mxu0 %v27663_v1 }
 0x370   : > { %24282 = vmatmul.mubr.f32.vlgmr.msra.gmra.mrb[6].mxu0 %v3762_v55 }
 0x371   : > { %24285 = vmatpush3.xpose.msra.mxu0 %v3774_v58  ;;  %24286 = vmatprep.mubr.msk.f32.mxu0 %vm27662_vm0, %v27663_v1 }
 0x372   : > { %24289 = vmatprep.subr.mxu0 %v27663_v1 }
 0x378   : > { %24287 = vmatmul.mubr.f32.vlgmr.msra.gmra.mrb[6].mxu0 %v3763_v57 }
 0x379   : > { %24290 = vmatpush3.xpose.msra.mxu0 %v3697_v56  ;;  %24291 = vmatprep.mubr.msk.f32.mxu0 %vm27662_vm0, %v27663_v1 }
 0x37a   : > { %24294 = vmatprep.subr.mxu0 %v27663_v1 }
 0x380   : > { %24292 = vmatmul.mubr.f32.vlgmr.msra.gmra.mrb[6].mxu0 %v3764_v59 }
 0x381   : > { %24295 = vmatpush3.xpose.msra.mxu0 %v3775_v60  ;;  %24296 = vmatprep.mubr.msk.f32.mxu0 %vm27662_vm0, %v27663_v1 }
 0x382   : > { %24299 = vmatprep.subr.mxu0 %v27663_v1 }
 0x388   : > { %24297 = vmatmul.mubr.f32.vlgmr.msra.gmra.mrb[6].mxu0 %v3762_v55 }
 0x389   : > { %24300 = vmatpush3.xpose.msra.mxu0 %v3697_v56  ;;  %24301 = vmatprep.mubr.msk.f32.mxu0 %vm27662_vm0, %v27663_v1 }
 0x38a   : > { %24334 = vmatprep.subr.mxu0 %v27663_v1 }
 0x390   : > { %24302 = vmatmul.mubr.f32.vlgmr.msra.gmra.mrb[6].mxu0 %v3762_v55 }
 0x391   : > { %24335 = vmatpush3.xpose.msra.mxu0 %v4615_v8  ;;  %24336 = vmatprep.mubr.msk.f32.mxu0 %vm27662_vm0, %v27663_v1 }
 0x392   : > { %24339 = vmatprep.subr.mxu0 %v27663_v1 }
 0x394   : > { %24337 = vmatmul.mubr.f32.vlgmr.msra.gmra.mrb[8].mxu0 %v4684_v15 }
 0x395   : > { %24340 = vmatpush3.xpose.msra.mxu0 %v4695_v16  ;;  %24341 = vmatprep.mubr.msk.f32.mxu0 %vm27662_vm0, %v27663_v1 }
 0x396   : > { %24344 = vmatprep.subr.mxu0 %v27663_v1 }
 0x39c   : > { %24342 = vmatmul.mubr.f32.vlgmr.msra.gmra.mrb[8].mxu0 %v4680_v7 }
 0x39d   : > { %24345 = vmatpush3.xpose.msra.mxu0 %v4692_v10  ;;  %24346 = vmatprep.mubr.msk.f32.mxu0 %vm27662_vm0, %v27663_v1 }
 0x39e   : > { %24349 = vmatprep.subr.mxu0 %v27663_v1 }
 0x3a4   : > { %24347 = vmatmul.mubr.f32.vlgmr.msra.gmra.mrb[8].mxu0 %v4681_v9 }
 0x3a5   : > { %24350 = vmatpush3.xpose.msra.mxu0 %v4615_v8  ;;  %24351 = vmatprep.mubr.msk.f32.mxu0 %vm27662_vm0, %v27663_v1 }
 0x3a6   : > { %24354 = vmatprep.subr.mxu0 %v27663_v1 }
 0x3ac   : > { %24352 = vmatmul.mubr.f32.vlgmr.msra.gmra.mrb[8].mxu0 %v4682_v11 }
 0x3ad   : > { %24355 = vmatpush3.xpose.msra.mxu0 %v4693_v12  ;;  %24356 = vmatprep.mubr.msk.f32.mxu0 %vm27662_vm0, %v27663_v1 }
 0x3ae   : > { %24359 = vmatprep.subr.mxu0 %v27663_v1 }
 0x3b4   : > { %24357 = vmatmul.mubr.f32.vlgmr.msra.gmra.mrb[8].mxu0 %v4680_v7 }
 0x3b5   : > { %24360 = vmatpush3.xpose.msra.mxu0 %v4615_v8  ;;  %24361 = vmatprep.mubr.msk.f32.mxu0 %vm27662_vm0, %v27663_v1 }
 0x3b6   : > { %26074 = vmatprep.subr.bf16.mxu0 %v27661_v0 }
 0x3bc   : > { %24362 = vmatmul.mubr.f32.vlgmr.msra.gmra.mrb[8].mxu0 %v4680_v7 }
 0x3bd   : > { %24402 = vmatprep.mubr.msk.f32.mxu0 %vm27662_vm0, %v27663_v1 }
 0x40b   : > { %v2302_v18 = vpop.f32.mrb[2].mxu0 }
 0x40c   : > { %v2306_v19 = vsel %vm850_vm3, -1e+09, %v2302_v18  ;;  %v24183_v21 = vpop.f32.mrb[3].mxu0 }
 0x40d   : > { %v2307_v22 = vsel %vm1855_vm2, %v2306_v19, -inf }
 0x40e   : > { %2308 = vmax.xlane.f32.xlu1 %v2307_v22 }
 0x437   : > { %v3220_v23 = vpop.f32.mrb[4].mxu0 }
 0x438   : > { %v3224_v24 = vsel %vm850_vm3, -1e+09, %v3220_v23  ;;  %v24243_v25 = vpop.f32.mrb[5].mxu0 }
 0x439   : > { %v3225_v26 = vsel %vm1855_vm2, %v3224_v24, -inf }
 0x43a   : > { %3226 = vmax.xlane.f32.xlu0 %v3225_v26 }
 0x463   : > { %v4138_v27 = vpop.f32.mrb[6].mxu0 }
 0x464   : > { %v4142_v28 = vsel %vm850_vm3, -1e+09, %v4138_v27  ;;  %v24303_v29 = vpop.f32.mrb[7].mxu0 }
 0x465   : > { %v4143_v30 = vsel %vm1855_vm2, %v4142_v28, -inf }
 0x466   : > { %4144 = vmax.xlane.f32.xlu1 %v4143_v30 }
 0x48f   : > { %v5056_v31 = vpop.f32.mrb[8].mxu0 }
 0x490   : > { %v5060_v32 = vsel %vm850_vm3, -1e+09, %v5056_v31  ;;  %v24363_v33 = vpop.f32.mrb[9].mxu0 }
 0x491   : > { %v5061_v34 = vsel %vm1855_vm2, %v5060_v32, -inf }
 0x492   : > { %5062 = vmax.xlane.f32.xlu1 %v5061_v34 }
 0x49b   : > { %v2309_v35 = vpop.xlane.xlu1 %2308 }
 0x49c   : > { %v2310_v36 = vsub.f32 %v2306_v19, %v2309_v35 }
 0x49e   : > { %v2311_v37 = vmul.f32 1.442695, %v2310_v36 }
 0x4a0   : > { %27155 = vpow2.f32 %v2311_v37 }
 0x4aa   : > { %v27156_v38 = vpop.eup %27155 }
 0x4ab   : > { %v2313_v39 = vsel %vm1855_vm2, %v27156_v38, 0.0 }
 0x4ac   : > { %2314 = vadd.xlane.f32.xlu0 %v2313_v39 }
 0x4c2   : > { %2318 = vrot.lane.b32.xlu0 %v28262_v20, %s30108_s24  ;;  %s30198_s24 = smov 24  }
 0x4c7   : > { %v3227_v40 = vpop.xlane.xlu0 %3226 }
 0x4c8   : > { %v3228_v42 = vsub.f32 %v3224_v24, %v3227_v40 }
 0x4ca   : > { %v3229_v43 = vmul.f32 1.442695, %v3228_v42 }
 0x4cc   : > { %27157 = vpow2.f32 %v3229_v43 }
 0x4d6   : > { %v27158_v44 = vpop.eup %27157 }
 0x4d7   : > { %v3231_v45 = vsel %vm1855_vm2, %v27158_v44, 0.0 }
 0x4d8   : > { %3232 = vadd.xlane.f32.xlu1 %v3231_v45 }
 0x4e9   : > { %3236 = vrot.lane.b32.xlu1 %v28262_v20, %s30106_s8  ;;  %s30110_s8 = smov 24  }
 0x4ed   : > { %4154 = vrot.lane.b32.xlu1 %v28262_v20, %s30104_s4  ;;  %s30112_s4 = smov 16  }
 0x4f3   : > { %v4145_v46 = vpop.xlane.xlu1 %4144 }
 0x4f4   : > { %v4146_v47 = vsub.f32 %v4142_v28, %v4145_v46 }
 0x4f6   : > { %v4147_v48 = vmul.f32 1.442695, %v4146_v47 }
 0x4f8   : > { %27159 = vpow2.f32 %v4147_v48 }
 0x502   : > { %v28385_v49 = vpop.eup %27159 }
 0x503   : > { %v4149_v50 = vsel %vm1855_vm2, %v28385_v49, 0.0 }
 0x504   : > { %4150 = vadd.xlane.f32.xlu0 %v4149_v50 }
 0x51a   : > { %5072 = vrot.lane.b32.xlu0 %v28262_v20, %s30102_s22  ;;  %s30195_s22 = smov 72  }
 0x51f   : > { %v5063_v51 = vpop.xlane.xlu1 %5062 }
 0x520   : > { %v5064_v52 = vsub.f32 %v5060_v32, %v5063_v51 }
 0x522   : > { %v5065_v53 = vmul.f32 1.442695, %v5064_v52 }
 0x524   : > { %27161 = vpow2.f32 %v5065_v53 }
 0x52e   : > { %v28391_v54 = vpop.eup %27161 }
 0x52f   : > { %v5067_v55 = vsel %vm1855_vm2, %v28391_v54, 0.0 }
 0x530   : > { %5068 = vadd.xlane.f32.xlu1 %v5067_v55 }
 0x539   : > { %v2315_v56 = vpop.xlane.xlu0 %2314 }
 0x53a   : > { %27163 = vrcp.f32 %v2315_v56 }
 0x53d   : > { %v2319_v57 = vpop.permute.xlu0 %2318 }
 0x53e   : > { %v2325_v58 = vand.u32 4294901760, %v2319_v57 }
 0x540   : > { %24185 = vmatpush3.msra.mxu1 %v2325_v58  ;;  %v2402_v20 = vsub.f32 %v2319_v57, %v2325_v58 }
 0x541   : > { %24189 = vmatprep.subr.mxu1 %v27663_v1 }
 0x542   : > { %v2403_v63 = vand.u32 4294901760, %v2402_v20 }
 0x544   : > { %v27164_v59 = vpop.eup %27163  ;;  %v2404_v4 = vsub.f32 %v2402_v20, %v2403_v63 }
 0x545   : > { %v2317_v60 = vmul.f32 %v27164_v59, %v27156_v38 }
 0x546   : > { %v2405_v7 = vand.u32 4294901760, %v2404_v4 }
 0x547   : > { %v2322_v61 = vsel %vm1855_vm2, %v2317_v60, 0  ;;  %v5541_v60 = vld [vmem:[%s30191_s1] sm:$0xff] }
 0x548   : > { %v2390_v62 = vand.u32 4294901760, %v2322_v61 }
 0x54a   : > { %v2391_v2 = vsub.f32 %v2322_v61, %v2390_v62  ;;  %v5556_v61 = vand.u32 4294901760, %v5541_v60 }
 0x54c   : > { %v2392_v3 = vand.u32 4294901760, %v2391_v2 }
 0x54e   : > { %v2393_v5 = vsub.f32 %v2391_v2, %v2392_v3 }
 0x550   : > { %v2394_v6 = vand.u32 4294901760, %v2393_v5 }
 0x552   : > { %24187 = vmatmul.mubr.f32.vlgmr.msra.gmra.mrb[2].mxu1 %v2394_v6 }
 0x553   : > { %24190 = vmatpush3.msra.mxu1 %v2405_v7  ;;  %24191 = vmatprep.mubr.msk.f32.mxu1 %vm27662_vm0, %v27663_v1 }
 0x554   : > { %24194 = vmatprep.subr.mxu1 %v27663_v1 }
 0x55a   : > { %24192 = vmatmul.mubr.f32.vlgmr.msra.gmra.mrb[2].mxu1 %v2390_v62 }
 0x55b   : > { %24195 = vmatpush3.msra.mxu1 %v2402_v20  ;;  %24196 = vmatprep.mubr.msk.f32.mxu1 %vm27662_vm0, %v27663_v1  ;;  %v5542_v20 = vld [vmem:[%s30191_s1 + $0x8] sm:$0xff] }
 0x55c   : > { %24199 = vmatprep.subr.mxu1 %v27663_v1 }
 0x562   : > { %24197 = vmatmul.mubr.f32.vlgmr.msra.gmra.mrb[2].mxu1 %v2391_v2 }
 0x563   : > { %24200 = vmatpush3.msra.mxu1 %v2325_v58  ;;  %24201 = vmatprep.mubr.msk.f32.mxu1 %vm27662_vm0, %v27663_v1 }
 0x564   : > { %24204 = vmatprep.subr.mxu1 %v27663_v1 }
 0x565   : > { %v3233_v8 = vpop.xlane.xlu1 %3232 }
 0x566   : > { %27165 = vrcp.f32 %v3233_v8 }
 0x569   : > { %v3237_v9 = vpop.permute.xlu1 %3236 }
 0x56a   : > { %24202 = vmatmul.mubr.f32.vlgmr.msra.gmra.mrb[2].mxu1 %v2392_v3  ;;  %v3243_v10 = vand.u32 4294901760, %v3237_v9 }
 0x56b   : > { %24205 = vmatpush3.msra.mxu1 %v2403_v63  ;;  %24206 = vmatprep.mubr.msk.f32.mxu1 %vm27662_vm0, %v27663_v1  ;;  %v28480_v63 = vsub.f32 %v5541_v60, %v5556_v61 }
 0x56c   : > { %24209 = vmatprep.subr.mxu1 %v27663_v1  ;;  %v3320_v13 = vsub.f32 %v3237_v9, %v3243_v10 }
 0x56d   : > { %v4155_v26 = vpop.permute.xlu1 %4154  ;;  %v5637_v3 = vand.u32 4294901760, %v28480_v63 }
 0x56e   : > { %v3321_v16 = vand.u32 4294901760, %v3320_v13  ;;  %v4161_v27 = vand.u32 4294901760, %v4155_v26 }
 0x56f   : > { %v5638_v5 = vsub.f32 %v28480_v63, %v5637_v3 }
 0x570   : > { %v27166_v11 = vpop.eup %27165  ;;  %v3322_v21 = vsub.f32 %v3320_v13, %v3321_v16  ;;  %v4238_v29 = vsub.f32 %v4155_v26, %v4161_v27 }
 0x571   : > { %v3235_v12 = vmul.f32 %v27166_v11, %v27158_v44  ;;  %v5639_v7 = vand.u32 4294901760, %v5638_v5 }
 0x572   : > { %24207 = vmatmul.mubr.f32.vlgmr.msra.gmra.mrb[2].mxu1 %v2390_v62  ;;  %v3323_v24 = vand.u32 4294901760, %v3322_v21  ;;  %v4239_v33 = vand.u32 4294901760, %v4238_v29 }
 0x573   : > { %24210 = vmatpush3.msra.mxu1 %v2325_v58  ;;  %24211 = vmatprep.mubr.msk.f32.mxu1 %vm27662_vm0, %v27663_v1  ;;  %v3240_v14 = vsel %vm1855_vm2, %v3235_v12, 0  ;;  %v5543_v12 = vld [vmem:[%s30191_s1 + $0x10] sm:$0xff] }
 0x574   : > { %24244 = vmatprep.subr.mxu1 %v27663_v1  ;;  %v3308_v15 = vand.u32 4294901760, %v3240_v14  ;;  %v4240_v36 = vsub.f32 %v4238_v29, %v4239_v33 }
 0x576   : > { %v3309_v18 = vsub.f32 %v3240_v14, %v3308_v15  ;;  %v4241_v39 = vand.u32 4294901760, %v4240_v36  ;;  %v5562_v14 = vand.u32 4294901760, %v5543_v12 }
 0x578   : > { %v3310_v19 = vand.u32 4294901760, %v3309_v18 }
 0x57a   : > { %24212 = vmatmul.mubr.f32.vlgmr.msra.gmra.mrb[2].mxu1 %v2390_v62  ;;  %v3311_v22 = vsub.f32 %v3309_v18, %v3310_v19  ;;  %v5559_v62 = vand.u32 4294901760, %v5542_v20 }
 0x57b   : > { %24245 = vmatpush3.msra.mxu1 %v3243_v10  ;;  %24246 = vmatprep.mubr.msk.f32.mxu1 %vm27662_vm0, %v27663_v1 }
 0x57c   : > { %24249 = vmatprep.subr.mxu1 %v27663_v1  ;;  %v3312_v23 = vand.u32 4294901760, %v3311_v22  ;;  %v28482_v2 = vsub.f32 %v5542_v20, %v5559_v62 }
 0x57e   : > { %24247 = vmatmul.mubr.f32.vlgmr.msra.gmra.mrb[4].mxu1 %v3312_v23  ;;  %v5644_v4 = vand.u32 4294901760, %v28482_v2 }
 0x57f   : > { %24250 = vmatpush3.msra.mxu1 %v3323_v24  ;;  %24251 = vmatprep.mubr.msk.f32.mxu1 %vm27662_vm0, %v27663_v1 }
 0x580   : > { %24254 = vmatprep.subr.mxu1 %v27663_v1  ;;  %v5645_v6 = vsub.f32 %v28482_v2, %v5644_v4 }
 0x582   : > { %v5646_v8 = vand.u32 4294901760, %v5645_v6 }
 0x584   : > { %v26081_v9 = vpack.c.bf16 %v5646_v8, %v5639_v7  ;;  %v27243_v7 = vld [vmem:[%s28180_s18] sm:$0xff]  ;;  %s30194_s18 = sld [smem:[#allocation47_spill]] }
 0x586   : > { %24252 = vmatmul.mubr.f32.vlgmr.msra.gmra.mrb[4].mxu1 %v3308_v15 }
 0x587   : > { %24255 = vmatpush3.msra.mxu1 %v3320_v13  ;;  %24256 = vmatprep.mubr.msk.f32.mxu1 %vm27662_vm0, %v27663_v1  ;;  %v5544_v13 = vld [vmem:[%s30191_s1 + $0x18] sm:$0xff] }
 0x588   : > { %24259 = vmatprep.subr.mxu1 %v27663_v1 }
 0x58e   : > { %24257 = vmatmul.mubr.f32.vlgmr.msra.gmra.mrb[4].mxu1 %v3309_v18 }
 0x58f   : > { %24260 = vmatpush3.msra.mxu1 %v3243_v10  ;;  %24261 = vmatprep.mubr.msk.f32.mxu1 %vm27662_vm0, %v27663_v1 }
 0x590   : > { %24264 = vmatprep.subr.mxu1 %v27663_v1 }
 0x591   : > { %v4151_v25 = vpop.xlane.xlu0 %4150 }
 0x592   : > { %27167 = vrcp.f32 %v4151_v25 }
 0x595   : > { %v5073_v42 = vpop.permute.xlu0 %5072 }
 0x596   : > { %24262 = vmatmul.mubr.f32.vlgmr.msra.gmra.mrb[4].mxu1 %v3310_v19  ;;  %v5079_v43 = vand.u32 4294901760, %v5073_v42 }
 0x597   : > { %24265 = vmatpush3.msra.mxu1 %v3321_v16  ;;  %24266 = vmatprep.mubr.msk.f32.mxu1 %vm27662_vm0, %v27663_v1  ;;  %v5650_v16 = vsub.f32 %v5543_v12, %v5562_v14 }
 0x598   : > { %24269 = vmatprep.subr.mxu1 %v27663_v1  ;;  %v5156_v45 = vsub.f32 %v5073_v42, %v5079_v43 }
 0x599   : > { %v5651_v19 = vand.u32 4294901760, %v5650_v16 }
 0x59b   : > { %v5652_v22 = vsub.f32 %v5650_v16, %v5651_v19 }
 0x59c   : > { %v27168_v28 = vpop.eup %27167 }
 0x59d   : > { %v4153_v30 = vmul.f32 %v27168_v28, %v28385_v49  ;;  %v5157_v49 = vand.u32 4294901760, %v5156_v45  ;;  %v5653_v24 = vand.u32 4294901760, %v5652_v22  ;;  %v6075_v22 = vld [vmem:[%s30192_s9 + $0x18] sm:$0xff] }
 0x59e   : > { %24267 = vmatmul.mubr.f32.vlgmr.msra.gmra.mrb[4].mxu1 %v3308_v15 }
 0x59f   : > { %24270 = vmatpush3.msra.mxu1 %v3243_v10  ;;  %24271 = vmatprep.mubr.msk.f32.mxu1 %vm27662_vm0, %v27663_v1  ;;  %v4158_v31 = vsel %vm1855_vm2, %v4153_v30, 0  ;;  %v5158_v52 = vsub.f32 %v5156_v45, %v5157_v49 }
 0x5a0   : > { %24304 = vmatprep.subr.mxu1 %v27663_v1  ;;  %v4226_v32 = vand.u32 4294901760, %v4158_v31 }
 0x5a1   : > { %v5159_v55 = vand.u32 4294901760, %v5158_v52 }
 0x5a2   : > { %v4227_v34 = vsub.f32 %v4158_v31, %v4226_v32 }
 0x5a4   : > { %v4228_v35 = vand.u32 4294901760, %v4227_v34 }
 0x5a6   : > { %24272 = vmatmul.mubr.f32.vlgmr.msra.gmra.mrb[4].mxu1 %v3308_v15  ;;  %v4229_v37 = vsub.f32 %v4227_v34, %v4228_v35  ;;  %v5565_v15 = vand.u32 4294901760, %v5544_v13 }
 0x5a7   : > { %24305 = vmatpush3.msra.mxu1 %v4161_v27  ;;  %24306 = vmatprep.mubr.msk.f32.mxu1 %vm27662_vm0, %v27663_v1 }
 0x5a8   : > { %24309 = vmatprep.subr.mxu1 %v27663_v1  ;;  %v4230_v38 = vand.u32 4294901760, %v4229_v37  ;;  %v5657_v18 = vsub.f32 %v5544_v13, %v5565_v15  ;;  %v26078_v28 = vpack.c.bf16 %v5565_v15, %v5562_v14  ;;  %v6072_v15 = vld [vmem:[%s30192_s9] sm:$0xff] }
 0x5aa   : > { %24307 = vmatmul.mubr.f32.vlgmr.msra.gmra.mrb[6].mxu1 %v4230_v38  ;;  %v5658_v21 = vand.u32 4294901760, %v5657_v18 }
 0x5ab   : > { %24310 = vmatpush3.msra.mxu1 %v4241_v39  ;;  %24311 = vmatprep.mubr.msk.f32.mxu1 %vm27662_vm0, %v27663_v1 }
 0x5ac   : > { %24314 = vmatprep.subr.mxu1 %v27663_v1  ;;  %v5659_v23 = vsub.f32 %v5657_v18, %v5658_v21 }
 0x5ae   : > { %v5660_v25 = vand.u32 4294901760, %v5659_v23 }
 0x5b0   : > { %v26084_v26 = vpack.c.bf16 %v5660_v25, %v5653_v24  ;;  %v6096_v24 = vand.u32 4294901760, %v6075_v22 }
 0x5b2   : > { %24312 = vmatmul.mubr.f32.vlgmr.msra.gmra.mrb[6].mxu1 %v4226_v32 }
 0x5b3   : > { %24315 = vmatpush3.msra.mxu1 %v4238_v29  ;;  %24316 = vmatprep.mubr.msk.f32.mxu1 %vm27662_vm0, %v27663_v1  ;;  %v26087_v29 = vpack.c.bf16 %v28482_v2, %v28480_v63 }
 0x5b4   : > { %24319 = vmatprep.subr.mxu1 %v27663_v1 }
 0x5ba   : > { %24317 = vmatmul.mubr.f32.vlgmr.msra.gmra.mrb[6].mxu1 %v4227_v34  ;;  %v26102_v34 = vpack.c.bf16 %v5658_v21, %v5651_v19  ;;  %v6087_v19 = vand.u32 4294901760, %v6072_v15 }
 0x5bb   : > { %24320 = vmatpush3.msra.mxu1 %v4161_v27  ;;  %24321 = vmatprep.mubr.msk.f32.mxu1 %vm27662_vm0, %v27663_v1 }
 0x5bc   : > { %24324 = vmatprep.subr.mxu1 %v27663_v1 }
 0x5bd   : > { %v5069_v40 = vpop.xlane.xlu1 %5068 }
 0x5be   : > { %27169 = vrcp.f32 %v5069_v40 }
 0x5c2   : > { %24322 = vmatmul.mubr.f32.vlgmr.msra.gmra.mrb[6].mxu1 %v4228_v35 }
 0x5c3   : > { %24325 = vmatpush3.msra.mxu1 %v4239_v33  ;;  %24326 = vmatprep.mubr.msk.f32.mxu1 %vm27662_vm0, %v27663_v1  ;;  %v26099_v33 = vpack.c.bf16 %v5644_v4, %v5637_v3 }
 0x5c4   : > { %24329 = vmatprep.subr.mxu1 %v27663_v1 }
 0x5c8   : > { %v27170_v44 = vpop.eup %27169 }
 0x5c9   : > { %v5071_v46 = vmul.f32 %v27170_v44, %v28391_v54 }
 0x5ca   : > { %24327 = vmatmul.mubr.f32.vlgmr.msra.gmra.mrb[6].mxu1 %v4226_v32 }
 0x5cb   : > { %24330 = vmatpush3.msra.mxu1 %v4161_v27  ;;  %24331 = vmatprep.mubr.msk.f32.mxu1 %vm27662_vm0, %v27663_v1  ;;  %v5076_v47 = vsel %vm1855_vm2, %v5071_v46, 0  ;;  %v26075_v27 = vpack.c.bf16 %v5559_v62, %v5556_v61 }
 0x5cc   : > { %24364 = vmatprep.subr.mxu1 %v27663_v1  ;;  %v5144_v48 = vand.u32 4294901760, %v5076_v47 }
 0x5cd   : > { %26076 = vmatpush3.bf16.msra.mxu0 %v26075_v27 }
 0x5ce   : > { %v5145_v50 = vsub.f32 %v5076_v47, %v5144_v48  ;;  %26077 = vmatprep.subr.bf16.mxu0 %v27661_v0 }
 0x5d0   : > { %v5146_v51 = vand.u32 4294901760, %v5145_v50 }
 0x5d1   : > { %26079 = vmatpush3.bf16.msra.mxu0 %v26078_v28 }
 0x5d2   : > { %24332 = vmatmul.mubr.f32.vlgmr.msra.gmra.mrb[6].mxu1 %v4226_v32  ;;  %v5147_v53 = vsub.f32 %v5145_v50, %v5146_v51  ;;  %26086 = vmatprep.subr.bf16.mxu0 %v27661_v0  ;;  %v26090_v32 = vpack.c.bf16 %v5657_v18, %v5650_v16  ;;  %v6073_v16 = vld [vmem:[%s30192_s9 + $0x8] sm:$0xff]  ;;  %v6074_v18 = vld [vmem:[%s30192_s9 + $0x10] sm:$0xff] }
 0x5d3   : > { %24365 = vmatpush3.msra.mxu1 %v5079_v43  ;;  %24366 = vmatprep.mubr.msk.f32.mxu1 %vm27662_vm0, %v27663_v1  ;;  %v6090_v21 = vand.u32 4294901760, %v6073_v16  ;;  %v6093_v23 = vand.u32 4294901760, %v6074_v18 }
 0x5d4   : > { %24369 = vmatprep.subr.mxu1 %v27663_v1  ;;  %v5148_v54 = vand.u32 4294901760, %v5147_v53  ;;  %v23132_v53 = vld [vmem:[#allocation7] ss:$0 sm:$0xff] }
 0x5d5   : > { %v28559_v25 = vpack.c.bf16 %v6090_v21, %v6087_v19 }
 0x5d6   : > { %24367 = vmatmul.mubr.f32.vlgmr.msra.gmra.mrb[8].mxu1 %v5148_v54 }
 0x5d7   : > { %24370 = vmatpush3.msra.mxu1 %v5159_v55  ;;  %24371 = vmatprep.mubr.msk.f32.mxu1 %vm27662_vm0, %v27663_v1 }
 0x5d8   : > { %24374 = vmatprep.subr.mxu1 %v27663_v1 }
 0x5de   : > { %24372 = vmatmul.mubr.f32.vlgmr.msra.gmra.mrb[8].mxu1 %v5144_v48 }
 0x5df   : > { %24375 = vmatpush3.msra.mxu1 %v5156_v45  ;;  %24376 = vmatprep.mubr.msk.f32.mxu1 %vm27662_vm0, %v27663_v1 }
 0x5e0   : > { %24379 = vmatprep.subr.mxu1 %v27663_v1 }
 0x5e6   : > { %24377 = vmatmul.mubr.f32.vlgmr.msra.gmra.mrb[8].mxu1 %v5145_v50 }
 0x5e7   : > { %24380 = vmatpush3.msra.mxu1 %v5079_v43  ;;  %24381 = vmatprep.mubr.msk.f32.mxu1 %vm27662_vm0, %v27663_v1 }
 0x5e8   : > { %24384 = vmatprep.subr.mxu1 %v27663_v1 }
 0x5ee   : > { %24382 = vmatmul.mubr.f32.vlgmr.msra.gmra.mrb[8].mxu1 %v5146_v51 }
 0x5ef   : > { %24385 = vmatpush3.msra.mxu1 %v5157_v49  ;;  %24386 = vmatprep.mubr.msk.f32.mxu1 %vm27662_vm0, %v27663_v1 }
 0x5f0   : > { %24389 = vmatprep.subr.mxu1 %v27663_v1 }
 0x5f6   : > { %24387 = vmatmul.mubr.f32.vlgmr.msra.gmra.mrb[8].mxu1 %v5144_v48 }
 0x5f7   : > { %24390 = vmatpush3.msra.mxu1 %v5079_v43  ;;  %24391 = vmatprep.mubr.msk.f32.mxu1 %vm27662_vm0, %v27663_v1 }
 0x5f8   : > { %26080 = vmatprep.subr.bf16.mxu1 %v27661_v0 }
 0x5fe   : > { %24392 = vmatmul.mubr.f32.vlgmr.msra.gmra.mrb[8].mxu1 %v5144_v48  ;;  %v23130_v48 = vld [vmem:[#allocation10] ss:$0 sm:$0xff] }
 0x5ff   : > { %24413 = vmatprep.mubr.msk.f32.mxu1 %vm27662_vm0, %v27663_v1  ;;  %26082 = vmatpush3.bf16.msra.mxu1 %v26081_v9  ;;  %v28517_v49 = vadd.f32 %v23130_v48, %v28296_v41 }
 0x600   : > { %26083 = vmatprep.subr.bf16.mxu1 %v27661_v0 }
 0x601   : > { %v28523_v50 = vsel %vm1855_vm2, %v28517_v49, 0 }
 0x602   : > { %v28531_v41 = vand.u32 4294901760, %v28523_v50 }
 0x603   : > { %26085 = vmatpush3.bf16.msra.mxu1 %v26084_v26  ;;  %v28561_v26 = vsub.f32 %v6072_v15, %v6087_v19 }
 0x604   : > { %26092 = vmatprep.subr.bf16.mxu1 %v27661_v0 }
 0x64d   : > { %v2766_v56 = vpop.f32.mrb[2].mxu1 }
 0x64e   : > { %v24213_v57 = vpop.f32.mrb[3].mxu1 }
 0x679   : > { %v3684_v58 = vpop.f32.mrb[4].mxu1 }
 0x67a   : > { %5525 = vrot.lane.b32.xlu1 %v3684_v58, %s30114_s3  ;;  %v24273_v59 = vpop.f32.mrb[5].mxu1  ;;  %s30193_s3 = sld [smem:[#allocation46_spill]] }
 0x6a5   : > { %v4602_v10 = vpop.f32.mrb[6].mxu1 }
 0x6a6   : > { %5529 = vrot.lane.b32.xlu0 %v4602_v10, %s30112_s4  ;;  %v24333_v11 = vpop.f32.mrb[7].mxu1  ;;  %s30202_s4 = smov 88  }
 0x6d1   : > { %v5520_v30 = vpop.f32.mrb[8].mxu1 }
 0x6d2   : > { %5533 = vrot.lane.b32.xlu0 %v5520_v30, %s30110_s8  ;;  %v24393_v31 = vpop.f32.mrb[9].mxu1  ;;  %v28568_v30 = vpack.c.bf16 %v6096_v24, %v6093_v23  ;;  %s30203_s8 = smov 112  }
 0x6d3   : > { %v6168_v31 = vand.u32 4294901760, %v28561_v26 }
 0x6ec   : > { %v5526_v35 = vpop.permute.xlu1 %5525 }
 0x6ed   : > { %v5536_v37 = vsel %vm1855_vm2, %v2766_v56, %v5526_v35 }
 0x718   : > { %v5530_v36 = vpop.permute.xlu0 %5529 }
 0x719   : > { %v5538_v38 = vsel %vm5537_vm4, %v5536_v37, %v5530_v36 }
 0x744   : > { %v5534_v39 = vpop.permute.xlu0 %5533 }
 0x745   : > { %v5540_v40 = vsel %vm5539_vm5, %v5538_v38, %v5534_v39 }
 0x746   : > { %v5553_v42 = vsel %vm862_vm1, %v5540_v40, 0 }
 0x747   : > { %v5624_v43 = vand.u32 4294901760, %v5553_v42 }
 0x749   : > { %v5625_v44 = vsub.f32 %v5553_v42, %v5624_v43  ;;  %24414 = vmatmul.mubr.f32.vlgmr.msra.gmra.mrb[10].mxu1 %v5624_v43 }
 0x74a   : > { %26094 = vmatpush3.bf16.msra.mxu1 %v26075_v27  ;;  %24435 = vmatprep.mubr.msk.f32.mxu1 %vm27662_vm0, %v27663_v1 }
 0x74b   : > { %26095 = vmatprep.subr.bf16.mxu1 %v27661_v0  ;;  %v5626_v45 = vand.u32 4294901760, %v5625_v44 }
 0x74d   : > { %v5627_v46 = vsub.f32 %v5625_v44, %v5626_v45 }
 0x74e   : > { %26097 = vmatpush3.bf16.msra.mxu1 %v26078_v28 }
 0x74f   : > { %26104 = vmatprep.subr.bf16.mxu1 %v27661_v0  ;;  %v5628_v47 = vand.u32 4294901760, %v5627_v46 }
 0x751   : > { %24436 = vmatmul.mubr.f32.vlgmr.msra.gmra.mrb[12].mxu1 %v5626_v45  ;;  %24403 = vmatmul.mubr.f32.vlgmr.msra.gmra.mrb[10].mxu0 %v5628_v47 }
 0x752   : > { %26088 = vmatpush3.bf16.msra.mxu0 %v26087_v29  ;;  %26106 = vmatpush3.bf16.msra.mxu1 %v26075_v27  ;;  %v6174_v27 = vsub.f32 %v6073_v16, %v6090_v21  ;;  %v28565_v29 = vsub.f32 %v6075_v22, %v6096_v24  ;;  %v6655_v21 = vsub.f32 %v28523_v50, %v28531_v41 }
 0x753   : > { %26089 = vmatprep.subr.bf16.mxu0 %v27661_v0  ;;  %26107 = vmatprep.subr.bf16.mxu1 %v27661_v0 }
 0x754   : > { %24424 = vmatprep.mubr.msk.f32.mxu0 %vm27662_vm0, %v27663_v1  ;;  %24457 = vmatprep.mubr.msk.f32.mxu1 %vm27662_vm0, %v27663_v1  ;;  %v6189_v38 = vand.u32 4294901760, %v28565_v29  ;;  %v26123_v46 = vpack.c.bf16 %v6174_v27, %v28561_v26 }
 0x756   : > { %26091 = vmatpush3.bf16.msra.mxu0 %v26090_v32  ;;  %26109 = vmatpush3.bf16.msra.mxu1 %v26078_v28  ;;  %v28563_v28 = vsub.f32 %v6074_v18, %v6093_v23  ;;  %v6175_v32 = vand.u32 4294901760, %v6174_v27  ;;  %v6190_v42 = vsub.f32 %v28565_v29, %v6189_v38  ;;  %v23133_v18 = vld [vmem:[#allocation8] ss:$0 sm:$0xff] }
 0x757   : > { %26098 = vmatprep.subr.bf16.mxu0 %v27661_v0  ;;  %24526 = vmatprep.subr.mxu1 %v27663_v1 }
 0x758   : > { %v6182_v37 = vand.u32 4294901760, %v28563_v28  ;;  %v26126_v47 = vpack.c.bf16 %v28565_v29, %v28563_v28  ;;  %v26135_v48 = vpack.c.bf16 %v6175_v32, %v6168_v31 }
 0x759   : > { %24425 = vmatmul.mubr.f32.vlgmr.msra.gmra.mrb[12].mxu0 %v5625_v44  ;;  %24458 = vmatmul.mubr.f32.vlgmr.msra.gmra.mrb[14].mxu1 %v5624_v43  ;;  %v6191_v44 = vand.u32 4294901760, %v6190_v42 }
 0x75a   : > { %26100 = vmatpush3.bf16.msra.mxu0 %v26099_v33  ;;  %24446 = vmatprep.mubr.msk.f32.mxu0 %vm27662_vm0, %v27663_v1  ;;  %v6169_v33 = vsub.f32 %v28561_v26, %v6168_v31  ;;  %v6183_v40 = vsub.f32 %v28563_v28, %v6182_v37  ;;  %v6656_v26 = vand.u32 4294901760, %v6655_v21 }
 0x75b   : > { %26101 = vmatprep.subr.bf16.mxu0 %v27661_v0  ;;  %24528 = vmatprep.mubr.msk.f32.mxu1 %vm27662_vm0, %v27663_v1 }
 0x75c   : > { %v6170_v35 = vand.u32 4294901760, %v6169_v33  ;;  %v6657_v29 = vsub.f32 %v6655_v21, %v6656_v26 }
 0x75e   : > { %26103 = vmatpush3.bf16.msra.mxu0 %v26102_v34  ;;  %v6176_v34 = vsub.f32 %v6174_v27, %v6175_v32  ;;  %v6658_v32 = vand.u32 4294901760, %v6657_v29 }
 0x75f   : > { %24527 = vmatpush3.xpose.msra.mxu1 %v28531_v41  ;;  %26110 = vmatprep.subr.bf16.mxu0 %v27661_v0 }
 0x760   : > { %24531 = vmatprep.subr.mxu1 %v27663_v1  ;;  %v6177_v36 = vand.u32 4294901760, %v6176_v34 }
 0x761   : > { %24447 = vmatmul.mubr.f32.vlgmr.msra.gmra.mrb[14].mxu0 %v5624_v43  ;;  %v6184_v43 = vand.u32 4294901760, %v6183_v40 }
 0x762   : > { %24468 = vmatprep.mubr.msk.f32.mxu0 %vm27662_vm0, %v27663_v1  ;;  %26112 = vmatpush3.bf16.msra.mxu0 %v28559_v25  ;;  %v26117_v39 = vpack.c.bf16 %v6177_v36, %v6170_v35 }
 0x763   : > { %26113 = vmatprep.subr.bf16.mxu0 %v27661_v0  ;;  %v26120_v45 = vpack.c.bf16 %v6191_v44, %v6184_v43 }
 0x766   : > { %26115 = vmatpush3.bf16.msra.mxu0 %v28568_v30 }
 0x767   : > { %26116 = vmatprep.subr.bf16.mxu0 %v27661_v0 }
 0x81c   : > { %v5721_v51 = vpop.f32.mrb[10].mxu1 }
 0x81d   : > { %v24415_v52 = vpop.f32.mrb[11].mxu1 }
 0x824   : > { %v5878_v54 = vpop.f32.mrb[12].mxu1  ;;  %v5630_v55 = vpop.f32.mrb[10].mxu0 }
 0x825   : > { %v5631_v56 = vadd.f32 %v23132_v53, %v5630_v55  ;;  %v24437_v57 = vpop.f32.mrb[13].mxu1  ;;  %v24404_v58 = vpop.f32.mrb[11].mxu0 }
 0x827   : > { %v5722_v59 = vadd.f32 %v5721_v51, %v5631_v56  ;;  %v26138_v51 = vpack.c.bf16 %v6189_v38, %v6182_v37 }
 0x82c   : > { %v5801_v60 = vpop.f32.mrb[12].mxu0  ;;  %v6036_v20 = vpop.f32.mrb[14].mxu1 }
 0x82d   : > { %v5802_v61 = vadd.f32 %v5801_v60, %v5722_v59  ;;  %v24426_v62 = vpop.f32.mrb[13].mxu0  ;;  %v24459_v63 = vpop.f32.mrb[15].mxu1  ;;  %v6062_v59 = vlaneseq }
 0x82e   : > { %v1351_v62 = vld [vmem:[%s30193_s3] sm:$0x7] }
 0x82f   : > { %v5879_v2 = vadd.f32 %v5878_v54, %v5802_v61  ;;  %v1352_v63 = vld [vmem:[%s30194_s18] sm:$0x7] }
 0x834   : > { %v5961_v3 = vpop.f32.mrb[14].mxu0 }
 0x835   : > { %v5962_v4 = vadd.f32 %v5961_v3, %v5879_v2  ;;  %v24448_v5 = vpop.f32.mrb[15].mxu0 }
 0x837   : > { %v6037_v6 = vadd.f32 %v6036_v20, %v5962_v4  ;;  %v28582_v20 = vshrl.u32 %v6062_v59, 7 }
 0x839   : > { %v6040_v8 = vadd.f32 %v27243_v7, %v6037_v6  ;;  %v28585_v61 = vsub.s32 0, %v28582_v20 }
 0x83b   : > { %v6041_v9 = vsel %vm862_vm1, %v6040_v8, 0.0  ;;  %v6065_v2 = vrot.slane %v1351_v62, %v28585_v61  ;;  %v6070_v5 = vrot.slane %v1352_v63, %v28585_v61 }
 0x83c   : > { %6042 = vadd.xlane.f32.xlu0 %v6041_v9 }
 0x8c9   : > { %v6043_v10 = vpop.xlane.xlu0 %6042 }
 0x8ca   : > { %v6045_v11 = vmul.f32 0.03125, %v6043_v10 }
 0x8cc   : > { %v6046_v12 = vsub.f32 %v6040_v8, %v6045_v11 }
 0x8ce   : > { %v6047_v13 = vmul.f32 %v6046_v12, %v6046_v12 }
 0x8d0   : > { %v6048_v14 = vsel %vm862_vm1, %v6047_v13, 0.0 }
 0x8d1   : > { %6049 = vadd.xlane.f32.xlu1 %v6048_v14 }
 0x8e2   : > { %7488 = vrot.lane.b32.xlu1 %v28517_v49, %s30125_s15 }
 0x8e6   : > { %8405 = vrot.lane.b32.xlu1 %v28517_v49, %s30121_s14 }
 0x8ea   : > { %9322 = vrot.lane.b32.xlu1 %v28517_v49, %s30118_s7 }
 0x95e   : > { %v6050_v52 = vpop.xlane.xlu1 %6049 }
 0x95f   : > { %v6051_v53 = vmul.f32 0.03125, %v6050_v52 }
 0x961   : > { %27171 = vrsqrt.f32 %v6051_v53  ;;  %vm6054_vm6 = vcmp.eq.f32.partialorder %v6051_v53, inf  ;;  %v6057_v56 = vand.u32 2147483648, %v6051_v53  ;;  %vm6056_vm7 = vcmp.eq.f32.partialorder %v6051_v53, 0.0 }
 0x96b   : > { %v27172_v54 = vpop.eup %27171 }
 0x96c   : > { %v6053_v55 = vmul.f32 %v27172_v54, %v6051_v53 }
 0x96e   : > { %v6055_v57 = vsel %vm6054_vm6, %v6051_v53, %v6053_v55 }
 0x96f   : > { %v6058_v58 = vsel %vm6056_vm7, %v6057_v56, %v6055_v57 }
 0x970   : > { %v6059_v60 = vadd.f32 1e-10, %v6058_v58 }
 0x972   : > { %27173 = vrcp.f32 %v6059_v60 }
 0x97c   : > { %v27174_v3 = vpop.eup %27173 }
 0x97d   : > { %v6061_v4 = vmul.f32 %v27174_v3, %v6046_v12  ;;  %v7489_v12 = vpop.permute.xlu1 %7488 }
 0x97e   : > { %v7492_v15 = vsel %vm1855_vm2, %v7489_v12, 0 }
 0x97f   : > { %v6066_v6 = vmul.f32 %v6065_v2, %v6061_v4  ;;  %v28626_v16 = vand.u32 4294901760, %v7492_v15 }
 0x981   : > { %v28595_v7 = vadd.f32 %v6070_v5, %v6066_v6  ;;  %v7572_v50 = vsub.f32 %v7492_v15, %v28626_v16  ;;  %v8406_v44 = vpop.permute.xlu1 %8405 }
 0x983   : > { %v6084_v8 = vsel %vm862_vm1, %v28595_v7, 0  ;;  %v7573_v36 = vand.u32 4294901760, %v7572_v50 }
 0x984   : > { %v6155_v9 = vand.u32 4294901760, %v6084_v8 }
 0x985   : > { %v9323_v60 = vpop.permute.xlu1 %9322 }
 0x986   : > { %v6156_v10 = vsub.f32 %v6084_v8, %v6155_v9  ;;  %v9326_v63 = vsel %vm1855_vm2, %v9323_v60, 0 }
 0x987   : > { %v9329_v3 = vand.u32 4294901760, %v9326_v63 }
 0x988   : > { %v6157_v11 = vand.u32 4294901760, %v6156_v10 }
 0x989   : > { %v9406_v5 = vsub.f32 %v9326_v63, %v9329_v3 }
 0x98a   : > { %v6158_v13 = vsub.f32 %v6156_v10, %v6157_v11 }
 0x98b   : > { %v9407_v8 = vand.u32 4294901760, %v9406_v5 }
 0x98c   : > { %v6159_v14 = vand.u32 4294901760, %v6158_v13 }
 0x98e   : > { %24469 = vmatmul.mubr.f32.vlgmr.msra.gmra.mrb[16].mxu0 %v6159_v14 }
 0x98f   : > { %26118 = vmatpush3.bf16.msra.mxu0 %v26117_v39  ;;  %24479 = vmatprep.mubr.msk.f32.mxu0 %vm27662_vm0, %v27663_v1  ;;  %v7574_v39 = vsub.f32 %v7572_v50, %v7573_v36 }
 0x990   : > { %26119 = vmatprep.subr.bf16.mxu0 %v27661_v0 }
 0x991   : > { %v7575_v42 = vand.u32 4294901760, %v7574_v39 }
 0x993   : > { %26121 = vmatpush3.bf16.msra.mxu0 %v26120_v45 }
 0x994   : > { %26122 = vmatprep.subr.bf16.mxu0 %v27661_v0 }
 0x996   : > { %24480 = vmatmul.mubr.f32.vlgmr.msra.gmra.mrb[16].mxu0 %v6155_v9 }
 0x997   : > { %26124 = vmatpush3.bf16.msra.mxu0 %v26123_v46  ;;  %24490 = vmatprep.mubr.msk.f32.mxu0 %vm27662_vm0, %v27663_v1  ;;  %v8409_v46 = vsel %vm1855_vm2, %v8406_v44, 0 }
 0x998   : > { %26125 = vmatprep.subr.bf16.mxu0 %v27661_v0 }
 0x99b   : > { %26127 = vmatpush3.bf16.msra.mxu0 %v26126_v47 }
 0x99c   : > { %26128 = vmatprep.subr.bf16.mxu0 %v27661_v0 }
 0x99e   : > { %24491 = vmatmul.mubr.f32.vlgmr.msra.gmra.mrb[16].mxu0 %v6156_v10  ;;  %v9408_v10 = vsub.f32 %v9406_v5, %v9407_v8 }
 0x99f   : > { %26130 = vmatpush3.bf16.msra.mxu0 %v28559_v25  ;;  %24501 = vmatprep.mubr.msk.f32.mxu0 %vm27662_vm0, %v27663_v1 }
 0x9a0   : > { %26131 = vmatprep.subr.bf16.mxu0 %v27661_v0  ;;  %v9409_v13 = vand.u32 4294901760, %v9408_v10 }
 0x9a3   : > { %26133 = vmatpush3.bf16.msra.mxu0 %v28568_v30 }
 0x9a4   : > { %26134 = vmatprep.subr.bf16.mxu0 %v27661_v0 }
 0x9a6   : > { %24502 = vmatmul.mubr.f32.vlgmr.msra.gmra.mrb[16].mxu0 %v6157_v11 }
 0x9a7   : > { %26136 = vmatpush3.bf16.msra.mxu0 %v26135_v48  ;;  %24512 = vmatprep.mubr.msk.f32.mxu0 %vm27662_vm0, %v27663_v1  ;;  %v8412_v48 = vand.u32 4294901760, %v8409_v46 }
 0x9a8   : > { %26137 = vmatprep.subr.bf16.mxu0 %v27661_v0 }
 0x9a9   : > { %v8489_v52 = vsub.f32 %v8409_v46, %v8412_v48 }
 0x9ab   : > { %26139 = vmatpush3.bf16.msra.mxu0 %v26138_v51  ;;  %v8490_v54 = vand.u32 4294901760, %v8489_v52 }
 0x9ac   : > { %26140 = vmatprep.subr.bf16.mxu0 %v27661_v0 }
 0x9ad   : > { %v8491_v56 = vsub.f32 %v8489_v52, %v8490_v54 }
 0x9ae   : > { %24513 = vmatmul.mubr.f32.vlgmr.msra.gmra.mrb[16].mxu0 %v6155_v9 }
 0x9af   : > { %26142 = vmatpush3.bf16.msra.mxu0 %v28559_v25  ;;  %24523 = vmatprep.mubr.msk.f32.mxu0 %vm27662_vm0, %v27663_v1  ;;  %v8492_v58 = vand.u32 4294901760, %v8491_v56 }
 0x9b0   : > { %26143 = vmatprep.subr.bf16.mxu0 %v27661_v0 }
 0x9b3   : > { %26145 = vmatpush3.bf16.msra.mxu0 %v28568_v30 }
 0x9b4   : > { %24586 = vmatprep.subr.mxu0 %v27663_v1 }
 0x9b6   : > { %24524 = vmatmul.mubr.f32.vlgmr.msra.gmra.mrb[16].mxu0 %v6155_v9 }
 0x9b7   : > { %24588 = vmatprep.mubr.msk.f32.mxu0 %vm27662_vm0, %v27663_v1 }
 0x9bc   : > { %24587 = vmatpush3.xpose.msra.mxu0 %v28626_v16 }
 0x9bd   : > { %24591 = vmatprep.subr.mxu0 %v27663_v1 }
 0xa89   : > { %v6567_v19 = vpop.f32.mrb[16].mxu0 }
 0xa8a   : > { %v26580_v22 = vadd.f32 %v23133_v18, %v6567_v19  ;;  %v24525_v23 = vpop.f32.mrb[17].mxu0 }
 0xa8c   : > { %v6572_v24 = vsel %vm1855_vm2, %v26580_v22, 0  ;;  %7486 = vrot.lane.b32.xlu0 %v26580_v22, %s30125_s15  ;;  %s30200_s15 = smov 120  }
 0xa8d   : > { %v6643_v25 = vand.u32 4294901760, %v6572_v24 }
 0xa8f   : > { %v6644_v27 = vsub.f32 %v6572_v24, %v6643_v25 }
 0xa90   : > { %8403 = vrot.lane.b32.xlu0 %v26580_v22, %s30121_s14  ;;  %s30208_s14 = smov 48  }
 0xa91   : > { %v6645_v28 = vand.u32 4294901760, %v6644_v27 }
 0xa93   : > { %v6646_v30 = vsub.f32 %v6644_v27, %v6645_v28 }
 0xa94   : > { %9320 = vrot.lane.b32.xlu0 %v26580_v22, %s30118_s7  ;;  %s30199_s7 = sld [smem:[#allocation44_spill]] }
 0xa95   : > { %v6647_v31 = vand.u32 4294901760, %v6646_v30 }
 0xa97   : > { %24529 = vmatmul.mubr.f32.vlgmr.msra.gmra.mrb[16].mxu1 %v6647_v31 }
 0xa98   : > { %24532 = vmatpush3.xpose.msra.mxu1 %v6658_v32  ;;  %24533 = vmatprep.mubr.msk.f32.mxu1 %vm27662_vm0, %v27663_v1 }
 0xa99   : > { %24536 = vmatprep.subr.mxu1 %v27663_v1 }
 0xa9f   : > { %24534 = vmatmul.mubr.f32.vlgmr.msra.gmra.mrb[16].mxu1 %v6643_v25 }
 0xaa0   : > { %24537 = vmatpush3.xpose.msra.mxu1 %v6655_v21  ;;  %24538 = vmatprep.mubr.msk.f32.mxu1 %vm27662_vm0, %v27663_v1 }
 0xaa1   : > { %24541 = vmatprep.subr.mxu1 %v27663_v1 }
 0xaa7   : > { %24539 = vmatmul.mubr.f32.vlgmr.msra.gmra.mrb[16].mxu1 %v6644_v27 }
 0xaa8   : > { %24542 = vmatpush3.xpose.msra.mxu1 %v28531_v41  ;;  %24543 = vmatprep.mubr.msk.f32.mxu1 %vm27662_vm0, %v27663_v1 }
 0xaa9   : > { %24546 = vmatprep.subr.mxu1 %v27663_v1 }
 0xaaf   : > { %24544 = vmatmul.mubr.f32.vlgmr.msra.gmra.mrb[16].mxu1 %v6645_v28 }
 0xab0   : > { %24547 = vmatpush3.xpose.msra.mxu1 %v6656_v26  ;;  %24548 = vmatprep.mubr.msk.f32.mxu1 %vm27662_vm0, %v27663_v1 }
 0xab1   : > { %24551 = vmatprep.subr.mxu1 %v27663_v1 }
 0xab7   : > { %24549 = vmatmul.mubr.f32.vlgmr.msra.gmra.mrb[16].mxu1 %v6643_v25 }
 0xab8   : > { %24552 = vmatpush3.xpose.msra.mxu1 %v28531_v41  ;;  %24553 = vmatprep.mubr.msk.f32.mxu1 %vm27662_vm0, %v27663_v1 }
 0xab9   : > { %24556 = vmatprep.subr.mxu1 %v27663_v1 }
 0xabf   : > { %24554 = vmatmul.mubr.f32.vlgmr.msra.gmra.mrb[16].mxu1 %v6643_v25 }
 0xac0   : > { %24558 = vmatprep.mubr.msk.f32.mxu1 %vm27662_vm0, %v27663_v1 }
 0xafe   : > { %v7487_v33 = vpop.permute.xlu0 %7486 }
 0xaff   : > { %v7490_v34 = vsel %vm1855_vm2, %v7487_v33, 0 }
 0xb00   : > { %v7560_v35 = vand.u32 4294901760, %v7490_v34 }
 0xb02   : > { %v7561_v37 = vsub.f32 %v7490_v34, %v7560_v35  ;;  %v8404_v43 = vpop.permute.xlu0 %8403 }
 0xb03   : > { %v8407_v45 = vsel %vm1855_vm2, %v8404_v43, 0 }
 0xb04   : > { %v7562_v38 = vand.u32 4294901760, %v7561_v37  ;;  %v8477_v47 = vand.u32 4294901760, %v8407_v45 }
 0xb06   : > { %v7563_v41 = vsub.f32 %v7561_v37, %v7562_v38  ;;  %v8478_v51 = vsub.f32 %v8407_v45, %v8477_v47  ;;  %v9321_v59 = vpop.permute.xlu0 %9320 }
 0xb07   : > { %v9324_v62 = vsel %vm1855_vm2, %v9321_v59, 0 }
 0xb08   : > { %v7564_v40 = vand.u32 4294901760, %v7563_v41  ;;  %v8479_v53 = vand.u32 4294901760, %v8478_v51  ;;  %v9394_v2 = vand.u32 4294901760, %v9324_v62 }
 0xb0a   : > { %24589 = vmatmul.mubr.f32.vlgmr.msra.gmra.mrb[18].mxu0 %v7564_v40  ;;  %v8480_v55 = vsub.f32 %v8478_v51, %v8479_v53  ;;  %v9395_v4 = vsub.f32 %v9324_v62, %v9394_v2 }
 0xb0b   : > { %24592 = vmatpush3.xpose.msra.mxu0 %v7575_v42  ;;  %24593 = vmatprep.mubr.msk.f32.mxu0 %vm27662_vm0, %v27663_v1 }
 0xb0c   : > { %24596 = vmatprep.subr.mxu0 %v27663_v1  ;;  %v8481_v57 = vand.u32 4294901760, %v8480_v55  ;;  %v9396_v6 = vand.u32 4294901760, %v9395_v4 }
 0xb0e   : > { %v9397_v9 = vsub.f32 %v9395_v4, %v9396_v6 }
 0xb10   : > { %v9398_v11 = vand.u32 4294901760, %v9397_v9 }
 0xb12   : > { %24594 = vmatmul.mubr.f32.vlgmr.msra.gmra.mrb[18].mxu0 %v7560_v35 }
 0xb13   : > { %24597 = vmatpush3.xpose.msra.mxu0 %v7572_v50  ;;  %24598 = vmatprep.mubr.msk.f32.mxu0 %vm27662_vm0, %v27663_v1 }
 0xb14   : > { %24601 = vmatprep.subr.mxu0 %v27663_v1 }
 0xb1a   : > { %24599 = vmatmul.mubr.f32.vlgmr.msra.gmra.mrb[18].mxu0 %v7561_v37 }
 0xb1b   : > { %24602 = vmatpush3.xpose.msra.mxu0 %v28626_v16  ;;  %24603 = vmatprep.mubr.msk.f32.mxu0 %vm27662_vm0, %v27663_v1 }
 0xb1c   : > { %24606 = vmatprep.subr.mxu0 %v27663_v1 }
 0xb22   : > { %24604 = vmatmul.mubr.f32.vlgmr.msra.gmra.mrb[18].mxu0 %v7562_v38 }
 0xb23   : > { %24607 = vmatpush3.xpose.msra.mxu0 %v7573_v36  ;;  %24608 = vmatprep.mubr.msk.f32.mxu0 %vm27662_vm0, %v27663_v1 }
 0xb24   : > { %24611 = vmatprep.subr.mxu0 %v27663_v1 }
 0xb2a   : > { %24609 = vmatmul.mubr.f32.vlgmr.msra.gmra.mrb[18].mxu0 %v7560_v35 }
 0xb2b   : > { %24612 = vmatpush3.xpose.msra.mxu0 %v28626_v16  ;;  %24613 = vmatprep.mubr.msk.f32.mxu0 %vm27662_vm0, %v27663_v1 }
 0xb2c   : > { %24646 = vmatprep.subr.mxu0 %v27663_v1 }
 0xb32   : > { %24614 = vmatmul.mubr.f32.vlgmr.msra.gmra.mrb[18].mxu0 %v7560_v35 }
 0xb33   : > { %24647 = vmatpush3.xpose.msra.mxu0 %v8412_v48  ;;  %24648 = vmatprep.mubr.msk.f32.mxu0 %vm27662_vm0, %v27663_v1 }
 0xb34   : > { %24651 = vmatprep.subr.mxu0 %v27663_v1 }
 0xb36   : > { %24649 = vmatmul.mubr.f32.vlgmr.msra.gmra.mrb[20].mxu0 %v8481_v57 }
 0xb37   : > { %24652 = vmatpush3.xpose.msra.mxu0 %v8492_v58  ;;  %24653 = vmatprep.mubr.msk.f32.mxu0 %vm27662_vm0, %v27663_v1 }
 0xb38   : > { %24656 = vmatprep.subr.mxu0 %v27663_v1 }
 0xb3e   : > { %24654 = vmatmul.mubr.f32.vlgmr.msra.gmra.mrb[20].mxu0 %v8477_v47 }
 0xb3f   : > { %24657 = vmatpush3.xpose.msra.mxu0 %v8489_v52  ;;  %24658 = vmatprep.mubr.msk.f32.mxu0 %vm27662_vm0, %v27663_v1 }
 0xb40   : > { %24661 = vmatprep.subr.mxu0 %v27663_v1 }
 0xb46   : > { %24659 = vmatmul.mubr.f32.vlgmr.msra.gmra.mrb[20].mxu0 %v8478_v51 }
 0xb47   : > { %24662 = vmatpush3.xpose.msra.mxu0 %v8412_v48  ;;  %24663 = vmatprep.mubr.msk.f32.mxu0 %vm27662_vm0, %v27663_v1 }
 0xb48   : > { %24666 = vmatprep.subr.mxu0 %v27663_v1 }
 0xb4e   : > { %24664 = vmatmul.mubr.f32.vlgmr.msra.gmra.mrb[20].mxu0 %v8479_v53 }
 0xb4f   : > { %24667 = vmatpush3.xpose.msra.mxu0 %v8490_v54  ;;  %24668 = vmatprep.mubr.msk.f32.mxu0 %vm27662_vm0, %v27663_v1 }
 0xb50   : > { %24671 = vmatprep.subr.mxu0 %v27663_v1 }
 0xb56   : > { %24669 = vmatmul.mubr.f32.vlgmr.msra.gmra.mrb[20].mxu0 %v8477_v47 }
 0xb57   : > { %24672 = vmatpush3.xpose.msra.mxu0 %v8412_v48  ;;  %24673 = vmatprep.mubr.msk.f32.mxu0 %vm27662_vm0, %v27663_v1 }
 0xb58   : > { %24706 = vmatprep.subr.mxu0 %v27663_v1 }
 0xb5e   : > { %24674 = vmatmul.mubr.f32.vlgmr.msra.gmra.mrb[20].mxu0 %v8477_v47 }
 0xb5f   : > { %24707 = vmatpush3.xpose.msra.mxu0 %v9329_v3  ;;  %24708 = vmatprep.mubr.msk.f32.mxu0 %vm27662_vm0, %v27663_v1 }
 0xb60   : > { %24711 = vmatprep.subr.mxu0 %v27663_v1 }
 0xb62   : > { %24709 = vmatmul.mubr.f32.vlgmr.msra.gmra.mrb[22].mxu0 %v9398_v11 }
 0xb63   : > { %24712 = vmatpush3.xpose.msra.mxu0 %v9409_v13  ;;  %24713 = vmatprep.mubr.msk.f32.mxu0 %vm27662_vm0, %v27663_v1 }
 0xb64   : > { %24716 = vmatprep.subr.mxu0 %v27663_v1 }
 0xb6a   : > { %24714 = vmatmul.mubr.f32.vlgmr.msra.gmra.mrb[22].mxu0 %v9394_v2 }
 0xb6b   : > { %24717 = vmatpush3.xpose.msra.mxu0 %v9406_v5  ;;  %24718 = vmatprep.mubr.msk.f32.mxu0 %vm27662_vm0, %v27663_v1 }
 0xb6c   : > { %24721 = vmatprep.subr.mxu0 %v27663_v1 }
 0xb72   : > { %24719 = vmatmul.mubr.f32.vlgmr.msra.gmra.mrb[22].mxu0 %v9395_v4 }
 0xb73   : > { %24722 = vmatpush3.xpose.msra.mxu0 %v9329_v3  ;;  %24723 = vmatprep.mubr.msk.f32.mxu0 %vm27662_vm0, %v27663_v1 }
 0xb74   : > { %24726 = vmatprep.subr.mxu0 %v27663_v1 }
 0xb7a   : > { %24724 = vmatmul.mubr.f32.vlgmr.msra.gmra.mrb[22].mxu0 %v9396_v6 }
 0xb7b   : > { %24727 = vmatpush3.xpose.msra.mxu0 %v9407_v8  ;;  %24728 = vmatprep.mubr.msk.f32.mxu0 %vm27662_vm0, %v27663_v1 }
 0xb7c   : > { %24731 = vmatprep.subr.mxu0 %v27663_v1 }
 0xb82   : > { %24729 = vmatmul.mubr.f32.vlgmr.msra.gmra.mrb[22].mxu0 %v9394_v2 }
 0xb83   : > { %24732 = vmatpush3.xpose.msra.mxu0 %v9329_v3  ;;  %24733 = vmatprep.mubr.msk.f32.mxu0 %vm27662_vm0, %v27663_v1 }
 0xb84   : > { %26146 = vmatprep.subr.bf16.mxu0 %v27661_v0 }
 0xb8a   : > { %24734 = vmatmul.mubr.f32.vlgmr.msra.gmra.mrb[22].mxu0 %v9394_v2 }
 0xb8b   : > { %24774 = vmatprep.mubr.msk.f32.mxu0 %vm27662_vm0, %v27663_v1 }
 0xb92   : > { %v7019_v14 = vpop.f32.mrb[16].mxu1 }
 0xb93   : > { %v24555_v12 = vpop.f32.mrb[17].mxu1  ;;  %v7023_v15 = vsel %vm1855_vm2, %v7019_v14, -inf }
 0xb94   : > { %7024 = vmax.xlane.f32.xlu0 %v7023_v15 }
 0xc05   : > { %v7936_v16 = vpop.f32.mrb[18].mxu0 }
 0xc06   : > { %v24615_v18 = vpop.f32.mrb[19].mxu0  ;;  %v7940_v19 = vsel %vm1855_vm2, %v7936_v16, -inf }
 0xc07   : > { %7941 = vmax.xlane.f32.xlu1 %v7940_v19 }
 0xc18   : > { %7034 = vrot.lane.b32.xlu1 %v28517_v49, %s30124_s13  ;;  %s30207_s13 = smov 56  }
 0xc21   : > { %v7025_v21 = vpop.xlane.xlu0 %7024 }
 0xc22   : > { %v7026_v22 = vsub.f32 %v7019_v14, %v7025_v21 }
 0xc24   : > { %v7027_v23 = vmul.f32 1.442695, %v7026_v22 }
 0xc26   : > { %27175 = vpow2.f32 %v7027_v23 }
 0xc30   : > { %v27176_v24 = vpop.eup %27175 }
 0xc31   : > { %v8853_v25 = vpop.f32.mrb[20].mxu0  ;;  %v7029_v26 = vsel %vm1855_vm2, %v27176_v24, 0.0 }
 0xc32   : > { %v24675_v27 = vpop.f32.mrb[21].mxu0  ;;  %7030 = vadd.xlane.f32.xlu0 %v7029_v26  ;;  %v8857_v28 = vsel %vm1855_vm2, %v8853_v25, -inf }
 0xc36   : > { %8858 = vmax.xlane.f32.xlu0 %v8857_v28 }
 0xc5d   : > { %v28722_v29 = vpop.f32.mrb[22].mxu0 }
 0xc5e   : > { %v24735_v30 = vpop.f32.mrb[23].mxu0  ;;  %v9774_v37 = vsel %vm1855_vm2, %v28722_v29, -inf }
 0xc94   : > { %v7942_v31 = vpop.xlane.xlu1 %7941 }
 0xc95   : > { %v7943_v32 = vsub.f32 %v7936_v16, %v7942_v31 }
 0xc97   : > { %v7944_v50 = vmul.f32 1.442695, %v7943_v32 }
 0xc98   : > { %v7035_v33 = vpop.permute.xlu1 %7034 }
 0xc99   : > { %27177 = vpow2.f32 %v7944_v50  ;;  %v7041_v34 = vand.u32 4294901760, %v7035_v33 }
 0xc9b   : > { %24557 = vmatpush3.msra.mxu1 %v7041_v34  ;;  %v7118_v43 = vsub.f32 %v7035_v33, %v7041_v34 }
 0xc9c   : > { %24561 = vmatprep.subr.mxu1 %v27663_v1 }
 0xc9d   : > { %v7119_v47 = vand.u32 4294901760, %v7118_v43 }
 0xc9f   : > { %v7120_v53 = vsub.f32 %v7118_v43, %v7119_v47 }
 0xca1   : > { %v7121_v57 = vand.u32 4294901760, %v7120_v53 }
 0xca3   : > { %v27178_v35 = vpop.eup %27177 }
 0xca4   : > { %v7946_v36 = vsel %vm1855_vm2, %v27178_v35, 0.0 }
 0xca5   : > { %7947 = vadd.xlane.f32.xlu0 %v7946_v36 }
 0xca9   : > { %9775 = vmax.xlane.f32.xlu0 %v9774_v37 }
 0xcbf   : > { %7951 = vrot.lane.b32.xlu0 %v28517_v49, %s30123_s12  ;;  %v7031_v38 = vpop.xlane.xlu0 %7030  ;;  %s30205_s12 = smov 104  }
 0xcc0   : > { %27179 = vrcp.f32 %v7031_v38 }
 0xcc3   : > { %8868 = vrot.lane.b32.xlu0 %v28517_v49, %s30120_s6  ;;  %v8859_v39 = vpop.xlane.xlu0 %8858  ;;  %s30201_s6 = smov 96  }
 0xcc4   : > { %v8860_v41 = vsub.f32 %v8853_v25, %v8859_v39 }
 0xcc6   : > { %v8861_v40 = vmul.f32 1.442695, %v8860_v41 }
 0xcc8   : > { %27181 = vpow2.f32 %v8861_v40 }
 0xcca   : > { %v27180_v42 = vpop.eup %27179 }
 0xccb   : > { %v7033_v44 = vmul.f32 %v27180_v42, %v27176_v24 }
 0xccd   : > { %v7038_v45 = vsel %vm1855_vm2, %v7033_v44, 0 }
 0xcce   : > { %v7106_v46 = vand.u32 4294901760, %v7038_v45 }
 0xcd0   : > { %v7107_v48 = vsub.f32 %v7038_v45, %v7106_v46 }
 0xcd2   : > { %v28733_v51 = vpop.eup %27181  ;;  %v7108_v52 = vand.u32 4294901760, %v7107_v48 }
 0xcd3   : > { %v8863_v54 = vsel %vm1855_vm2, %v28733_v51, 0.0 }
 0xcd4   : > { %8864 = vadd.xlane.f32.xlu1 %v8863_v54  ;;  %v7109_v55 = vsub.f32 %v7107_v48, %v7108_v52 }
 0xcd6   : > { %v7110_v56 = vand.u32 4294901760, %v7109_v55  ;;  %v10252_v55 = vld [vmem:[#allocation11] sm:$0xff] }
 0xcd8   : > { %24559 = vmatmul.mubr.f32.vlgmr.msra.gmra.mrb[18].mxu1 %v7110_v56  ;;  %v10253_v56 = vld [vmem:[#allocation11 + $0x8] sm:$0xff] }
 0xcd9   : > { %24562 = vmatpush3.msra.mxu1 %v7121_v57  ;;  %24563 = vmatprep.mubr.msk.f32.mxu1 %vm27662_vm0, %v27663_v1  ;;  %v10267_v57 = vand.u32 4294901760, %v10252_v55 }
 0xcda   : > { %24566 = vmatprep.subr.mxu1 %v27663_v1 }
 0xce0   : > { %24564 = vmatmul.mubr.f32.vlgmr.msra.gmra.mrb[18].mxu1 %v7106_v46 }
 0xce1   : > { %24567 = vmatpush3.msra.mxu1 %v7118_v43  ;;  %24568 = vmatprep.mubr.msk.f32.mxu1 %vm27662_vm0, %v27663_v1 }
 0xce2   : > { %24571 = vmatprep.subr.mxu1 %v27663_v1 }
 0xce5   : > { %9785 = vrot.lane.b32.xlu1 %v28517_v49, %s30195_s22 }
 0xce8   : > { %24569 = vmatmul.mubr.f32.vlgmr.msra.gmra.mrb[18].mxu1 %v7107_v48 }
 0xce9   : > { %24572 = vmatpush3.msra.mxu1 %v7041_v34  ;;  %24573 = vmatprep.mubr.msk.f32.mxu1 %vm27662_vm0, %v27663_v1 }
 0xcea   : > { %24576 = vmatprep.subr.mxu1 %v27663_v1 }
 0xcf0   : > { %24574 = vmatmul.mubr.f32.vlgmr.msra.gmra.mrb[18].mxu1 %v7108_v52 }
 0xcf1   : > { %24577 = vmatpush3.msra.mxu1 %v7119_v47  ;;  %24578 = vmatprep.mubr.msk.f32.mxu1 %vm27662_vm0, %v27663_v1 }
 0xcf2   : > { %24581 = vmatprep.subr.mxu1 %v27663_v1 }
 0xcf8   : > { %24579 = vmatmul.mubr.f32.vlgmr.msra.gmra.mrb[18].mxu1 %v7106_v46 }
 0xcf9   : > { %24582 = vmatpush3.msra.mxu1 %v7041_v34  ;;  %24583 = vmatprep.mubr.msk.f32.mxu1 %vm27662_vm0, %v27663_v1 }
 0xcfa   : > { %24616 = vmatprep.subr.mxu1 %v27663_v1 }
 0xd00   : > { %24584 = vmatmul.mubr.f32.vlgmr.msra.gmra.mrb[18].mxu1 %v7106_v46 }
 0xd01   : > { %24618 = vmatprep.mubr.msk.f32.mxu1 %vm27662_vm0, %v27663_v1 }
 0xd32   : > { %v7948_v58 = vpop.xlane.xlu0 %7947 }
 0xd33   : > { %27183 = vrcp.f32 %v7948_v58  ;;  %v10270_v58 = vand.u32 4294901760, %v10253_v56 }
 0xd36   : > { %v9776_v59 = vpop.xlane.xlu0 %9775 }
 0xd37   : > { %v9777_v60 = vsub.f32 %v28722_v29, %v9776_v59  ;;  %v28823_v59 = vsub.f32 %v10252_v55, %v10267_v57 }
 0xd39   : > { %v9778_v62 = vmul.f32 1.442695, %v9777_v60  ;;  %v28825_v60 = vsub.f32 %v10253_v56, %v10270_v58 }
 0xd3a   : > { %v7952_v63 = vpop.permute.xlu0 %7951 }
 0xd3b   : > { %27185 = vpow2.f32 %v9778_v62  ;;  %v7958_v2 = vand.u32 4294901760, %v7952_v63  ;;  %v10348_v62 = vand.u32 4294901760, %v28823_v59 }
 0xd3d   : > { %v27184_v3 = vpop.eup %27183  ;;  %24617 = vmatpush3.msra.mxu1 %v7958_v2  ;;  %v8035_v5 = vsub.f32 %v7952_v63, %v7958_v2  ;;  %v10355_v63 = vand.u32 4294901760, %v28825_v60 }
 0xd3e   : > { %v7950_v4 = vmul.f32 %v27184_v3, %v27178_v35  ;;  %24621 = vmatprep.subr.mxu1 %v27663_v1  ;;  %v8869_v21 = vpop.permute.xlu0 %8868 }
 0xd3f   : > { %v8036_v9 = vand.u32 4294901760, %v8035_v5  ;;  %v8875_v22 = vand.u32 4294901760, %v8869_v21  ;;  %v10356_v3 = vsub.f32 %v28825_v60, %v10355_v63 }
 0xd40   : > { %v7955_v6 = vsel %vm1855_vm2, %v7950_v4, 0 }
 0xd41   : > { %v8023_v8 = vand.u32 4294901760, %v7955_v6  ;;  %v8037_v14 = vsub.f32 %v8035_v5, %v8036_v9  ;;  %v8952_v24 = vsub.f32 %v8869_v21, %v8875_v22 }
 0xd43   : > { %v8024_v10 = vsub.f32 %v7955_v6, %v8023_v8  ;;  %v8038_v18 = vand.u32 4294901760, %v8037_v14  ;;  %v8953_v28 = vand.u32 4294901760, %v8952_v24 }
 0xd45   : > { %v28759_v11 = vpop.eup %27185  ;;  %v8025_v13 = vand.u32 4294901760, %v8024_v10  ;;  %v8954_v31 = vsub.f32 %v8952_v24, %v8953_v28 }
 0xd46   : > { %v9780_v12 = vsel %vm1855_vm2, %v28759_v11, 0.0 }
 0xd47   : > { %9781 = vadd.xlane.f32.xlu0 %v9780_v12  ;;  %v8026_v15 = vsub.f32 %v8024_v10, %v8025_v13  ;;  %v8955_v33 = vand.u32 4294901760, %v8954_v31 }
 0xd49   : > { %v8027_v16 = vand.u32 4294901760, %v8026_v15 }
 0xd4b   : > { %24619 = vmatmul.mubr.f32.vlgmr.msra.gmra.mrb[20].mxu1 %v8027_v16 }
 0xd4c   : > { %24622 = vmatpush3.msra.mxu1 %v8038_v18  ;;  %24623 = vmatprep.mubr.msk.f32.mxu1 %vm27662_vm0, %v27663_v1 }
 0xd4d   : > { %24626 = vmatprep.subr.mxu1 %v27663_v1 }
 0xd53   : > { %24624 = vmatmul.mubr.f32.vlgmr.msra.gmra.mrb[20].mxu1 %v8023_v8 }
 0xd54   : > { %24627 = vmatpush3.msra.mxu1 %v8035_v5  ;;  %24628 = vmatprep.mubr.msk.f32.mxu1 %vm27662_vm0, %v27663_v1  ;;  %v10357_v5 = vand.u32 4294901760, %v10356_v3 }
 0xd55   : > { %24631 = vmatprep.subr.mxu1 %v27663_v1 }
 0xd5b   : > { %24629 = vmatmul.mubr.f32.vlgmr.msra.gmra.mrb[20].mxu1 %v8024_v10  ;;  %v10254_v10 = vld [vmem:[#allocation11 + $0x10] sm:$0xff] }
 0xd5c   : > { %24632 = vmatpush3.msra.mxu1 %v7958_v2  ;;  %24633 = vmatprep.mubr.msk.f32.mxu1 %vm27662_vm0, %v27663_v1 }
 0xd5d   : > { %24636 = vmatprep.subr.mxu1 %v27663_v1 }
 0xd61   : > { %v8865_v19 = vpop.xlane.xlu1 %8864 }
 0xd62   : > { %27187 = vrcp.f32 %v8865_v19 }
 0xd63   : > { %24634 = vmatmul.mubr.f32.vlgmr.msra.gmra.mrb[20].mxu1 %v8025_v13  ;;  %v10273_v13 = vand.u32 4294901760, %v10254_v10 }
 0xd64   : > { %24637 = vmatpush3.msra.mxu1 %v8036_v9  ;;  %24638 = vmatprep.mubr.msk.f32.mxu1 %vm27662_vm0, %v27663_v1 }
 0xd65   : > { %24641 = vmatprep.subr.mxu1 %v27663_v1  ;;  %v9786_v34 = vpop.permute.xlu1 %9785  ;;  %v10361_v12 = vsub.f32 %v10254_v10, %v10273_v13 }
 0xd66   : > { %v9792_v35 = vand.u32 4294901760, %v9786_v34 }
 0xd67   : > { %v10362_v16 = vand.u32 4294901760, %v10361_v12 }
 0xd68   : > { %v9869_v41 = vsub.f32 %v9786_v34, %v9792_v35 }
 0xd69   : > { %v10363_v19 = vsub.f32 %v10361_v12, %v10362_v16 }
 0xd6a   : > { %v9870_v44 = vand.u32 4294901760, %v9869_v41 }
 0xd6b   : > { %24639 = vmatmul.mubr.f32.vlgmr.msra.gmra.mrb[20].mxu1 %v8023_v8 }
 0xd6c   : > { %v27188_v23 = vpop.eup %27187  ;;  %24642 = vmatpush3.msra.mxu1 %v7958_v2  ;;  %24643 = vmatprep.mubr.msk.f32.mxu1 %vm27662_vm0, %v27663_v1  ;;  %v9871_v47 = vsub.f32 %v9869_v41, %v9870_v44  ;;  %v10349_v2 = vsub.f32 %v28823_v59, %v10348_v62 }
 0xd6d   : > { %v8867_v25 = vmul.f32 %v27188_v23, %v28733_v51  ;;  %24676 = vmatprep.subr.mxu1 %v27663_v1 }
 0xd6e   : > { %v9872_v52 = vand.u32 4294901760, %v9871_v47  ;;  %v10350_v4 = vand.u32 4294901760, %v10349_v2 }
 0xd6f   : > { %v8872_v26 = vsel %vm1855_vm2, %v8867_v25, 0  ;;  %v26147_v25 = vpack.c.bf16 %v10270_v58, %v10267_v57 }
 0xd70   : > { %v8940_v27 = vand.u32 4294901760, %v8872_v26  ;;  %v26153_v6 = vpack.c.bf16 %v10357_v5, %v10350_v4 }
 0xd71   : > { %26148 = vmatpush3.bf16.msra.mxu0 %v26147_v25 }
 0xd72   : > { %v8941_v29 = vsub.f32 %v8872_v26, %v8940_v27  ;;  %26149 = vmatprep.subr.bf16.mxu0 %v27661_v0 }
 0xd73   : > { %24644 = vmatmul.mubr.f32.vlgmr.msra.gmra.mrb[20].mxu1 %v8023_v8 }
 0xd74   : > { %24677 = vmatpush3.msra.mxu1 %v8875_v22  ;;  %24678 = vmatprep.mubr.msk.f32.mxu1 %vm27662_vm0, %v27663_v1  ;;  %v8942_v30 = vand.u32 4294901760, %v8941_v29 }
 0xd75   : > { %24681 = vmatprep.subr.mxu1 %v27663_v1 }
 0xd76   : > { %v8943_v32 = vsub.f32 %v8941_v29, %v8942_v30 }
 0xd78   : > { %v8944_v50 = vand.u32 4294901760, %v8943_v32 }
 0xd7a   : > { %24679 = vmatmul.mubr.f32.vlgmr.msra.gmra.mrb[22].mxu1 %v8944_v50 }
 0xd7b   : > { %24682 = vmatpush3.msra.mxu1 %v8955_v33  ;;  %24683 = vmatprep.mubr.msk.f32.mxu1 %vm27662_vm0, %v27663_v1 }
 0xd7c   : > { %24686 = vmatprep.subr.mxu1 %v27663_v1 }
 0xd82   : > { %24684 = vmatmul.mubr.f32.vlgmr.msra.gmra.mrb[22].mxu1 %v8940_v27 }
 0xd83   : > { %24687 = vmatpush3.msra.mxu1 %v8952_v24  ;;  %24688 = vmatprep.mubr.msk.f32.mxu1 %vm27662_vm0, %v27663_v1 }
 0xd84   : > { %24691 = vmatprep.subr.mxu1 %v27663_v1 }
 0xd8a   : > { %24689 = vmatmul.mubr.f32.vlgmr.msra.gmra.mrb[22].mxu1 %v8941_v29 }
 0xd8b   : > { %24692 = vmatpush3.msra.mxu1 %v8875_v22  ;;  %24693 = vmatprep.mubr.msk.f32.mxu1 %vm27662_vm0, %v27663_v1 }
 0xd8c   : > { %24696 = vmatprep.subr.mxu1 %v27663_v1 }
 0xd92   : > { %24694 = vmatmul.mubr.f32.vlgmr.msra.gmra.mrb[22].mxu1 %v8942_v30 }
 0xd93   : > { %24697 = vmatpush3.msra.mxu1 %v8953_v28  ;;  %24698 = vmatprep.mubr.msk.f32.mxu1 %vm27662_vm0, %v27663_v1 }
 0xd94   : > { %24701 = vmatprep.subr.mxu1 %v27663_v1 }
 0xd9a   : > { %24699 = vmatmul.mubr.f32.vlgmr.msra.gmra.mrb[22].mxu1 %v8940_v27 }
 0xd9b   : > { %24702 = vmatpush3.msra.mxu1 %v8875_v22  ;;  %24703 = vmatprep.mubr.msk.f32.mxu1 %vm27662_vm0, %v27663_v1  ;;  %v10364_v22 = vand.u32 4294901760, %v10363_v19 }
 0xd9c   : > { %24736 = vmatprep.subr.mxu1 %v27663_v1 }
 0xda2   : > { %24704 = vmatmul.mubr.f32.vlgmr.msra.gmra.mrb[22].mxu1 %v8940_v27 }
 0xda3   : > { %24737 = vmatpush3.msra.mxu1 %v9792_v35  ;;  %24738 = vmatprep.mubr.msk.f32.mxu1 %vm27662_vm0, %v27663_v1 }
 0xda4   : > { %24741 = vmatprep.subr.mxu1 %v27663_v1 }
 0xdd3   : > { %v28801_v36 = vpop.f32.mrb[18].mxu1 }
 0xdd4   : > { %v9782_v37 = vpop.xlane.xlu0 %9781  ;;  %v24585_v38 = vpop.f32.mrb[19].mxu1 }
 0xdd5   : > { %27189 = vrcp.f32 %v9782_v37 }
 0xddf   : > { %v27190_v39 = vpop.eup %27189 }
 0xde0   : > { %v9784_v40 = vmul.f32 %v27190_v39, %v28759_v11  ;;  %v10255_v11 = vld [vmem:[#allocation11 + $0x18] sm:$0xff] }
 0xde1   : > { %v10276_v14 = vand.u32 4294901760, %v10255_v11 }
 0xde2   : > { %v9789_v42 = vsel %vm1855_vm2, %v9784_v40, 0 }
 0xde3   : > { %v9857_v43 = vand.u32 4294901760, %v9789_v42  ;;  %v10368_v15 = vsub.f32 %v10255_v11, %v10276_v14  ;;  %v26150_v26 = vpack.c.bf16 %v10276_v14, %v10273_v13  ;;  %v10782_v13 = vld [vmem:[#allocation14] sm:$0xff]  ;;  %v10783_v14 = vld [vmem:[#allocation14 + $0x8] sm:$0xff] }
 0xde5   : > { %v9858_v45 = vsub.f32 %v9789_v42, %v9857_v43  ;;  %v10369_v18 = vand.u32 4294901760, %v10368_v15  ;;  %26151 = vmatpush3.bf16.msra.mxu0 %v26150_v26  ;;  %v26162_v29 = vpack.c.bf16 %v10368_v15, %v10361_v12  ;;  %v10784_v12 = vld [vmem:[#allocation14 + $0x10] sm:$0xff] }
 0xde6   : > { %26158 = vmatprep.subr.bf16.mxu0 %v27661_v0  ;;  %v10803_v19 = vand.u32 4294901760, %v10784_v12 }
 0xde7   : > { %v9859_v46 = vand.u32 4294901760, %v9858_v45  ;;  %v10370_v21 = vsub.f32 %v10368_v15, %v10369_v18  ;;  %v26174_v30 = vpack.c.bf16 %v10369_v18, %v10362_v16  ;;  %v10797_v15 = vand.u32 4294901760, %v10782_v13  ;;  %v10785_v18 = vld [vmem:[#allocation14 + $0x18] sm:$0xff] }
 0xde8   : > { %v10800_v16 = vand.u32 4294901760, %v10783_v14 }
 0xde9   : > { %v9860_v48 = vsub.f32 %v9858_v45, %v9859_v46  ;;  %v10371_v23 = vand.u32 4294901760, %v10370_v21  ;;  %v10806_v21 = vand.u32 4294901760, %v10785_v18 }
 0xdeb   : > { %v9861_v51 = vand.u32 4294901760, %v9860_v48  ;;  %v26156_v24 = vpack.c.bf16 %v10371_v23, %v10364_v22  ;;  %v28879_v22 = vpack.c.bf16 %v10800_v16, %v10797_v15  ;;  %v28881_v23 = vsub.f32 %v10782_v13, %v10797_v15 }
 0xded   : > { %24739 = vmatmul.mubr.f32.vlgmr.msra.gmra.mrb[24].mxu1 %v9861_v51 }
 0xdee   : > { %24742 = vmatpush3.msra.mxu1 %v9872_v52  ;;  %24743 = vmatprep.mubr.msk.f32.mxu1 %vm27662_vm0, %v27663_v1 }
 0xdef   : > { %24746 = vmatprep.subr.mxu1 %v27663_v1 }
 0xdf5   : > { %24744 = vmatmul.mubr.f32.vlgmr.msra.gmra.mrb[24].mxu1 %v9857_v43 }
 0xdf6   : > { %24747 = vmatpush3.msra.mxu1 %v9869_v41  ;;  %24748 = vmatprep.mubr.msk.f32.mxu1 %vm27662_vm0, %v27663_v1 }
 0xdf7   : > { %24751 = vmatprep.subr.mxu1 %v27663_v1 }
 0xdfd   : > { %24749 = vmatmul.mubr.f32.vlgmr.msra.gmra.mrb[24].mxu1 %v9858_v45 }
 0xdfe   : > { %24752 = vmatpush3.msra.mxu1 %v9792_v35  ;;  %24753 = vmatprep.mubr.msk.f32.mxu1 %vm27662_vm0, %v27663_v1 }
 0xdff   : > { %24756 = vmatprep.subr.mxu1 %v27663_v1 }
 0xe05   : > { %24754 = vmatmul.mubr.f32.vlgmr.msra.gmra.mrb[24].mxu1 %v9859_v46  ;;  %v23134_v46 = vld [vmem:[#allocation13] ss:$0 sm:$0xff] }
 0xe06   : > { %24757 = vmatpush3.msra.mxu1 %v9870_v44  ;;  %24758 = vmatprep.mubr.msk.f32.mxu1 %vm27662_vm0, %v27663_v1 }
 0xe07   : > { %24761 = vmatprep.subr.mxu1 %v27663_v1 }
 0xe0d   : > { %24759 = vmatmul.mubr.f32.vlgmr.msra.gmra.mrb[24].mxu1 %v9857_v43 }
 0xe0e   : > { %24762 = vmatpush3.msra.mxu1 %v9792_v35  ;;  %24763 = vmatprep.mubr.msk.f32.mxu1 %vm27662_vm0, %v27663_v1 }
 0xe0f   : > { %26152 = vmatprep.subr.bf16.mxu1 %v27661_v0 }
 0xe15   : > { %24764 = vmatmul.mubr.f32.vlgmr.msra.gmra.mrb[24].mxu1 %v9857_v43  ;;  %v26171_v43 = vpack.c.bf16 %v10355_v63, %v10348_v62 }
 0xe16   : > { %24785 = vmatprep.mubr.msk.f32.mxu1 %vm27662_vm0, %v27663_v1  ;;  %26154 = vmatpush3.bf16.msra.mxu1 %v26153_v6 }
 0xe17   : > { %26155 = vmatprep.subr.bf16.mxu1 %v27661_v0 }
 0xe1a   : > { %26157 = vmatpush3.bf16.msra.mxu1 %v26156_v24  ;;  %v28883_v24 = vsub.f32 %v10783_v14, %v10800_v16 }
 0xe1b   : > { %26164 = vmatprep.subr.bf16.mxu1 %v27661_v0 }
 0xe46   : > { %v8399_v53 = vpop.f32.mrb[20].mxu1 }
 0xe47   : > { %10238 = vrot.lane.b32.xlu0 %v8399_v53, %s30196_s0  ;;  %v24645_v54 = vpop.f32.mrb[21].mxu1 }
 0xe75   : > { %v9316_v8 = vpop.f32.mrb[22].mxu1 }
 0xe76   : > { %10242 = vrot.lane.b32.xlu1 %v9316_v8, %s30197_s10  ;;  %v24705_v9 = vpop.f32.mrb[23].mxu1 }
 0xeb9   : > { %v10239_v31 = vpop.permute.xlu0 %10238 }
 0xeba   : > { %v10249_v50 = vsel %vm1855_vm2, %v28801_v36, %v10239_v31  ;;  %v26159_v36 = vpack.c.bf16 %v28825_v60, %v28823_v59 }
 0xee8   : > { %v10233_v27 = vpop.f32.mrb[24].mxu1  ;;  %v10243_v32 = vpop.permute.xlu1 %10242 }
 0xee9   : > { %10246 = vrot.lane.b32.xlu1 %v10233_v27, %s30198_s24  ;;  %v24765_v28 = vpop.f32.mrb[25].mxu1  ;;  %v10250_v33 = vsel %vm5537_vm4, %v10249_v50, %v10243_v32  ;;  %v28890_v27 = vpack.c.bf16 %v10806_v21, %v10803_v19 }
 0xeea   : > { %v10878_v28 = vand.u32 4294901760, %v28881_v23 }
 0xf5b   : > { %v10247_v34 = vpop.permute.xlu1 %10246 }
 0xf5c   : > { %v10251_v35 = vsel %vm5539_vm5, %v10250_v33, %v10247_v34 }
 0xf5d   : > { %v10264_v37 = vsel %vm862_vm1, %v10251_v35, 0 }
 0xf5e   : > { %v10335_v38 = vand.u32 4294901760, %v10264_v37 }
 0xf60   : > { %v10336_v39 = vsub.f32 %v10264_v37, %v10335_v38  ;;  %24786 = vmatmul.mubr.f32.vlgmr.msra.gmra.mrb[26].mxu1 %v10335_v38 }
 0xf61   : > { %26166 = vmatpush3.bf16.msra.mxu1 %v26147_v25  ;;  %24807 = vmatprep.mubr.msk.f32.mxu1 %vm27662_vm0, %v27663_v1 }
 0xf62   : > { %26167 = vmatprep.subr.bf16.mxu1 %v27661_v0  ;;  %v10337_v41 = vand.u32 4294901760, %v10336_v39 }
 0xf64   : > { %v10338_v40 = vsub.f32 %v10336_v39, %v10337_v41 }
 0xf65   : > { %26169 = vmatpush3.bf16.msra.mxu1 %v26150_v26 }
 0xf66   : > { %26176 = vmatprep.subr.bf16.mxu1 %v27661_v0  ;;  %v10339_v42 = vand.u32 4294901760, %v10338_v40 }
 0xf68   : > { %24808 = vmatmul.mubr.f32.vlgmr.msra.gmra.mrb[28].mxu1 %v10337_v41  ;;  %24775 = vmatmul.mubr.f32.vlgmr.msra.gmra.mrb[24].mxu0 %v10339_v42 }
 0xf69   : > { %26160 = vmatpush3.bf16.msra.mxu0 %v26159_v36  ;;  %26178 = vmatpush3.bf16.msra.mxu1 %v26147_v25  ;;  %v28885_v25 = vsub.f32 %v10784_v12, %v10803_v19  ;;  %v26195_v36 = vpack.c.bf16 %v28883_v24, %v28881_v23 }
 0xf6a   : > { %26161 = vmatprep.subr.bf16.mxu0 %v27661_v0  ;;  %26179 = vmatprep.subr.bf16.mxu1 %v27661_v0 }
 0xf6b   : > { %24796 = vmatprep.mubr.msk.f32.mxu0 %vm27662_vm0, %v27663_v1  ;;  %24829 = vmatprep.mubr.msk.f32.mxu1 %vm27662_vm0, %v27663_v1  ;;  %v10892_v33 = vand.u32 4294901760, %v28885_v25 }
 0xf6d   : > { %26163 = vmatpush3.bf16.msra.mxu0 %v26162_v29  ;;  %26181 = vmatpush3.bf16.msra.mxu1 %v26150_v26  ;;  %v28887_v26 = vsub.f32 %v10785_v18, %v10806_v21  ;;  %v10885_v29 = vand.u32 4294901760, %v28883_v24  ;;  %v10893_v37 = vsub.f32 %v28885_v25, %v10892_v33 }
 0xf6e   : > { %26170 = vmatprep.subr.bf16.mxu0 %v27661_v0  ;;  %26230 = vmatprep.subr.bf16.mxu1 %v27661_v0 }
 0xf6f   : > { %v10886_v31 = vsub.f32 %v28883_v24, %v10885_v29  ;;  %v10899_v34 = vand.u32 4294901760, %v28887_v26  ;;  %v26198_v42 = vpack.c.bf16 %v28887_v26, %v28885_v25 }
 0xf70   : > { %24797 = vmatmul.mubr.f32.vlgmr.msra.gmra.mrb[26].mxu0 %v10336_v39  ;;  %24830 = vmatmul.mubr.f32.vlgmr.msra.gmra.mrb[30].mxu1 %v10335_v38  ;;  %v10894_v39 = vand.u32 4294901760, %v10893_v37 }
 0xf71   : > { %26172 = vmatpush3.bf16.msra.mxu0 %v26171_v43  ;;  %24818 = vmatprep.mubr.msk.f32.mxu0 %vm27662_vm0, %v27663_v1  ;;  %v10887_v50 = vand.u32 4294901760, %v10886_v31  ;;  %v28911_v43 = vpack.c.bf16 %v10885_v29, %v10878_v28  ;;  %v28983_v31 = vld [vmem:[%s30193_s3] sm:$0x7] }
 0xf72   : > { %26173 = vmatprep.subr.bf16.mxu0 %v27661_v0  ;;  %24933 = vmatprep.mubr.msk.f32.mxu1 %vm27662_vm0, %v27663_v1 }
 0xf75   : > { %26175 = vmatpush3.bf16.msra.mxu0 %v26174_v30  ;;  %v10879_v30 = vsub.f32 %v28881_v23, %v10878_v28 }
 0xf76   : > { %26182 = vmatprep.subr.bf16.mxu0 %v27661_v0 }
 0xf77   : > { %v10880_v32 = vand.u32 4294901760, %v10879_v30  ;;  %v28978_v30 = vsub.s32 1, %v28582_v20 }
 0xf78   : > { %24819 = vmatmul.mubr.f32.vlgmr.msra.gmra.mrb[28].mxu0 %v10335_v38  ;;  %v10900_v38 = vsub.f32 %v28887_v26, %v10899_v34 }
 0xf79   : > { %24840 = vmatprep.mubr.msk.f32.mxu0 %vm27662_vm0, %v27663_v1  ;;  %26184 = vmatpush3.bf16.msra.mxu0 %v28879_v22  ;;  %v28901_v35 = vpack.c.bf16 %v10887_v50, %v10880_v32  ;;  %v10775_v32 = vrot.slane %v28983_v31, %v28978_v30 }
 0xf7a   : > { %26185 = vmatprep.subr.bf16.mxu0 %v27661_v0  ;;  %v10901_v41 = vand.u32 4294901760, %v10900_v38 }
 0xf7c   : > { %v28905_v40 = vpack.c.bf16 %v10901_v41, %v10894_v39 }
 0xf7d   : > { %26187 = vmatpush3.bf16.msra.mxu0 %v28890_v27 }
 0xf7e   : > { %26188 = vmatprep.subr.bf16.mxu0 %v27661_v0 }
0x1033   : > { %v10432_v44 = vpop.f32.mrb[26].mxu1 }
0x1034   : > { %v24787_v45 = vpop.f32.mrb[27].mxu1 }
0x1035   : > { %v28918_v45 = vld [vmem:[%s30199_s7] sm:$0xff] }
0x103b   : > { %v10589_v47 = vpop.f32.mrb[28].mxu1  ;;  %v10341_v48 = vpop.f32.mrb[24].mxu0 }
0x103c   : > { %v10342_v51 = vadd.f32 %v23134_v46, %v10341_v48  ;;  %v24809_v52 = vpop.f32.mrb[29].mxu1  ;;  %v24776_v53 = vpop.f32.mrb[25].mxu0  ;;  %v28923_v46 = vld [vmem:[%s30199_s7 + $0x8] sm:$0xff]  ;;  %v11302_v48 = vand.u32 4294901760, %v28918_v45 }
0x103d   : > { %v28935_v52 = vld [vmem:[%s30199_s7 + $0x18] sm:$0xff] }
0x103e   : > { %v10433_v54 = vadd.f32 %v10432_v44, %v10342_v51  ;;  %v28913_v44 = vpack.c.bf16 %v10899_v34, %v10892_v33  ;;  %v11305_v51 = vand.u32 4294901760, %v28923_v46  ;;  %v28991_v34 = vld [vmem:[%s30194_s18] sm:$0x7] }
0x103f   : > { %v10780_v37 = vrot.slane %v28991_v34, %v28978_v30 }
0x1043   : > { %v10512_v55 = vpop.f32.mrb[26].mxu0  ;;  %v10747_v56 = vpop.f32.mrb[30].mxu1 }
0x1044   : > { %v10513_v57 = vadd.f32 %v10512_v55, %v10433_v54  ;;  %v24798_v58 = vpop.f32.mrb[27].mxu0  ;;  %v24831_v59 = vpop.f32.mrb[31].mxu1  ;;  %v11311_v54 = vand.u32 4294901760, %v28935_v52  ;;  %v28942_v55 = vsub.f32 %v28918_v45, %v11302_v48 }
0x1046   : > { %v10590_v60 = vadd.f32 %v10589_v47, %v10513_v57  ;;  %v28928_v47 = vld [vmem:[%s30199_s7 + $0x10] sm:$0xff]  ;;  %v28957_v58 = vsub.f32 %v28935_v52, %v11311_v54  ;;  %v11387_v59 = vand.u32 4294901760, %v28942_v55 }
0x1047   : > { %v11308_v53 = vand.u32 4294901760, %v28928_v47 }
0x1049   : > { %v28952_v57 = vsub.f32 %v28928_v47, %v11308_v53  ;;  %v29061_v45 = vpack.c.bf16 %v11311_v54, %v11308_v53 }
0x104b   : > { %v10672_v62 = vpop.f32.mrb[28].mxu0 }
0x104c   : > { %v10673_v63 = vadd.f32 %v10672_v62, %v10590_v60  ;;  %v24820_v2 = vpop.f32.mrb[29].mxu0  ;;  %v11401_v62 = vand.u32 4294901760, %v28952_v57 }
0x104d   : > { %v11388_v2 = vsub.f32 %v28942_v55, %v11387_v59 }
0x104e   : > { %v10748_v3 = vadd.f32 %v10747_v56, %v10673_v63  ;;  %v28947_v56 = vsub.f32 %v28923_v46, %v11305_v51  ;;  %v11408_v63 = vand.u32 4294901760, %v28957_v58 }
0x1050   : > { %v10751_v4 = vadd.f32 %v10748_v3, %v28595_v7  ;;  %v11394_v60 = vand.u32 4294901760, %v28947_v56 }
0x1052   : > { %v10752_v5 = vsel %vm862_vm1, %v10751_v4, 0.0  ;;  %v11395_v3 = vsub.f32 %v28947_v56, %v11394_v60 }
0x1053   : > { %10753 = vadd.xlane.f32.xlu1 %v10752_v5  ;;  %v11409_v5 = vsub.f32 %v28957_v58, %v11408_v63 }
0x10e0   : > { %v10754_v6 = vpop.xlane.xlu1 %10753 }
0x10e1   : > { %v10755_v8 = vmul.f32 0.03125, %v10754_v6  ;;  %v11389_v6 = vand.u32 4294901760, %v11388_v2 }
0x10e3   : > { %v28874_v9 = vsub.f32 %v10751_v4, %v10755_v8  ;;  %v11402_v4 = vsub.f32 %v28952_v57, %v11401_v62  ;;  %v11396_v8 = vand.u32 4294901760, %v11395_v3 }
0x10e5   : > { %v10757_v10 = vmul.f32 %v28874_v9, %v28874_v9  ;;  %v26231_v13 = vpack.c.bf16 %v11396_v8, %v11389_v6 }
0x10e7   : > { %v10758_v11 = vsel %vm862_vm1, %v10757_v10, 0.0  ;;  %v11403_v10 = vand.u32 4294901760, %v11402_v4  ;;  %26232 = vmatpush3.bf16.msra.mxu1 %v26231_v13 }
0x10e8   : > { %10759 = vadd.xlane.f32.xlu0 %v10758_v11  ;;  %v11410_v11 = vand.u32 4294901760, %v11409_v5  ;;  %26233 = vmatprep.subr.bf16.mxu1 %v27661_v0 }
0x10ea   : > { %v26234_v14 = vpack.c.bf16 %v11410_v11, %v11403_v10 }
0x10ec   : > { %26235 = vmatpush3.bf16.msra.mxu1 %v26234_v14 }
0x10ed   : > { %26236 = vmatprep.subr.bf16.mxu1 %v27661_v0 }
0x1175   : > { %v10760_v12 = vpop.xlane.xlu0 %10759 }
0x1176   : > { %v10761_v15 = vmul.f32 0.03125, %v10760_v12 }
0x1178   : > { %27191 = vrsqrt.f32 %v10761_v15  ;;  %vm10764_vm8 = vcmp.eq.f32.partialorder %v10761_v15, inf  ;;  %v10767_v19 = vand.u32 2147483648, %v10761_v15  ;;  %vm10766_vm9 = vcmp.eq.f32.partialorder %v10761_v15, 0.0 }
0x1182   : > { %v27192_v16 = vpop.eup %27191 }
0x1183   : > { %v10763_v18 = vmul.f32 %v27192_v16, %v10761_v15  ;;  %v29052_v16 = vpack.c.bf16 %v11305_v51, %v11302_v48 }
0x1185   : > { %v10765_v21 = vsel %vm10764_vm8, %v10761_v15, %v10763_v18 }
0x1186   : > { %v10768_v28 = vsel %vm10766_vm9, %v10767_v19, %v10765_v21 }
0x1187   : > { %v10769_v29 = vadd.f32 1e-10, %v10768_v28 }
0x1189   : > { %27193 = vrcp.f32 %v10769_v29 }
0x1193   : > { %v27194_v50 = vpop.eup %27193 }
0x1194   : > { %v10771_v33 = vmul.f32 %v27194_v50, %v28874_v9  ;;  %v11286_v9 = vld [vmem:[%s30199_s7 + $0x20] sm:$0xff] }
0x1195   : > { %v11314_v23 = vand.u32 4294901760, %v11286_v9 }
0x1196   : > { %v10776_v38 = vmul.f32 %v10775_v32, %v10771_v33  ;;  %v23135_v32 = vld [vmem:[#allocation16] ss:$0 sm:$0xff] }
0x1197   : > { %v29038_v25 = vsub.f32 %v11286_v9, %v11314_v23 }
0x1198   : > { %v10781_v39 = vadd.f32 %v10780_v37, %v10776_v38 }
0x119a   : > { %v10794_v41 = vsel %vm862_vm1, %v10781_v39, 0 }
0x119b   : > { %v10865_v2 = vand.u32 4294901760, %v10794_v41 }
0x119d   : > { %v10866_v3 = vsub.f32 %v10794_v41, %v10865_v2  ;;  %v26243_v41 = vpack.c.bf16 %v28947_v56, %v28942_v55 }
0x119f   : > { %v10867_v4 = vand.u32 4294901760, %v10866_v3 }
0x11a1   : > { %v10868_v5 = vsub.f32 %v10866_v3, %v10867_v4 }
0x11a3   : > { %v10869_v6 = vand.u32 4294901760, %v10868_v5 }
0x11a5   : > { %24841 = vmatmul.mubr.f32.vlgmr.msra.gmra.mrb[30].mxu0 %v10869_v6 }
0x11a6   : > { %26190 = vmatpush3.bf16.msra.mxu0 %v28901_v35  ;;  %24851 = vmatprep.mubr.msk.f32.mxu0 %vm27662_vm0, %v27663_v1  ;;  %v11289_v35 = vld [vmem:[%s30199_s7 + $0x38] sm:$0xff] }
0x11a7   : > { %26191 = vmatprep.subr.bf16.mxu0 %v27661_v0 }
0x11aa   : > { %26193 = vmatpush3.bf16.msra.mxu0 %v28905_v40  ;;  %v11415_v40 = vand.u32 4294901760, %v29038_v25 }
0x11ab   : > { %26194 = vmatprep.subr.bf16.mxu0 %v27661_v0 }
0x11ad   : > { %24852 = vmatmul.mubr.f32.vlgmr.msra.gmra.mrb[30].mxu0 %v10865_v2 }
0x11ae   : > { %26196 = vmatpush3.bf16.msra.mxu0 %v26195_v36  ;;  %24862 = vmatprep.mubr.msk.f32.mxu0 %vm27662_vm0, %v27663_v1 }
0x11af   : > { %26197 = vmatprep.subr.bf16.mxu0 %v27661_v0 }
0x11b2   : > { %26199 = vmatpush3.bf16.msra.mxu0 %v26198_v42 }
0x11b3   : > { %26200 = vmatprep.subr.bf16.mxu0 %v27661_v0 }
0x11b5   : > { %24863 = vmatmul.mubr.f32.vlgmr.msra.gmra.mrb[30].mxu0 %v10866_v3 }
0x11b6   : > { %26202 = vmatpush3.bf16.msra.mxu0 %v28879_v22  ;;  %24873 = vmatprep.mubr.msk.f32.mxu0 %vm27662_vm0, %v27663_v1 }
0x11b7   : > { %26203 = vmatprep.subr.bf16.mxu0 %v27661_v0 }
0x11ba   : > { %26205 = vmatpush3.bf16.msra.mxu0 %v28890_v27 }
0x11bb   : > { %26206 = vmatprep.subr.bf16.mxu0 %v27661_v0 }
0x11bd   : > { %24874 = vmatmul.mubr.f32.vlgmr.msra.gmra.mrb[30].mxu0 %v10867_v4  ;;  %v26246_v4 = vpack.c.bf16 %v28957_v58, %v28952_v57  ;;  %v23136_v57 = vld [vmem:[#allocation17] ss:$0 sm:$0xff] }
0x11be   : > { %26208 = vmatpush3.bf16.msra.mxu0 %v28911_v43  ;;  %24884 = vmatprep.mubr.msk.f32.mxu0 %vm27662_vm0, %v27663_v1  ;;  %v11323_v43 = vand.u32 4294901760, %v11289_v35 }
0x11bf   : > { %26209 = vmatprep.subr.bf16.mxu0 %v27661_v0 }
0x11c0   : > { %v11435_v11 = vsub.f32 %v11289_v35, %v11323_v43 }
0x11c2   : > { %26211 = vmatpush3.bf16.msra.mxu0 %v28913_v44  ;;  %v11416_v44 = vsub.f32 %v29038_v25, %v11415_v40  ;;  %v11436_v15 = vand.u32 4294901760, %v11435_v11 }
0x11c3   : > { %26212 = vmatprep.subr.bf16.mxu0 %v27661_v0 }
0x11c4   : > { %v11417_v13 = vand.u32 4294901760, %v11416_v44  ;;  %v11437_v21 = vsub.f32 %v11435_v11, %v11436_v15 }
0x11c5   : > { %24885 = vmatmul.mubr.f32.vlgmr.msra.gmra.mrb[30].mxu0 %v10865_v2 }
0x11c6   : > { %26214 = vmatpush3.bf16.msra.mxu0 %v28879_v22  ;;  %24895 = vmatprep.mubr.msk.f32.mxu0 %vm27662_vm0, %v27663_v1  ;;  %v11287_v22 = vld [vmem:[%s30199_s7 + $0x28] sm:$0xff]  ;;  %v11438_v29 = vand.u32 4294901760, %v11437_v21 }
0x11c7   : > { %26215 = vmatprep.subr.bf16.mxu0 %v27661_v0  ;;  %v11317_v24 = vand.u32 4294901760, %v11287_v22 }
0x11c9   : > { %v11421_v26 = vsub.f32 %v11287_v22, %v11317_v24  ;;  %v26225_v48 = vpack.c.bf16 %v11317_v24, %v11314_v23  ;;  %v26267_v22 = vpack.c.bf16 %v11394_v60, %v11387_v59  ;;  %v26270_v23 = vpack.c.bf16 %v11408_v63, %v11401_v62 }
0x11ca   : > { %26217 = vmatpush3.bf16.msra.mxu0 %v28890_v27  ;;  %v11288_v27 = vld [vmem:[%s30199_s7 + $0x30] sm:$0xff] }
0x11cb   : > { %26218 = vmatprep.subr.bf16.mxu0 %v27661_v0  ;;  %v11422_v36 = vand.u32 4294901760, %v11421_v26  ;;  %v11320_v42 = vand.u32 4294901760, %v11288_v27  ;;  %v26249_v47 = vpack.c.bf16 %v11421_v26, %v29038_v25 }
0x11cd   : > { %24896 = vmatmul.mubr.f32.vlgmr.msra.gmra.mrb[30].mxu0 %v10865_v2  ;;  %v11423_v8 = vsub.f32 %v11421_v26, %v11422_v36  ;;  %v11428_v10 = vsub.f32 %v11288_v27, %v11320_v42  ;;  %v26228_v51 = vpack.c.bf16 %v11323_v43, %v11320_v42  ;;  %v26273_v53 = vpack.c.bf16 %v11422_v36, %v11415_v40 }
0x11ce   : > { %24914 = vmatprep.mubr.msk.f32.mxu0 %vm27662_vm0, %v27663_v1  ;;  %26220 = vmatpush3.bf16.msra.mxu0 %v29052_v16 }
0x11cf   : > { %v11424_v14 = vand.u32 4294901760, %v11423_v8  ;;  %v11429_v12 = vand.u32 4294901760, %v11428_v10  ;;  %26221 = vmatprep.subr.bf16.mxu0 %v27661_v0  ;;  %v26252_v52 = vpack.c.bf16 %v11435_v11, %v11428_v10 }
0x11d1   : > { %v26237_v18 = vpack.c.bf16 %v11424_v14, %v11417_v13  ;;  %v11430_v19 = vsub.f32 %v11428_v10, %v11429_v12  ;;  %v26276_v54 = vpack.c.bf16 %v11436_v15, %v11429_v12 }
0x11d2   : > { %26223 = vmatpush3.bf16.msra.mxu0 %v29061_v45 }
0x11d3   : > { %26238 = vmatpush3.bf16.msra.mxu1 %v26237_v18  ;;  %v11431_v28 = vand.u32 4294901760, %v11430_v19  ;;  %26224 = vmatprep.subr.bf16.mxu0 %v27661_v0  ;;  %v23139_v18 = vld [vmem:[%s30188_s30 + $0x20] sm:$0xff]  ;;  %v23140_v19 = vld [vmem:[%s30188_s30 + $0x28] sm:$0xff] }
0x11d4   : > { %26239 = vmatprep.subr.bf16.mxu1 %v27661_v0  ;;  %v11890_v21 = vand.u32 4294901760, %v23139_v18 }
0x11d5   : > { %v26240_v46 = vpack.c.bf16 %v11438_v29, %v11431_v28  ;;  %v11893_v28 = vand.u32 4294901760, %v23140_v19  ;;  %v23142_v29 = vld [vmem:[%s30188_s30 + $0x38] sm:$0xff] }
0x11d6   : > { %26226 = vmatpush3.bf16.msra.mxu0 %v26225_v48 }
0x11d7   : > { %26241 = vmatpush3.bf16.msra.mxu1 %v26240_v46  ;;  %26227 = vmatprep.subr.bf16.mxu0 %v27661_v0  ;;  %v11899_v46 = vand.u32 4294901760, %v23142_v29 }
0x11d8   : > { %26242 = vmatprep.subr.bf16.mxu1 %v27661_v0 }
0x11da   : > { %26229 = vmatpush3.bf16.msra.mxu0 %v26228_v51 }
0x11db   : > { %26254 = vmatprep.subr.bf16.mxu0 %v27661_v0 }
0x12a0   : > { %v11277_v50 = vpop.f32.mrb[30].mxu0 }
0x12a1   : > { %v26581_v33 = vadd.f32 %v23135_v32, %v11277_v50  ;;  %v24897_v37 = vpop.f32.mrb[31].mxu0 }
0x12a3   : > { %v11281_v38 = vmax.f32 %v26581_v33, 0.0 }
0x12a5   : > { %v11299_v39 = vsel %vm11297_vm10, %v11281_v38, 0 }
0x12a6   : > { %v11374_v2 = vand.u32 4294901760, %v11299_v39 }
0x12a8   : > { %v11375_v3 = vsub.f32 %v11299_v39, %v11374_v2  ;;  %24934 = vmatmul.mubr.f32.vlgmr.msra.gmra.mrb[32].mxu1 %v11374_v2 }
0x12a9   : > { %26244 = vmatpush3.bf16.msra.mxu1 %v26243_v41  ;;  %24952 = vmatprep.mubr.msk.f32.mxu1 %vm27662_vm0, %v27663_v1 }
0x12aa   : > { %v11376_v5 = vand.u32 4294901760, %v11375_v3  ;;  %26245 = vmatprep.subr.bf16.mxu1 %v27661_v0 }
0x12ac   : > { %v11377_v6 = vsub.f32 %v11375_v3, %v11376_v5 }
0x12ad   : > { %26247 = vmatpush3.bf16.msra.mxu1 %v26246_v4 }
0x12ae   : > { %26248 = vmatprep.subr.bf16.mxu1 %v27661_v0  ;;  %v11378_v9 = vand.u32 4294901760, %v11377_v6 }
0x12b0   : > { %24915 = vmatmul.mubr.f32.vlgmr.msra.gmra.mrb[32].mxu0 %v11378_v9 }
0x12b1   : > { %26250 = vmatpush3.bf16.msra.mxu1 %v26249_v47  ;;  %26256 = vmatpush3.bf16.msra.mxu0 %v29052_v16  ;;  %v11977_v47 = vsub.f32 %v23140_v19, %v11893_v28 }
0x12b2   : > { %26251 = vmatprep.subr.bf16.mxu1 %v27661_v0  ;;  %26257 = vmatprep.subr.bf16.mxu0 %v27661_v0 }
0x12b3   : > { %24971 = vmatprep.mubr.msk.f32.mxu0 %vm27662_vm0, %v27663_v1  ;;  %v11978_v50 = vand.u32 4294901760, %v11977_v47 }
0x12b5   : > { %26253 = vmatpush3.bf16.msra.mxu1 %v26252_v52  ;;  %26259 = vmatpush3.bf16.msra.mxu0 %v29061_v45  ;;  %v11979_v37 = vsub.f32 %v11977_v47, %v11978_v50 }
0x12b6   : > { %26260 = vmatprep.subr.bf16.mxu0 %v27661_v0  ;;  %26266 = vmatprep.subr.bf16.mxu1 %v27661_v0 }
0x12b7   : > { %v11980_v39 = vand.u32 4294901760, %v11979_v37 }
0x12b8   : > { %24953 = vmatmul.mubr.f32.vlgmr.msra.gmra.mrb[34].mxu1 %v11375_v3 }
0x12b9   : > { %26262 = vmatpush3.bf16.msra.mxu0 %v26225_v48  ;;  %26268 = vmatpush3.bf16.msra.mxu1 %v26267_v22 }
0x12ba   : > { %26263 = vmatprep.subr.bf16.mxu0 %v27661_v0  ;;  %26269 = vmatprep.subr.bf16.mxu1 %v27661_v0 }
0x12bb   : > { %24990 = vmatprep.mubr.msk.f32.mxu1 %vm27662_vm0, %v27663_v1 }
0x12bd   : > { %26265 = vmatpush3.bf16.msra.mxu0 %v26228_v51  ;;  %26271 = vmatpush3.bf16.msra.mxu1 %v26270_v23 }
0x12be   : > { %26272 = vmatprep.subr.bf16.mxu1 %v27661_v0  ;;  %26278 = vmatprep.subr.bf16.mxu0 %v27661_v0 }
0x12c0   : > { %24972 = vmatmul.mubr.f32.vlgmr.msra.gmra.mrb[34].mxu0 %v11376_v5 }
0x12c1   : > { %26274 = vmatpush3.bf16.msra.mxu1 %v26273_v53  ;;  %26280 = vmatpush3.bf16.msra.mxu0 %v29052_v16  ;;  %v11991_v53 = vsub.f32 %v23142_v29, %v11899_v46 }
0x12c2   : > { %26275 = vmatprep.subr.bf16.mxu1 %v27661_v0  ;;  %26281 = vmatprep.subr.bf16.mxu0 %v27661_v0 }
0x12c3   : > { %25009 = vmatprep.mubr.msk.f32.mxu0 %vm27662_vm0, %v27663_v1 }
0x12c5   : > { %26277 = vmatpush3.bf16.msra.mxu1 %v26276_v54  ;;  %26283 = vmatpush3.bf16.msra.mxu0 %v29061_v45 }
0x12c6   : > { %26284 = vmatprep.subr.bf16.mxu0 %v27661_v0  ;;  %26290 = vmatprep.subr.bf16.mxu1 %v27661_v0 }
0x12c8   : > { %24991 = vmatmul.mubr.f32.vlgmr.msra.gmra.mrb[36].mxu1 %v11374_v2 }
0x12c9   : > { %26286 = vmatpush3.bf16.msra.mxu0 %v26225_v48  ;;  %25020 = vmatprep.mubr.msk.f32.mxu1 %vm27662_vm0, %v27663_v1  ;;  %v29129_v48 = vpack.c.bf16 %v11893_v28, %v11890_v21 }
0x12ca   : > { %26287 = vmatprep.subr.bf16.mxu0 %v27661_v0 }
0x12cb   : > { %26292 = vmatpush3.bf16.msra.mxu1 %v29129_v48 }
0x12cc   : > { %26293 = vmatprep.subr.bf16.mxu1 %v27661_v0 }
0x12cd   : > { %26289 = vmatpush3.bf16.msra.mxu0 %v26228_v51  ;;  %v11970_v51 = vsub.f32 %v23139_v18, %v11890_v21 }
0x12ce   : > { %25078 = vmatprep.subr.mxu0 %v27663_v1 }
0x12cf   : > { %v11971_v32 = vand.u32 4294901760, %v11970_v51  ;;  %v26303_v23 = vpack.c.bf16 %v11977_v47, %v11970_v51 }
0x12d0   : > { %25010 = vmatmul.mubr.f32.vlgmr.msra.gmra.mrb[36].mxu0 %v11374_v2  ;;  %v11992_v2 = vand.u32 4294901760, %v11991_v53 }
0x12d1   : > { %25080 = vmatprep.mubr.msk.f32.mxu0 %vm27662_vm0, %v27663_v1  ;;  %v11972_v33 = vsub.f32 %v11970_v51, %v11971_v32 }
0x12d2   : > { %v11993_v5 = vsub.f32 %v11991_v53, %v11992_v2 }
0x12d3   : > { %v11973_v38 = vand.u32 4294901760, %v11972_v33 }
0x12d4   : > { %v11994_v9 = vand.u32 4294901760, %v11993_v5 }
0x12d5   : > { %v26297_v3 = vpack.c.bf16 %v11980_v39, %v11973_v38 }
0x137b   : > { %v11491_v55 = vpop.f32.mrb[32].mxu1 }
0x137c   : > { %v24935_v56 = vpop.f32.mrb[33].mxu1 }
0x137d   : > { %v26315_v56 = vpack.c.bf16 %v11978_v50, %v11971_v32 }
0x1383   : > { %v11380_v58 = vpop.f32.mrb[32].mxu0 }
0x1384   : > { %v11381_v59 = vadd.f32 %v23136_v57, %v11380_v58  ;;  %v24916_v60 = vpop.f32.mrb[33].mxu0 }
0x1386   : > { %v11492_v62 = vadd.f32 %v11491_v55, %v11381_v59 }
0x138b   : > { %v11579_v63 = vpop.f32.mrb[34].mxu1 }
0x138c   : > { %v11580_v24 = vadd.f32 %v11579_v63, %v11492_v62  ;;  %v24954_v25 = vpop.f32.mrb[35].mxu1 }
0x1393   : > { %v11660_v26 = vpop.f32.mrb[34].mxu0 }
0x1394   : > { %v11661_v27 = vadd.f32 %v11660_v26, %v11580_v24  ;;  %v24973_v35 = vpop.f32.mrb[35].mxu0 }
0x139b   : > { %v11755_v40 = vpop.f32.mrb[36].mxu1 }
0x139c   : > { %v11756_v36 = vadd.f32 %v11755_v40, %v11661_v27  ;;  %v24992_v42 = vpop.f32.mrb[37].mxu1  ;;  %v29138_v27 = vsub.s32 2, %v28582_v20 }
0x139e   : > { %v11862_v35 = vrot.slane %v28983_v31, %v29138_v27  ;;  %v11867_v42 = vrot.slane %v28991_v34, %v29138_v27  ;;  %v23143_v31 = vld [vmem:[#allocation5 + $0x1] ss:$0 sm:$0xff] }
0x13a3   : > { %v11834_v43 = vpop.f32.mrb[36].mxu0 }
0x13a4   : > { %v11835_v44 = vadd.f32 %v11834_v43, %v11756_v36  ;;  %v25011_v8 = vpop.f32.mrb[37].mxu0 }
0x13a6   : > { %v11838_v10 = vadd.f32 %v11835_v44, %v28595_v7  ;;  %v23141_v7 = vld [vmem:[%s30188_s30 + $0x30] sm:$0xff]  ;;  %s30211_s30 = sshll.u32 %s28132_s17, 3 }
0x13a7   : > { %v11896_v45 = vand.u32 4294901760, %v23141_v7 }
0x13a8   : > { %v11839_v11 = vsel %vm862_vm1, %v11838_v10, 0.0 }
0x13a9   : > { %11840 = vadd.xlane.f32.xlu1 %v11839_v11  ;;  %v11984_v52 = vsub.f32 %v23141_v7, %v11896_v45  ;;  %v29132_v54 = vpack.c.bf16 %v11899_v46, %v11896_v45 }
0x13ab   : > { %26295 = vmatpush3.bf16.msra.mxu1 %v29132_v54  ;;  %v11985_v41 = vand.u32 4294901760, %v11984_v52  ;;  %v26306_v55 = vpack.c.bf16 %v11991_v53, %v11984_v52 }
0x13ac   : > { %26296 = vmatprep.subr.bf16.mxu1 %v27661_v0 }
0x13ad   : > { %v11986_v4 = vsub.f32 %v11984_v52, %v11985_v41  ;;  %v26318_v57 = vpack.c.bf16 %v11992_v2, %v11985_v41 }
0x13af   : > { %v11987_v6 = vand.u32 4294901760, %v11986_v4 }
0x13b1   : > { %v26300_v22 = vpack.c.bf16 %v11994_v9, %v11987_v6 }
0x1436   : > { %v11841_v13 = vpop.xlane.xlu1 %11840 }
0x1437   : > { %v11842_v14 = vmul.f32 0.03125, %v11841_v13 }
0x1439   : > { %v11843_v12 = vsub.f32 %v11838_v10, %v11842_v14 }
0x143b   : > { %v11844_v15 = vmul.f32 %v11843_v12, %v11843_v12 }
0x143d   : > { %v11845_v16 = vsel %vm862_vm1, %v11844_v15, 0.0 }
0x143e   : > { %11846 = vadd.xlane.f32.xlu1 %v11845_v16 }
0x14cb   : > { %v11847_v58 = vpop.xlane.xlu1 %11846 }
0x14cc   : > { %v11848_v59 = vmul.f32 0.03125, %v11847_v58 }
0x14ce   : > { %27195 = vrsqrt.f32 %v11848_v59  ;;  %vm11851_vm11 = vcmp.eq.f32.partialorder %v11848_v59, inf  ;;  %v11854_v63 = vand.u32 2147483648, %v11848_v59  ;;  %vm11853_vm12 = vcmp.eq.f32.partialorder %v11848_v59, 0.0 }
0x14d8   : > { %v27196_v60 = vpop.eup %27195 }
0x14d9   : > { %v11850_v62 = vmul.f32 %v27196_v60, %v11848_v59 }
0x14db   : > { %v11852_v24 = vsel %vm11851_vm11, %v11848_v59, %v11850_v62 }
0x14dc   : > { %v11855_v25 = vsel %vm11853_vm12, %v11854_v63, %v11852_v24 }
0x14dd   : > { %v11856_v26 = vadd.f32 1e-10, %v11855_v25 }
0x14df   : > { %27197 = vrcp.f32 %v11856_v26 }
0x14e9   : > { %v27198_v40 = vpop.eup %27197 }
0x14ea   : > { %v11858_v36 = vmul.f32 %v27198_v40, %v11843_v12 }
0x14ec   : > { %v11863_v43 = vmul.f32 %v11862_v35, %v11858_v36 }
0x14ee   : > { %v29144_v44 = vadd.f32 %v11867_v42, %v11863_v43 }
0x14f0   : > { %v11887_v8 = vsel %vm862_vm1, %v29144_v44, 0 }
0x14f1   : > { %v11958_v10 = vand.u32 4294901760, %v11887_v8 }
0x14f3   : > { %v11959_v11 = vsub.f32 %v11887_v8, %v11958_v10 }
0x14f5   : > { %v11960_v13 = vand.u32 4294901760, %v11959_v11 }
0x14f7   : > { %v11961_v14 = vsub.f32 %v11959_v11, %v11960_v13 }
0x14f9   : > { %v11962_v20 = vand.u32 4294901760, %v11961_v14 }
0x14fb   : > { %25021 = vmatmul.mubr.f32.vlgmr.msra.gmra.mrb[38].mxu1 %v11962_v20 }
0x14fc   : > { %26298 = vmatpush3.bf16.msra.mxu1 %v26297_v3  ;;  %25031 = vmatprep.mubr.msk.f32.mxu1 %vm27662_vm0, %v27663_v1 }
0x14fd   : > { %26299 = vmatprep.subr.bf16.mxu1 %v27661_v0 }
0x1500   : > { %26301 = vmatpush3.bf16.msra.mxu1 %v26300_v22 }
0x1501   : > { %26302 = vmatprep.subr.bf16.mxu1 %v27661_v0 }
0x1503   : > { %25032 = vmatmul.mubr.f32.vlgmr.msra.gmra.mrb[38].mxu1 %v11958_v10 }
0x1504   : > { %26304 = vmatpush3.bf16.msra.mxu1 %v26303_v23  ;;  %25042 = vmatprep.mubr.msk.f32.mxu1 %vm27662_vm0, %v27663_v1 }
0x1505   : > { %26305 = vmatprep.subr.bf16.mxu1 %v27661_v0 }
0x1508   : > { %26307 = vmatpush3.bf16.msra.mxu1 %v26306_v55 }
0x1509   : > { %26308 = vmatprep.subr.bf16.mxu1 %v27661_v0 }
0x150b   : > { %25043 = vmatmul.mubr.f32.vlgmr.msra.gmra.mrb[38].mxu1 %v11959_v11 }
0x150c   : > { %26310 = vmatpush3.bf16.msra.mxu1 %v29129_v48  ;;  %25053 = vmatprep.mubr.msk.f32.mxu1 %vm27662_vm0, %v27663_v1 }
0x150d   : > { %26311 = vmatprep.subr.bf16.mxu1 %v27661_v0 }
0x1510   : > { %26313 = vmatpush3.bf16.msra.mxu1 %v29132_v54 }
0x1511   : > { %26314 = vmatprep.subr.bf16.mxu1 %v27661_v0 }
0x1513   : > { %25054 = vmatmul.mubr.f32.vlgmr.msra.gmra.mrb[38].mxu1 %v11960_v13 }
0x1514   : > { %26316 = vmatpush3.bf16.msra.mxu1 %v26315_v56  ;;  %25064 = vmatprep.mubr.msk.f32.mxu1 %vm27662_vm0, %v27663_v1 }
0x1515   : > { %26317 = vmatprep.subr.bf16.mxu1 %v27661_v0 }
0x1518   : > { %26319 = vmatpush3.bf16.msra.mxu1 %v26318_v57 }
0x1519   : > { %26320 = vmatprep.subr.bf16.mxu1 %v27661_v0 }
0x151b   : > { %25065 = vmatmul.mubr.f32.vlgmr.msra.gmra.mrb[38].mxu1 %v11958_v10 }
0x151c   : > { %26322 = vmatpush3.bf16.msra.mxu1 %v29129_v48  ;;  %25075 = vmatprep.mubr.msk.f32.mxu1 %vm27662_vm0, %v27663_v1 }
0x151d   : > { %26323 = vmatprep.subr.bf16.mxu1 %v27661_v0 }
0x1520   : > { %26325 = vmatpush3.bf16.msra.mxu1 %v29132_v54 }
0x1521   : > { %25138 = vmatprep.subr.mxu1 %v27663_v1 }
0x1523   : > { %25076 = vmatmul.mubr.f32.vlgmr.msra.gmra.mrb[38].mxu1 %v11958_v10 }
0x1524   : > { %25140 = vmatprep.mubr.msk.f32.mxu1 %vm27662_vm0, %v27663_v1 }
0x15f6   : > { %v12370_v34 = vpop.f32.mrb[38].mxu1 }
0x15f7   : > { %v29174_v12 = vadd.f32 %v23143_v31, %v12370_v34  ;;  %v25077_v15 = vpop.f32.mrb[39].mxu1 }
0x15f9   : > { %13291 = vrot.lane.b32.xlu1 %v29174_v12, %s30200_s15  ;;  %12375 = vrot.lane.b32.xlu0 %v29174_v12, %s30201_s6  ;;  %v12377_v16 = vsel %vm1855_vm2, %v29174_v12, 0  ;;  %s30209_s6 = smov 40  }
0x15fa   : > { %v29192_v18 = vand.u32 4294901760, %v12377_v16 }
0x15fc   : > { %v12448_v19 = vsub.f32 %v12377_v16, %v29192_v18 }
0x15fd   : > { %13293 = vrot.lane.b32.xlu1 %v29174_v12, %s30202_s4  ;;  %14209 = vrot.lane.b32.xlu0 %v29174_v12, %s30203_s8 }
0x15fe   : > { %v12449_v7 = vand.u32 4294901760, %v12448_v19 }
0x1600   : > { %v12450_v46 = vsub.f32 %v12448_v19, %v12449_v7 }
0x1601   : > { %14211 = vrot.lane.b32.xlu1 %v29174_v12, %s30204_s11  ;;  %15127 = vrot.lane.b32.xlu0 %v29174_v12, %s30205_s12 }
0x1602   : > { %v12451_v32 = vand.u32 4294901760, %v12450_v46 }
0x1605   : > { %15129 = vrot.lane.b32.xlu1 %v29174_v12, %s30195_s22  ;;  %s30206_s22 = smov 64  }
0x166b   : > { %v13292_v21 = vpop.permute.xlu1 %13291  ;;  %v12376_v28 = vpop.permute.xlu0 %12375 }
0x166c   : > { %v13295_v29 = vsel %vm1855_vm2, %v13292_v21, 0  ;;  %v12379_v45 = vsel %vm1855_vm2, %v12376_v28, 0 }
0x166d   : > { %v29197_v48 = vand.u32 4294901760, %v13295_v29  ;;  %v12382_v51 = vand.u32 4294901760, %v12379_v45 }
0x166f   : > { %v13366_v47 = vsub.f32 %v13295_v29, %v29197_v48  ;;  %v12459_v52 = vsub.f32 %v12379_v45, %v12382_v51  ;;  %v13294_v53 = vpop.permute.xlu1 %13293  ;;  %25079 = vmatpush3.xpose.msra.mxu0 %v12382_v51  ;;  %v14210_v9 = vpop.permute.xlu0 %14209 }
0x1670   : > { %v13297_v54 = vsel %vm1855_vm2, %v13294_v53, 0  ;;  %25083 = vmatprep.subr.mxu0 %v27663_v1  ;;  %v14213_v23 = vsel %vm1855_vm2, %v14210_v9, 0 }
0x1671   : > { %v13367_v50 = vand.u32 4294901760, %v13366_v47  ;;  %v12460_v33 = vand.u32 4294901760, %v12459_v52  ;;  %v13300_v37 = vand.u32 4294901760, %v13297_v54  ;;  %v14283_v56 = vand.u32 4294901760, %v14213_v23 }
0x1672   : > { %25081 = vmatmul.mubr.f32.vlgmr.msra.gmra.mrb[38].mxu0 %v12451_v32 }
0x1673   : > { %v13368_v38 = vsub.f32 %v13366_v47, %v13367_v50  ;;  %v12461_v39 = vsub.f32 %v12459_v52, %v12460_v33  ;;  %v13377_v41 = vsub.f32 %v13297_v54, %v13300_v37  ;;  %25139 = vmatpush3.xpose.msra.mxu1 %v13300_v37  ;;  %25085 = vmatprep.mubr.msk.f32.mxu0 %vm27662_vm0, %v27663_v1  ;;  %v14212_v22 = vpop.permute.xlu1 %14211  ;;  %v15128_v35 = vpop.permute.xlu0 %15127 }
0x1674   : > { %25143 = vmatprep.subr.mxu1 %v27663_v1  ;;  %v14215_v55 = vsel %vm1855_vm2, %v14212_v22, 0  ;;  %v14284_v58 = vsub.f32 %v14213_v23, %v14283_v56  ;;  %v15131_v36 = vsel %vm1855_vm2, %v15128_v35, 0 }
0x1675   : > { %v13369_v2 = vand.u32 4294901760, %v13368_v38  ;;  %v12462_v3 = vand.u32 4294901760, %v12461_v39  ;;  %v13378_v4 = vand.u32 4294901760, %v13377_v41  ;;  %v14218_v57 = vand.u32 4294901760, %v14215_v55 }
0x1676   : > { %v14285_v60 = vand.u32 4294901760, %v14284_v58  ;;  %v15201_v43 = vand.u32 4294901760, %v15131_v36 }
0x1677   : > { %v13379_v5 = vsub.f32 %v13377_v41, %v13378_v4  ;;  %25141 = vmatmul.mubr.f32.vlgmr.msra.gmra.mrb[40].mxu1 %v13369_v2  ;;  %25084 = vmatpush3.xpose.msra.mxu0 %v12462_v3  ;;  %v14295_v59 = vsub.f32 %v14215_v55, %v14218_v57  ;;  %v15130_v40 = vpop.permute.xlu1 %15129 }
0x1678   : > { %25088 = vmatprep.subr.mxu0 %v27663_v1  ;;  %25145 = vmatprep.mubr.msk.f32.mxu1 %vm27662_vm0, %v27663_v1  ;;  %v14286_v63 = vsub.f32 %v14284_v58, %v14285_v60  ;;  %v15133_v42 = vsel %vm1855_vm2, %v15130_v40, 0  ;;  %v15202_v10 = vsub.f32 %v15131_v36, %v15201_v43 }
0x1679   : > { %v13380_v6 = vand.u32 4294901760, %v13379_v5  ;;  %v14296_v62 = vand.u32 4294901760, %v14295_v59  ;;  %v15136_v8 = vand.u32 4294901760, %v15133_v42 }
0x167a   : > { %25086 = vmatmul.mubr.f32.vlgmr.msra.gmra.mrb[38].mxu0 %v29192_v18  ;;  %v14287_v25 = vand.u32 4294901760, %v14286_v63  ;;  %v15203_v13 = vand.u32 4294901760, %v15202_v10 }
0x167b   : > { %25089 = vmatpush3.xpose.msra.mxu0 %v12459_v52  ;;  %25144 = vmatpush3.xpose.msra.mxu1 %v13380_v6  ;;  %v14297_v24 = vsub.f32 %v14295_v59, %v14296_v62  ;;  %v15213_v11 = vsub.f32 %v15133_v42, %v15136_v8 }
0x167c   : > { %25148 = vmatprep.subr.mxu1 %v27663_v1  ;;  %25090 = vmatprep.mubr.msk.f32.mxu0 %vm27662_vm0, %v27663_v1  ;;  %v15204_v20 = vsub.f32 %v15202_v10, %v15203_v13 }
0x167d   : > { %25093 = vmatprep.subr.mxu0 %v27663_v1  ;;  %v14298_v26 = vand.u32 4294901760, %v14297_v24  ;;  %v15214_v14 = vand.u32 4294901760, %v15213_v11 }
0x167e   : > { %v15205_v34 = vand.u32 4294901760, %v15204_v20 }
0x167f   : > { %25146 = vmatmul.mubr.f32.vlgmr.msra.gmra.mrb[40].mxu1 %v29197_v48  ;;  %v15215_v31 = vsub.f32 %v15213_v11, %v15214_v14 }
0x1680   : > { %25149 = vmatpush3.xpose.msra.mxu1 %v13377_v41  ;;  %25150 = vmatprep.mubr.msk.f32.mxu1 %vm27662_vm0, %v27663_v1 }
0x1681   : > { %25153 = vmatprep.subr.mxu1 %v27663_v1  ;;  %v15216_v15 = vand.u32 4294901760, %v15215_v31 }
0x1682   : > { %25091 = vmatmul.mubr.f32.vlgmr.msra.gmra.mrb[38].mxu0 %v12448_v19 }
0x1683   : > { %25094 = vmatpush3.xpose.msra.mxu0 %v12382_v51  ;;  %25095 = vmatprep.mubr.msk.f32.mxu0 %vm27662_vm0, %v27663_v1 }
0x1684   : > { %25098 = vmatprep.subr.mxu0 %v27663_v1 }
0x1687   : > { %25151 = vmatmul.mubr.f32.vlgmr.msra.gmra.mrb[40].mxu1 %v13366_v47 }
0x1688   : > { %25154 = vmatpush3.xpose.msra.mxu1 %v13300_v37  ;;  %25155 = vmatprep.mubr.msk.f32.mxu1 %vm27662_vm0, %v27663_v1 }
0x1689   : > { %25158 = vmatprep.subr.mxu1 %v27663_v1 }
0x168a   : > { %25096 = vmatmul.mubr.f32.vlgmr.msra.gmra.mrb[38].mxu0 %v12449_v7 }
0x168b   : > { %25099 = vmatpush3.xpose.msra.mxu0 %v12460_v33  ;;  %25100 = vmatprep.mubr.msk.f32.mxu0 %vm27662_vm0, %v27663_v1 }
0x168c   : > { %25103 = vmatprep.subr.mxu0 %v27663_v1 }
0x168f   : > { %25156 = vmatmul.mubr.f32.vlgmr.msra.gmra.mrb[40].mxu1 %v13367_v50 }
0x1690   : > { %25159 = vmatpush3.xpose.msra.mxu1 %v13378_v4  ;;  %25160 = vmatprep.mubr.msk.f32.mxu1 %vm27662_vm0, %v27663_v1 }
0x1691   : > { %25163 = vmatprep.subr.mxu1 %v27663_v1 }
0x1692   : > { %25101 = vmatmul.mubr.f32.vlgmr.msra.gmra.mrb[38].mxu0 %v29192_v18 }
0x1693   : > { %25104 = vmatpush3.xpose.msra.mxu0 %v12382_v51  ;;  %25105 = vmatprep.mubr.msk.f32.mxu0 %vm27662_vm0, %v27663_v1 }
0x1694   : > { %25108 = vmatprep.subr.mxu0 %v27663_v1 }
0x1697   : > { %25161 = vmatmul.mubr.f32.vlgmr.msra.gmra.mrb[40].mxu1 %v29197_v48 }
0x1698   : > { %25164 = vmatpush3.xpose.msra.mxu1 %v13300_v37  ;;  %25165 = vmatprep.mubr.msk.f32.mxu1 %vm27662_vm0, %v27663_v1 }
0x1699   : > { %25198 = vmatprep.subr.mxu1 %v27663_v1 }
0x169a   : > { %25106 = vmatmul.mubr.f32.vlgmr.msra.gmra.mrb[38].mxu0 %v29192_v18 }
0x169b   : > { %25110 = vmatprep.mubr.msk.f32.mxu0 %vm27662_vm0, %v27663_v1 }
0x169f   : > { %25166 = vmatmul.mubr.f32.vlgmr.msra.gmra.mrb[40].mxu1 %v29197_v48 }
0x16a0   : > { %25199 = vmatpush3.xpose.msra.mxu1 %v14218_v57  ;;  %25200 = vmatprep.mubr.msk.f32.mxu1 %vm27662_vm0, %v27663_v1 }
0x16a1   : > { %25203 = vmatprep.subr.mxu1 %v27663_v1 }
0x16a3   : > { %25201 = vmatmul.mubr.f32.vlgmr.msra.gmra.mrb[42].mxu1 %v14287_v25 }
0x16a4   : > { %25204 = vmatpush3.xpose.msra.mxu1 %v14298_v26  ;;  %25205 = vmatprep.mubr.msk.f32.mxu1 %vm27662_vm0, %v27663_v1 }
0x16a5   : > { %25208 = vmatprep.subr.mxu1 %v27663_v1 }
0x16ab   : > { %25206 = vmatmul.mubr.f32.vlgmr.msra.gmra.mrb[42].mxu1 %v14283_v56 }
0x16ac   : > { %25209 = vmatpush3.xpose.msra.mxu1 %v14295_v59  ;;  %25210 = vmatprep.mubr.msk.f32.mxu1 %vm27662_vm0, %v27663_v1 }
0x16ad   : > { %25213 = vmatprep.subr.mxu1 %v27663_v1 }
0x16b3   : > { %25211 = vmatmul.mubr.f32.vlgmr.msra.gmra.mrb[42].mxu1 %v14284_v58 }
0x16b4   : > { %25214 = vmatpush3.xpose.msra.mxu1 %v14218_v57  ;;  %25215 = vmatprep.mubr.msk.f32.mxu1 %vm27662_vm0, %v27663_v1 }
0x16b5   : > { %25218 = vmatprep.subr.mxu1 %v27663_v1 }
0x16bb   : > { %25216 = vmatmul.mubr.f32.vlgmr.msra.gmra.mrb[42].mxu1 %v14285_v60 }
0x16bc   : > { %25219 = vmatpush3.xpose.msra.mxu1 %v14296_v62  ;;  %25220 = vmatprep.mubr.msk.f32.mxu1 %vm27662_vm0, %v27663_v1 }
0x16bd   : > { %25223 = vmatprep.subr.mxu1 %v27663_v1 }
0x16c3   : > { %25221 = vmatmul.mubr.f32.vlgmr.msra.gmra.mrb[42].mxu1 %v14283_v56 }
0x16c4   : > { %25224 = vmatpush3.xpose.msra.mxu1 %v14218_v57  ;;  %25225 = vmatprep.mubr.msk.f32.mxu1 %vm27662_vm0, %v27663_v1 }
0x16c5   : > { %25258 = vmatprep.subr.mxu1 %v27663_v1 }
0x16cb   : > { %25226 = vmatmul.mubr.f32.vlgmr.msra.gmra.mrb[42].mxu1 %v14283_v56 }
0x16cc   : > { %25259 = vmatpush3.xpose.msra.mxu1 %v15136_v8  ;;  %25260 = vmatprep.mubr.msk.f32.mxu1 %vm27662_vm0, %v27663_v1 }
0x16cd   : > { %25263 = vmatprep.subr.mxu1 %v27663_v1 }
0x16cf   : > { %25261 = vmatmul.mubr.f32.vlgmr.msra.gmra.mrb[44].mxu1 %v15205_v34 }
0x16d0   : > { %25264 = vmatpush3.xpose.msra.mxu1 %v15216_v15  ;;  %25265 = vmatprep.mubr.msk.f32.mxu1 %vm27662_vm0, %v27663_v1 }
0x16d1   : > { %25268 = vmatprep.subr.mxu1 %v27663_v1 }
0x16d7   : > { %25266 = vmatmul.mubr.f32.vlgmr.msra.gmra.mrb[44].mxu1 %v15201_v43 }
0x16d8   : > { %25269 = vmatpush3.xpose.msra.mxu1 %v15213_v11  ;;  %25270 = vmatprep.mubr.msk.f32.mxu1 %vm27662_vm0, %v27663_v1 }
0x16d9   : > { %25273 = vmatprep.subr.mxu1 %v27663_v1 }
0x16df   : > { %25271 = vmatmul.mubr.f32.vlgmr.msra.gmra.mrb[44].mxu1 %v15202_v10 }
0x16e0   : > { %25274 = vmatpush3.xpose.msra.mxu1 %v15136_v8  ;;  %25275 = vmatprep.mubr.msk.f32.mxu1 %vm27662_vm0, %v27663_v1 }
0x16e1   : > { %25278 = vmatprep.subr.mxu1 %v27663_v1 }
0x16e7   : > { %25276 = vmatmul.mubr.f32.vlgmr.msra.gmra.mrb[44].mxu1 %v15203_v13 }
0x16e8   : > { %25279 = vmatpush3.xpose.msra.mxu1 %v15214_v14  ;;  %25280 = vmatprep.mubr.msk.f32.mxu1 %vm27662_vm0, %v27663_v1 }
0x16e9   : > { %25283 = vmatprep.subr.mxu1 %v27663_v1 }
0x16ef   : > { %25281 = vmatmul.mubr.f32.vlgmr.msra.gmra.mrb[44].mxu1 %v15201_v43 }
0x16f0   : > { %25284 = vmatpush3.xpose.msra.mxu1 %v15136_v8  ;;  %25285 = vmatprep.mubr.msk.f32.mxu1 %vm27662_vm0, %v27663_v1 }
0x16f1   : > { %26326 = vmatprep.subr.bf16.mxu1 %v27661_v0 }
0x16f7   : > { %25286 = vmatmul.mubr.f32.vlgmr.msra.gmra.mrb[44].mxu1 %v15201_v43 }
0x16f8   : > { %25326 = vmatprep.mubr.msk.f32.mxu1 %vm27662_vm0, %v27663_v1 }
0x176d   : > { %v12823_v16 = vpop.f32.mrb[38].mxu0 }
0x176e   : > { %v12827_v18 = vsel %vm850_vm3, -1e+09, %v12823_v16  ;;  %v25107_v19 = vpop.f32.mrb[39].mxu0 }
0x176f   : > { %v12828_v7 = vsel %vm1855_vm2, %v12827_v18, -inf }
0x1770   : > { %12829 = vmax.xlane.f32.xlu0 %v12828_v7 }
0x1772   : > { %v13741_v21 = vpop.f32.mrb[40].mxu1 }
0x1773   : > { %v13745_v28 = vsel %vm850_vm3, -1e+09, %v13741_v21  ;;  %v25167_v29 = vpop.f32.mrb[41].mxu1 }
0x1774   : > { %v13746_v45 = vsel %vm1855_vm2, %v13745_v28, -inf }
0x1775   : > { %13747 = vmax.xlane.f32.xlu1 %v13746_v45 }
0x1786   : > { %12839 = vrot.lane.b32.xlu1 %v29174_v12, %s30206_s22 }
0x179e   : > { %v14659_v46 = vpop.f32.mrb[42].mxu1 }
0x179f   : > { %v25227_v48 = vpop.f32.mrb[43].mxu1  ;;  %v14663_v2 = vsel %vm850_vm3, -1e+09, %v14659_v46 }
0x17a0   : > { %v14664_v3 = vsel %vm1855_vm2, %v14663_v2, -inf }
0x17ca   : > { %v15577_v51 = vpop.f32.mrb[44].mxu1 }
0x17cb   : > { %v25287_v47 = vpop.f32.mrb[45].mxu1  ;;  %v15581_v6 = vsel %vm850_vm3, -1e+09, %v15577_v51 }
0x17cc   : > { %v15582_v9 = vsel %vm1855_vm2, %v15581_v6, -inf }
0x17fd   : > { %v12830_v52 = vpop.xlane.xlu0 %12829 }
0x17fe   : > { %v12831_v53 = vsub.f32 %v12827_v18, %v12830_v52 }
0x1800   : > { %v12832_v54 = vmul.f32 1.442695, %v12831_v53 }
0x1802   : > { %27199 = vpow2.f32 %v12832_v54  ;;  %v13748_v32 = vpop.xlane.xlu1 %13747 }
0x1803   : > { %v13749_v50 = vsub.f32 %v13745_v28, %v13748_v32 }
0x1805   : > { %v13750_v33 = vmul.f32 1.442695, %v13749_v50 }
0x1806   : > { %v12840_v37 = vpop.permute.xlu1 %12839 }
0x1807   : > { %v29291_v38 = vand.u32 4294901760, %v12840_v37  ;;  %27201 = vpow2.f32 %v13750_v33 }
0x1809   : > { %25109 = vmatpush3.msra.mxu0 %v29291_v38  ;;  %v12923_v17 = vsub.f32 %v12840_v37, %v29291_v38 }
0x180a   : > { %25113 = vmatprep.subr.mxu0 %v27663_v1 }
0x180b   : > { %v12924_v26 = vand.u32 4294901760, %v12923_v17 }
0x180c   : > { %v27200_v39 = vpop.eup %27199 }
0x180d   : > { %v12834_v41 = vsel %vm1855_vm2, %v27200_v39, 0.0  ;;  %v12925_v42 = vsub.f32 %v12923_v17, %v12924_v26 }
0x180e   : > { %12835 = vadd.xlane.f32.xlu0 %v12834_v41 }
0x180f   : > { %v12926_v11 = vand.u32 4294901760, %v12925_v42 }
0x1811   : > { %v27202_v4 = vpop.eup %27201 }
0x1812   : > { %14665 = vmax.xlane.f32.xlu0 %v14664_v3  ;;  %v13752_v5 = vsel %vm1855_vm2, %v27202_v4, 0.0 }
0x1816   : > { %13753 = vadd.xlane.f32.xlu0 %v13752_v5 }
0x181a   : > { %15583 = vmax.xlane.f32.xlu0 %v15582_v9 }
0x1830   : > { %13757 = vrot.lane.b32.xlu0 %v29174_v12, %s30207_s13 }
0x1834   : > { %14675 = vrot.lane.b32.xlu0 %v29174_v12, %s30208_s14 }
0x189b   : > { %v12836_v22 = vpop.xlane.xlu0 %12835 }
0x189c   : > { %27203 = vrcp.f32 %v12836_v22 }
0x189f   : > { %v14666_v23 = vpop.xlane.xlu0 %14665 }
0x18a0   : > { %v14667_v55 = vsub.f32 %v14663_v2, %v14666_v23 }
0x18a2   : > { %v14668_v56 = vmul.f32 1.442695, %v14667_v55 }
0x18a3   : > { %v13754_v57 = vpop.xlane.xlu0 %13753 }
0x18a4   : > { %27205 = vpow2.f32 %v14668_v56 }
0x18a6   : > { %v27204_v58 = vpop.eup %27203 }
0x18a7   : > { %v12838_v59 = vmul.f32 %v27204_v58, %v27200_v39  ;;  %v15584_v60 = vpop.xlane.xlu0 %15583 }
0x18a8   : > { %v15585_v62 = vsub.f32 %v15581_v6, %v15584_v60 }
0x18a9   : > { %v12843_v63 = vsel %vm1855_vm2, %v12838_v59, 0 }
0x18aa   : > { %v15586_v24 = vmul.f32 1.442695, %v15585_v62  ;;  %v12911_v25 = vand.u32 4294901760, %v12843_v63 }
0x18ab   : > { %v13758_v15 = vpop.permute.xlu0 %13757 }
0x18ac   : > { %27207 = vpow2.f32 %v15586_v24  ;;  %v12912_v35 = vsub.f32 %v12843_v63, %v12911_v25  ;;  %v13764_v16 = vand.u32 4294901760, %v13758_v15 }
0x18ad   : > { %27209 = vrcp.f32 %v13754_v57 }
0x18ae   : > { %v29309_v40 = vpop.eup %27205  ;;  %v12913_v36 = vand.u32 4294901760, %v12912_v35  ;;  %v13841_v19 = vsub.f32 %v13758_v15, %v13764_v16 }
0x18af   : > { %v14670_v43 = vsel %vm1855_vm2, %v29309_v40, 0.0  ;;  %v14676_v48 = vpop.permute.xlu0 %14675 }
0x18b0   : > { %14671 = vadd.xlane.f32.xlu1 %v14670_v43  ;;  %v12914_v8 = vsub.f32 %v12912_v35, %v12913_v36  ;;  %v13842_v21 = vand.u32 4294901760, %v13841_v19  ;;  %v14682_v51 = vand.u32 4294901760, %v14676_v48 }
0x18b2   : > { %v12915_v10 = vand.u32 4294901760, %v12914_v8  ;;  %v13843_v29 = vsub.f32 %v13841_v19, %v13842_v21  ;;  %v14759_v53 = vsub.f32 %v14676_v48, %v14682_v51 }
0x18b4   : > { %25111 = vmatmul.mubr.f32.vlgmr.msra.gmra.mrb[40].mxu0 %v12915_v10  ;;  %v13844_v46 = vand.u32 4294901760, %v13843_v29  ;;  %v14760_v33 = vand.u32 4294901760, %v14759_v53 }
0x18b5   : > { %25114 = vmatpush3.msra.mxu0 %v12926_v11  ;;  %25115 = vmatprep.mubr.msk.f32.mxu0 %vm27662_vm0, %v27663_v1 }
0x18b6   : > { %v29315_v13 = vpop.eup %27207  ;;  %25118 = vmatprep.subr.mxu0 %v27663_v1  ;;  %v14761_v39 = vsub.f32 %v14759_v53, %v14760_v33 }
0x18b7   : > { %v15588_v14 = vsel %vm1855_vm2, %v29315_v13, 0.0  ;;  %v27210_v20 = vpop.eup %27209 }
0x18b8   : > { %15589 = vadd.xlane.f32.xlu0 %v15588_v14  ;;  %v13756_v31 = vmul.f32 %v27210_v20, %v27202_v4  ;;  %v14762_v3 = vand.u32 4294901760, %v14761_v39  ;;  %v23146_v20 = vld [vmem:[%s30191_s1 + $0x30] sm:$0xff] }
0x18ba   : > { %v13761_v34 = vsel %vm1855_vm2, %v13756_v31, 0  ;;  %v23147_v31 = vld [vmem:[%s30191_s1 + $0x38] sm:$0xff] }
0x18bb   : > { %v16086_v15 = vand.u32 4294901760, %v23147_v31 }
0x18bc   : > { %25116 = vmatmul.mubr.f32.vlgmr.msra.gmra.mrb[40].mxu0 %v12911_v25 }
0x18bd   : > { %25119 = vmatpush3.msra.mxu0 %v12923_v17  ;;  %25120 = vmatprep.mubr.msk.f32.mxu0 %vm27662_vm0, %v27663_v1 }
0x18be   : > { %25123 = vmatprep.subr.mxu0 %v27663_v1 }
0x18c1   : > { %15593 = vrot.lane.b32.xlu1 %v29174_v12, %s30209_s6  ;;  %v13829_v12 = vand.u32 4294901760, %v13761_v34 }
0x18c3   : > { %v13830_v18 = vsub.f32 %v13761_v34, %v13829_v12  ;;  %v16083_v34 = vand.u32 4294901760, %v23146_v20 }
0x18c4   : > { %25121 = vmatmul.mubr.f32.vlgmr.msra.gmra.mrb[40].mxu0 %v12912_v35 }
0x18c5   : > { %25124 = vmatpush3.msra.mxu0 %v29291_v38  ;;  %25125 = vmatprep.mubr.msk.f32.mxu0 %vm27662_vm0, %v27663_v1  ;;  %v13831_v7 = vand.u32 4294901760, %v13830_v18  ;;  %v26330_v29 = vpack.c.bf16 %v16086_v15, %v16083_v34 }
0x18c6   : > { %25128 = vmatprep.subr.mxu0 %v27663_v1 }
0x18c7   : > { %v13832_v28 = vsub.f32 %v13830_v18, %v13831_v7 }
0x18c9   : > { %v13833_v45 = vand.u32 4294901760, %v13832_v28 }
0x18cc   : > { %25126 = vmatmul.mubr.f32.vlgmr.msra.gmra.mrb[40].mxu0 %v12913_v36  ;;  %v23145_v36 = vld [vmem:[%s30191_s1 + $0x28] sm:$0xff] }
0x18cd   : > { %25129 = vmatpush3.msra.mxu0 %v12924_v26  ;;  %25130 = vmatprep.mubr.msk.f32.mxu0 %vm27662_vm0, %v27663_v1  ;;  %v16080_v43 = vand.u32 4294901760, %v23145_v36 }
0x18ce   : > { %25133 = vmatprep.subr.mxu0 %v27663_v1 }
0x18cf   : > { %v16164_v10 = vsub.f32 %v23145_v36, %v16080_v43 }
0x18d4   : > { %25131 = vmatmul.mubr.f32.vlgmr.msra.gmra.mrb[40].mxu0 %v12911_v25 }
0x18d5   : > { %25134 = vmatpush3.msra.mxu0 %v29291_v38  ;;  %25135 = vmatprep.mubr.msk.f32.mxu0 %vm27662_vm0, %v27663_v1 }
0x18d6   : > { %25168 = vmatprep.subr.mxu0 %v27663_v1 }
0x18dc   : > { %25136 = vmatmul.mubr.f32.vlgmr.msra.gmra.mrb[40].mxu0 %v12911_v25 }
0x18dd   : > { %25169 = vmatpush3.msra.mxu0 %v13764_v16  ;;  %25170 = vmatprep.mubr.msk.f32.mxu0 %vm27662_vm0, %v27663_v1 }
0x18de   : > { %25173 = vmatprep.subr.mxu0 %v27663_v1 }
0x18e0   : > { %25171 = vmatmul.mubr.f32.vlgmr.msra.gmra.mrb[42].mxu0 %v13833_v45 }
0x18e1   : > { %25174 = vmatpush3.msra.mxu0 %v13844_v46  ;;  %25175 = vmatprep.mubr.msk.f32.mxu0 %vm27662_vm0, %v27663_v1 }
0x18e2   : > { %25178 = vmatprep.subr.mxu0 %v27663_v1 }
0x18e8   : > { %25176 = vmatmul.mubr.f32.vlgmr.msra.gmra.mrb[42].mxu0 %v13829_v12 }
0x18e9   : > { %25179 = vmatpush3.msra.mxu0 %v13841_v19  ;;  %25180 = vmatprep.mubr.msk.f32.mxu0 %vm27662_vm0, %v27663_v1 }
0x18ea   : > { %25183 = vmatprep.subr.mxu0 %v27663_v1 }
0x18f0   : > { %25181 = vmatmul.mubr.f32.vlgmr.msra.gmra.mrb[42].mxu0 %v13830_v18 }
0x18f1   : > { %25184 = vmatpush3.msra.mxu0 %v13764_v16  ;;  %25185 = vmatprep.mubr.msk.f32.mxu0 %vm27662_vm0, %v27663_v1 }
0x18f2   : > { %25188 = vmatprep.subr.mxu0 %v27663_v1 }
0x18f8   : > { %25186 = vmatmul.mubr.f32.vlgmr.msra.gmra.mrb[42].mxu0 %v13831_v7 }
0x18f9   : > { %25189 = vmatpush3.msra.mxu0 %v13842_v21  ;;  %25190 = vmatprep.mubr.msk.f32.mxu0 %vm27662_vm0, %v27663_v1  ;;  %v16165_v21 = vand.u32 4294901760, %v16164_v10 }
0x18fa   : > { %25193 = vmatprep.subr.mxu0 %v27663_v1 }
0x1900   : > { %25191 = vmatmul.mubr.f32.vlgmr.msra.gmra.mrb[42].mxu0 %v13829_v12 }
0x1901   : > { %25194 = vmatpush3.msra.mxu0 %v13764_v16  ;;  %25195 = vmatprep.mubr.msk.f32.mxu0 %vm27662_vm0, %v27663_v1  ;;  %v16178_v16 = vsub.f32 %v23147_v31, %v16086_v15 }
0x1902   : > { %25228 = vmatprep.subr.mxu0 %v27663_v1 }
0x1903   : > { %v16179_v46 = vand.u32 4294901760, %v16178_v16 }
0x1908   : > { %25196 = vmatmul.mubr.f32.vlgmr.msra.gmra.mrb[42].mxu0 %v13829_v12  ;;  %v16171_v12 = vsub.f32 %v23146_v20, %v16083_v34 }
0x1909   : > { %25229 = vmatpush3.msra.mxu0 %v14682_v51  ;;  %25230 = vmatprep.mubr.msk.f32.mxu0 %vm27662_vm0, %v27663_v1 }
0x190a   : > { %25233 = vmatprep.subr.mxu0 %v27663_v1  ;;  %v26342_v18 = vpack.c.bf16 %v16178_v16, %v16171_v12  ;;  %v16172_v45 = vand.u32 4294901760, %v16171_v12 }
0x193d   : > { %v14672_v47 = vpop.xlane.xlu1 %14671 }
0x193e   : > { %27211 = vrcp.f32 %v14672_v47  ;;  %v26354_v47 = vpack.c.bf16 %v16179_v46, %v16172_v45 }
0x1941   : > { %v15594_v22 = vpop.permute.xlu1 %15593 }
0x1942   : > { %v15600_v55 = vand.u32 4294901760, %v15594_v22 }
0x1944   : > { %v15677_v57 = vsub.f32 %v15594_v22, %v15600_v55 }
0x1945   : > { %v15590_v4 = vpop.xlane.xlu0 %15589 }
0x1946   : > { %27213 = vrcp.f32 %v15590_v4  ;;  %v15678_v17 = vand.u32 4294901760, %v15677_v57 }
0x1948   : > { %v27212_v52 = vpop.eup %27211  ;;  %v15679_v60 = vsub.f32 %v15677_v57, %v15678_v17 }
0x1949   : > { %v14674_v54 = vmul.f32 %v27212_v52, %v29309_v40  ;;  %v23144_v40 = vld [vmem:[%s30191_s1 + $0x20] sm:$0xff] }
0x194a   : > { %v15680_v63 = vand.u32 4294901760, %v15679_v60  ;;  %v16077_v42 = vand.u32 4294901760, %v23144_v40 }
0x194b   : > { %v14679_v32 = vsel %vm1855_vm2, %v14674_v54, 0  ;;  %v16173_v54 = vsub.f32 %v16171_v12, %v16172_v45  ;;  %v23151_v45 = vld [vmem:[%s30192_s9 + $0x30] sm:$0xff] }
0x194c   : > { %v14747_v50 = vand.u32 4294901760, %v14679_v32  ;;  %v16157_v8 = vsub.f32 %v23144_v40, %v16077_v42  ;;  %v26327_v19 = vpack.c.bf16 %v16080_v43, %v16077_v42 }
0x194e   : > { %v14748_v37 = vsub.f32 %v14679_v32, %v14747_v50  ;;  %v26339_v11 = vpack.c.bf16 %v16164_v10, %v16157_v8  ;;  %v16158_v7 = vand.u32 4294901760, %v16157_v8  ;;  %26328 = vmatpush3.bf16.msra.mxu1 %v26327_v19  ;;  %v16180_v32 = vsub.f32 %v16178_v16, %v16179_v46 }
0x194f   : > { %26329 = vmatprep.subr.bf16.mxu1 %v27661_v0 }
0x1950   : > { %v14749_v38 = vand.u32 4294901760, %v14748_v37  ;;  %v27214_v5 = vpop.eup %27213  ;;  %v26351_v28 = vpack.c.bf16 %v16165_v21, %v16158_v7  ;;  %v16159_v48 = vsub.f32 %v16157_v8, %v16158_v7  ;;  %v16181_v39 = vand.u32 4294901760, %v16180_v32 }
0x1951   : > { %v15592_v6 = vmul.f32 %v27214_v5, %v29315_v13 }
0x1952   : > { %v14750_v41 = vsub.f32 %v14748_v37, %v14749_v38  ;;  %26331 = vmatpush3.bf16.msra.mxu1 %v26330_v29  ;;  %v16160_v52 = vand.u32 4294901760, %v16159_v48 }
0x1953   : > { %v15597_v9 = vsel %vm1855_vm2, %v15592_v6, 0  ;;  %26332 = vmatprep.subr.bf16.mxu1 %v27661_v0 }
0x1954   : > { %v14751_v2 = vand.u32 4294901760, %v14750_v41  ;;  %v15665_v23 = vand.u32 4294901760, %v15597_v9 }
0x1956   : > { %25231 = vmatmul.mubr.f32.vlgmr.msra.gmra.mrb[44].mxu0 %v14751_v2  ;;  %v15666_v56 = vsub.f32 %v15597_v9, %v15665_v23 }
0x1957   : > { %25234 = vmatpush3.msra.mxu0 %v14762_v3  ;;  %25235 = vmatprep.mubr.msk.f32.mxu0 %vm27662_vm0, %v27663_v1 }
0x1958   : > { %25238 = vmatprep.subr.mxu0 %v27663_v1  ;;  %v15667_v58 = vand.u32 4294901760, %v15666_v56 }
0x195a   : > { %v15668_v59 = vsub.f32 %v15666_v56, %v15667_v58 }
0x195c   : > { %v15669_v62 = vand.u32 4294901760, %v15668_v59 }
0x195e   : > { %25236 = vmatmul.mubr.f32.vlgmr.msra.gmra.mrb[44].mxu0 %v14747_v50 }
0x195f   : > { %25239 = vmatpush3.msra.mxu0 %v14759_v53  ;;  %25240 = vmatprep.mubr.msk.f32.mxu0 %vm27662_vm0, %v27663_v1 }
0x1960   : > { %25243 = vmatprep.subr.mxu0 %v27663_v1 }
0x1966   : > { %25241 = vmatmul.mubr.f32.vlgmr.msra.gmra.mrb[44].mxu0 %v14748_v37 }
0x1967   : > { %25244 = vmatpush3.msra.mxu0 %v14682_v51  ;;  %25245 = vmatprep.mubr.msk.f32.mxu0 %vm27662_vm0, %v27663_v1 }
0x1968   : > { %25248 = vmatprep.subr.mxu0 %v27663_v1 }
0x196e   : > { %25246 = vmatmul.mubr.f32.vlgmr.msra.gmra.mrb[44].mxu0 %v14749_v38  ;;  %v16174_v38 = vand.u32 4294901760, %v16173_v54 }
0x196f   : > { %25249 = vmatpush3.msra.mxu0 %v14760_v33  ;;  %25250 = vmatprep.mubr.msk.f32.mxu0 %vm27662_vm0, %v27663_v1 }
0x1970   : > { %25253 = vmatprep.subr.mxu0 %v27663_v1  ;;  %v26336_v41 = vpack.c.bf16 %v16181_v39, %v16174_v38 }
0x1976   : > { %25251 = vmatmul.mubr.f32.vlgmr.msra.gmra.mrb[44].mxu0 %v14747_v50 }
0x1977   : > { %25254 = vmatpush3.msra.mxu0 %v14682_v51  ;;  %25255 = vmatprep.mubr.msk.f32.mxu0 %vm27662_vm0, %v27663_v1  ;;  %v16166_v51 = vsub.f32 %v16164_v10, %v16165_v21 }
0x1978   : > { %25288 = vmatprep.subr.mxu0 %v27663_v1 }
0x1979   : > { %v16167_v53 = vand.u32 4294901760, %v16166_v51  ;;  %v23152_v51 = vld [vmem:[%s30192_s9 + $0x38] sm:$0xff] }
0x197b   : > { %v26333_v33 = vpack.c.bf16 %v16167_v53, %v16160_v52  ;;  %v16618_v52 = vand.u32 4294901760, %v23152_v51 }
0x197e   : > { %25256 = vmatmul.mubr.f32.vlgmr.msra.gmra.mrb[44].mxu0 %v14747_v50 }
0x197f   : > { %25289 = vmatpush3.msra.mxu0 %v15600_v55  ;;  %25290 = vmatprep.mubr.msk.f32.mxu0 %vm27662_vm0, %v27663_v1 }
0x1980   : > { %25293 = vmatprep.subr.mxu0 %v27663_v1 }
0x1982   : > { %25291 = vmatmul.mubr.f32.vlgmr.msra.gmra.mrb[46].mxu0 %v15669_v62 }
0x1983   : > { %25294 = vmatpush3.msra.mxu0 %v15680_v63  ;;  %25295 = vmatprep.mubr.msk.f32.mxu0 %vm27662_vm0, %v27663_v1 }
0x1984   : > { %25298 = vmatprep.subr.mxu0 %v27663_v1 }
0x198a   : > { %25296 = vmatmul.mubr.f32.vlgmr.msra.gmra.mrb[46].mxu0 %v15665_v23 }
0x198b   : > { %25299 = vmatpush3.msra.mxu0 %v15677_v57  ;;  %25300 = vmatprep.mubr.msk.f32.mxu0 %vm27662_vm0, %v27663_v1 }
0x198c   : > { %25303 = vmatprep.subr.mxu0 %v27663_v1 }
0x1992   : > { %25301 = vmatmul.mubr.f32.vlgmr.msra.gmra.mrb[46].mxu0 %v15666_v56 }
0x1993   : > { %25304 = vmatpush3.msra.mxu0 %v15600_v55  ;;  %25305 = vmatprep.mubr.msk.f32.mxu0 %vm27662_vm0, %v27663_v1 }
0x1994   : > { %25308 = vmatprep.subr.mxu0 %v27663_v1 }
0x199a   : > { %25306 = vmatmul.mubr.f32.vlgmr.msra.gmra.mrb[46].mxu0 %v15667_v58 }
0x199b   : > { %25309 = vmatpush3.msra.mxu0 %v15678_v17  ;;  %25310 = vmatprep.mubr.msk.f32.mxu0 %vm27662_vm0, %v27663_v1 }
0x199c   : > { %25313 = vmatprep.subr.mxu0 %v27663_v1 }
0x19a2   : > { %25311 = vmatmul.mubr.f32.vlgmr.msra.gmra.mrb[46].mxu0 %v15665_v23 }
0x19a3   : > { %25314 = vmatpush3.msra.mxu0 %v15600_v55  ;;  %25315 = vmatprep.mubr.msk.f32.mxu0 %vm27662_vm0, %v27663_v1 }
0x19a4   : > { %26338 = vmatprep.subr.bf16.mxu0 %v27661_v0 }
0x19aa   : > { %25316 = vmatmul.mubr.f32.vlgmr.msra.gmra.mrb[46].mxu0 %v15665_v23 }
0x19ab   : > { %25348 = vmatprep.mubr.msk.f32.mxu0 %vm27662_vm0, %v27663_v1  ;;  %26340 = vmatpush3.bf16.msra.mxu0 %v26339_v11 }
0x19ac   : > { %26341 = vmatprep.subr.bf16.mxu0 %v27661_v0 }
0x19af   : > { %v13287_v24 = vpop.f32.mrb[40].mxu0  ;;  %26343 = vmatpush3.bf16.msra.mxu0 %v26342_v18 }
0x19b0   : > { %v25137_v25 = vpop.f32.mrb[41].mxu0  ;;  %26350 = vmatprep.subr.bf16.mxu0 %v27661_v0 }
0x19b1   : > { %v23148_v25 = vld [vmem:[#allocation7 + $0x1] ss:$0 sm:$0xff] }
0x19db   : > { %v14205_v26 = vpop.f32.mrb[42].mxu0 }
0x19dc   : > { %16046 = vrot.lane.b32.xlu0 %v14205_v26, %s30196_s0  ;;  %v25197_v35 = vpop.f32.mrb[43].mxu0 }
0x1a4e   : > { %v16047_v2 = vpop.permute.xlu0 %16046 }
0x1a4f   : > { %v16057_v4 = vsel %vm1855_vm2, %v13287_v24, %v16047_v2 }
0x1a51   : > { %v15123_v13 = vpop.f32.mrb[44].mxu0 }
0x1a52   : > { %16050 = vrot.lane.b32.xlu1 %v15123_v13, %s30197_s10  ;;  %v25257_v14 = vpop.f32.mrb[45].mxu0 }
0x1a7d   : > { %v16041_v50 = vpop.f32.mrb[46].mxu0 }
0x1a7e   : > { %16054 = vrot.lane.b32.xlu1 %v16041_v50, %s30198_s24  ;;  %v25317_v37 = vpop.f32.mrb[47].mxu0 }
0x1ac4   : > { %v16051_v3 = vpop.permute.xlu1 %16050 }
0x1ac5   : > { %v16058_v5 = vsel %vm5537_vm4, %v16057_v4, %v16051_v3 }
0x1af0   : > { %v16055_v6 = vpop.permute.xlu1 %16054 }
0x1af1   : > { %v16059_v9 = vsel %vm5539_vm5, %v16058_v5, %v16055_v6 }
0x1af2   : > { %v16074_v22 = vsel %vm862_vm1, %v16059_v9, 0 }
0x1af3   : > { %v16145_v23 = vand.u32 4294901760, %v16074_v22 }
0x1af5   : > { %v16146_v55 = vsub.f32 %v16074_v22, %v16145_v23 }
0x1af7   : > { %v16147_v56 = vand.u32 4294901760, %v16146_v55  ;;  %25349 = vmatmul.mubr.f32.vlgmr.msra.gmra.mrb[48].mxu0 %v16146_v55 }
0x1af8   : > { %26352 = vmatpush3.bf16.msra.mxu0 %v26351_v28  ;;  %25370 = vmatprep.mubr.msk.f32.mxu0 %vm27662_vm0, %v27663_v1  ;;  %v23149_v28 = vld [vmem:[%s30192_s9 + $0x20] sm:$0xff] }
0x1af9   : > { %26353 = vmatprep.subr.bf16.mxu0 %v27661_v0  ;;  %v16148_v57 = vsub.f32 %v16146_v55, %v16147_v56  ;;  %v16609_v46 = vand.u32 4294901760, %v23149_v28 }
0x1afb   : > { %v16149_v58 = vand.u32 4294901760, %v16148_v57  ;;  %v16689_v54 = vsub.f32 %v23149_v28, %v16609_v46  ;;  %v23153_v28 = vld [vmem:[#allocation8 + $0x1] ss:$0 sm:$0xff] }
0x1afc   : > { %26355 = vmatpush3.bf16.msra.mxu0 %v26354_v47  ;;  %v16615_v47 = vand.u32 4294901760, %v23151_v45 }
0x1afd   : > { %25327 = vmatmul.mubr.f32.vlgmr.msra.gmra.mrb[46].mxu1 %v16149_v58  ;;  %26362 = vmatprep.subr.bf16.mxu0 %v27661_v0  ;;  %v16690_v38 = vand.u32 4294901760, %v16689_v54 }
0x1afe   : > { %26334 = vmatpush3.bf16.msra.mxu1 %v26333_v33  ;;  %25337 = vmatprep.mubr.msk.f32.mxu1 %vm27662_vm0, %v27663_v1  ;;  %v16703_v50 = vsub.f32 %v23151_v45, %v16615_v47  ;;  %v16710_v33 = vsub.f32 %v23152_v51, %v16618_v52  ;;  %v29470_v37 = vpack.c.bf16 %v16618_v52, %v16615_v47 }
0x1aff   : > { %25371 = vmatmul.mubr.f32.vlgmr.msra.gmra.mrb[50].mxu0 %v16145_v23  ;;  %26335 = vmatprep.subr.bf16.mxu1 %v27661_v0 }
0x1b00   : > { %25392 = vmatprep.mubr.msk.f32.mxu0 %vm27662_vm0, %v27663_v1  ;;  %v16704_v5 = vand.u32 4294901760, %v16703_v50  ;;  %v16711_v6 = vand.u32 4294901760, %v16710_v33 }
0x1b02   : > { %26337 = vmatpush3.bf16.msra.mxu1 %v26336_v41  ;;  %v16691_v41 = vsub.f32 %v16689_v54, %v16690_v38  ;;  %v16705_v22 = vsub.f32 %v16703_v50, %v16704_v5 }
0x1b03   : > { %26344 = vmatprep.subr.bf16.mxu1 %v27661_v0 }
0x1b04   : > { %v16692_v3 = vand.u32 4294901760, %v16691_v41  ;;  %v16706_v55 = vand.u32 4294901760, %v16705_v22 }
0x1b05   : > { %25338 = vmatmul.mubr.f32.vlgmr.msra.gmra.mrb[48].mxu1 %v16145_v23 }
0x1b06   : > { %26346 = vmatpush3.bf16.msra.mxu1 %v26327_v19  ;;  %25359 = vmatprep.mubr.msk.f32.mxu1 %vm27662_vm0, %v27663_v1 }
0x1b07   : > { %26347 = vmatprep.subr.bf16.mxu1 %v27661_v0 }
0x1b0a   : > { %26349 = vmatpush3.bf16.msra.mxu1 %v26330_v29 }
0x1b0b   : > { %26356 = vmatprep.subr.bf16.mxu1 %v27661_v0 }
0x1b0d   : > { %25360 = vmatmul.mubr.f32.vlgmr.msra.gmra.mrb[50].mxu1 %v16147_v56 }
0x1b0e   : > { %26358 = vmatpush3.bf16.msra.mxu1 %v26327_v19  ;;  %25381 = vmatprep.mubr.msk.f32.mxu1 %vm27662_vm0, %v27663_v1 }
0x1b0f   : > { %26359 = vmatprep.subr.bf16.mxu1 %v27661_v0 }
0x1b12   : > { %26361 = vmatpush3.bf16.msra.mxu1 %v26330_v29  ;;  %v23150_v29 = vld [vmem:[%s30192_s9 + $0x28] sm:$0xff] }
0x1b13   : > { %25450 = vmatprep.subr.mxu1 %v27663_v1  ;;  %v16612_v48 = vand.u32 4294901760, %v23150_v29 }
0x1b15   : > { %25382 = vmatmul.mubr.f32.vlgmr.msra.gmra.mrb[52].mxu1 %v16145_v23  ;;  %v29467_v53 = vpack.c.bf16 %v16612_v48, %v16609_v46  ;;  %v16696_v32 = vsub.f32 %v23150_v29, %v16612_v48  ;;  %v16712_v23 = vsub.f32 %v16710_v33, %v16711_v6 }
0x1b16   : > { %25452 = vmatprep.mubr.msk.f32.mxu1 %vm27662_vm0, %v27663_v1 }
0x1b17   : > { %26364 = vmatpush3.bf16.msra.mxu0 %v29467_v53  ;;  %v16697_v39 = vand.u32 4294901760, %v16696_v32  ;;  %v16713_v56 = vand.u32 4294901760, %v16712_v23  ;;  %v26375_v58 = vpack.c.bf16 %v16696_v32, %v16689_v54 }
0x1b18   : > { %26365 = vmatprep.subr.bf16.mxu0 %v27661_v0 }
0x1b19   : > { %v16698_v2 = vsub.f32 %v16696_v32, %v16697_v39  ;;  %v26372_v57 = vpack.c.bf16 %v16713_v56, %v16706_v55 }
0x1b1b   : > { %26367 = vmatpush3.bf16.msra.mxu0 %v29470_v37  ;;  %v16699_v4 = vand.u32 4294901760, %v16698_v2 }
0x1b1c   : > { %26368 = vmatprep.subr.bf16.mxu0 %v27661_v0 }
0x1b1d   : > { %v26369_v9 = vpack.c.bf16 %v16699_v4, %v16692_v3 }
0x1bca   : > { %v16322_v17 = vpop.f32.mrb[48].mxu0 }
0x1bcb   : > { %v25350_v59 = vpop.f32.mrb[49].mxu0 }
0x1bcc   : > { %v26387_v59 = vpack.c.bf16 %v16697_v39, %v16690_v38 }
0x1bd0   : > { %v16151_v60 = vpop.f32.mrb[46].mxu1 }
0x1bd1   : > { %v25328_v62 = vpop.f32.mrb[47].mxu1  ;;  %v16152_v26 = vadd.f32 %v23148_v25, %v16151_v60  ;;  %v26390_v60 = vpack.c.bf16 %v16711_v6, %v16704_v5 }
0x1bd2   : > { %v16482_v63 = vpop.f32.mrb[50].mxu0 }
0x1bd3   : > { %v25372_v24 = vpop.f32.mrb[51].mxu0 }
0x1bd8   : > { %v16242_v35 = vpop.f32.mrb[48].mxu1 }
0x1bd9   : > { %v16243_v40 = vadd.f32 %v16242_v35, %v16152_v26  ;;  %v25339_v36 = vpop.f32.mrb[49].mxu1 }
0x1bdb   : > { %v16323_v42 = vadd.f32 %v16322_v17, %v16243_v40  ;;  %v26378_v17 = vpack.c.bf16 %v16710_v33, %v16703_v50 }
0x1be0   : > { %v16399_v43 = vpop.f32.mrb[50].mxu1 }
0x1be1   : > { %v16400_v8 = vadd.f32 %v16399_v43, %v16323_v42  ;;  %v25361_v10 = vpop.f32.mrb[51].mxu1  ;;  %v23137_v42 = vld [vmem:[%s30193_s3 + $0x4] sm:$0x7] }
0x1be2   : > { %v23138_v43 = vld [vmem:[%s30194_s18 + $0x4] sm:$0x7] }
0x1be3   : > { %v16483_v11 = vadd.f32 %v16482_v63, %v16400_v8  ;;  %v16585_v8 = vrot.slane %v23137_v42, %v28585_v61 }
0x1be8   : > { %v16557_v13 = vpop.f32.mrb[52].mxu1 }
0x1be9   : > { %v16558_v14 = vadd.f32 %v16557_v13, %v16483_v11  ;;  %v25383_v20 = vpop.f32.mrb[53].mxu1  ;;  %v16590_v13 = vrot.slane %v23138_v43, %v28585_v61 }
0x1beb   : > { %v16561_v31 = vadd.f32 %v16558_v14, %v29144_v44 }
0x1bed   : > { %v16562_v34 = vsel %vm862_vm1, %v16561_v31, 0.0 }
0x1bee   : > { %16563 = vadd.xlane.f32.xlu1 %v16562_v34 }
0x1bff   : > { %17093 = vrot.lane.b32.xlu1 %v28517_v49, %s30206_s22 }
0x1c03   : > { %18011 = vrot.lane.b32.xlu1 %v28517_v49, %s30207_s13  ;;  %s27562_s13 = sshll.u32 %s27679_s29, 4  ;;  %s27563_s13 = int_to_ptr.vmem [resolvable:$false] %s27562_s13 }
0x1c04   : > { %s27564_s4 = scalar_lea.vmem %s27563_s13, 256 }
0x1c7b   : > { %v16564_v15 = vpop.xlane.xlu1 %16563 }
0x1c7c   : > { %v16565_v12 = vmul.f32 0.03125, %v16564_v15 }
0x1c7e   : > { %v16566_v16 = vsub.f32 %v16561_v31, %v16565_v12 }
0x1c7f   : > { %v17094_v18 = vpop.permute.xlu1 %17093 }
0x1c80   : > { %v29447_v19 = vsel %vm1855_vm2, %v17094_v18, 0  ;;  %v16567_v7 = vmul.f32 %v16566_v16, %v16566_v16 }
0x1c81   : > { %v29450_v21 = vand.u32 4294901760, %v29447_v19 }
0x1c82   : > { %v16568_v44 = vsel %vm862_vm1, %v16567_v7, 0.0 }
0x1c83   : > { %16569 = vadd.xlane.f32.xlu0 %v16568_v44  ;;  %25451 = vmatpush3.xpose.msra.mxu1 %v29450_v21  ;;  %v18012_v61 = vpop.permute.xlu1 %18011  ;;  %v17178_v45 = vsub.f32 %v29447_v19, %v29450_v21 }
0x1c84   : > { %25455 = vmatprep.subr.mxu1 %v27663_v1 }
0x1c85   : > { %v17179_v52 = vand.u32 4294901760, %v17178_v45 }
0x1c87   : > { %v17180_v32 = vsub.f32 %v17178_v45, %v17179_v52 }
0x1c89   : > { %v17181_v33 = vand.u32 4294901760, %v17180_v32 }
0x1d10   : > { %v16570_v62 = vpop.xlane.xlu0 %16569 }
0x1d11   : > { %v16571_v63 = vmul.f32 0.03125, %v16570_v62 }
0x1d13   : > { %27215 = vrsqrt.f32 %v16571_v63  ;;  %vm16574_vm13 = vcmp.eq.f32.partialorder %v16571_v63, inf  ;;  %v16577_v26 = vand.u32 2147483648, %v16571_v63  ;;  %vm16576_vm14 = vcmp.eq.f32.partialorder %v16571_v63, 0.0 }
0x1d1d   : > { %v27216_v24 = vpop.eup %27215 }
0x1d1e   : > { %v16573_v25 = vmul.f32 %v27216_v24, %v16571_v63 }
0x1d20   : > { %v16575_v35 = vsel %vm16574_vm13, %v16571_v63, %v16573_v25 }
0x1d21   : > { %v16578_v40 = vsel %vm16576_vm14, %v16577_v26, %v16575_v35 }
0x1d22   : > { %v16579_v36 = vadd.f32 1e-10, %v16578_v40 }
0x1d24   : > { %27217 = vrcp.f32 %v16579_v36 }
0x1d2e   : > { %v27218_v10 = vpop.eup %27217 }
0x1d2f   : > { %v16581_v11 = vmul.f32 %v27218_v10, %v16566_v16  ;;  %v18015_v16 = vsel %vm1855_vm2, %v18012_v61, 0 }
0x1d30   : > { %v29514_v44 = vand.u32 4294901760, %v18015_v16 }
0x1d31   : > { %v16586_v14 = vmul.f32 %v16585_v8, %v16581_v11 }
0x1d33   : > { %v29483_v20 = vadd.f32 %v16590_v13, %v16586_v14 }
0x1d35   : > { %v16606_v31 = vsel %vm862_vm1, %v29483_v20, 0 }
0x1d36   : > { %v16677_v34 = vand.u32 4294901760, %v16606_v31 }
0x1d38   : > { %v16678_v15 = vsub.f32 %v16606_v31, %v16677_v34 }
0x1d3a   : > { %v16679_v12 = vand.u32 4294901760, %v16678_v15 }
0x1d3c   : > { %v16680_v18 = vsub.f32 %v16678_v15, %v16679_v12 }
0x1d3e   : > { %v16681_v7 = vand.u32 4294901760, %v16680_v18 }
0x1d40   : > { %25393 = vmatmul.mubr.f32.vlgmr.msra.gmra.mrb[52].mxu0 %v16681_v7 }
0x1d41   : > { %26370 = vmatpush3.bf16.msra.mxu0 %v26369_v9  ;;  %25403 = vmatprep.mubr.msk.f32.mxu0 %vm27662_vm0, %v27663_v1 }
0x1d42   : > { %26371 = vmatprep.subr.bf16.mxu0 %v27661_v0 }
0x1d45   : > { %26373 = vmatpush3.bf16.msra.mxu0 %v26372_v57 }
0x1d46   : > { %26374 = vmatprep.subr.bf16.mxu0 %v27661_v0 }
0x1d48   : > { %25404 = vmatmul.mubr.f32.vlgmr.msra.gmra.mrb[52].mxu0 %v16677_v34 }
0x1d49   : > { %26376 = vmatpush3.bf16.msra.mxu0 %v26375_v58  ;;  %25414 = vmatprep.mubr.msk.f32.mxu0 %vm27662_vm0, %v27663_v1 }
0x1d4a   : > { %26377 = vmatprep.subr.bf16.mxu0 %v27661_v0 }
0x1d4d   : > { %26379 = vmatpush3.bf16.msra.mxu0 %v26378_v17 }
0x1d4e   : > { %26380 = vmatprep.subr.bf16.mxu0 %v27661_v0 }
0x1d50   : > { %25415 = vmatmul.mubr.f32.vlgmr.msra.gmra.mrb[52].mxu0 %v16678_v15 }
0x1d51   : > { %26382 = vmatpush3.bf16.msra.mxu0 %v29467_v53  ;;  %25425 = vmatprep.mubr.msk.f32.mxu0 %vm27662_vm0, %v27663_v1 }
0x1d52   : > { %26383 = vmatprep.subr.bf16.mxu0 %v27661_v0 }
0x1d55   : > { %26385 = vmatpush3.bf16.msra.mxu0 %v29470_v37 }
0x1d56   : > { %26386 = vmatprep.subr.bf16.mxu0 %v27661_v0 }
0x1d58   : > { %25426 = vmatmul.mubr.f32.vlgmr.msra.gmra.mrb[52].mxu0 %v16679_v12 }
0x1d59   : > { %26388 = vmatpush3.bf16.msra.mxu0 %v26387_v59  ;;  %25436 = vmatprep.mubr.msk.f32.mxu0 %vm27662_vm0, %v27663_v1 }
0x1d5a   : > { %26389 = vmatprep.subr.bf16.mxu0 %v27661_v0 }
0x1d5d   : > { %26391 = vmatpush3.bf16.msra.mxu0 %v26390_v60 }
0x1d5e   : > { %26392 = vmatprep.subr.bf16.mxu0 %v27661_v0 }
0x1d60   : > { %25437 = vmatmul.mubr.f32.vlgmr.msra.gmra.mrb[52].mxu0 %v16677_v34 }
0x1d61   : > { %26394 = vmatpush3.bf16.msra.mxu0 %v29467_v53  ;;  %25447 = vmatprep.mubr.msk.f32.mxu0 %vm27662_vm0, %v27663_v1 }
0x1d62   : > { %26395 = vmatprep.subr.bf16.mxu0 %v27661_v0 }
0x1d65   : > { %26397 = vmatpush3.bf16.msra.mxu0 %v29470_v37  ;;  %v18095_v37 = vsub.f32 %v18015_v16, %v29514_v44 }
0x1d66   : > { %25510 = vmatprep.subr.mxu0 %v27663_v1 }
0x1d67   : > { %v18096_v2 = vand.u32 4294901760, %v18095_v37 }
0x1d68   : > { %25448 = vmatmul.mubr.f32.vlgmr.msra.gmra.mrb[52].mxu0 %v16677_v34 }
0x1d69   : > { %25512 = vmatprep.mubr.msk.f32.mxu0 %vm27662_vm0, %v27663_v1  ;;  %v18097_v5 = vsub.f32 %v18095_v37, %v18096_v2 }
0x1d6b   : > { %v18098_v9 = vand.u32 4294901760, %v18097_v5 }
0x1d6e   : > { %25511 = vmatpush3.xpose.msra.mxu0 %v29514_v44 }
0x1d6f   : > { %25515 = vmatprep.subr.mxu0 %v27663_v1 }
0x1e3b   : > { %v17089_v29 = vpop.f32.mrb[52].mxu0 }
0x1e3c   : > { %v26583_v46 = vadd.f32 %v23153_v28, %v17089_v29  ;;  %v25449_v48 = vpop.f32.mrb[53].mxu0 }
0x1e3e   : > { %v17096_v51 = vsel %vm1855_vm2, %v26583_v46, 0  ;;  %18926 = vrot.lane.b32.xlu1 %v26583_v46, %s30203_s8  ;;  %18009 = vrot.lane.b32.xlu0 %v26583_v46, %s30200_s15  ;;  %s27678_s15 = smov 32   ;;  %s30212_s8 = sld [smem:[#allocation50_spill]] }
0x1e3f   : > { %v17166_v47 = vand.u32 4294901760, %v17096_v51 }
0x1e41   : > { %v17167_v53 = vsub.f32 %v17096_v51, %v17166_v47 }
0x1e42   : > { %18928 = vrot.lane.b32.xlu1 %v28517_v49, %s30208_s14  ;;  %19843 = vrot.lane.b32.xlu0 %v26583_v46, %s30205_s12  ;;  %s22898_s14 = scalar_lea.sflag [#allocation4], %s28132_s17 }
0x1e43   : > { %v17168_v54 = vand.u32 4294901760, %v17167_v53 }
0x1e44   : > { %s30015_s12 = scalar_lea.hbm %s30212_s8, %s23167_s28 }
0x1e45   : > { %v17169_v50 = vsub.f32 %v17167_v53, %v17168_v54 }
0x1e46   : > { %19845 = vrot.lane.b32.xlu1 %v28517_v49, %s30209_s6  ;;  %s30210_s6 = sld [smem:[#allocation48_spill]] }
0x1e47   : > { %v17170_v19 = vand.u32 4294901760, %v17169_v50 }
0x1e49   : > { %25453 = vmatmul.mubr.f32.vlgmr.msra.gmra.mrb[54].mxu1 %v17170_v19 }
0x1e4a   : > { %25456 = vmatpush3.xpose.msra.mxu1 %v17181_v33  ;;  %25457 = vmatprep.mubr.msk.f32.mxu1 %vm27662_vm0, %v27663_v1 }
0x1e4b   : > { %25460 = vmatprep.subr.mxu1 %v27663_v1 }
0x1e51   : > { %25458 = vmatmul.mubr.f32.vlgmr.msra.gmra.mrb[54].mxu1 %v17166_v47 }
0x1e52   : > { %25461 = vmatpush3.xpose.msra.mxu1 %v17178_v45  ;;  %25462 = vmatprep.mubr.msk.f32.mxu1 %vm27662_vm0, %v27663_v1 }
0x1e53   : > { %25465 = vmatprep.subr.mxu1 %v27663_v1 }
0x1e59   : > { %25463 = vmatmul.mubr.f32.vlgmr.msra.gmra.mrb[54].mxu1 %v17167_v53 }
0x1e5a   : > { %25466 = vmatpush3.xpose.msra.mxu1 %v29450_v21  ;;  %25467 = vmatprep.mubr.msk.f32.mxu1 %vm27662_vm0, %v27663_v1 }
0x1e5b   : > { %25470 = vmatprep.subr.mxu1 %v27663_v1 }
0x1e61   : > { %25468 = vmatmul.mubr.f32.vlgmr.msra.gmra.mrb[54].mxu1 %v17168_v54 }
0x1e62   : > { %25471 = vmatpush3.xpose.msra.mxu1 %v17179_v52  ;;  %25472 = vmatprep.mubr.msk.f32.mxu1 %vm27662_vm0, %v27663_v1 }
0x1e63   : > { %25475 = vmatprep.subr.mxu1 %v27663_v1 }
0x1e69   : > { %25473 = vmatmul.mubr.f32.vlgmr.msra.gmra.mrb[54].mxu1 %v17166_v47 }
0x1e6a   : > { %25476 = vmatpush3.xpose.msra.mxu1 %v29450_v21  ;;  %25477 = vmatprep.mubr.msk.f32.mxu1 %vm27662_vm0, %v27663_v1 }
0x1e6b   : > { %25480 = vmatprep.subr.mxu1 %v27663_v1 }
0x1e71   : > { %25478 = vmatmul.mubr.f32.vlgmr.msra.gmra.mrb[54].mxu1 %v17166_v47 }
0x1e72   : > { %25482 = vmatprep.mubr.msk.f32.mxu1 %vm27662_vm0, %v27663_v1 }
0x1eb0   : > { %v18010_v38 = vpop.permute.xlu0 %18009  ;;  %v18927_v22 = vpop.permute.xlu1 %18926 }
0x1eb1   : > { %v18013_v39 = vsel %vm1855_vm2, %v18010_v38, 0  ;;  %v18930_v55 = vsel %vm1855_vm2, %v18927_v22, 0 }
0x1eb2   : > { %v18083_v41 = vand.u32 4294901760, %v18013_v39  ;;  %v19000_v57 = vand.u32 4294901760, %v18930_v55 }
0x1eb4   : > { %v18084_v3 = vsub.f32 %v18013_v39, %v18083_v41  ;;  %v18929_v23 = vpop.permute.xlu1 %18928  ;;  %v19001_v17 = vsub.f32 %v18930_v55, %v19000_v57  ;;  %v19844_v35 = vpop.permute.xlu0 %19843 }
0x1eb5   : > { %v18932_v56 = vsel %vm1855_vm2, %v18929_v23, 0  ;;  %v19847_v36 = vsel %vm1855_vm2, %v19844_v35, 0 }
0x1eb6   : > { %v18085_v4 = vand.u32 4294901760, %v18084_v3  ;;  %v18935_v58 = vand.u32 4294901760, %v18932_v56  ;;  %v19002_v60 = vand.u32 4294901760, %v19001_v17  ;;  %v19917_v43 = vand.u32 4294901760, %v19847_v36 }
0x1eb8   : > { %v18086_v21 = vsub.f32 %v18084_v3, %v18085_v4  ;;  %v19012_v59 = vsub.f32 %v18932_v56, %v18935_v58  ;;  %v19003_v63 = vsub.f32 %v19001_v17, %v19002_v60  ;;  %v19846_v40 = vpop.permute.xlu1 %19845  ;;  %v19918_v10 = vsub.f32 %v19847_v36, %v19917_v43 }
0x1eb9   : > { %v19849_v42 = vsel %vm1855_vm2, %v19846_v40, 0 }
0x1eba   : > { %v18087_v6 = vand.u32 4294901760, %v18086_v21  ;;  %v19013_v62 = vand.u32 4294901760, %v19012_v59  ;;  %v19004_v25 = vand.u32 4294901760, %v19003_v63  ;;  %v19852_v8 = vand.u32 4294901760, %v19849_v42 }
0x1ebb   : > { %v19919_v13 = vand.u32 4294901760, %v19918_v10 }
0x1ebc   : > { %25513 = vmatmul.mubr.f32.vlgmr.msra.gmra.mrb[54].mxu0 %v18087_v6  ;;  %v19014_v24 = vsub.f32 %v19012_v59, %v19013_v62  ;;  %v19929_v11 = vsub.f32 %v19849_v42, %v19852_v8 }
0x1ebd   : > { %25516 = vmatpush3.xpose.msra.mxu0 %v18098_v9  ;;  %25517 = vmatprep.mubr.msk.f32.mxu0 %vm27662_vm0, %v27663_v1  ;;  %v19920_v31 = vsub.f32 %v19918_v10, %v19919_v13 }
0x1ebe   : > { %25520 = vmatprep.subr.mxu0 %v27663_v1  ;;  %v19015_v26 = vand.u32 4294901760, %v19014_v24  ;;  %v19930_v14 = vand.u32 4294901760, %v19929_v11 }
0x1ebf   : > { %v19921_v15 = vand.u32 4294901760, %v19920_v31 }
0x1ec0   : > { %v19931_v34 = vsub.f32 %v19929_v11, %v19930_v14 }
0x1ec2   : > { %v19932_v12 = vand.u32 4294901760, %v19931_v34 }
0x1ec4   : > { %25518 = vmatmul.mubr.f32.vlgmr.msra.gmra.mrb[54].mxu0 %v18083_v41 }
0x1ec5   : > { %25521 = vmatpush3.xpose.msra.mxu0 %v18095_v37  ;;  %25522 = vmatprep.mubr.msk.f32.mxu0 %vm27662_vm0, %v27663_v1 }
0x1ec6   : > { %25525 = vmatprep.subr.mxu0 %v27663_v1 }
0x1ecc   : > { %25523 = vmatmul.mubr.f32.vlgmr.msra.gmra.mrb[54].mxu0 %v18084_v3 }
0x1ecd   : > { %25526 = vmatpush3.xpose.msra.mxu0 %v29514_v44  ;;  %25527 = vmatprep.mubr.msk.f32.mxu0 %vm27662_vm0, %v27663_v1 }
0x1ece   : > { %25530 = vmatprep.subr.mxu0 %v27663_v1 }
0x1ed4   : > { %25528 = vmatmul.mubr.f32.vlgmr.msra.gmra.mrb[54].mxu0 %v18085_v4 }
0x1ed5   : > { %25531 = vmatpush3.xpose.msra.mxu0 %v18096_v2  ;;  %25532 = vmatprep.mubr.msk.f32.mxu0 %vm27662_vm0, %v27663_v1 }
0x1ed6   : > { %25535 = vmatprep.subr.mxu0 %v27663_v1 }
0x1edc   : > { %25533 = vmatmul.mubr.f32.vlgmr.msra.gmra.mrb[54].mxu0 %v18083_v41 }
0x1edd   : > { %25536 = vmatpush3.xpose.msra.mxu0 %v29514_v44  ;;  %25537 = vmatprep.mubr.msk.f32.mxu0 %vm27662_vm0, %v27663_v1 }
0x1ede   : > { %25570 = vmatprep.subr.mxu0 %v27663_v1 }
0x1ee4   : > { %25538 = vmatmul.mubr.f32.vlgmr.msra.gmra.mrb[54].mxu0 %v18083_v41 }
0x1ee5   : > { %25571 = vmatpush3.xpose.msra.mxu0 %v18935_v58  ;;  %25572 = vmatprep.mubr.msk.f32.mxu0 %vm27662_vm0, %v27663_v1 }
0x1ee6   : > { %25575 = vmatprep.subr.mxu0 %v27663_v1 }
0x1ee8   : > { %25573 = vmatmul.mubr.f32.vlgmr.msra.gmra.mrb[56].mxu0 %v19004_v25 }
0x1ee9   : > { %25576 = vmatpush3.xpose.msra.mxu0 %v19015_v26  ;;  %25577 = vmatprep.mubr.msk.f32.mxu0 %vm27662_vm0, %v27663_v1 }
0x1eea   : > { %25580 = vmatprep.subr.mxu0 %v27663_v1 }
0x1ef0   : > { %25578 = vmatmul.mubr.f32.vlgmr.msra.gmra.mrb[56].mxu0 %v19000_v57 }
0x1ef1   : > { %25581 = vmatpush3.xpose.msra.mxu0 %v19012_v59  ;;  %25582 = vmatprep.mubr.msk.f32.mxu0 %vm27662_vm0, %v27663_v1 }
0x1ef2   : > { %25585 = vmatprep.subr.mxu0 %v27663_v1 }
0x1ef8   : > { %25583 = vmatmul.mubr.f32.vlgmr.msra.gmra.mrb[56].mxu0 %v19001_v17 }
0x1ef9   : > { %25586 = vmatpush3.xpose.msra.mxu0 %v18935_v58  ;;  %25587 = vmatprep.mubr.msk.f32.mxu0 %vm27662_vm0, %v27663_v1 }
0x1efa   : > { %25590 = vmatprep.subr.mxu0 %v27663_v1 }
0x1f00   : > { %25588 = vmatmul.mubr.f32.vlgmr.msra.gmra.mrb[56].mxu0 %v19002_v60 }
0x1f01   : > { %25591 = vmatpush3.xpose.msra.mxu0 %v19013_v62  ;;  %25592 = vmatprep.mubr.msk.f32.mxu0 %vm27662_vm0, %v27663_v1 }
0x1f02   : > { %25595 = vmatprep.subr.mxu0 %v27663_v1 }
0x1f08   : > { %25593 = vmatmul.mubr.f32.vlgmr.msra.gmra.mrb[56].mxu0 %v19000_v57 }
0x1f09   : > { %25596 = vmatpush3.xpose.msra.mxu0 %v18935_v58  ;;  %25597 = vmatprep.mubr.msk.f32.mxu0 %vm27662_vm0, %v27663_v1 }
0x1f0a   : > { %25630 = vmatprep.subr.mxu0 %v27663_v1 }
0x1f10   : > { %25598 = vmatmul.mubr.f32.vlgmr.msra.gmra.mrb[56].mxu0 %v19000_v57 }
0x1f11   : > { %25631 = vmatpush3.xpose.msra.mxu0 %v19852_v8  ;;  %25632 = vmatprep.mubr.msk.f32.mxu0 %vm27662_vm0, %v27663_v1 }
0x1f12   : > { %25635 = vmatprep.subr.mxu0 %v27663_v1 }
0x1f14   : > { %25633 = vmatmul.mubr.f32.vlgmr.msra.gmra.mrb[58].mxu0 %v19921_v15 }
0x1f15   : > { %25636 = vmatpush3.xpose.msra.mxu0 %v19932_v12  ;;  %25637 = vmatprep.mubr.msk.f32.mxu0 %vm27662_vm0, %v27663_v1 }
0x1f16   : > { %25640 = vmatprep.subr.mxu0 %v27663_v1 }
0x1f1c   : > { %25638 = vmatmul.mubr.f32.vlgmr.msra.gmra.mrb[58].mxu0 %v19917_v43 }
0x1f1d   : > { %25641 = vmatpush3.xpose.msra.mxu0 %v19929_v11  ;;  %25642 = vmatprep.mubr.msk.f32.mxu0 %vm27662_vm0, %v27663_v1 }
0x1f1e   : > { %25645 = vmatprep.subr.mxu0 %v27663_v1 }
0x1f24   : > { %25643 = vmatmul.mubr.f32.vlgmr.msra.gmra.mrb[58].mxu0 %v19918_v10 }
0x1f25   : > { %25646 = vmatpush3.xpose.msra.mxu0 %v19852_v8  ;;  %25647 = vmatprep.mubr.msk.f32.mxu0 %vm27662_vm0, %v27663_v1 }
0x1f26   : > { %25650 = vmatprep.subr.mxu0 %v27663_v1 }
0x1f2c   : > { %25648 = vmatmul.mubr.f32.vlgmr.msra.gmra.mrb[58].mxu0 %v19919_v13 }
0x1f2d   : > { %25651 = vmatpush3.xpose.msra.mxu0 %v19930_v14  ;;  %25652 = vmatprep.mubr.msk.f32.mxu0 %vm27662_vm0, %v27663_v1 }
0x1f2e   : > { %25655 = vmatprep.subr.mxu0 %v27663_v1 }
0x1f34   : > { %25653 = vmatmul.mubr.f32.vlgmr.msra.gmra.mrb[58].mxu0 %v19917_v43 }
0x1f35   : > { %25656 = vmatpush3.xpose.msra.mxu0 %v19852_v8  ;;  %25657 = vmatprep.mubr.msk.f32.mxu0 %vm27662_vm0, %v27663_v1 }
0x1f36   : > { %26398 = vmatprep.subr.bf16.mxu0 %v27661_v0 }
0x1f3c   : > { %25658 = vmatmul.mubr.f32.vlgmr.msra.gmra.mrb[58].mxu0 %v19917_v43 }
0x1f3d   : > { %25698 = vmatprep.mubr.msk.f32.mxu0 %vm27662_vm0, %v27663_v1 }
0x1f44   : > { %v17542_v18 = vpop.f32.mrb[54].mxu1 }
0x1f45   : > { %v25479_v7 = vpop.f32.mrb[55].mxu1  ;;  %v17546_v61 = vsel %vm1855_vm2, %v17542_v18, -inf }
0x1f46   : > { %17547 = vmax.xlane.f32.xlu0 %v17546_v61 }
0x1fb7   : > { %v18459_v16 = vpop.f32.mrb[54].mxu0 }
0x1fb8   : > { %v25539_v44 = vpop.f32.mrb[55].mxu0  ;;  %v18463_v28 = vsel %vm1855_vm2, %v18459_v16, -inf }
0x1fb9   : > { %18464 = vmax.xlane.f32.xlu1 %v18463_v28 }
0x1fca   : > { %17557 = vrot.lane.b32.xlu1 %v28517_v49, %s27678_s15  ;;  %s838_s15 = scalar_lea.vmem [#allocation20], %s30211_s30 }
0x1fd3   : > { %v17548_v29 = vpop.xlane.xlu0 %17547 }
0x1fd4   : > { %v17549_v45 = vsub.f32 %v17542_v18, %v17548_v29 }
0x1fd6   : > { %v17550_v46 = vmul.f32 1.442695, %v17549_v45 }
0x1fd8   : > { %27219 = vpow2.f32 %v17550_v46 }
0x1fe2   : > { %v27220_v48 = vpop.eup %27219 }
0x1fe3   : > { %v19376_v51 = vpop.f32.mrb[56].mxu0  ;;  %v17552_v47 = vsel %vm1855_vm2, %v27220_v48, 0.0 }
0x1fe4   : > { %v25599_v52 = vpop.f32.mrb[57].mxu0  ;;  %17553 = vadd.xlane.f32.xlu0 %v17552_v47  ;;  %v19380_v53 = vsel %vm1855_vm2, %v19376_v51, -inf }
0x1fe8   : > { %19381 = vmax.xlane.f32.xlu0 %v19380_v53 }
0x200f   : > { %v29613_v54 = vpop.f32.mrb[58].mxu0 }
0x2010   : > { %v25659_v32 = vpop.f32.mrb[59].mxu0  ;;  %v20297_v2 = vsel %vm1855_vm2, %v29613_v54, -inf }
0x2046   : > { %v18465_v50 = vpop.xlane.xlu1 %18464 }
0x2047   : > { %v18466_v19 = vsub.f32 %v18459_v16, %v18465_v50 }
0x2049   : > { %v18467_v33 = vmul.f32 1.442695, %v18466_v19 }
0x204a   : > { %v17558_v37 = vpop.permute.xlu1 %17557 }
0x204b   : > { %27221 = vpow2.f32 %v18467_v33  ;;  %v17564_v38 = vand.u32 4294901760, %v17558_v37 }
0x204d   : > { %25481 = vmatpush3.msra.mxu1 %v17564_v38  ;;  %v17641_v9 = vsub.f32 %v17558_v37, %v17564_v38 }
0x204e   : > { %25485 = vmatprep.subr.mxu1 %v27663_v1 }
0x204f   : > { %v17642_v56 = vand.u32 4294901760, %v17641_v9 }
0x2051   : > { %v17643_v59 = vsub.f32 %v17641_v9, %v17642_v56 }
0x2053   : > { %v17644_v24 = vand.u32 4294901760, %v17643_v59  ;;  %v20776_v59 = vld [vmem:[#allocation11 + $0x20] sm:$0xff] }
0x2055   : > { %v27222_v39 = vpop.eup %27221 }
0x2056   : > { %v18469_v41 = vsel %vm1855_vm2, %v27222_v39, 0.0 }
0x2057   : > { %18470 = vadd.xlane.f32.xlu0 %v18469_v41 }
0x205b   : > { %20298 = vmax.xlane.f32.xlu0 %v20297_v2 }
0x2071   : > { %18474 = vrot.lane.b32.xlu0 %v28517_v49, %s30198_s24  ;;  %v17554_v3 = vpop.xlane.xlu0 %17553 }
0x2072   : > { %27223 = vrcp.f32 %v17554_v3 }
0x2075   : > { %19391 = vrot.lane.b32.xlu0 %v28517_v49, %s30197_s10  ;;  %v19382_v4 = vpop.xlane.xlu0 %19381 }
0x2076   : > { %v19383_v5 = vsub.f32 %v19376_v51, %v19382_v4 }
0x2078   : > { %v19384_v21 = vmul.f32 1.442695, %v19383_v5 }
0x207a   : > { %27225 = vpow2.f32 %v19384_v21 }
0x207c   : > { %v27224_v6 = vpop.eup %27223 }
0x207d   : > { %v17556_v22 = vmul.f32 %v27224_v6, %v27220_v48 }
0x207f   : > { %v17561_v23 = vsel %vm1855_vm2, %v17556_v22, 0 }
0x2080   : > { %v17629_v55 = vand.u32 4294901760, %v17561_v23 }
0x2082   : > { %v17630_v57 = vsub.f32 %v17561_v23, %v17629_v55 }
0x2084   : > { %v29624_v58 = vpop.eup %27225  ;;  %v17631_v17 = vand.u32 4294901760, %v17630_v57 }
0x2085   : > { %v19386_v60 = vsel %vm1855_vm2, %v29624_v58, 0.0 }
0x2086   : > { %19387 = vadd.xlane.f32.xlu1 %v19386_v60  ;;  %v17632_v62 = vsub.f32 %v17630_v57, %v17631_v17  ;;  %v20777_v60 = vld [vmem:[#allocation11 + $0x28] sm:$0xff] }
0x2088   : > { %v17633_v63 = vand.u32 4294901760, %v17632_v62  ;;  %v20792_v62 = vand.u32 4294901760, %v20776_v59 }
0x208a   : > { %25483 = vmatmul.mubr.f32.vlgmr.msra.gmra.mrb[56].mxu1 %v17633_v63  ;;  %v20795_v63 = vand.u32 4294901760, %v20777_v60 }
0x208b   : > { %25486 = vmatpush3.msra.mxu1 %v17644_v24  ;;  %25487 = vmatprep.mubr.msk.f32.mxu1 %vm27662_vm0, %v27663_v1  ;;  %v29714_v24 = vsub.f32 %v20776_v59, %v20792_v62 }
0x208c   : > { %25490 = vmatprep.subr.mxu1 %v27663_v1 }
0x2092   : > { %25488 = vmatmul.mubr.f32.vlgmr.msra.gmra.mrb[56].mxu1 %v17629_v55 }
0x2093   : > { %25491 = vmatpush3.msra.mxu1 %v17641_v9  ;;  %25492 = vmatprep.mubr.msk.f32.mxu1 %vm27662_vm0, %v27663_v1 }
0x2094   : > { %25495 = vmatprep.subr.mxu1 %v27663_v1 }
0x2097   : > { %20308 = vrot.lane.b32.xlu1 %v28517_v49, %s30196_s0 }
0x209a   : > { %25493 = vmatmul.mubr.f32.vlgmr.msra.gmra.mrb[56].mxu1 %v17630_v57 }
0x209b   : > { %25496 = vmatpush3.msra.mxu1 %v17564_v38  ;;  %25497 = vmatprep.mubr.msk.f32.mxu1 %vm27662_vm0, %v27663_v1 }
0x209c   : > { %25500 = vmatprep.subr.mxu1 %v27663_v1 }
0x20a2   : > { %25498 = vmatmul.mubr.f32.vlgmr.msra.gmra.mrb[56].mxu1 %v17631_v17 }
0x20a3   : > { %25501 = vmatpush3.msra.mxu1 %v17642_v56  ;;  %25502 = vmatprep.mubr.msk.f32.mxu1 %vm27662_vm0, %v27663_v1 }
0x20a4   : > { %25505 = vmatprep.subr.mxu1 %v27663_v1 }
0x20aa   : > { %25503 = vmatmul.mubr.f32.vlgmr.msra.gmra.mrb[56].mxu1 %v17629_v55 }
0x20ab   : > { %25506 = vmatpush3.msra.mxu1 %v17564_v38  ;;  %25507 = vmatprep.mubr.msk.f32.mxu1 %vm27662_vm0, %v27663_v1 }
0x20ac   : > { %25540 = vmatprep.subr.mxu1 %v27663_v1 }
0x20b2   : > { %25508 = vmatmul.mubr.f32.vlgmr.msra.gmra.mrb[56].mxu1 %v17629_v55 }
0x20b3   : > { %25542 = vmatprep.mubr.msk.f32.mxu1 %vm27662_vm0, %v27663_v1 }
0x20e4   : > { %v18471_v49 = vpop.xlane.xlu0 %18470 }
0x20e5   : > { %27227 = vrcp.f32 %v18471_v49  ;;  %v29716_v49 = vsub.f32 %v20777_v60, %v20795_v63 }
0x20e8   : > { %v20299_v25 = vpop.xlane.xlu0 %20298 }
0x20e9   : > { %v20300_v26 = vsub.f32 %v29613_v54, %v20299_v25  ;;  %v20873_v25 = vand.u32 4294901760, %v29714_v24 }
0x20eb   : > { %v20301_v35 = vmul.f32 1.442695, %v20300_v26  ;;  %v20880_v26 = vand.u32 4294901760, %v29716_v49 }
0x20ec   : > { %v18475_v40 = vpop.permute.xlu0 %18474 }
0x20ed   : > { %27229 = vpow2.f32 %v20301_v35  ;;  %v18481_v36 = vand.u32 4294901760, %v18475_v40  ;;  %v20874_v35 = vsub.f32 %v29714_v24, %v20873_v25 }
0x20ef   : > { %v27228_v42 = vpop.eup %27227  ;;  %25541 = vmatpush3.msra.mxu1 %v18481_v36  ;;  %v18558_v8 = vsub.f32 %v18475_v40, %v18481_v36  ;;  %v20881_v40 = vsub.f32 %v29716_v49, %v20880_v26 }
0x20f0   : > { %v18473_v43 = vmul.f32 %v27228_v42, %v27222_v39  ;;  %25545 = vmatprep.subr.mxu1 %v27663_v1  ;;  %v19392_v44 = vpop.permute.xlu0 %19391 }
0x20f1   : > { %v18559_v13 = vand.u32 4294901760, %v18558_v8  ;;  %v19398_v28 = vand.u32 4294901760, %v19392_v44  ;;  %v20882_v42 = vand.u32 4294901760, %v20881_v40 }
0x20f2   : > { %v18478_v10 = vsel %vm1855_vm2, %v18473_v43, 0 }
0x20f3   : > { %v18546_v11 = vand.u32 4294901760, %v18478_v10  ;;  %v18560_v15 = vsub.f32 %v18558_v8, %v18559_v13  ;;  %v19475_v45 = vsub.f32 %v19392_v44, %v19398_v28 }
0x20f5   : > { %v18547_v14 = vsub.f32 %v18478_v10, %v18546_v11  ;;  %v18561_v61 = vand.u32 4294901760, %v18560_v15  ;;  %v19476_v47 = vand.u32 4294901760, %v19475_v45 }
0x20f7   : > { %v29650_v31 = vpop.eup %27229  ;;  %v18548_v34 = vand.u32 4294901760, %v18547_v14  ;;  %v19477_v54 = vsub.f32 %v19475_v45, %v19476_v47 }
0x20f8   : > { %v20303_v12 = vsel %vm1855_vm2, %v29650_v31, 0.0 }
0x20f9   : > { %20304 = vadd.xlane.f32.xlu0 %v20303_v12  ;;  %v18549_v18 = vsub.f32 %v18547_v14, %v18548_v34  ;;  %v19478_v19 = vand.u32 4294901760, %v19477_v54 }
0x20fb   : > { %v18550_v7 = vand.u32 4294901760, %v18549_v18 }
0x20fd   : > { %25543 = vmatmul.mubr.f32.vlgmr.msra.gmra.mrb[58].mxu1 %v18550_v7 }
0x20fe   : > { %25546 = vmatpush3.msra.mxu1 %v18561_v61  ;;  %25547 = vmatprep.mubr.msk.f32.mxu1 %vm27662_vm0, %v27663_v1 }
0x20ff   : > { %25550 = vmatprep.subr.mxu1 %v27663_v1 }
0x2105   : > { %25548 = vmatmul.mubr.f32.vlgmr.msra.gmra.mrb[58].mxu1 %v18546_v11 }
0x2106   : > { %25551 = vmatpush3.msra.mxu1 %v18558_v8  ;;  %25552 = vmatprep.mubr.msk.f32.mxu1 %vm27662_vm0, %v27663_v1 }
0x2107   : > { %25555 = vmatprep.subr.mxu1 %v27663_v1 }
0x210d   : > { %25553 = vmatmul.mubr.f32.vlgmr.msra.gmra.mrb[58].mxu1 %v18547_v14 }
0x210e   : > { %25556 = vmatpush3.msra.mxu1 %v18481_v36  ;;  %25557 = vmatprep.mubr.msk.f32.mxu1 %vm27662_vm0, %v27663_v1 }
0x210f   : > { %25560 = vmatprep.subr.mxu1 %v27663_v1 }
0x2113   : > { %v19388_v16 = vpop.xlane.xlu1 %19387 }
0x2114   : > { %27231 = vrcp.f32 %v19388_v16 }
0x2115   : > { %25558 = vmatmul.mubr.f32.vlgmr.msra.gmra.mrb[58].mxu1 %v18548_v34 }
0x2116   : > { %25561 = vmatpush3.msra.mxu1 %v18559_v13  ;;  %25562 = vmatprep.mubr.msk.f32.mxu1 %vm27662_vm0, %v27663_v1  ;;  %v20779_v13 = vld [vmem:[#allocation11 + $0x38] sm:$0xff] }
0x2117   : > { %25565 = vmatprep.subr.mxu1 %v27663_v1  ;;  %v20309_v33 = vpop.permute.xlu1 %20308 }
0x2118   : > { %v20315_v37 = vand.u32 4294901760, %v20309_v33 }
0x211a   : > { %v20392_v3 = vsub.f32 %v20309_v33, %v20315_v37 }
0x211c   : > { %v20393_v6 = vand.u32 4294901760, %v20392_v3 }
0x211d   : > { %25563 = vmatmul.mubr.f32.vlgmr.msra.gmra.mrb[58].mxu1 %v18546_v11 }
0x211e   : > { %v27232_v29 = vpop.eup %27231  ;;  %25566 = vmatpush3.msra.mxu1 %v18481_v36  ;;  %25567 = vmatprep.mubr.msk.f32.mxu1 %vm27662_vm0, %v27663_v1  ;;  %v20394_v23 = vsub.f32 %v20392_v3, %v20393_v6  ;;  %v20875_v36 = vand.u32 4294901760, %v20874_v35 }
0x211f   : > { %v19390_v46 = vmul.f32 %v27232_v29, %v29624_v58  ;;  %25600 = vmatprep.subr.mxu1 %v27663_v1  ;;  %v26399_v29 = vpack.c.bf16 %v20795_v63, %v20792_v62 }
0x2120   : > { %v20395_v57 = vand.u32 4294901760, %v20394_v23  ;;  %v26405_v43 = vpack.c.bf16 %v20882_v42, %v20875_v36 }
0x2121   : > { %v19395_v48 = vsel %vm1855_vm2, %v19390_v46, 0  ;;  %26400 = vmatpush3.bf16.msra.mxu0 %v26399_v29 }
0x2122   : > { %v19463_v51 = vand.u32 4294901760, %v19395_v48  ;;  %26401 = vmatprep.subr.bf16.mxu0 %v27661_v0 }
0x2124   : > { %v19464_v52 = vsub.f32 %v19395_v48, %v19463_v51 }
0x2125   : > { %25568 = vmatmul.mubr.f32.vlgmr.msra.gmra.mrb[58].mxu1 %v18546_v11  ;;  %v20778_v11 = vld [vmem:[#allocation11 + $0x30] sm:$0xff] }
0x2126   : > { %25601 = vmatpush3.msra.mxu1 %v19398_v28  ;;  %25602 = vmatprep.mubr.msk.f32.mxu1 %vm27662_vm0, %v27663_v1  ;;  %v19465_v53 = vand.u32 4294901760, %v19464_v52  ;;  %v20798_v14 = vand.u32 4294901760, %v20778_v11 }
0x2127   : > { %25605 = vmatprep.subr.mxu1 %v27663_v1 }
0x2128   : > { %v19466_v32 = vsub.f32 %v19464_v52, %v19465_v53  ;;  %v20886_v34 = vsub.f32 %v20778_v11, %v20798_v14  ;;  %v21308_v11 = vld [vmem:[#allocation14 + $0x20] sm:$0xff] }
0x212a   : > { %v19467_v50 = vand.u32 4294901760, %v19466_v32  ;;  %v20887_v12 = vand.u32 4294901760, %v20886_v34 }
0x212c   : > { %25603 = vmatmul.mubr.f32.vlgmr.msra.gmra.mrb[60].mxu1 %v19467_v50  ;;  %v20888_v7 = vsub.f32 %v20886_v34, %v20887_v12 }
0x212d   : > { %25606 = vmatpush3.msra.mxu1 %v19478_v19  ;;  %25607 = vmatprep.mubr.msk.f32.mxu1 %vm27662_vm0, %v27663_v1 }
0x212e   : > { %25610 = vmatprep.subr.mxu1 %v27663_v1  ;;  %v20889_v16 = vand.u32 4294901760, %v20888_v7 }
0x2134   : > { %25608 = vmatmul.mubr.f32.vlgmr.msra.gmra.mrb[60].mxu1 %v19463_v51 }
0x2135   : > { %25611 = vmatpush3.msra.mxu1 %v19475_v45  ;;  %25612 = vmatprep.mubr.msk.f32.mxu1 %vm27662_vm0, %v27663_v1 }
0x2136   : > { %25615 = vmatprep.subr.mxu1 %v27663_v1 }
0x213c   : > { %25613 = vmatmul.mubr.f32.vlgmr.msra.gmra.mrb[60].mxu1 %v19464_v52 }
0x213d   : > { %25616 = vmatpush3.msra.mxu1 %v19398_v28  ;;  %25617 = vmatprep.mubr.msk.f32.mxu1 %vm27662_vm0, %v27663_v1 }
0x213e   : > { %25620 = vmatprep.subr.mxu1 %v27663_v1 }
0x2144   : > { %25618 = vmatmul.mubr.f32.vlgmr.msra.gmra.mrb[60].mxu1 %v19465_v53 }
0x2145   : > { %25621 = vmatpush3.msra.mxu1 %v19476_v47  ;;  %25622 = vmatprep.mubr.msk.f32.mxu1 %vm27662_vm0, %v27663_v1 }
0x2146   : > { %25625 = vmatprep.subr.mxu1 %v27663_v1 }
0x214c   : > { %25623 = vmatmul.mubr.f32.vlgmr.msra.gmra.mrb[60].mxu1 %v19463_v51 }
0x214d   : > { %25626 = vmatpush3.msra.mxu1 %v19398_v28  ;;  %25627 = vmatprep.mubr.msk.f32.mxu1 %vm27662_vm0, %v27663_v1 }
0x214e   : > { %25660 = vmatprep.subr.mxu1 %v27663_v1 }
0x2154   : > { %25628 = vmatmul.mubr.f32.vlgmr.msra.gmra.mrb[60].mxu1 %v19463_v51 }
0x2155   : > { %25661 = vmatpush3.msra.mxu1 %v20315_v37  ;;  %25662 = vmatprep.mubr.msk.f32.mxu1 %vm27662_vm0, %v27663_v1 }
0x2156   : > { %25665 = vmatprep.subr.mxu1 %v27663_v1 }
0x2185   : > { %v29692_v38 = vpop.f32.mrb[56].mxu1 }
0x2186   : > { %v20305_v39 = vpop.xlane.xlu0 %20304  ;;  %v25509_v41 = vpop.f32.mrb[57].mxu1 }
0x2187   : > { %27233 = vrcp.f32 %v20305_v39 }
0x2191   : > { %v27234_v2 = vpop.eup %27233 }
0x2192   : > { %v20307_v4 = vmul.f32 %v27234_v2, %v29650_v31  ;;  %v20801_v31 = vand.u32 4294901760, %v20779_v13 }
0x2194   : > { %v20312_v5 = vsel %vm1855_vm2, %v20307_v4, 0  ;;  %v20893_v15 = vsub.f32 %v20779_v13, %v20801_v31  ;;  %v26402_v45 = vpack.c.bf16 %v20801_v31, %v20798_v14  ;;  %v26423_v4 = vpack.c.bf16 %v20880_v26, %v20873_v25  ;;  %v21309_v13 = vld [vmem:[#allocation14 + $0x28] sm:$0xff]  ;;  %v21310_v14 = vld [vmem:[#allocation14 + $0x30] sm:$0xff] }
0x2195   : > { %v20380_v21 = vand.u32 4294901760, %v20312_v5  ;;  %v21324_v31 = vand.u32 4294901760, %v21308_v11 }
0x2196   : > { %v20894_v18 = vand.u32 4294901760, %v20893_v15  ;;  %26403 = vmatpush3.bf16.msra.mxu0 %v26402_v45  ;;  %v26414_v51 = vpack.c.bf16 %v20893_v15, %v20886_v34  ;;  %v21327_v34 = vand.u32 4294901760, %v21309_v13 }
0x2197   : > { %v20381_v9 = vsub.f32 %v20312_v5, %v20380_v21  ;;  %26410 = vmatprep.subr.bf16.mxu0 %v27661_v0 }
0x2198   : > { %v20895_v61 = vsub.f32 %v20893_v15, %v20894_v18  ;;  %v26426_v47 = vpack.c.bf16 %v20894_v18, %v20887_v12  ;;  %v21311_v15 = vld [vmem:[#allocation14 + $0x38] sm:$0xff]  ;;  %v21330_v12 = vand.u32 4294901760, %v21310_v14  ;;  %v29770_v7 = vpack.c.bf16 %v21327_v34, %v21324_v31 }
0x2199   : > { %v20382_v22 = vand.u32 4294901760, %v20381_v9  ;;  %v21333_v18 = vand.u32 4294901760, %v21311_v15 }
0x219a   : > { %v20896_v44 = vand.u32 4294901760, %v20895_v61  ;;  %v29772_v61 = vsub.f32 %v21308_v11, %v21324_v31 }
0x219b   : > { %v20383_v55 = vsub.f32 %v20381_v9, %v20382_v22 }
0x219c   : > { %v26408_v28 = vpack.c.bf16 %v20896_v44, %v20889_v16  ;;  %v29774_v16 = vsub.f32 %v21309_v13, %v21327_v34  ;;  %v29776_v44 = vsub.f32 %v21310_v14, %v21330_v12 }
0x219d   : > { %v20384_v56 = vand.u32 4294901760, %v20383_v55 }
0x219f   : > { %25663 = vmatmul.mubr.f32.vlgmr.msra.gmra.mrb[62].mxu1 %v20384_v56 }
0x21a0   : > { %25666 = vmatpush3.msra.mxu1 %v20395_v57  ;;  %25667 = vmatprep.mubr.msk.f32.mxu1 %vm27662_vm0, %v27663_v1 }
0x21a1   : > { %25670 = vmatprep.subr.mxu1 %v27663_v1 }
0x21a7   : > { %25668 = vmatmul.mubr.f32.vlgmr.msra.gmra.mrb[62].mxu1 %v20380_v21 }
0x21a8   : > { %25671 = vmatpush3.msra.mxu1 %v20392_v3  ;;  %25672 = vmatprep.mubr.msk.f32.mxu1 %vm27662_vm0, %v27663_v1 }
0x21a9   : > { %25675 = vmatprep.subr.mxu1 %v27663_v1 }
0x21af   : > { %25673 = vmatmul.mubr.f32.vlgmr.msra.gmra.mrb[62].mxu1 %v20381_v9 }
0x21b0   : > { %25676 = vmatpush3.msra.mxu1 %v20315_v37  ;;  %25677 = vmatprep.mubr.msk.f32.mxu1 %vm27662_vm0, %v27663_v1 }
0x21b1   : > { %25680 = vmatprep.subr.mxu1 %v27663_v1 }
0x21b7   : > { %25678 = vmatmul.mubr.f32.vlgmr.msra.gmra.mrb[62].mxu1 %v20382_v22 }
0x21b8   : > { %25681 = vmatpush3.msra.mxu1 %v20393_v6  ;;  %25682 = vmatprep.mubr.msk.f32.mxu1 %vm27662_vm0, %v27663_v1  ;;  %v23154_v6 = vld [vmem:[#allocation13 + $0x1] ss:$0 sm:$0xff] }
0x21b9   : > { %25685 = vmatprep.subr.mxu1 %v27663_v1 }
0x21bf   : > { %25683 = vmatmul.mubr.f32.vlgmr.msra.gmra.mrb[62].mxu1 %v20380_v21 }
0x21c0   : > { %25686 = vmatpush3.msra.mxu1 %v20315_v37  ;;  %25687 = vmatprep.mubr.msk.f32.mxu1 %vm27662_vm0, %v27663_v1 }
0x21c1   : > { %26404 = vmatprep.subr.bf16.mxu1 %v27661_v0 }
0x21c7   : > { %25688 = vmatmul.mubr.f32.vlgmr.msra.gmra.mrb[62].mxu1 %v20380_v21 }
0x21c8   : > { %25709 = vmatprep.mubr.msk.f32.mxu1 %vm27662_vm0, %v27663_v1  ;;  %26406 = vmatpush3.bf16.msra.mxu1 %v26405_v43 }
0x21c9   : > { %26407 = vmatprep.subr.bf16.mxu1 %v27661_v0 }
0x21cc   : > { %26409 = vmatpush3.bf16.msra.mxu1 %v26408_v28  ;;  %v29778_v28 = vsub.f32 %v21311_v15, %v21333_v18 }
0x21cd   : > { %26416 = vmatprep.subr.bf16.mxu1 %v27661_v0 }
0x21f8   : > { %v18922_v58 = vpop.f32.mrb[58].mxu1 }
0x21f9   : > { %20761 = vrot.lane.b32.xlu0 %v18922_v58, %s30196_s0  ;;  %v25569_v17 = vpop.f32.mrb[59].mxu1  ;;  %s22911_s0 = sshll.u32 %s838_s15, 4  ;;  %s30017_s0 = int_to_ptr.vmem [resolvable:$true] %s22911_s0 }
0x21fa   : > { %s27558_s22 = scalar_lea.vmem %s30017_s0, 128  ;;  %p27565_p10 = scmp.lt.s32.totalorder %s30017_s0, %s27563_s13 }
0x21fb   : > { %p27559_p3 = scmp.ne.s32.totalorder %s30017_s0, %s27558_s22  ;;  %p27566_p11 = scmp.lt.s32.totalorder %s27564_s4, %s27558_s22 }
0x21fd   : > { %p27560_p0 = pnand %p27559_p3, %p30213_p2  ;;  %p27567_p8 = por %p27566_p11, %p27565_p10 }
0x21ff   : > { %p27561_p4 = pneg %p27560_p0 }
0x2201   : > { %p27568_p5 = pnand %p27567_p8, %p27561_p4 }
0x2227   : > { %v19839_v8 = vpop.f32.mrb[60].mxu1 }
0x2228   : > { %20765 = vrot.lane.b32.xlu1 %v19839_v8, %s30197_s10  ;;  %v25629_v10 = vpop.f32.mrb[61].mxu1 }
0x226b   : > { %v20762_v52 = vpop.permute.xlu0 %20761 }
0x226c   : > { %v20772_v54 = vsel %vm1855_vm2, %v29692_v38, %v20762_v52  ;;  %v26411_v38 = vpack.c.bf16 %v29716_v49, %v29714_v24 }
0x229a   : > { %v20756_v46 = vpop.f32.mrb[62].mxu1  ;;  %v20766_v53 = vpop.permute.xlu1 %20765 }
0x229b   : > { %20769 = vrot.lane.b32.xlu1 %v20756_v46, %s30198_s24  ;;  %v25689_v48 = vpop.f32.mrb[63].mxu1  ;;  %v20773_v32 = vsel %vm5537_vm4, %v20772_v54, %v20766_v53  ;;  %v21412_v46 = vand.u32 4294901760, %v29774_v16  ;;  %v21419_v53 = vand.u32 4294901760, %v29776_v44  ;;  %v21426_v54 = vand.u32 4294901760, %v29778_v28 }
0x230d   : > { %v20770_v50 = vpop.permute.xlu1 %20769 }
0x230e   : > { %v20774_v19 = vsel %vm5539_vm5, %v20773_v32, %v20770_v50  ;;  %v21420_v50 = vsub.f32 %v29776_v44, %v21419_v53 }
0x230f   : > { %v20789_v33 = vsel %vm862_vm1, %v20774_v19, 0  ;;  %v21427_v19 = vsub.f32 %v29778_v28, %v21426_v54 }
0x2310   : > { %v20860_v37 = vand.u32 4294901760, %v20789_v33 }
0x2312   : > { %v20861_v39 = vsub.f32 %v20789_v33, %v20860_v37  ;;  %25710 = vmatmul.mubr.f32.vlgmr.msra.gmra.mrb[64].mxu1 %v20860_v37  ;;  %v21421_v33 = vand.u32 4294901760, %v21420_v50 }
0x2313   : > { %26418 = vmatpush3.bf16.msra.mxu1 %v26399_v29  ;;  %25731 = vmatprep.mubr.msk.f32.mxu1 %vm27662_vm0, %v27663_v1 }
0x2314   : > { %26419 = vmatprep.subr.bf16.mxu1 %v27661_v0  ;;  %v20862_v41 = vand.u32 4294901760, %v20861_v39 }
0x2316   : > { %v20863_v2 = vsub.f32 %v20861_v39, %v20862_v41 }
0x2317   : > { %26421 = vmatpush3.bf16.msra.mxu1 %v26402_v45 }
0x2318   : > { %26428 = vmatprep.subr.bf16.mxu1 %v27661_v0  ;;  %v20864_v3 = vand.u32 4294901760, %v20863_v2  ;;  %v26450_v2 = vpack.c.bf16 %v29778_v28, %v29776_v44  ;;  %v23162_v44 = vld [vmem:[%s30199_s7 + $0x70] sm:$0xff]  ;;  %v23163_v28 = vld [vmem:[%s30199_s7 + $0x78] sm:$0xff] }
0x231a   : > { %25732 = vmatmul.mubr.f32.vlgmr.msra.gmra.mrb[66].mxu1 %v20862_v41  ;;  %25699 = vmatmul.mubr.f32.vlgmr.msra.gmra.mrb[60].mxu0 %v20864_v3  ;;  %v26447_v41 = vpack.c.bf16 %v29774_v16, %v29772_v61  ;;  %v26462_v3 = vpack.c.bf16 %v21426_v54, %v21419_v53 }
0x231b   : > { %26412 = vmatpush3.bf16.msra.mxu0 %v26411_v38  ;;  %26430 = vmatpush3.bf16.msra.mxu1 %v26399_v29  ;;  %v29781_v29 = vpack.c.bf16 %v21333_v18, %v21330_v12  ;;  %v23160_v12 = vld [vmem:[%s30199_s7 + $0x60] sm:$0xff]  ;;  %v23161_v18 = vld [vmem:[%s30199_s7 + $0x68] sm:$0xff] }
0x231c   : > { %26413 = vmatprep.subr.bf16.mxu0 %v27661_v0  ;;  %26431 = vmatprep.subr.bf16.mxu1 %v27661_v0 }
0x231d   : > { %25720 = vmatprep.mubr.msk.f32.mxu0 %vm27662_vm0, %v27663_v1  ;;  %25753 = vmatprep.mubr.msk.f32.mxu1 %vm27662_vm0, %v27663_v1 }
0x231f   : > { %26415 = vmatpush3.bf16.msra.mxu0 %v26414_v51  ;;  %26433 = vmatpush3.bf16.msra.mxu1 %v26402_v45  ;;  %v21405_v45 = vand.u32 4294901760, %v29772_v61  ;;  %v21413_v51 = vsub.f32 %v29774_v16, %v21412_v46 }
0x2320   : > { %26422 = vmatprep.subr.bf16.mxu0 %v27661_v0  ;;  %26470 = vmatprep.subr.bf16.mxu1 %v27661_v0 }
0x2321   : > { %v21406_v48 = vsub.f32 %v29772_v61, %v21405_v45  ;;  %v21414_v52 = vand.u32 4294901760, %v21413_v51  ;;  %v26459_v38 = vpack.c.bf16 %v21412_v46, %v21405_v45  ;;  %v21845_v61 = vand.u32 4294901760, %v23161_v18 }
0x2322   : > { %25721 = vmatmul.mubr.f32.vlgmr.msra.gmra.mrb[62].mxu0 %v20861_v39  ;;  %25754 = vmatmul.mubr.f32.vlgmr.msra.gmra.mrb[68].mxu1 %v20860_v37  ;;  %v21851_v45 = vand.u32 4294901760, %v23163_v28 }
0x2323   : > { %26424 = vmatpush3.bf16.msra.mxu0 %v26423_v4  ;;  %25742 = vmatprep.mubr.msk.f32.mxu0 %vm27662_vm0, %v27663_v1  ;;  %v23156_v4 = vld [vmem:[%s30199_s7 + $0x40] sm:$0xff] }
0x2324   : > { %26425 = vmatprep.subr.bf16.mxu0 %v27661_v0  ;;  %25838 = vmatprep.mubr.msk.f32.mxu1 %vm27662_vm0, %v27663_v1  ;;  %v29899_v54 = vsub.f32 %v23163_v28, %v21851_v45 }
0x2327   : > { %26427 = vmatpush3.bf16.msra.mxu0 %v26426_v47  ;;  %v21407_v47 = vand.u32 4294901760, %v21406_v48 }
0x2328   : > { %26434 = vmatprep.subr.bf16.mxu0 %v27661_v0 }
0x2329   : > { %v26441_v32 = vpack.c.bf16 %v21414_v52, %v21407_v47  ;;  %v29894_v52 = vsub.f32 %v23161_v18, %v21845_v61 }
0x232a   : > { %25743 = vmatmul.mubr.f32.vlgmr.msra.gmra.mrb[64].mxu0 %v20860_v37  ;;  %v21428_v37 = vand.u32 4294901760, %v21427_v19 }
0x232b   : > { %25764 = vmatprep.mubr.msk.f32.mxu0 %vm27662_vm0, %v27663_v1  ;;  %26436 = vmatpush3.bf16.msra.mxu0 %v29770_v7 }
0x232c   : > { %26437 = vmatprep.subr.bf16.mxu0 %v27661_v0  ;;  %v26444_v39 = vpack.c.bf16 %v21428_v37, %v21421_v33 }
0x232f   : > { %26439 = vmatpush3.bf16.msra.mxu0 %v29781_v29 }
0x2330   : > { %26440 = vmatprep.subr.bf16.mxu0 %v27661_v0 }
0x23e5   : > { %v20957_v5 = vpop.f32.mrb[64].mxu1 }
0x23e6   : > { %v25711_v21 = vpop.f32.mrb[65].mxu1 }
0x23e7   : > { %v21830_v21 = vand.u32 4294901760, %v23156_v4 }
0x23ed   : > { %v21114_v9 = vpop.f32.mrb[66].mxu1  ;;  %v20866_v22 = vpop.f32.mrb[60].mxu0 }
0x23ee   : > { %v20867_v23 = vadd.f32 %v23154_v6, %v20866_v22  ;;  %v25733_v55 = vpop.f32.mrb[67].mxu1  ;;  %v25700_v56 = vpop.f32.mrb[61].mxu0  ;;  %v29806_v22 = vsub.f32 %v23156_v4, %v21830_v21 }
0x23f0   : > { %v20958_v57 = vadd.f32 %v20957_v5, %v20867_v23  ;;  %v23157_v5 = vld [vmem:[%s30199_s7 + $0x48] sm:$0xff] }
0x23f1   : > { %v21833_v6 = vand.u32 4294901760, %v23157_v5 }
0x23f3   : > { %v29808_v23 = vsub.f32 %v23157_v5, %v21833_v6 }
0x23f5   : > { %v21037_v58 = vpop.f32.mrb[62].mxu0  ;;  %v21272_v17 = vpop.f32.mrb[68].mxu1  ;;  %v21922_v50 = vand.u32 4294901760, %v29808_v23 }
0x23f6   : > { %v21038_v59 = vadd.f32 %v21037_v58, %v20958_v57  ;;  %v25722_v60 = vpop.f32.mrb[63].mxu0  ;;  %v25755_v62 = vpop.f32.mrb[69].mxu1 }
0x23f7   : > { %v21923_v33 = vsub.f32 %v29808_v23, %v21922_v50 }
0x23f8   : > { %v21115_v63 = vadd.f32 %v21114_v9, %v21038_v59  ;;  %v29804_v9 = vpack.c.bf16 %v21833_v6, %v21830_v21 }
0x23fa   : > { %26472 = vmatpush3.bf16.msra.mxu1 %v29804_v9 }
0x23fb   : > { %26473 = vmatprep.subr.bf16.mxu1 %v27661_v0 }
0x23fd   : > { %v21197_v24 = vpop.f32.mrb[64].mxu0 }
0x23fe   : > { %v21198_v49 = vadd.f32 %v21197_v24, %v21115_v63  ;;  %v25744_v25 = vpop.f32.mrb[65].mxu0  ;;  %v29815_v63 = vld [vmem:[%s30193_s3 + $0x4] sm:$0x7] }
0x23ff   : > { %v21300_v24 = vrot.slane %v29815_v63, %v28978_v30 }
0x2400   : > { %v21273_v26 = vadd.f32 %v21272_v17, %v21198_v49 }
0x2402   : > { %v21276_v35 = vadd.f32 %v21273_v26, %v29483_v20  ;;  %v29823_v26 = vld [vmem:[%s30194_s18 + $0x4] sm:$0x7] }
0x2404   : > { %v21277_v40 = vsel %vm862_vm1, %v21276_v35, 0.0 }
0x2405   : > { %21278 = vadd.xlane.f32.xlu1 %v21277_v40 }
0x2492   : > { %v21279_v36 = vpop.xlane.xlu1 %21278 }
0x2493   : > { %v21280_v42 = vmul.f32 0.03125, %v21279_v36 }
0x2495   : > { %v29765_v43 = vsub.f32 %v21276_v35, %v21280_v42  ;;  %v21305_v35 = vrot.slane %v29823_v26, %v28978_v30  ;;  %v23158_v30 = vld [vmem:[%s30199_s7 + $0x50] sm:$0xff] }
0x2496   : > { %v21836_v31 = vand.u32 4294901760, %v23158_v30 }
0x2497   : > { %v21282_v8 = vmul.f32 %v29765_v43, %v29765_v43 }
0x2498   : > { %v29888_v48 = vsub.f32 %v23158_v30, %v21836_v31 }
0x2499   : > { %v21283_v10 = vsel %vm862_vm1, %v21282_v8, 0.0 }
0x249a   : > { %21284 = vadd.xlane.f32.xlu0 %v21283_v10 }
0x2527   : > { %v21285_v55 = vpop.xlane.xlu0 %21284 }
0x2528   : > { %v21286_v56 = vmul.f32 0.03125, %v21285_v55  ;;  %v21950_v55 = vand.u32 4294901760, %v29894_v52 }
0x252a   : > { %27235 = vrsqrt.f32 %v21286_v56  ;;  %vm21289_vm15 = vcmp.eq.f32.partialorder %v21286_v56, inf  ;;  %v21292_v17 = vand.u32 2147483648, %v21286_v56  ;;  %vm21291_vm2 = vcmp.eq.f32.partialorder %v21286_v56, 0.0 }
0x2534   : > { %v27236_v57 = vpop.eup %27235 }
0x2535   : > { %v21288_v58 = vmul.f32 %v27236_v57, %v21286_v56 }
0x2537   : > { %v21290_v59 = vsel %vm21289_vm15, %v21286_v56, %v21288_v58  ;;  %v21951_v58 = vsub.f32 %v29894_v52, %v21950_v55 }
0x2538   : > { %v21293_v60 = vsel %vm21291_vm2, %v21292_v17, %v21290_v59 }
0x2539   : > { %v21294_v62 = vadd.f32 1e-10, %v21293_v60  ;;  %v21952_v59 = vand.u32 4294901760, %v21951_v58 }
0x253b   : > { %27237 = vrcp.f32 %v21294_v62  ;;  %v21964_v62 = vand.u32 4294901760, %v29899_v54 }
0x2545   : > { %v27238_v49 = vpop.eup %27237 }
0x2546   : > { %v21296_v25 = vmul.f32 %v27238_v49, %v29765_v43  ;;  %v23159_v43 = vld [vmem:[%s30199_s7 + $0x58] sm:$0xff] }
0x2547   : > { %v21839_v34 = vand.u32 4294901760, %v23159_v43 }
0x2548   : > { %v21301_v40 = vmul.f32 %v21300_v24, %v21296_v25  ;;  %v21965_v25 = vsub.f32 %v29899_v54, %v21964_v62 }
0x2549   : > { %v29862_v15 = vpack.c.bf16 %v21839_v34, %v21836_v31  ;;  %v29890_v51 = vsub.f32 %v23159_v43, %v21839_v34  ;;  %v23155_v31 = vld [vmem:[#allocation16 + $0x1] ss:$0 sm:$0xff] }
0x254a   : > { %v21306_v36 = vadd.f32 %v21305_v35, %v21301_v40  ;;  %v21966_v40 = vand.u32 4294901760, %v21965_v25 }
0x254b   : > { %26475 = vmatpush3.bf16.msra.mxu1 %v29862_v15 }
0x254c   : > { %v21321_v42 = vsel %vm862_vm1, %v21306_v36, 0  ;;  %26476 = vmatprep.subr.bf16.mxu1 %v27661_v0 }
0x254d   : > { %v21392_v8 = vand.u32 4294901760, %v21321_v42 }
0x254f   : > { %v21393_v10 = vsub.f32 %v21321_v42, %v21392_v8  ;;  %v26495_v42 = vpack.c.bf16 %v29808_v23, %v29806_v22 }
0x2551   : > { %v21394_v11 = vand.u32 4294901760, %v21393_v10 }
0x2553   : > { %v21395_v13 = vsub.f32 %v21393_v10, %v21394_v11 }
0x2555   : > { %v21396_v14 = vand.u32 4294901760, %v21395_v13 }
0x2557   : > { %25765 = vmatmul.mubr.f32.vlgmr.msra.gmra.mrb[66].mxu0 %v21396_v14 }
0x2558   : > { %26442 = vmatpush3.bf16.msra.mxu0 %v26441_v32  ;;  %25775 = vmatprep.mubr.msk.f32.mxu0 %vm27662_vm0, %v27663_v1  ;;  %v21915_v32 = vand.u32 4294901760, %v29806_v22 }
0x2559   : > { %26443 = vmatprep.subr.bf16.mxu0 %v27661_v0 }
0x255a   : > { %v21916_v19 = vsub.f32 %v29806_v22, %v21915_v32  ;;  %v26519_v13 = vpack.c.bf16 %v21922_v50, %v21915_v32 }
0x255c   : > { %26445 = vmatpush3.bf16.msra.mxu0 %v26444_v39  ;;  %v21917_v37 = vand.u32 4294901760, %v21916_v19  ;;  %v21924_v39 = vand.u32 4294901760, %v21923_v33 }
0x255d   : > { %26446 = vmatprep.subr.bf16.mxu0 %v27661_v0 }
0x255f   : > { %25776 = vmatmul.mubr.f32.vlgmr.msra.gmra.mrb[66].mxu0 %v21392_v8 }
0x2560   : > { %26448 = vmatpush3.bf16.msra.mxu0 %v26447_v41  ;;  %25786 = vmatprep.mubr.msk.f32.mxu0 %vm27662_vm0, %v27663_v1  ;;  %v21929_v41 = vand.u32 4294901760, %v29888_v48 }
0x2561   : > { %26449 = vmatprep.subr.bf16.mxu0 %v27661_v0 }
0x2564   : > { %26451 = vmatpush3.bf16.msra.mxu0 %v26450_v2  ;;  %v21936_v2 = vand.u32 4294901760, %v29890_v51 }
0x2565   : > { %26452 = vmatprep.subr.bf16.mxu0 %v27661_v0 }
0x2566   : > { %v21937_v4 = vsub.f32 %v29890_v51, %v21936_v2  ;;  %v26522_v14 = vpack.c.bf16 %v21936_v2, %v21929_v41 }
0x2567   : > { %25787 = vmatmul.mubr.f32.vlgmr.msra.gmra.mrb[66].mxu0 %v21393_v10 }
0x2568   : > { %26454 = vmatpush3.bf16.msra.mxu0 %v29770_v7  ;;  %25797 = vmatprep.mubr.msk.f32.mxu0 %vm27662_vm0, %v27663_v1  ;;  %v21938_v21 = vand.u32 4294901760, %v21937_v4 }
0x2569   : > { %26455 = vmatprep.subr.bf16.mxu0 %v27661_v0 }
0x256c   : > { %26457 = vmatpush3.bf16.msra.mxu0 %v29781_v29 }
0x256d   : > { %26458 = vmatprep.subr.bf16.mxu0 %v27661_v0 }
0x256f   : > { %25798 = vmatmul.mubr.f32.vlgmr.msra.gmra.mrb[66].mxu0 %v21394_v11 }
0x2570   : > { %26460 = vmatpush3.bf16.msra.mxu0 %v26459_v38  ;;  %25808 = vmatprep.mubr.msk.f32.mxu0 %vm27662_vm0, %v27663_v1  ;;  %v26483_v38 = vpack.c.bf16 %v21924_v39, %v21917_v37 }
0x2571   : > { %26461 = vmatprep.subr.bf16.mxu0 %v27661_v0 }
0x2574   : > { %26463 = vmatpush3.bf16.msra.mxu0 %v26462_v3  ;;  %v21930_v3 = vsub.f32 %v29888_v48, %v21929_v41 }
0x2575   : > { %26464 = vmatprep.subr.bf16.mxu0 %v27661_v0 }
0x2576   : > { %v21931_v5 = vand.u32 4294901760, %v21930_v3 }
0x2577   : > { %25809 = vmatmul.mubr.f32.vlgmr.msra.gmra.mrb[66].mxu0 %v21392_v8 }
0x2578   : > { %26466 = vmatpush3.bf16.msra.mxu0 %v29770_v7  ;;  %25819 = vmatprep.mubr.msk.f32.mxu0 %vm27662_vm0, %v27663_v1  ;;  %v21842_v7 = vand.u32 4294901760, %v23160_v12  ;;  %v26486_v56 = vpack.c.bf16 %v21938_v21, %v21931_v5 }
0x2579   : > { %26467 = vmatprep.subr.bf16.mxu0 %v27661_v0 }
0x257a   : > { %v29874_v16 = vpack.c.bf16 %v21845_v61, %v21842_v7  ;;  %v29892_v47 = vsub.f32 %v23160_v12, %v21842_v7 }
0x257c   : > { %26469 = vmatpush3.bf16.msra.mxu0 %v29781_v29  ;;  %26478 = vmatpush3.bf16.msra.mxu1 %v29874_v16  ;;  %v21848_v29 = vand.u32 4294901760, %v23162_v44  ;;  %v21943_v6 = vand.u32 4294901760, %v29892_v47  ;;  %v26501_v10 = vpack.c.bf16 %v29894_v52, %v29892_v47 }
0x257d   : > { %26506 = vmatprep.subr.bf16.mxu0 %v27661_v0  ;;  %26479 = vmatprep.subr.bf16.mxu1 %v27661_v0 }
0x257e   : > { %v29886_v46 = vpack.c.bf16 %v21851_v45, %v21848_v29  ;;  %v29897_v53 = vsub.f32 %v23162_v44, %v21848_v29  ;;  %v21944_v57 = vsub.f32 %v29892_v47, %v21943_v6  ;;  %v26525_v30 = vpack.c.bf16 %v21950_v55, %v21943_v6 }
0x257f   : > { %25820 = vmatmul.mubr.f32.vlgmr.msra.gmra.mrb[66].mxu0 %v21392_v8  ;;  %v26498_v8 = vpack.c.bf16 %v29890_v51, %v29888_v48 }
0x2580   : > { %26508 = vmatpush3.bf16.msra.mxu0 %v29804_v9  ;;  %25895 = vmatprep.mubr.msk.f32.mxu0 %vm27662_vm0, %v27663_v1  ;;  %v21945_v17 = vand.u32 4294901760, %v21944_v57  ;;  %v21957_v60 = vand.u32 4294901760, %v29897_v53  ;;  %v26504_v11 = vpack.c.bf16 %v29899_v54, %v29897_v53  ;;  %v22398_v57 = vld [vmem:[%s30210_s6 + $0x8] sm:$0xff] }
0x2581   : > { %26509 = vmatprep.subr.bf16.mxu0 %v27661_v0  ;;  %26481 = vmatpush3.bf16.msra.mxu1 %v29886_v46 }
0x2582   : > { %26482 = vmatprep.subr.bf16.mxu1 %v27661_v0  ;;  %v26489_v24 = vpack.c.bf16 %v21952_v59, %v21945_v17  ;;  %v21958_v49 = vsub.f32 %v29897_v53, %v21957_v60  ;;  %v26528_v43 = vpack.c.bf16 %v21964_v62, %v21957_v60  ;;  %v22415_v17 = vand.u32 4294901760, %v22398_v57  ;;  %v22400_v59 = vld [vmem:[%s30210_s6 + $0x18] sm:$0xff] }
0x2583   : > { %v22421_v62 = vand.u32 4294901760, %v22400_v59 }
0x2584   : > { %26511 = vmatpush3.bf16.msra.mxu0 %v29862_v15  ;;  %v21959_v35 = vand.u32 4294901760, %v21958_v49  ;;  %v22499_v25 = vsub.f32 %v22398_v57, %v22415_v17 }
0x2585   : > { %26512 = vmatprep.subr.bf16.mxu0 %v27661_v0 }
0x2586   : > { %v26492_v36 = vpack.c.bf16 %v21966_v40, %v21959_v35  ;;  %v22513_v40 = vsub.f32 %v22400_v59, %v22421_v62 }
0x2588   : > { %26514 = vmatpush3.bf16.msra.mxu0 %v29874_v16 }
0x2589   : > { %26515 = vmatprep.subr.bf16.mxu0 %v27661_v0 }
0x258c   : > { %26517 = vmatpush3.bf16.msra.mxu0 %v29886_v46 }
0x258d   : > { %26530 = vmatprep.subr.bf16.mxu0 %v27661_v0 }
0x2652   : > { %v21804_v34 = vpop.f32.mrb[66].mxu0 }
0x2653   : > { %v26584_v12 = vadd.f32 %v23155_v31, %v21804_v34  ;;  %v25821_v18 = vpop.f32.mrb[67].mxu0 }
0x2655   : > { %v21808_v7 = vmax.f32 %v26584_v12, 0.0 }
0x2657   : > { %v21827_v22 = vsel %vm11297_vm10, %v21808_v7, 0 }
0x2658   : > { %v21902_v23 = vand.u32 4294901760, %v21827_v22 }
0x265a   : > { %v21903_v61 = vsub.f32 %v21827_v22, %v21902_v23 }
0x265c   : > { %v21904_v44 = vand.u32 4294901760, %v21903_v61 }
0x265e   : > { %25896 = vmatmul.mubr.f32.vlgmr.msra.gmra.mrb[68].mxu0 %v21904_v44  ;;  %v21905_v28 = vsub.f32 %v21903_v61, %v21904_v44 }
0x265f   : > { %26532 = vmatpush3.bf16.msra.mxu0 %v29804_v9  ;;  %25933 = vmatprep.mubr.msk.f32.mxu0 %vm27662_vm0, %v27663_v1 }
0x2660   : > { %26533 = vmatprep.subr.bf16.mxu0 %v27661_v0  ;;  %v21906_v29 = vand.u32 4294901760, %v21905_v28 }
0x2662   : > { %25839 = vmatmul.mubr.f32.vlgmr.msra.gmra.mrb[70].mxu1 %v21906_v29 }
0x2663   : > { %26484 = vmatpush3.bf16.msra.mxu1 %v26483_v38  ;;  %26535 = vmatpush3.bf16.msra.mxu0 %v29862_v15 }
0x2664   : > { %26485 = vmatprep.subr.bf16.mxu1 %v27661_v0  ;;  %26536 = vmatprep.subr.bf16.mxu0 %v27661_v0 }
0x2665   : > { %25857 = vmatprep.mubr.msk.f32.mxu1 %vm27662_vm0, %v27663_v1 }
0x2667   : > { %26487 = vmatpush3.bf16.msra.mxu1 %v26486_v56  ;;  %26538 = vmatpush3.bf16.msra.mxu0 %v29874_v16  ;;  %v22397_v56 = vld [vmem:[%s30210_s6] sm:$0xff] }
0x2668   : > { %26488 = vmatprep.subr.bf16.mxu1 %v27661_v0  ;;  %26539 = vmatprep.subr.bf16.mxu0 %v27661_v0  ;;  %v22412_v58 = vand.u32 4294901760, %v22397_v56 }
0x266a   : > { %v22492_v49 = vsub.f32 %v22397_v56, %v22412_v58 }
0x266b   : > { %26490 = vmatpush3.bf16.msra.mxu1 %v26489_v24  ;;  %26541 = vmatpush3.bf16.msra.mxu0 %v29886_v46  ;;  %v23164_v46 = vld [vmem:[#allocation17 + $0x1] ss:$0 sm:$0xff]  ;;  %v29973_v24 = vpack.c.bf16 %v22415_v17, %v22412_v58 }
0x266c   : > { %26491 = vmatprep.subr.bf16.mxu1 %v27661_v0 }
0x266e   : > { %25934 = vmatmul.mubr.f32.vlgmr.msra.gmra.mrb[70].mxu0 %v21902_v23 }
0x266f   : > { %26493 = vmatpush3.bf16.msra.mxu1 %v26492_v36 }
0x2670   : > { %26494 = vmatprep.subr.bf16.mxu1 %v27661_v0 }
0x2672   : > { %25858 = vmatmul.mubr.f32.vlgmr.msra.gmra.mrb[72].mxu1 %v21902_v23 }
0x2673   : > { %26496 = vmatpush3.bf16.msra.mxu1 %v26495_v42  ;;  %25876 = vmatprep.mubr.msk.f32.mxu1 %vm27662_vm0, %v27663_v1  ;;  %v22493_v42 = vand.u32 4294901760, %v22492_v49 }
0x2674   : > { %26497 = vmatprep.subr.bf16.mxu1 %v27661_v0 }
0x2677   : > { %26499 = vmatpush3.bf16.msra.mxu1 %v26498_v8  ;;  %v22500_v8 = vand.u32 4294901760, %v22499_v25 }
0x2678   : > { %26500 = vmatprep.subr.bf16.mxu1 %v27661_v0 }
0x2679   : > { %v26567_v44 = vpack.c.bf16 %v22500_v8, %v22493_v42 }
0x267b   : > { %26502 = vmatpush3.bf16.msra.mxu1 %v26501_v10  ;;  %v22494_v10 = vsub.f32 %v22492_v49, %v22493_v42 }
0x267c   : > { %26503 = vmatprep.subr.bf16.mxu1 %v27661_v0 }
0x267f   : > { %26505 = vmatpush3.bf16.msra.mxu1 %v26504_v11  ;;  %v22501_v11 = vsub.f32 %v22499_v25, %v22500_v8 }
0x2680   : > { %26518 = vmatprep.subr.bf16.mxu1 %v27661_v0 }
0x2682   : > { %25877 = vmatmul.mubr.f32.vlgmr.msra.gmra.mrb[74].mxu1 %v21903_v61 }
0x2683   : > { %26520 = vmatpush3.bf16.msra.mxu1 %v26519_v13  ;;  %25914 = vmatprep.mubr.msk.f32.mxu1 %vm27662_vm0, %v27663_v1  ;;  %v22495_v13 = vand.u32 4294901760, %v22494_v10 }
0x2684   : > { %26521 = vmatprep.subr.bf16.mxu1 %v27661_v0 }
0x2687   : > { %26523 = vmatpush3.bf16.msra.mxu1 %v26522_v14  ;;  %v22502_v14 = vand.u32 4294901760, %v22501_v11 }
0x2688   : > { %26524 = vmatprep.subr.bf16.mxu1 %v27661_v0 }
0x2689   : > { %v26549_v31 = vpack.c.bf16 %v22502_v14, %v22495_v13 }
0x268b   : > { %26526 = vmatpush3.bf16.msra.mxu1 %v26525_v30 }
0x268c   : > { %26527 = vmatprep.subr.bf16.mxu1 %v27661_v0 }
0x268f   : > { %26529 = vmatpush3.bf16.msra.mxu1 %v26528_v43  ;;  %v22514_v43 = vand.u32 4294901760, %v22513_v40 }
0x2690   : > { %26542 = vmatprep.subr.bf16.mxu1 %v27661_v0 }
0x2691   : > { %v22515_v12 = vsub.f32 %v22513_v40, %v22514_v43 }
0x2692   : > { %25915 = vmatmul.mubr.f32.vlgmr.msra.gmra.mrb[76].mxu1 %v21902_v23  ;;  %v26555_v23 = vpack.c.bf16 %v22499_v25, %v22492_v49 }
0x2693   : > { %25944 = vmatprep.mubr.msk.f32.mxu1 %vm27662_vm0, %v27663_v1  ;;  %26544 = vmatpush3.bf16.msra.mxu1 %v29973_v24  ;;  %v22516_v7 = vand.u32 4294901760, %v22515_v12 }
0x2694   : > { %26545 = vmatprep.subr.bf16.mxu1 %v27661_v0 }
0x2731   : > { %v22188_v9 = vpop.f32.mrb[68].mxu0 }
0x2732   : > { %v25897_v15 = vpop.f32.mrb[69].mxu0 }
0x2735   : > { %v21908_v16 = vpop.f32.mrb[70].mxu1 }
0x2736   : > { %v25840_v45 = vpop.f32.mrb[71].mxu1  ;;  %v21909_v47 = vadd.f32 %v23164_v46, %v21908_v16 }
0x2741   : > { %v22362_v48 = vpop.f32.mrb[70].mxu0 }
0x2742   : > { %v25935_v51 = vpop.f32.mrb[71].mxu0 }
0x2745   : > { %v22019_v52 = vpop.f32.mrb[72].mxu1 }
0x2746   : > { %v22020_v53 = vadd.f32 %v22019_v52, %v21909_v47  ;;  %v25859_v54 = vpop.f32.mrb[73].mxu1  ;;  %v22390_v47 = vrot.slane %v29815_v63, %v29138_v27 }
0x2747   : > { %v22395_v54 = vrot.slane %v29823_v26, %v29138_v27  ;;  %v23165_v27 = vld [vmem:[#allocation19] ss:$0 sm:$0xff] }
0x2755   : > { %v22107_v32 = vpop.f32.mrb[74].mxu1 }
0x2756   : > { %v22108_v50 = vadd.f32 %v22107_v32, %v22020_v53  ;;  %v25878_v19 = vpop.f32.mrb[75].mxu1 }
0x2758   : > { %v22189_v33 = vadd.f32 %v22188_v9, %v22108_v50 }
0x2765   : > { %v22283_v37 = vpop.f32.mrb[76].mxu1 }
0x2766   : > { %v22284_v39 = vadd.f32 %v22283_v37, %v22189_v33  ;;  %v25916_v41 = vpop.f32.mrb[77].mxu1 }
0x2768   : > { %v22363_v2 = vadd.f32 %v22362_v48, %v22284_v39 }
0x276a   : > { %v22366_v38 = vadd.f32 %v22363_v2, %v29483_v20  ;;  %v22399_v20 = vld [vmem:[%s30210_s6 + $0x10] sm:$0xff] }
0x276b   : > { %v22418_v60 = vand.u32 4294901760, %v22399_v20 }
0x276c   : > { %v22367_v3 = vsel %vm862_vm1, %v22366_v38, 0.0 }
0x276d   : > { %22368 = vadd.xlane.f32.xlu1 %v22367_v3  ;;  %v22506_v35 = vsub.f32 %v22399_v20, %v22418_v60  ;;  %v29976_v36 = vpack.c.bf16 %v22421_v62, %v22418_v60 }
0x276f   : > { %26547 = vmatpush3.bf16.msra.mxu1 %v29976_v36  ;;  %v22507_v30 = vand.u32 4294901760, %v22506_v35  ;;  %v26558_v61 = vpack.c.bf16 %v22513_v40, %v22506_v35 }
0x2770   : > { %26548 = vmatprep.subr.bf16.mxu1 %v27661_v0 }
0x2771   : > { %v22508_v34 = vsub.f32 %v22506_v35, %v22507_v30  ;;  %v26570_v28 = vpack.c.bf16 %v22514_v43, %v22507_v30 }
0x2773   : > { %v22509_v18 = vand.u32 4294901760, %v22508_v34 }
0x2775   : > { %v26552_v22 = vpack.c.bf16 %v22516_v7, %v22509_v18 }
0x27fa   : > { %v22369_v4 = vpop.xlane.xlu1 %22368 }
0x27fb   : > { %v22370_v5 = vmul.f32 0.03125, %v22369_v4 }
0x27fd   : > { %v22371_v21 = vsub.f32 %v22366_v38, %v22370_v5 }
0x27ff   : > { %v22372_v6 = vmul.f32 %v22371_v21, %v22371_v21 }
0x2801   : > { %v22373_v55 = vsel %vm862_vm1, %v22372_v6, 0.0 }
0x2802   : > { %22374 = vadd.xlane.f32.xlu1 %v22373_v55 }
0x288f   : > { %v22375_v29 = vpop.xlane.xlu1 %22374 }
0x2890   : > { %v22376_v9 = vmul.f32 0.03125, %v22375_v29 }
0x2892   : > { %27239 = vrsqrt.f32 %v22376_v9  ;;  %vm22379_vm3 = vcmp.eq.f32.partialorder %v22376_v9, inf  ;;  %v22382_v45 = vand.u32 2147483648, %v22376_v9  ;;  %vm22381_vm4 = vcmp.eq.f32.partialorder %v22376_v9, 0.0 }
0x289c   : > { %v27240_v15 = vpop.eup %27239 }
0x289d   : > { %v22378_v16 = vmul.f32 %v27240_v15, %v22376_v9 }
0x289f   : > { %v22380_v46 = vsel %vm22379_vm3, %v22376_v9, %v22378_v16 }
0x28a0   : > { %v22383_v48 = vsel %vm22381_vm4, %v22382_v45, %v22380_v46 }
0x28a1   : > { %v22384_v51 = vadd.f32 1e-10, %v22383_v48 }
0x28a3   : > { %27241 = vrcp.f32 %v22384_v51 }
0x28ad   : > { %v27242_v52 = vpop.eup %27241 }
0x28ae   : > { %v22386_v53 = vmul.f32 %v27242_v52, %v22371_v21 }
0x28b0   : > { %v22391_v32 = vmul.f32 %v22390_v47, %v22386_v53 }
0x28b2   : > { %v22396_v50 = vadd.f32 %v22395_v54, %v22391_v32 }
0x28b4   : > { %v22409_v19 = vsel %vm862_vm1, %v22396_v50, 0 }
0x28b5   : > { %v22480_v33 = vand.u32 4294901760, %v22409_v19 }
0x28b7   : > { %v22481_v37 = vsub.f32 %v22409_v19, %v22480_v33 }
0x28b9   : > { %v22482_v39 = vand.u32 4294901760, %v22481_v37 }
0x28bb   : > { %v22483_v41 = vsub.f32 %v22481_v37, %v22482_v39 }
0x28bd   : > { %v22484_v2 = vand.u32 4294901760, %v22483_v41 }
0x28bf   : > { %25945 = vmatmul.mubr.f32.vlgmr.msra.gmra.mrb[78].mxu1 %v22484_v2 }
0x28c0   : > { %26550 = vmatpush3.bf16.msra.mxu1 %v26549_v31  ;;  %25955 = vmatprep.mubr.msk.f32.mxu1 %vm27662_vm0, %v27663_v1 }
0x28c1   : > { %26551 = vmatprep.subr.bf16.mxu1 %v27661_v0 }
0x28c4   : > { %26553 = vmatpush3.bf16.msra.mxu1 %v26552_v22 }
0x28c5   : > { %26554 = vmatprep.subr.bf16.mxu1 %v27661_v0 }
0x28c7   : > { %25956 = vmatmul.mubr.f32.vlgmr.msra.gmra.mrb[78].mxu1 %v22480_v33 }
0x28c8   : > { %26556 = vmatpush3.bf16.msra.mxu1 %v26555_v23  ;;  %25966 = vmatprep.mubr.msk.f32.mxu1 %vm27662_vm0, %v27663_v1 }
0x28c9   : > { %26557 = vmatprep.subr.bf16.mxu1 %v27661_v0 }
0x28cc   : > { %26559 = vmatpush3.bf16.msra.mxu1 %v26558_v61 }
0x28cd   : > { %26560 = vmatprep.subr.bf16.mxu1 %v27661_v0 }
0x28cf   : > { %25967 = vmatmul.mubr.f32.vlgmr.msra.gmra.mrb[78].mxu1 %v22481_v37 }
0x28d0   : > { %26562 = vmatpush3.bf16.msra.mxu1 %v29973_v24  ;;  %25977 = vmatprep.mubr.msk.f32.mxu1 %vm27662_vm0, %v27663_v1 }
0x28d1   : > { %26563 = vmatprep.subr.bf16.mxu1 %v27661_v0 }
0x28d4   : > { %26565 = vmatpush3.bf16.msra.mxu1 %v29976_v36 }
0x28d5   : > { %26566 = vmatprep.subr.bf16.mxu1 %v27661_v0 }
0x28d7   : > { %25978 = vmatmul.mubr.f32.vlgmr.msra.gmra.mrb[78].mxu1 %v22482_v39 }
0x28d8   : > { %26568 = vmatpush3.bf16.msra.mxu1 %v26567_v44  ;;  %25988 = vmatprep.mubr.msk.f32.mxu1 %vm27662_vm0, %v27663_v1 }
0x28d9   : > { %26569 = vmatprep.subr.bf16.mxu1 %v27661_v0 }
0x28dc   : > { %26571 = vmatpush3.bf16.msra.mxu1 %v26570_v28 }
0x28dd   : > { %26572 = vmatprep.subr.bf16.mxu1 %v27661_v0 }
0x28df   : > { %25989 = vmatmul.mubr.f32.vlgmr.msra.gmra.mrb[78].mxu1 %v22480_v33 }
0x28e0   : > { %26574 = vmatpush3.bf16.msra.mxu1 %v29973_v24  ;;  %25999 = vmatprep.mubr.msk.f32.mxu1 %vm27662_vm0, %v27663_v1 }
0x28e1   : > { %26575 = vmatprep.subr.bf16.mxu1 %v27661_v0 }
0x28e4   : > { %26577 = vmatpush3.bf16.msra.mxu1 %v29976_v36 }
0x28e7   : > { %26000 = vmatmul.mubr.f32.vlgmr.msra.gmra.mrb[78].mxu1 %v22480_v33 }
0x29ba   : > { %v22892_v63 = vpop.f32.mrb[78].mxu1 }
0x29bb   : > { %v26585_v26 = vadd.f32 %v23165_v27, %v22892_v63  ;;  %v26001_v38 = vpop.f32.mrb[79].mxu1 }
0x29bd   : > { %22896 = vst [vmem:[%s838_s15] sm:$0xff] %v26585_v26 }
0x29be   : > { %27571 = shalt.err (!%p27568_p5)
}
0x29bf   : > { %s27572_s17 = scalar_lea.hbm %s30015_s12, 128  ;;  %s27576_s20 = scalar_lea.hbm %s30212_s8, 256 }
0x29c0   : > { %p27573_p7 = scmp.ne.s32.totalorder %s30015_s12, %s27572_s17  ;;  %p27577_p12 = scmp.lt.u32.totalorder %s30015_s12, %s30212_s8 }
0x29c1   : > { %p27578_p13 = scmp.lt.u32.totalorder %s27576_s20, %s27572_s17  ;;  %p27580_p3 = scmp.lt.u32.totalorder %s27572_s17, %s30015_s12 }
0x29c2   : > { %p27574_p6 = pnand %p27573_p7, %p30213_p2 }
0x29c3   : > { %p27579_p1 = por %p27578_p13, %p27577_p12 }
0x29c4   : > { %p27575_p9 = pneg %p27574_p6 }
0x29c5   : > { %p27581_p0 = por %p27580_p3, %p27579_p1 }
0x29c7   : > { %p27582_p4 = pnand %p27581_p0, %p27575_p9 }
0x29c9   : > { %27585 = shalt.err (!%p27582_p4)
}
0x29ca   : > { %27028 = dma.vmem_to_hbm [thread:$0]  (%p30213_p2), %s30017_s0, 128, %s30015_s12, %s22898_s14  }
0x29cb PF: > { %s22923_s15 = sand.u32 1, %s27632_s2   ;;  %p30214_p10 = scmp.ne.s32.totalorder %s30172_s23, 0 }
0x29cc   : > { %p30215_p11 = scmp.ge.s32.totalorder %s27644_s27, 2  ;;  %s22924_s10 = scalar_lea.sflag [#allocation4], %s22923_s15 }
0x29ce   : > { %p27066_p8 = pnand %p30215_p11, %p30214_p10 }
0x29d0   : > { %27627 = dma.done.wait (!%p27066_p8), %s22924_s10, 128  }
0x29d1   : > { %27629 = vsyncadd (!%p27066_p8), %s22924_s10, 4294967168  ;;  %p39_p5 = scmp.ge.s32.totalorder %s28056_s5, 4   ;;  %s30216_s2 = smov %s27636_s25 }
0x29d2   : > { %s30217_s25 = smov %s27640_s26  ;;  %s30218_s26 = smov %s28067_s19 }
0x29d3   : > { %s30219_s27 = smov %s28056_s5  ;;  %41 = sbr.rel (!%p39_p5) target bundleno = 33 (0x21), region = 209 }
0x29da   :  { %22929 = vsyncpa [#allocation3], 1 }
0x29db   :  { %22931 = vsyncpa [#allocation3 + $0x1], 1 }
0x29dc   :  { %22932 = vsyncpa [#allocation6], 1 }
0x29dd   :  { %22933 = vsyncpa [#allocation9], 1 }
0x29de   :  { %22934 = vsyncpa [#allocation12], 1 }
0x29df   :  { %22935 = vsyncpa [#allocation15], 1 }
0x29e0   :  { %22936 = vsyncpa [#allocation18], 1 }
0x29e1   :  { %22937 = vsyncpa [#allocation4], 1 }
0x29e2   :  { %22939 = vsyncpa [#allocation4 + $0x1], 1 }

</bundles_post_ra>
